<compile_context>
chip_gen: v7x
topology: tpu7x:2x2x1
jax: 0.10.0
libtpu: 0.0.40
codegen_flags: <defaults>
</compile_context>

<pallas_src>
import functools

import numpy as np
import jax
import jax.numpy as jnp
from jax import lax
from jax.experimental import pallas as pl
from jax.experimental.pallas import tpu as pltpu

MAX_SAMPLE_NUM = 201
OUTPUT_DIM = 40
BN_EPS = 1e-5

N_GEN = MAX_SAMPLE_NUM * OUTPUT_DIM               # 8040
MAIN_COUNT = MAX_SAMPLE_NUM * (OUTPUT_DIM - 4)    # 7236 non-sigmoid columns
TN_GEN = 4096                                     # GenPath N-tile (grid of 2)
N_GEN_PAD = 8192

TERRAIN_LEN = 128          # featW=41 hardcoded in the reference => terrain length 128
GROUPS = 48                # per-batch W-position row stride (47 valid + 1 pad, mult of 8)
FLAT_K = GROUPS * 64       # 3072 lanes into the sf Linear (valid: 41*64 = 2624)
BB = 4                     # batches per grid step of the features kernel


# ------------------------------ small helpers ------------------------------ #
def _round_up(x, m):
    return (x + m - 1) // m * m


def _pad_to(a, axis, size):
    pad = size - a.shape[axis]
    if pad == 0:
        return a
    widths = [(0, 0)] * a.ndim
    widths[axis] = (0, pad)
    return jnp.pad(a, widths)


def _mish(y):
    # x * tanh(softplus(x)) == x * (1 - 2/((1+e^x)^2 + 1))
    # one EUP exp + one approx reciprocal; mish(0) == 0 exactly (keeps zero pads zero).
    e = jnp.exp(y)
    t = 1.0 + e
    return y * (1.0 - 2.0 * pl.reciprocal(t * t + 1.0, approx=True))


def _bn_fold(bias, bn):
    gamma, beta, mean, var = bn
    scale = gamma / jnp.sqrt(var + BN_EPS)
    shift = (bias - mean) * scale + beta
    return scale, shift


# ------------------------------ Pallas kernels ------------------------------ #
def _features_kernel(xin_ref, wc_ref, w1_ref, w2_ref, w3_ref, w4_ref, sh_ref, o_ref):
    """Stage-1 convs + full StateFeatures conv stack for one block of BB batches."""
    wc = wc_ref[...]
    # Stage 1 (ConvReal/ConvBin/ConvEnv + BN + mish): one 16-wide matmul per W-phase q.
    # Row (q, b, j) of xin encodes image position h = 3j + q; indicator columns carry
    # the per-conv BN shift, so all-zero (padding) rows stay exactly zero.
    s = [_mish(jnp.dot(xin_ref[q], wc, preferred_element_type=jnp.float32))
         for q in range(3)]                                           # 3 x (R, 24)

    # Conv1 3x3 stride 3 (+BN+mish): one banded matmul per phase, summed.
    acc = jnp.dot(s[0], w1_ref[0], preferred_element_type=jnp.float32)
    acc = acc + jnp.dot(s[1], w1_ref[1], preferred_element_type=jnp.float32)
    acc = acc + jnp.dot(s[2], w1_ref[2], preferred_element_type=jnp.float32)
    a = _mish(acc + sh_ref[0:1, 0:8])                                 # (R, 8)

    def conv3x3(x, w_ref, sh_row):
        # stride-1 3x3 conv in (rows = W-pos, lanes = H-pos x chan) layout:
        # one banded matmul per W-phase q + statically shifted row adds.
        rows = x.shape[0]
        out = None
        for q in range(3):
            y = jnp.dot(x, w_ref[q], preferred_element_type=jnp.float32)
            y = y[q:rows - 2 + q, :]
            out = y if out is None else out + y
        return _mish(out + sh_row)

    a = conv3x3(a, w2_ref, sh_ref[1:2, 0:48])                         # (R-2, 48)
    a = conv3x3(a, w3_ref, sh_ref[2:3, 0:64])                         # (R-4, 64)
    a = conv3x3(a, w4_ref, sh_ref[3:4, 0:64])                         # (R-6, 64)

    pad = o_ref.shape[0] - a.shape[0]
    a = jnp.concatenate([a, jnp.zeros((pad, a.shape[1]), jnp.float32)], axis=0)
    o_ref[...] = a.astype(o_ref.dtype)


def _dense_tail_kernel(x_ref, wsf_ref, w1_ref, w2_ref, w3_ref, sh_ref, wg_ref, sg_ref,
                       o_ref, *, tn, main_count):
    """sf Linear -> DenseNet 64/128/256 -> GenPath tile (+ sigmoid on tail columns).

    The cheap feature chain is recomputed per N-tile so grid steps are independent
    (megacore-parallel); only the GenPath weight tile changes per step.
    """
    f = _mish(jnp.dot(x_ref[...], wsf_ref[...],
                      preferred_element_type=jnp.float32) + sh_ref[:, 0:128])
    d = _mish(jnp.dot(f.astype(jnp.bfloat16), w1_ref[...],
                      preferred_element_type=jnp.float32) + sh_ref[:, 128:256])
    d = _mish(jnp.dot(d.astype(jnp.bfloat16), w2_ref[...],
                      preferred_element_type=jnp.float32) + sh_ref[:, 256:384])
    d = _mish(jnp.dot(d.astype(jnp.bfloat16), w3_ref[...],
                      preferred_element_type=jnp.float32) + sh_ref[:, 384:640])
    y = jnp.dot(d.astype(jnp.bfloat16), wg_ref[0],
                preferred_element_type=jnp.float32) + sg_ref[...]

    j = pl.program_id(0)

    @pl.when(j * tn + tn <= main_count)        # tile of pure "main" columns
    def _():
        o_ref[...] = y

    @pl.when(j * tn + tn > main_count)         # tile holding the sigmoid tail columns
    def _():
        col = j * tn + lax.broadcasted_iota(jnp.int32, y.shape, 1)
        o_ref[...] = jnp.where(col >= main_count, jax.nn.sigmoid(y), y)


# ------------------------------ kernel wrappers ----------------------------- #
def features(xin, prep, Bp):
    """One pallas_call: stage-1 convs + 4-layer StateFeatures stack -> (Bp*48, 64) bf16."""
    f = prep["feat"]
    grid = (Bp // BB,)
    return pl.pallas_call(
        _features_kernel,
        grid=grid,
        in_specs=[
            pl.BlockSpec((3, BB * GROUPS, 16), lambda i: (0, i, 0)),
            pl.BlockSpec((16, 24), lambda i: (0, 0)),
            pl.BlockSpec((3, 24, 8), lambda i: (0, 0, 0)),
            pl.BlockSpec((3, 8, 48), lambda i: (0, 0, 0)),
            pl.BlockSpec((3, 48, 64), lambda i: (0, 0, 0)),
            pl.BlockSpec((3, 64, 64), lambda i: (0, 0, 0)),
            pl.BlockSpec((4, 128), lambda i: (0, 0)),
        ],
        out_specs=pl.BlockSpec((BB * GROUPS, 64), lambda i: (i, 0)),
        out_shape=jax.ShapeDtypeStruct((Bp * GROUPS, 64), jnp.bfloat16),
        compiler_params=pltpu.CompilerParams(dimension_semantics=("parallel",)),
    )(xin, f["wc"], f["w1"], f["w2"], f["w3"], f["w4"], f["sh"])


def dense_tail(flat, prep, Bp):
    """One pallas_call: sf_lin + ds1..3 + GenPath (N-tiled, grid=2) + tail sigmoid."""
    w1d, w2d, w3d = prep["dense"]
    return pl.pallas_call(
        functools.partial(_dense_tail_kernel, tn=TN_GEN, main_count=MAIN_COUNT),
        grid=(N_GEN_PAD // TN_GEN,),
        in_specs=[
            pl.BlockSpec((Bp, FLAT_K), lambda j: (0, 0)),
            pl.BlockSpec((FLAT_K, 128), lambda j: (0, 0)),
            pl.BlockSpec((128, 128), lambda j: (0, 0)),
            pl.BlockSpec((128, 128), lambda j: (0, 0)),
            pl.BlockSpec((128, 256), lambda j: (0, 0)),
            pl.BlockSpec((1, 640), lambda j: (0, 0)),
            pl.BlockSpec((1, 256, TN_GEN), lambda j: (j, 0, 0)),
            pl.BlockSpec((1, TN_GEN), lambda j: (0, j)),
        ],
        out_specs=pl.BlockSpec((Bp, TN_GEN), lambda j: (0, j)),
        out_shape=jax.ShapeDtypeStruct((Bp, N_GEN_PAD), jnp.float32),
        compiler_params=pltpu.CompilerParams(dimension_semantics=("parallel",)),
    )(flat, prep["sf_lin_w"], w1d, w2d, w3d, prep["shd"], prep["gen_w"], prep["gen_s"])


# --------------------------- parameter creation ----------------------------- #
def _init_params(key):
    keys = iter(jax.random.split(key, 96))

    def conv(cout, cin, kh, kw):
        fan = cin * kh * kw
        w = jax.random.normal(next(keys), (cout, cin, kh, kw), jnp.float32) / jnp.sqrt(fan)
        b = 0.1 * jax.random.normal(next(keys), (cout,), jnp.float32)
        return w, b

    def linear(out_f, in_f):
        w = jax.random.normal(next(keys), (out_f, in_f), jnp.float32) / jnp.sqrt(in_f)
        b = 0.1 * jax.random.normal(next(keys), (out_f,), jnp.float32)
        return w, b

    def bn(n):
        gamma = 1.0 + 0.1 * jax.random.normal(next(keys), (n,), jnp.float32)
        beta = 0.1 * jax.random.normal(next(keys), (n,), jnp.float32)
        mean = 0.1 * jax.random.normal(next(keys), (n,), jnp.float32)
        var = 1.0 + 0.1 * jax.random.uniform(next(keys), (n,), jnp.float32)
        return gamma, beta, mean, var

    p = {}
    p["conv_real"], p["bn_real"] = conv(24, 1, 3, 1), bn(24)
    p["conv_bin"], p["bn_bin"] = conv(24, 1, 4, 1), bn(24)
    p["conv_env"], p["bn_env"] = conv(24, 1, 1, 1), bn(24)
    p["sf_conv1"], p["sf_bn1"] = conv(1, 1, 3, 3), bn(1)
    p["sf_conv2"], p["sf_bn2"] = conv(8, 1, 3, 3), bn(8)
    p["sf_conv3"], p["sf_bn3"] = conv(16, 8, 3, 3), bn(16)
    p["sf_conv4"], p["sf_bn4"] = conv(32, 16, 3, 3), bn(32)
    p["sf_lin"], p["sf_bn_lin"] = linear(40, 41 * 2 * 32), bn(40)
    p["ds1"], p["ds_bn1"] = linear(64, 40), bn(64)
    p["ds2"], p["ds_bn2"] = linear(128, 64), bn(128)
    p["ds3"], p["ds_bn3"] = linear(256, 128), bn(256)
    p["gen"] = linear(MAX_SAMPLE_NUM * OUTPUT_DIM, 256)
    return p


def _prep_stage1(raw):
    """Combined stage-1 weight (16, 24): 3 real taps | 4 bin taps | 1 env tap |
    3 one-hot BN-shift rows | zero pad.  BN scale folded into the tap rows."""
    wr, br = raw["conv_real"]
    wb, bbias = raw["conv_bin"]
    we, be = raw["conv_env"]
    scr, shr = _bn_fold(br, raw["bn_real"])
    scb, shb = _bn_fold(bbias, raw["bn_bin"])
    sce, she = _bn_fold(be, raw["bn_env"])
    wc = jnp.zeros((16, 24), jnp.float32)
    wc = wc.at[0:3].set(wr[:, 0, :, 0].T * scr[None, :])
    wc = wc.at[3:7].set(wb[:, 0, :, 0].T * scb[None, :])
    wc = wc.at[7].set(we[:, 0, 0, 0] * sce)
    wc = wc.at[8].set(shr)
    wc = wc.at[9].set(shb)
    wc = wc.at[10].set(she)
    return wc


def _band_conv(conv, bn, hin, ho, stride):
    """Per-phase banded weights for a 3x3 conv in the (rows=W-pos, lanes=H-pos*chan)
    layout: W[q, m*cin + c, i*cout + d] = w[d, c, p, q] * bn_scale[d] with m = stride*i+p.
    Also returns the lane-tiled BN shift row (ho*cout,)."""
    w, b = conv                                   # (cout, cin, 3, 3)
    cout, cin = int(w.shape[0]), int(w.shape[1])
    scale, shift = _bn_fold(b, bn)
    ws = w * scale[:, None, None, None]
    sel = np.zeros((3, ho, hin), np.float32)
    for i in range(ho):
        for p in range(3):
            sel[p, i, stride * i + p] = 1.0
    t = jnp.einsum("pim,dcpq->qmcid", jnp.asarray(sel), ws)   # (3, hin, cin, ho, cout)
    wq = t.reshape(3, hin * cin, ho * cout).astype(jnp.float32)
    sh_row = jnp.tile(shift, ho)                              # lane index i*cout + d
    return wq, sh_row


def _prep_linear(lin, bn, k_pad, n_pad):
    """Fold BN into a (K, N) weight; zero-pad K/N; bf16 weight + f32 shift row."""
    w, b = lin
    scale, shift = _bn_fold(b, bn)
    wm = w.T * scale[None, :]
    K, N = wm.shape
    wq = jnp.zeros((k_pad, n_pad), jnp.float32).at[:K, :N].set(wm).astype(jnp.bfloat16)
    srow = jnp.zeros((1, n_pad), jnp.float32).at[0, :N].set(shift)
    return wq, srow


def prepare_params(raw):
    """One-time prep: BN folding, banded conv layouts, padding, bf16 casts, gen pre-tiling."""
    prep = {}

    wc = _prep_stage1(raw)
    w1q, sh1 = _band_conv(raw["sf_conv1"], raw["sf_bn1"], hin=24, ho=8, stride=3)
    w2q, sh2 = _band_conv(raw["sf_conv2"], raw["sf_bn2"], hin=8, ho=6, stride=1)
    w3q, sh3 = _band_conv(raw["sf_conv3"], raw["sf_bn3"], hin=6, ho=4, stride=1)
    w4q, sh4 = _band_conv(raw["sf_conv4"], raw["sf_bn4"], hin=4, ho=2, stride=1)
    sh = jnp.zeros((4, 128), jnp.float32)
    for r, v in enumerate([sh1, sh2, sh3, sh4]):
        sh = sh.at[r, :v.shape[0]].set(v)
    prep["feat"] = {"wc": wc, "w1": w1q, "w2": w2q, "w3": w3q, "w4": w4q, "sh": sh}

    # sf Linear (+BN1d): permute its K to our (w-pos, h-pos, chan) flatten order and
    # zero-pad the dead w-positions 41..47 so junk conv rows contribute exactly 0.
    lw, lb = raw["sf_lin"]
    ssc, ssh = _bn_fold(lb, raw["sf_bn_lin"])
    lws = lw * ssc[:, None]                               # (40, 2624) torch order c*82+h*41+w
    lr = lws.reshape(OUTPUT_DIM, 32, 2, 41)
    lmat = jnp.transpose(lr, (3, 2, 1, 0)).reshape(41 * 64, OUTPUT_DIM)  # rows w*64+h*32+c
    wsf = jnp.zeros((FLAT_K, 128), jnp.float32).at[:41 * 64, :OUTPUT_DIM].set(lmat)
    prep["sf_lin_w"] = wsf.astype(jnp.bfloat16)
    ssf_row = jnp.zeros((1, 128), jnp.float32).at[0, :OUTPUT_DIM].set(ssh)

    w1d, s1d = _prep_linear(raw["ds1"], raw["ds_bn1"], 128, 128)
    w2d, s2d = _prep_linear(raw["ds2"], raw["ds_bn2"], 128, 128)
    w3d, s3d = _prep_linear(raw["ds3"], raw["ds_bn3"], 128, 256)
    prep["dense"] = (w1d, w2d, w3d)
    prep["shd"] = jnp.concatenate([ssf_row, s1d, s2d, s3d], axis=1)       # (1, 640)

    # GenPath: permute columns to [main | tail] so only the last tile runs the sigmoid;
    # pre-tile to (2, 256, TN_GEN) so each grid step's weight DMA is contiguous.
    gw, gb = raw["gen"]
    cols = np.arange(N_GEN)
    perm = np.concatenate([cols[cols % OUTPUT_DIM < OUTPUT_DIM - 4],
                           cols[cols % OUTPUT_DIM >= OUTPUT_DIM - 4]])
    gmat = jnp.zeros((256, N_GEN_PAD), jnp.float32).at[:, :N_GEN].set(gw.T[:, perm])
    prep["gen_w"] = jnp.transpose(gmat.reshape(256, 2, TN_GEN), (1, 0, 2)).astype(jnp.bfloat16)
    prep["gen_s"] = jnp.zeros((1, N_GEN_PAD), jnp.float32).at[0, :N_GEN].set(gb[perm])
    return prep


# ------------------------------- forward pass -------------------------------- #
def deep_qmp_forward(prep, X, Terrain):
    B = X.shape[0]
    assert Terrain.shape[1] == TERRAIN_LEN, "featW=41 in the reference needs terrain length 128"
    Bp = max(8, _round_up(B, 8))
    if Bp != B:
        X = _pad_to(X, 0, Bp)
        Terrain = _pad_to(Terrain, 0, Bp)

    x_real = jnp.concatenate([X[:, :30], X[:, 34:]], axis=1)       # (Bp, 36)
    x_bin = X[:, 30:34]                                            # (Bp, 4)

    # Build the stage-1 "row program" Xin: one 16-wide row per (q, batch, j) encoding
    # which of ConvReal/ConvBin/ConvEnv produces image position h = 3j + q.
    h = 3 * np.arange(GROUPS)[None, :] + np.arange(3)[:, None]     # (3, 48)
    is_real = h <= 11
    is_bin = h == 12
    is_env = (h >= 13) & (h <= 140)
    mr = jnp.asarray(is_real, jnp.float32)
    mb = jnp.asarray(is_bin, jnp.float32)
    me = jnp.asarray(is_env, jnp.float32)
    r0 = x_real[:, np.where(is_real, 3 * h, 0)] * mr               # (Bp, 3, 48)
    r1 = x_real[:, np.where(is_real, 3 * h + 1, 0)] * mr
    r2 = x_real[:, np.where(is_real, 3 * h + 2, 0)] * mr
    ev = Terrain[:, np.where(is_env, h - 13, 0)] * me
    bcols = [x_bin[:, k][:, None, None] * mb for k in range(4)]
    z = jnp.zeros((Bp, 3, GROUPS), jnp.float32)
    cols = [r0, r1, r2] + bcols + [ev,
                                   jnp.broadcast_to(mr, (Bp, 3, GROUPS)),
                                   jnp.broadcast_to(mb, (Bp, 3, GROUPS)),
                                   jnp.broadcast_to(me, (Bp, 3, GROUPS)),
                                   z, z, z, z, z]
    xin = jnp.stack(cols, axis=-1)                                 # (Bp, 3, 48, 16)
    xin = jnp.transpose(xin, (1, 0, 2, 3)).reshape(3, Bp * GROUPS, 16)

    # --- fused stage-1 + StateFeatures conv stack ---
    feat = features(xin, prep, Bp)                                 # (Bp*48, 64) bf16
    flat = feat.reshape(Bp, FLAT_K)                                # free row-major reshape

    # --- fused dense tail: sf_lin -> ds1 -> ds2 -> ds3 -> gen + tail sigmoid ---
    full_perm = dense_tail(flat, prep, Bp)                         # (Bp, 8192), [main|tail] cols

    # un-permute: [main | tail] column order back to (sample, feature) layout.
    # Padded gen columns 8040..8191 (sigmoid(0)=0.5) are sliced away here.
    main = full_perm[:, :MAIN_COUNT].reshape(Bp, MAX_SAMPLE_NUM, OUTPUT_DIM - 4)
    tail = full_perm[:, MAIN_COUNT:MAIN_COUNT + MAX_SAMPLE_NUM * 4].reshape(
        Bp, MAX_SAMPLE_NUM, 4)
    full = jnp.concatenate([main, tail], axis=-1)                  # (Bp, 201, 40)
    return full[:B]


# ---------------------------------- main ------------------------------------- #
if __name__ == "__main__":
    key = jax.random.PRNGKey(0)
    pkey, xkey, tkey = jax.random.split(key, 3)
    raw = _init_params(pkey)
    prep = prepare_params(raw)

    B = 2
    X = jax.random.normal(xkey, (B, 40), jnp.float32)           # state vector, dim 40
    Terrain = jax.random.normal(tkey, (B, TERRAIN_LEN), jnp.float32)

    fwd = jax.jit(deep_qmp_forward)
    out = jax.block_until_ready(fwd(prep, X, Terrain))

    assert out.shape == (B, MAX_SAMPLE_NUM, OUTPUT_DIM), out.shape
    assert bool(jnp.all(jnp.isfinite(out)))
    print("KERNEL_OK")
</pallas_src>

<mosaic_0001>
module attributes {stable_mosaic.version = 11 : i64} {
  func.func @_features_kernel(%arg0: i32, %arg1: memref<3x192x16xf32, #tpu.memory_space<vmem>>, %arg2: memref<16x24xf32, #tpu.memory_space<vmem>>, %arg3: memref<3x24x8xf32, #tpu.memory_space<vmem>>, %arg4: memref<3x8x48xf32, #tpu.memory_space<vmem>>, %arg5: memref<3x48x64xf32, #tpu.memory_space<vmem>>, %arg6: memref<3x64x64xf32, #tpu.memory_space<vmem>>, %arg7: memref<4x128xf32, #tpu.memory_space<vmem>>, %arg8: memref<192x64xbf16, #tpu.memory_space<vmem>>) attributes {dimension_semantics = [#tpu.dimension_semantics<parallel>], iteration_bounds = array<i64: 2>, scalar_prefetch = 0 : i64, scratch_operands = 0 : i64, tpu.core_type = #tpu.core_type<tc>, window_params = [{transform_indices = @transform_0, window_bounds = array<i64: 3, 192, 16>}, {pipeline_mode = #tpu.pipeline_mode<synchronous>, transform_indices = @transform_1, window_bounds = array<i64: 16, 24>}, {pipeline_mode = #tpu.pipeline_mode<synchronous>, transform_indices = @transform_2, window_bounds = array<i64: 3, 24, 8>}, {pipeline_mode = #tpu.pipeline_mode<synchronous>, transform_indices = @transform_3, window_bounds = array<i64: 3, 8, 48>}, {pipeline_mode = #tpu.pipeline_mode<synchronous>, transform_indices = @transform_4, window_bounds = array<i64: 3, 48, 64>}, {pipeline_mode = #tpu.pipeline_mode<synchronous>, transform_indices = @transform_5, window_bounds = array<i64: 3, 64, 64>}, {pipeline_mode = #tpu.pipeline_mode<synchronous>, transform_indices = @transform_6, window_bounds = array<i64: 4, 128>}, {transform_indices = @transform_7, window_bounds = array<i64: 192, 64>}]} {
    %c0 = arith.constant 0 : index
    %c0_0 = arith.constant 0 : index
    %0 = vector.load %arg2[%c0, %c0_0] : memref<16x24xf32, #tpu.memory_space<vmem>>, vector<16x24xf32>
    %c0_1 = arith.constant 0 : index
    %c0_2 = arith.constant 0 : index
    %c0_3 = arith.constant 0 : index
    %1 = vector.load %arg1[%c0_1, %c0_2, %c0_3] : memref<3x192x16xf32, #tpu.memory_space<vmem>>, vector<1x192x16xf32>
    %2 = vector.shape_cast %1 : vector<1x192x16xf32> to vector<192x16xf32>
    %cst = arith.constant dense<0.000000e+00> : vector<192x24xf32>
    %3 = tpu.matmul %2, %0, %cst {dimension_numbers = #tpu.dot_dimension_numbers<[1], [0], [0], [1], [0, 0, 1, 1], [], []>} : vector<192x16xf32>, vector<16x24xf32>, vector<192x24xf32> -> vector<192x24xf32>
    %4 = math.exp %3 : vector<192x24xf32>
    %cst_4 = arith.constant 1.000000e+00 : f32
    %5 = vector.broadcast %cst_4 : f32 to vector<192x24xf32>
    %6 = arith.addf %5, %4 : vector<192x24xf32>
    %7 = arith.mulf %6, %6 : vector<192x24xf32>
    %cst_5 = arith.constant 1.000000e+00 : f32
    %8 = vector.broadcast %cst_5 : f32 to vector<192x24xf32>
    %9 = arith.addf %7, %8 : vector<192x24xf32>
    %10 = tpu.reciprocal %9 {approx = true} : vector<192x24xf32> -> vector<192x24xf32>
    %cst_6 = arith.constant 2.000000e+00 : f32
    %11 = vector.broadcast %cst_6 : f32 to vector<192x24xf32>
    %12 = arith.mulf %11, %10 : vector<192x24xf32>
    %cst_7 = arith.constant 1.000000e+00 : f32
    %13 = vector.broadcast %cst_7 : f32 to vector<192x24xf32>
    %14 = arith.subf %13, %12 : vector<192x24xf32>
    %15 = arith.mulf %3, %14 : vector<192x24xf32>
    %c1 = arith.constant 1 : index
    %c0_8 = arith.constant 0 : index
    %c0_9 = arith.constant 0 : index
    %16 = vector.load %arg1[%c1, %c0_8, %c0_9] : memref<3x192x16xf32, #tpu.memory_space<vmem>>, vector<1x192x16xf32>
    %17 = vector.shape_cast %16 : vector<1x192x16xf32> to vector<192x16xf32>
    %cst_10 = arith.constant dense<0.000000e+00> : vector<192x24xf32>
    %18 = tpu.matmul %17, %0, %cst_10 {dimension_numbers = #tpu.dot_dimension_numbers<[1], [0], [0], [1], [0, 0, 1, 1], [], []>} : vector<192x16xf32>, vector<16x24xf32>, vector<192x24xf32> -> vector<192x24xf32>
    %19 = math.exp %18 : vector<192x24xf32>
    %cst_11 = arith.constant 1.000000e+00 : f32
    %20 = vector.broadcast %cst_11 : f32 to vector<192x24xf32>
    %21 = arith.addf %20, %19 : vector<192x24xf32>
    %22 = arith.mulf %21, %21 : vector<192x24xf32>
    %cst_12 = arith.constant 1.000000e+00 : f32
    %23 = vector.broadcast %cst_12 : f32 to vector<192x24xf32>
    %24 = arith.addf %22, %23 : vector<192x24xf32>
    %25 = tpu.reciprocal %24 {approx = true} : vector<192x24xf32> -> vector<192x24xf32>
    %cst_13 = arith.constant 2.000000e+00 : f32
    %26 = vector.broadcast %cst_13 : f32 to vector<192x24xf32>
    %27 = arith.mulf %26, %25 : vector<192x24xf32>
    %cst_14 = arith.constant 1.000000e+00 : f32
    %28 = vector.broadcast %cst_14 : f32 to vector<192x24xf32>
    %29 = arith.subf %28, %27 : vector<192x24xf32>
    %30 = arith.mulf %18, %29 : vector<192x24xf32>
    %c2 = arith.constant 2 : index
    %c0_15 = arith.constant 0 : index
    %c0_16 = arith.constant 0 : index
    %31 = vector.load %arg1[%c2, %c0_15, %c0_16] : memref<3x192x16xf32, #tpu.memory_space<vmem>>, vector<1x192x16xf32>
    %32 = vector.shape_cast %31 : vector<1x192x16xf32> to vector<192x16xf32>
    %cst_17 = arith.constant dense<0.000000e+00> : vector<192x24xf32>
    %33 = tpu.matmul %32, %0, %cst_17 {dimension_numbers = #tpu.dot_dimension_numbers<[1], [0], [0], [1], [0, 0, 1, 1], [], []>} : vector<192x16xf32>, vector<16x24xf32>, vector<192x24xf32> -> vector<192x24xf32>
    %34 = math.exp %33 : vector<192x24xf32>
    %cst_18 = arith.constant 1.000000e+00 : f32
    %35 = vector.broadcast %cst_18 : f32 to vector<192x24xf32>
    %36 = arith.addf %35, %34 : vector<192x24xf32>
    %37 = arith.mulf %36, %36 : vector<192x24xf32>
    %cst_19 = arith.constant 1.000000e+00 : f32
    %38 = vector.broadcast %cst_19 : f32 to vector<192x24xf32>
    %39 = arith.addf %37, %38 : vector<192x24xf32>
    %40 = tpu.reciprocal %39 {approx = true} : vector<192x24xf32> -> vector<192x24xf32>
    %cst_20 = arith.constant 2.000000e+00 : f32
    %41 = vector.broadcast %cst_20 : f32 to vector<192x24xf32>
    %42 = arith.mulf %41, %40 : vector<192x24xf32>
    %cst_21 = arith.constant 1.000000e+00 : f32
    %43 = vector.broadcast %cst_21 : f32 to vector<192x24xf32>
    %44 = arith.subf %43, %42 : vector<192x24xf32>
    %45 = arith.mulf %33, %44 : vector<192x24xf32>
    %c0_22 = arith.constant 0 : index
    %c0_23 = arith.constant 0 : index
    %c0_24 = arith.constant 0 : index
    %46 = vector.load %arg3[%c0_22, %c0_23, %c0_24] : memref<3x24x8xf32, #tpu.memory_space<vmem>>, vector<1x24x8xf32>
    %47 = vector.shape_cast %46 : vector<1x24x8xf32> to vector<24x8xf32>
    %cst_25 = arith.constant dense<0.000000e+00> : vector<192x8xf32>
    %48 = tpu.matmul %15, %47, %cst_25 {dimension_numbers = #tpu.dot_dimension_numbers<[1], [0], [0], [1], [0, 0, 1, 1], [], []>} : vector<192x24xf32>, vector<24x8xf32>, vector<192x8xf32> -> vector<192x8xf32>
    %c1_26 = arith.constant 1 : index
    %c0_27 = arith.constant 0 : index
    %c0_28 = arith.constant 0 : index
    %49 = vector.load %arg3[%c1_26, %c0_27, %c0_28] : memref<3x24x8xf32, #tpu.memory_space<vmem>>, vector<1x24x8xf32>
    %50 = vector.shape_cast %49 : vector<1x24x8xf32> to vector<24x8xf32>
    %cst_29 = arith.constant dense<0.000000e+00> : vector<192x8xf32>
    %51 = tpu.matmul %30, %50, %cst_29 {dimension_numbers = #tpu.dot_dimension_numbers<[1], [0], [0], [1], [0, 0, 1, 1], [], []>} : vector<192x24xf32>, vector<24x8xf32>, vector<192x8xf32> -> vector<192x8xf32>
    %52 = arith.addf %48, %51 : vector<192x8xf32>
    %c2_30 = arith.constant 2 : index
    %c0_31 = arith.constant 0 : index
    %c0_32 = arith.constant 0 : index
    %53 = vector.load %arg3[%c2_30, %c0_31, %c0_32] : memref<3x24x8xf32, #tpu.memory_space<vmem>>, vector<1x24x8xf32>
    %54 = vector.shape_cast %53 : vector<1x24x8xf32> to vector<24x8xf32>
    %cst_33 = arith.constant dense<0.000000e+00> : vector<192x8xf32>
    %55 = tpu.matmul %45, %54, %cst_33 {dimension_numbers = #tpu.dot_dimension_numbers<[1], [0], [0], [1], [0, 0, 1, 1], [], []>} : vector<192x24xf32>, vector<24x8xf32>, vector<192x8xf32> -> vector<192x8xf32>
    %56 = arith.addf %52, %55 : vector<192x8xf32>
    %c0_34 = arith.constant 0 : index
    %c0_35 = arith.constant 0 : index
    %57 = vector.load %arg7[%c0_34, %c0_35] : memref<4x128xf32, #tpu.memory_space<vmem>>, vector<1x8xf32>
    %58 = vector.broadcast %57 : vector<1x8xf32> to vector<192x8xf32>
    %59 = arith.addf %56, %58 : vector<192x8xf32>
    %60 = math.exp %59 : vector<192x8xf32>
    %cst_36 = arith.constant 1.000000e+00 : f32
    %61 = vector.broadcast %cst_36 : f32 to vector<192x8xf32>
    %62 = arith.addf %61, %60 : vector<192x8xf32>
    %63 = arith.mulf %62, %62 : vector<192x8xf32>
    %cst_37 = arith.constant 1.000000e+00 : f32
    %64 = vector.broadcast %cst_37 : f32 to vector<192x8xf32>
    %65 = arith.addf %63, %64 : vector<192x8xf32>
    %66 = tpu.reciprocal %65 {approx = true} : vector<192x8xf32> -> vector<192x8xf32>
    %cst_38 = arith.constant 2.000000e+00 : f32
    %67 = vector.broadcast %cst_38 : f32 to vector<192x8xf32>
    %68 = arith.mulf %67, %66 : vector<192x8xf32>
    %cst_39 = arith.constant 1.000000e+00 : f32
    %69 = vector.broadcast %cst_39 : f32 to vector<192x8xf32>
    %70 = arith.subf %69, %68 : vector<192x8xf32>
    %71 = arith.mulf %59, %70 : vector<192x8xf32>
    %c1_40 = arith.constant 1 : index
    %c0_41 = arith.constant 0 : index
    %72 = vector.load %arg7[%c1_40, %c0_41] : memref<4x128xf32, #tpu.memory_space<vmem>>, vector<1x48xf32>
    %c0_42 = arith.constant 0 : index
    %c0_43 = arith.constant 0 : index
    %c0_44 = arith.constant 0 : index
    %73 = vector.load %arg4[%c0_42, %c0_43, %c0_44] : memref<3x8x48xf32, #tpu.memory_space<vmem>>, vector<1x8x48xf32>
    %74 = vector.shape_cast %73 : vector<1x8x48xf32> to vector<8x48xf32>
    %cst_45 = arith.constant dense<0.000000e+00> : vector<192x48xf32>
    %75 = tpu.matmul %71, %74, %cst_45 {dimension_numbers = #tpu.dot_dimension_numbers<[1], [0], [0], [1], [0, 0, 1, 1], [], []>} : vector<192x8xf32>, vector<8x48xf32>, vector<192x48xf32> -> vector<192x48xf32>
    %76 = vector.extract_strided_slice %75 {offsets = [0, 0], sizes = [190, 48], strides = [1, 1]} : vector<192x48xf32> to vector<190x48xf32>
    %c1_46 = arith.constant 1 : index
    %c0_47 = arith.constant 0 : index
    %c0_48 = arith.constant 0 : index
    %77 = vector.load %arg4[%c1_46, %c0_47, %c0_48] : memref<3x8x48xf32, #tpu.memory_space<vmem>>, vector<1x8x48xf32>
    %78 = vector.shape_cast %77 : vector<1x8x48xf32> to vector<8x48xf32>
    %cst_49 = arith.constant dense<0.000000e+00> : vector<192x48xf32>
    %79 = tpu.matmul %71, %78, %cst_49 {dimension_numbers = #tpu.dot_dimension_numbers<[1], [0], [0], [1], [0, 0, 1, 1], [], []>} : vector<192x8xf32>, vector<8x48xf32>, vector<192x48xf32> -> vector<192x48xf32>
    %80 = vector.extract_strided_slice %79 {offsets = [1, 0], sizes = [190, 48], strides = [1, 1]} : vector<192x48xf32> to vector<190x48xf32>
    %81 = arith.addf %76, %80 : vector<190x48xf32>
    %c2_50 = arith.constant 2 : index
    %c0_51 = arith.constant 0 : index
    %c0_52 = arith.constant 0 : index
    %82 = vector.load %arg4[%c2_50, %c0_51, %c0_52] : memref<3x8x48xf32, #tpu.memory_space<vmem>>, vector<1x8x48xf32>
    %83 = vector.shape_cast %82 : vector<1x8x48xf32> to vector<8x48xf32>
    %cst_53 = arith.constant dense<0.000000e+00> : vector<192x48xf32>
    %84 = tpu.matmul %71, %83, %cst_53 {dimension_numbers = #tpu.dot_dimension_numbers<[1], [0], [0], [1], [0, 0, 1, 1], [], []>} : vector<192x8xf32>, vector<8x48xf32>, vector<192x48xf32> -> vector<192x48xf32>
    %85 = vector.extract_strided_slice %84 {offsets = [2, 0], sizes = [190, 48], strides = [1, 1]} : vector<192x48xf32> to vector<190x48xf32>
    %86 = arith.addf %81, %85 : vector<190x48xf32>
    %87 = vector.broadcast %72 : vector<1x48xf32> to vector<190x48xf32>
    %88 = arith.addf %86, %87 : vector<190x48xf32>
    %89 = math.exp %88 : vector<190x48xf32>
    %cst_54 = arith.constant 1.000000e+00 : f32
    %90 = vector.broadcast %cst_54 : f32 to vector<190x48xf32>
    %91 = arith.addf %90, %89 : vector<190x48xf32>
    %92 = arith.mulf %91, %91 : vector<190x48xf32>
    %cst_55 = arith.constant 1.000000e+00 : f32
    %93 = vector.broadcast %cst_55 : f32 to vector<190x48xf32>
    %94 = arith.addf %92, %93 : vector<190x48xf32>
    %95 = tpu.reciprocal %94 {approx = true} : vector<190x48xf32> -> vector<190x48xf32>
    %cst_56 = arith.constant 2.000000e+00 : f32
    %96 = vector.broadcast %cst_56 : f32 to vector<190x48xf32>
    %97 = arith.mulf %96, %95 : vector<190x48xf32>
    %cst_57 = arith.constant 1.000000e+00 : f32
    %98 = vector.broadcast %cst_57 : f32 to vector<190x48xf32>
    %99 = arith.subf %98, %97 : vector<190x48xf32>
    %100 = arith.mulf %88, %99 : vector<190x48xf32>
    %c2_58 = arith.constant 2 : index
    %c0_59 = arith.constant 0 : index
    %101 = vector.load %arg7[%c2_58, %c0_59] : memref<4x128xf32, #tpu.memory_space<vmem>>, vector<1x64xf32>
    %c0_60 = arith.constant 0 : index
    %c0_61 = arith.constant 0 : index
    %c0_62 = arith.constant 0 : index
    %102 = vector.load %arg5[%c0_60, %c0_61, %c0_62] : memref<3x48x64xf32, #tpu.memory_space<vmem>>, vector<1x48x64xf32>
    %103 = vector.shape_cast %102 : vector<1x48x64xf32> to vector<48x64xf32>
    %cst_63 = arith.constant dense<0.000000e+00> : vector<190x64xf32>
    %104 = tpu.matmul %100, %103, %cst_63 {dimension_numbers = #tpu.dot_dimension_numbers<[1], [0], [0], [1], [0, 0, 1, 1], [], []>} : vector<190x48xf32>, vector<48x64xf32>, vector<190x64xf32> -> vector<190x64xf32>
    %105 = vector.extract_strided_slice %104 {offsets = [0, 0], sizes = [188, 64], strides = [1, 1]} : vector<190x64xf32> to vector<188x64xf32>
    %c1_64 = arith.constant 1 : index
    %c0_65 = arith.constant 0 : index
    %c0_66 = arith.constant 0 : index
    %106 = vector.load %arg5[%c1_64, %c0_65, %c0_66] : memref<3x48x64xf32, #tpu.memory_space<vmem>>, vector<1x48x64xf32>
    %107 = vector.shape_cast %106 : vector<1x48x64xf32> to vector<48x64xf32>
    %cst_67 = arith.constant dense<0.000000e+00> : vector<190x64xf32>
    %108 = tpu.matmul %100, %107, %cst_67 {dimension_numbers = #tpu.dot_dimension_numbers<[1], [0], [0], [1], [0, 0, 1, 1], [], []>} : vector<190x48xf32>, vector<48x64xf32>, vector<190x64xf32> -> vector<190x64xf32>
    %109 = vector.extract_strided_slice %108 {offsets = [1, 0], sizes = [188, 64], strides = [1, 1]} : vector<190x64xf32> to vector<188x64xf32>
    %110 = arith.addf %105, %109 : vector<188x64xf32>
    %c2_68 = arith.constant 2 : index
    %c0_69 = arith.constant 0 : index
    %c0_70 = arith.constant 0 : index
    %111 = vector.load %arg5[%c2_68, %c0_69, %c0_70] : memref<3x48x64xf32, #tpu.memory_space<vmem>>, vector<1x48x64xf32>
    %112 = vector.shape_cast %111 : vector<1x48x64xf32> to vector<48x64xf32>
    %cst_71 = arith.constant dense<0.000000e+00> : vector<190x64xf32>
    %113 = tpu.matmul %100, %112, %cst_71 {dimension_numbers = #tpu.dot_dimension_numbers<[1], [0], [0], [1], [0, 0, 1, 1], [], []>} : vector<190x48xf32>, vector<48x64xf32>, vector<190x64xf32> -> vector<190x64xf32>
    %114 = vector.extract_strided_slice %113 {offsets = [2, 0], sizes = [188, 64], strides = [1, 1]} : vector<190x64xf32> to vector<188x64xf32>
    %115 = arith.addf %110, %114 : vector<188x64xf32>
    %116 = vector.broadcast %101 : vector<1x64xf32> to vector<188x64xf32>
    %117 = arith.addf %115, %116 : vector<188x64xf32>
    %118 = math.exp %117 : vector<188x64xf32>
    %cst_72 = arith.constant 1.000000e+00 : f32
    %119 = vector.broadcast %cst_72 : f32 to vector<188x64xf32>
    %120 = arith.addf %119, %118 : vector<188x64xf32>
    %121 = arith.mulf %120, %120 : vector<188x64xf32>
    %cst_73 = arith.constant 1.000000e+00 : f32
    %122 = vector.broadcast %cst_73 : f32 to vector<188x64xf32>
    %123 = arith.addf %121, %122 : vector<188x64xf32>
    %124 = tpu.reciprocal %123 {approx = true} : vector<188x64xf32> -> vector<188x64xf32>
    %cst_74 = arith.constant 2.000000e+00 : f32
    %125 = vector.broadcast %cst_74 : f32 to vector<188x64xf32>
    %126 = arith.mulf %125, %124 : vector<188x64xf32>
    %cst_75 = arith.constant 1.000000e+00 : f32
    %127 = vector.broadcast %cst_75 : f32 to vector<188x64xf32>
    %128 = arith.subf %127, %126 : vector<188x64xf32>
    %129 = arith.mulf %117, %128 : vector<188x64xf32>
    %c3 = arith.constant 3 : index
    %c0_76 = arith.constant 0 : index
    %130 = vector.load %arg7[%c3, %c0_76] : memref<4x128xf32, #tpu.memory_space<vmem>>, vector<1x64xf32>
    %c0_77 = arith.constant 0 : index
    %c0_78 = arith.constant 0 : index
    %c0_79 = arith.constant 0 : index
    %131 = vector.load %arg6[%c0_77, %c0_78, %c0_79] : memref<3x64x64xf32, #tpu.memory_space<vmem>>, vector<1x64x64xf32>
    %132 = vector.shape_cast %131 : vector<1x64x64xf32> to vector<64x64xf32>
    %cst_80 = arith.constant dense<0.000000e+00> : vector<188x64xf32>
    %133 = tpu.matmul %129, %132, %cst_80 {dimension_numbers = #tpu.dot_dimension_numbers<[1], [0], [0], [1], [0, 0, 1, 1], [], []>} : vector<188x64xf32>, vector<64x64xf32>, vector<188x64xf32> -> vector<188x64xf32>
    %134 = vector.extract_strided_slice %133 {offsets = [0, 0], sizes = [186, 64], strides = [1, 1]} : vector<188x64xf32> to vector<186x64xf32>
    %c1_81 = arith.constant 1 : index
    %c0_82 = arith.constant 0 : index
    %c0_83 = arith.constant 0 : index
    %135 = vector.load %arg6[%c1_81, %c0_82, %c0_83] : memref<3x64x64xf32, #tpu.memory_space<vmem>>, vector<1x64x64xf32>
    %136 = vector.shape_cast %135 : vector<1x64x64xf32> to vector<64x64xf32>
    %cst_84 = arith.constant dense<0.000000e+00> : vector<188x64xf32>
    %137 = tpu.matmul %129, %136, %cst_84 {dimension_numbers = #tpu.dot_dimension_numbers<[1], [0], [0], [1], [0, 0, 1, 1], [], []>} : vector<188x64xf32>, vector<64x64xf32>, vector<188x64xf32> -> vector<188x64xf32>
    %138 = vector.extract_strided_slice %137 {offsets = [1, 0], sizes = [186, 64], strides = [1, 1]} : vector<188x64xf32> to vector<186x64xf32>
    %139 = arith.addf %134, %138 : vector<186x64xf32>
    %c2_85 = arith.constant 2 : index
    %c0_86 = arith.constant 0 : index
    %c0_87 = arith.constant 0 : index
    %140 = vector.load %arg6[%c2_85, %c0_86, %c0_87] : memref<3x64x64xf32, #tpu.memory_space<vmem>>, vector<1x64x64xf32>
    %141 = vector.shape_cast %140 : vector<1x64x64xf32> to vector<64x64xf32>
    %cst_88 = arith.constant dense<0.000000e+00> : vector<188x64xf32>
    %142 = tpu.matmul %129, %141, %cst_88 {dimension_numbers = #tpu.dot_dimension_numbers<[1], [0], [0], [1], [0, 0, 1, 1], [], []>} : vector<188x64xf32>, vector<64x64xf32>, vector<188x64xf32> -> vector<188x64xf32>
    %143 = vector.extract_strided_slice %142 {offsets = [2, 0], sizes = [186, 64], strides = [1, 1]} : vector<188x64xf32> to vector<186x64xf32>
    %144 = arith.addf %139, %143 : vector<186x64xf32>
    %145 = vector.broadcast %130 : vector<1x64xf32> to vector<186x64xf32>
    %146 = arith.addf %144, %145 : vector<186x64xf32>
    %147 = math.exp %146 : vector<186x64xf32>
    %cst_89 = arith.constant 1.000000e+00 : f32
    %148 = vector.broadcast %cst_89 : f32 to vector<186x64xf32>
    %149 = arith.addf %148, %147 : vector<186x64xf32>
    %150 = arith.mulf %149, %149 : vector<186x64xf32>
    %cst_90 = arith.constant 1.000000e+00 : f32
    %151 = vector.broadcast %cst_90 : f32 to vector<186x64xf32>
    %152 = arith.addf %150, %151 : vector<186x64xf32>
    %153 = tpu.reciprocal %152 {approx = true} : vector<186x64xf32> -> vector<186x64xf32>
    %cst_91 = arith.constant 2.000000e+00 : f32
    %154 = vector.broadcast %cst_91 : f32 to vector<186x64xf32>
    %155 = arith.mulf %154, %153 : vector<186x64xf32>
    %cst_92 = arith.constant 1.000000e+00 : f32
    %156 = vector.broadcast %cst_92 : f32 to vector<186x64xf32>
    %157 = arith.subf %156, %155 : vector<186x64xf32>
    %158 = arith.mulf %146, %157 : vector<186x64xf32>
    %cst_93 = arith.constant 0.000000e+00 : f32
    %159 = vector.broadcast %cst_93 : f32 to vector<6x64xf32>
    %160 = tpu.concatenate %158, %159 in 0 : vector<186x64xf32>, vector<6x64xf32> -> vector<192x64xf32>
    %161 = arith.truncf %160 : vector<192x64xf32> to vector<192x64xbf16>
    %c0_94 = arith.constant 0 : index
    %c0_95 = arith.constant 0 : index
    %162 = vector.load %arg8[%c0_94, %c0_95] : memref<192x64xbf16, #tpu.memory_space<vmem>>, vector<192x64xbf16>
    tpu.vector_store %arg8[%c0_94, %c0_95], %161 {strides = array<i32>} : memref<192x64xbf16, #tpu.memory_space<vmem>>, vector<192x64xbf16>,
    return
  }
  func.func @transform_0(%arg0: i32) -> (i32, i32, i32) {
    %c0_i32 = arith.constant 0 : i32
    %c0_i32_0 = arith.constant 0 : i32
    %c0_i32_1 = arith.constant 0 : i32
    return %c0_i32, %arg0, %c0_i32_0 : i32, i32, i32
  }
  func.func @transform_1(%arg0: i32) -> (i32, i32) {
    %c0_i32 = arith.constant 0 : i32
    %c0_i32_0 = arith.constant 0 : i32
    %c0_i32_1 = arith.constant 0 : i32
    return %c0_i32, %c0_i32_0 : i32, i32
  }
  func.func @transform_2(%arg0: i32) -> (i32, i32, i32) {
    %c0_i32 = arith.constant 0 : i32
    %c0_i32_0 = arith.constant 0 : i32
    %c0_i32_1 = arith.constant 0 : i32
    %c0_i32_2 = arith.constant 0 : i32
    return %c0_i32, %c0_i32_0, %c0_i32_1 : i32, i32, i32
  }
  func.func @transform_3(%arg0: i32) -> (i32, i32, i32) {
    %c0_i32 = arith.constant 0 : i32
    %c0_i32_0 = arith.constant 0 : i32
    %c0_i32_1 = arith.constant 0 : i32
    %c0_i32_2 = arith.constant 0 : i32
    return %c0_i32, %c0_i32_0, %c0_i32_1 : i32, i32, i32
  }
  func.func @transform_4(%arg0: i32) -> (i32, i32, i32) {
    %c0_i32 = arith.constant 0 : i32
    %c0_i32_0 = arith.constant 0 : i32
    %c0_i32_1 = arith.constant 0 : i32
    %c0_i32_2 = arith.constant 0 : i32
    return %c0_i32, %c0_i32_0, %c0_i32_1 : i32, i32, i32
  }
  func.func @transform_5(%arg0: i32) -> (i32, i32, i32) {
    %c0_i32 = arith.constant 0 : i32
    %c0_i32_0 = arith.constant 0 : i32
    %c0_i32_1 = arith.constant 0 : i32
    %c0_i32_2 = arith.constant 0 : i32
    return %c0_i32, %c0_i32_0, %c0_i32_1 : i32, i32, i32
  }
  func.func @transform_6(%arg0: i32) -> (i32, i32) {
    %c0_i32 = arith.constant 0 : i32
    %c0_i32_0 = arith.constant 0 : i32
    %c0_i32_1 = arith.constant 0 : i32
    return %c0_i32, %c0_i32_0 : i32, i32
  }
  func.func @transform_7(%arg0: i32) -> (i32, i32) {
    %c0_i32 = arith.constant 0 : i32
    %c0_i32_0 = arith.constant 0 : i32
    return %arg0, %c0_i32 : i32, i32
  }
}

module attributes {stable_mosaic.version = 11 : i64} {
  func.func @_dense_tail_kernel(%arg0: i32, %arg1: memref<8x3072xbf16, #tpu.memory_space<vmem>>, %arg2: memref<3072x128xbf16, #tpu.memory_space<vmem>>, %arg3: memref<128x128xbf16, #tpu.memory_space<vmem>>, %arg4: memref<128x128xbf16, #tpu.memory_space<vmem>>, %arg5: memref<128x256xbf16, #tpu.memory_space<vmem>>, %arg6: memref<1x640xf32, #tpu.memory_space<vmem>>, %arg7: memref<1x256x4096xbf16, #tpu.memory_space<vmem>>, %arg8: memref<1x4096xf32, #tpu.memory_space<vmem>>, %arg9: memref<8x4096xf32, #tpu.memory_space<vmem>>) attributes {dimension_semantics = [#tpu.dimension_semantics<parallel>], iteration_bounds = array<i64: 2>, scalar_prefetch = 0 : i64, scratch_operands = 0 : i64, tpu.core_type = #tpu.core_type<tc>, window_params = [{pipeline_mode = #tpu.pipeline_mode<synchronous>, transform_indices = @transform_0, window_bounds = array<i64: 8, 3072>}, {pipeline_mode = #tpu.pipeline_mode<synchronous>, transform_indices = @transform_1, window_bounds = array<i64: 3072, 128>}, {pipeline_mode = #tpu.pipeline_mode<synchronous>, transform_indices = @transform_2, window_bounds = array<i64: 128, 128>}, {pipeline_mode = #tpu.pipeline_mode<synchronous>, transform_indices = @transform_3, window_bounds = array<i64: 128, 128>}, {pipeline_mode = #tpu.pipeline_mode<synchronous>, transform_indices = @transform_4, window_bounds = array<i64: 128, 256>}, {pipeline_mode = #tpu.pipeline_mode<synchronous>, transform_indices = @transform_5, window_bounds = array<i64: 1, 640>}, {transform_indices = @transform_6, window_bounds = array<i64: 1, 256, 4096>}, {transform_indices = @transform_7, window_bounds = array<i64: 1, 4096>}, {transform_indices = @transform_8, window_bounds = array<i64: 8, 4096>}]} {
    %c0 = arith.constant 0 : index
    %c0_0 = arith.constant 0 : index
    %0 = vector.load %arg1[%c0, %c0_0] : memref<8x3072xbf16, #tpu.memory_space<vmem>>, vector<8x3072xbf16>
    %c0_1 = arith.constant 0 : index
    %c0_2 = arith.constant 0 : index
    %1 = vector.load %arg2[%c0_1, %c0_2] : memref<3072x128xbf16, #tpu.memory_space<vmem>>, vector<3072x128xbf16>
    %cst = arith.constant dense<0.000000e+00> : vector<8x128xf32>
    %2 = tpu.matmul %0, %1, %cst {dimension_numbers = #tpu.dot_dimension_numbers<[1], [0], [0], [1], [0, 0, 1, 1], [], []>} : vector<8x3072xbf16>, vector<3072x128xbf16>, vector<8x128xf32> -> vector<8x128xf32>
    %c0_3 = arith.constant 0 : index
    %c0_4 = arith.constant 0 : index
    %3 = vector.load %arg6[%c0_3, %c0_4] : memref<1x640xf32, #tpu.memory_space<vmem>>, vector<1x128xf32>
    %4 = vector.broadcast %3 : vector<1x128xf32> to vector<8x128xf32>
    %5 = arith.addf %2, %4 : vector<8x128xf32>
    %6 = math.exp %5 : vector<8x128xf32>
    %cst_5 = arith.constant 1.000000e+00 : f32
    %7 = vector.broadcast %cst_5 : f32 to vector<8x128xf32>
    %8 = arith.addf %7, %6 : vector<8x128xf32>
    %9 = arith.mulf %8, %8 : vector<8x128xf32>
    %cst_6 = arith.constant 1.000000e+00 : f32
    %10 = vector.broadcast %cst_6 : f32 to vector<8x128xf32>
    %11 = arith.addf %9, %10 : vector<8x128xf32>
    %12 = tpu.reciprocal %11 {approx = true} : vector<8x128xf32> -> vector<8x128xf32>
    %cst_7 = arith.constant 2.000000e+00 : f32
    %13 = vector.broadcast %cst_7 : f32 to vector<8x128xf32>
    %14 = arith.mulf %13, %12 : vector<8x128xf32>
    %cst_8 = arith.constant 1.000000e+00 : f32
    %15 = vector.broadcast %cst_8 : f32 to vector<8x128xf32>
    %16 = arith.subf %15, %14 : vector<8x128xf32>
    %17 = arith.mulf %5, %16 : vector<8x128xf32>
    %18 = arith.truncf %17 : vector<8x128xf32> to vector<8x128xbf16>
    %c0_9 = arith.constant 0 : index
    %c0_10 = arith.constant 0 : index
    %19 = vector.load %arg3[%c0_9, %c0_10] : memref<128x128xbf16, #tpu.memory_space<vmem>>, vector<128x128xbf16>
    %cst_11 = arith.constant dense<0.000000e+00> : vector<8x128xf32>
    %20 = tpu.matmul %18, %19, %cst_11 {dimension_numbers = #tpu.dot_dimension_numbers<[1], [0], [0], [1], [0, 0, 1, 1], [], []>} : vector<8x128xbf16>, vector<128x128xbf16>, vector<8x128xf32> -> vector<8x128xf32>
    %c0_12 = arith.constant 0 : index
    %c128 = arith.constant 128 : index
    %21 = vector.load %arg6[%c0_12, %c128] : memref<1x640xf32, #tpu.memory_space<vmem>>, vector<1x128xf32>
    %22 = vector.broadcast %21 : vector<1x128xf32> to vector<8x128xf32>
    %23 = arith.addf %20, %22 : vector<8x128xf32>
    %24 = math.exp %23 : vector<8x128xf32>
    %cst_13 = arith.constant 1.000000e+00 : f32
    %25 = vector.broadcast %cst_13 : f32 to vector<8x128xf32>
    %26 = arith.addf %25, %24 : vector<8x128xf32>
    %27 = arith.mulf %26, %26 : vector<8x128xf32>
    %cst_14 = arith.constant 1.000000e+00 : f32
    %28 = vector.broadcast %cst_14 : f32 to vector<8x128xf32>
    %29 = arith.addf %27, %28 : vector<8x128xf32>
    %30 = tpu.reciprocal %29 {approx = true} : vector<8x128xf32> -> vector<8x128xf32>
    %cst_15 = arith.constant 2.000000e+00 : f32
    %31 = vector.broadcast %cst_15 : f32 to vector<8x128xf32>
    %32 = arith.mulf %31, %30 : vector<8x128xf32>
    %cst_16 = arith.constant 1.000000e+00 : f32
    %33 = vector.broadcast %cst_16 : f32 to vector<8x128xf32>
    %34 = arith.subf %33, %32 : vector<8x128xf32>
    %35 = arith.mulf %23, %34 : vector<8x128xf32>
    %36 = arith.truncf %35 : vector<8x128xf32> to vector<8x128xbf16>
    %c0_17 = arith.constant 0 : index
    %c0_18 = arith.constant 0 : index
    %37 = vector.load %arg4[%c0_17, %c0_18] : memref<128x128xbf16, #tpu.memory_space<vmem>>, vector<128x128xbf16>
    %cst_19 = arith.constant dense<0.000000e+00> : vector<8x128xf32>
    %38 = tpu.matmul %36, %37, %cst_19 {dimension_numbers = #tpu.dot_dimension_numbers<[1], [0], [0], [1], [0, 0, 1, 1], [], []>} : vector<8x128xbf16>, vector<128x128xbf16>, vector<8x128xf32> -> vector<8x128xf32>
    %c0_20 = arith.constant 0 : index
    %c256 = arith.constant 256 : index
    %39 = vector.load %arg6[%c0_20, %c256] : memref<1x640xf32, #tpu.memory_space<vmem>>, vector<1x128xf32>
    %40 = vector.broadcast %39 : vector<1x128xf32> to vector<8x128xf32>
    %41 = arith.addf %38, %40 : vector<8x128xf32>
    %42 = math.exp %41 : vector<8x128xf32>
    %cst_21 = arith.constant 1.000000e+00 : f32
    %43 = vector.broadcast %cst_21 : f32 to vector<8x128xf32>
    %44 = arith.addf %43, %42 : vector<8x128xf32>
    %45 = arith.mulf %44, %44 : vector<8x128xf32>
    %cst_22 = arith.constant 1.000000e+00 : f32
    %46 = vector.broadcast %cst_22 : f32 to vector<8x128xf32>
    %47 = arith.addf %45, %46 : vector<8x128xf32>
    %48 = tpu.reciprocal %47 {approx = true} : vector<8x128xf32> -> vector<8x128xf32>
    %cst_23 = arith.constant 2.000000e+00 : f32
    %49 = vector.broadcast %cst_23 : f32 to vector<8x128xf32>
    %50 = arith.mulf %49, %48 : vector<8x128xf32>
    %cst_24 = arith.constant 1.000000e+00 : f32
    %51 = vector.broadcast %cst_24 : f32 to vector<8x128xf32>
    %52 = arith.subf %51, %50 : vector<8x128xf32>
    %53 = arith.mulf %41, %52 : vector<8x128xf32>
    %54 = arith.truncf %53 : vector<8x128xf32> to vector<8x128xbf16>
    %c0_25 = arith.constant 0 : index
    %c0_26 = arith.constant 0 : index
    %55 = vector.load %arg5[%c0_25, %c0_26] : memref<128x256xbf16, #tpu.memory_space<vmem>>, vector<128x256xbf16>
    %cst_27 = arith.constant dense<0.000000e+00> : vector<8x256xf32>
    %56 = tpu.matmul %54, %55, %cst_27 {dimension_numbers = #tpu.dot_dimension_numbers<[1], [0], [0], [1], [0, 0, 1, 1], [], []>} : vector<8x128xbf16>, vector<128x256xbf16>, vector<8x256xf32> -> vector<8x256xf32>
    %c0_28 = arith.constant 0 : index
    %c384 = arith.constant 384 : index
    %57 = vector.load %arg6[%c0_28, %c384] : memref<1x640xf32, #tpu.memory_space<vmem>>, vector<1x256xf32>
    %58 = vector.broadcast %57 : vector<1x256xf32> to vector<8x256xf32>
    %59 = arith.addf %56, %58 : vector<8x256xf32>
    %60 = math.exp %59 : vector<8x256xf32>
    %cst_29 = arith.constant 1.000000e+00 : f32
    %61 = vector.broadcast %cst_29 : f32 to vector<8x256xf32>
    %62 = arith.addf %61, %60 : vector<8x256xf32>
    %63 = arith.mulf %62, %62 : vector<8x256xf32>
    %cst_30 = arith.constant 1.000000e+00 : f32
    %64 = vector.broadcast %cst_30 : f32 to vector<8x256xf32>
    %65 = arith.addf %63, %64 : vector<8x256xf32>
    %66 = tpu.reciprocal %65 {approx = true} : vector<8x256xf32> -> vector<8x256xf32>
    %cst_31 = arith.constant 2.000000e+00 : f32
    %67 = vector.broadcast %cst_31 : f32 to vector<8x256xf32>
    %68 = arith.mulf %67, %66 : vector<8x256xf32>
    %cst_32 = arith.constant 1.000000e+00 : f32
    %69 = vector.broadcast %cst_32 : f32 to vector<8x256xf32>
    %70 = arith.subf %69, %68 : vector<8x256xf32>
    %71 = arith.mulf %59, %70 : vector<8x256xf32>
    %72 = arith.truncf %71 : vector<8x256xf32> to vector<8x256xbf16>
    %c0_33 = arith.constant 0 : index
    %c0_34 = arith.constant 0 : index
    %c0_35 = arith.constant 0 : index
    %73 = vector.load %arg7[%c0_33, %c0_34, %c0_35] : memref<1x256x4096xbf16, #tpu.memory_space<vmem>>, vector<1x256x4096xbf16>
    %74 = vector.shape_cast %73 : vector<1x256x4096xbf16> to vector<256x4096xbf16>
    %cst_36 = arith.constant dense<0.000000e+00> : vector<8x4096xf32>
    %75 = tpu.matmul %72, %74, %cst_36 {dimension_numbers = #tpu.dot_dimension_numbers<[1], [0], [0], [1], [0, 0, 1, 1], [], []>} : vector<8x256xbf16>, vector<256x4096xbf16>, vector<8x4096xf32> -> vector<8x4096xf32>
    %c0_37 = arith.constant 0 : index
    %c0_38 = arith.constant 0 : index
    %76 = vector.load %arg8[%c0_37, %c0_38] : memref<1x4096xf32, #tpu.memory_space<vmem>>, vector<1x4096xf32>
    %77 = vector.broadcast %76 : vector<1x4096xf32> to vector<8x4096xf32>
    %78 = arith.addf %75, %77 : vector<8x4096xf32>
    %c4096_i32 = arith.constant 4096 : i32
    %79 = arith.muli %arg0, %c4096_i32 : i32
    %c4096_i32_39 = arith.constant 4096 : i32
    %80 = arith.addi %79, %c4096_i32_39 : i32
    %c7236_i32 = arith.constant 7236 : i32
    %81 = arith.cmpi sle, %80, %c7236_i32 : i32
    %82 = arith.extui %81 : i1 to i32
    %c0_i32 = arith.constant 0 : i32
    %83 = arith.cmpi ne, %82, %c0_i32 : i32
    scf.if %83 {
      %c0_44 = arith.constant 0 : index
      %c0_45 = arith.constant 0 : index
      %89 = vector.load %arg9[%c0_44, %c0_45] : memref<8x4096xf32, #tpu.memory_space<vmem>>, vector<8x4096xf32>
      tpu.vector_store %arg9[%c0_44, %c0_45], %78 {strides = array<i32>} : memref<8x4096xf32, #tpu.memory_space<vmem>>, vector<8x4096xf32>,
    } else {
    }
    %c4096_i32_40 = arith.constant 4096 : i32
    %84 = arith.muli %arg0, %c4096_i32_40 : i32
    %c4096_i32_41 = arith.constant 4096 : i32
    %85 = arith.addi %84, %c4096_i32_41 : i32
    %c7236_i32_42 = arith.constant 7236 : i32
    %86 = arith.cmpi sgt, %85, %c7236_i32_42 : i32
    %87 = arith.extui %86 : i1 to i32
    %c0_i32_43 = arith.constant 0 : i32
    %88 = arith.cmpi ne, %87, %c0_i32_43 : i32
    scf.if %88 {
      %c4096_i32_44 = arith.constant 4096 : i32
      %89 = arith.muli %arg0, %c4096_i32_44 : i32
      %90 = tpu.iota {dimensions = array<i32: 1>} : vector<8x4096xi32>
      %91 = vector.broadcast %89 : i32 to vector<8x4096xi32>
      %92 = arith.addi %91, %90 : vector<8x4096xi32>
      %c7236_i32_45 = arith.constant 7236 : i32
      %93 = vector.broadcast %c7236_i32_45 : i32 to vector<8x4096xi32>
      %94 = arith.cmpi sge, %92, %93 : vector<8x4096xi32>
      %95 = arith.negf %78 : vector<8x4096xf32>
      %96 = math.exp %95 : vector<8x4096xf32>
      %cst_46 = arith.constant 1.000000e+00 : f32
      %97 = vector.broadcast %cst_46 : f32 to vector<8x4096xf32>
      %98 = arith.addf %97, %96 : vector<8x4096xf32>
      %99 = arith.divf %97, %98 : vector<8x4096xf32>
      %100 = arith.select %94, %99, %78 : vector<8x4096xi1>, vector<8x4096xf32>
      %c0_47 = arith.constant 0 : index
      %c0_48 = arith.constant 0 : index
      %101 = vector.load %arg9[%c0_47, %c0_48] : memref<8x4096xf32, #tpu.memory_space<vmem>>, vector<8x4096xf32>
      tpu.vector_store %arg9[%c0_47, %c0_48], %100 {strides = array<i32>} : memref<8x4096xf32, #tpu.memory_space<vmem>>, vector<8x4096xf32>,
    } else {
    }
    return
  }
  func.func @transform_0(%arg0: i32) -> (i32, i32) {
    %c0_i32 = arith.constant 0 : i32
    %c0_i32_0 = arith.constant 0 : i32
    %c0_i32_1 = arith.constant 0 : i32
    return %c0_i32, %c0_i32_0 : i32, i32
  }
  func.func @transform_1(%arg0: i32) -> (i32, i32) {
    %c0_i32 = arith.constant 0 : i32
    %c0_i32_0 = arith.constant 0 : i32
    %c0_i32_1 = arith.constant 0 : i32
    return %c0_i32, %c0_i32_0 : i32, i32
  }
  func.func @transform_2(%arg0: i32) -> (i32, i32) {
    %c0_i32 = arith.constant 0 : i32
    %c0_i32_0 = arith.constant 0 : i32
    %c0_i32_1 = arith.constant 0 : i32
    return %c0_i32, %c0_i32_0 : i32, i32
  }
  func.func @transform_3(%arg0: i32) -> (i32, i32) {
    %c0_i32 = arith.constant 0 : i32
    %c0_i32_0 = arith.constant 0 : i32
    %c0_i32_1 = arith.constant 0 : i32
    return %c0_i32, %c0_i32_0 : i32, i32
  }
  func.func @transform_4(%arg0: i32) -> (i32, i32) {
    %c0_i32 = arith.constant 0 : i32
    %c0_i32_0 = arith.constant 0 : i32
    %c0_i32_1 = arith.constant 0 : i32
    return %c0_i32, %c0_i32_0 : i32, i32
  }
  func.func @transform_5(%arg0: i32) -> (i32, i32) {
    %c0_i32 = arith.constant 0 : i32
    %c0_i32_0 = arith.constant 0 : i32
    %c0_i32_1 = arith.constant 0 : i32
    return %c0_i32, %c0_i32_0 : i32, i32
  }
  func.func @transform_6(%arg0: i32) -> (i32, i32, i32) {
    %c0_i32 = arith.constant 0 : i32
    %c0_i32_0 = arith.constant 0 : i32
    %c0_i32_1 = arith.constant 0 : i32
    return %arg0, %c0_i32, %c0_i32_0 : i32, i32, i32
  }
  func.func @transform_7(%arg0: i32) -> (i32, i32) {
    %c0_i32 = arith.constant 0 : i32
    %c0_i32_0 = arith.constant 0 : i32
    return %c0_i32, %arg0 : i32, i32
  }
  func.func @transform_8(%arg0: i32) -> (i32, i32) {
    %c0_i32 = arith.constant 0 : i32
    %c0_i32_0 = arith.constant 0 : i32
    return %c0_i32, %arg0 : i32, i32
  }
}

</mosaic_0001>

<bundles_post_ra>
// kernel: deep_qmp_forward.2
= control target key start
LH: loop header
LB: loop body
LE: loop exit
PB: predicated region body
PF: predicated region fallthrough
CT: control target
= control target key end

     0   :  { %s12119_s0 = inlined_call_operand.vmem [shape: f32[3,384,16], index: 0, kind: input, shape index: {}]   ;;  %s12120_s1 = inlined_call_operand.hbm [shape: f32[16,24], index: 1, kind: input, shape index: {}]   ;;  %s12121_s2 = inlined_call_operand.vmem [shape: f32[3,24,8], index: 2, kind: input, shape index: {}]   ;;  %s12122_s3 = inlined_call_operand.hbm [shape: f32[3,8,48], index: 3, kind: input, shape index: {}]   ;;  %s12123_s4 = inlined_call_operand.hbm [shape: f32[3,48,64], index: 4, kind: input, shape index: {}]   ;;  %s12124_s5 = inlined_call_operand.hbm [shape: f32[3,64,64], index: 5, kind: input, shape index: {}]   ;;  %s12125_s6 = inlined_call_operand.hbm [shape: f32[4,128], index: 6, kind: input, shape index: {}]   ;;  %s12126_s7 = inlined_call_operand.vmem [shape: bf16[384,64], index: 7, kind: output, shape index: {}]  }
   0x1   :  { %12167 = sst [smem:[#allocation51_spill]] %s12122_s3 }
   0x2   :  { %12 = vsyncpa [#allocation4], 0 }
   0x3   :  { %13 = vsyncpa [#allocation6], 0 }
   0x4   :  { %14 = vsyncpa [#allocation9], 0  ;;  %s9538_s24 = smov 0   ;;  %s9540_s25 = smov 0  }
   0x5   :  { %s9542_s26 = smov 0  }
   0x6 LB: > { %s12129_s27 = sadd.s32 4294967295, %s9489_s26   ;;  %s9555_s28 = sadd.s32 1, %s9489_s26   ;;  %s9489_s26 = sphi %s9542_s26, %s12254_s26   ;;  %s9485_s25 = sphi %s9540_s25, %s12253_s25   ;;  %s9481_s24 = sphi %s9538_s24, %s12252_s24  }
   0x7   : > { %s24_s29 = ssub.s32 %s9489_s26, %s9555_s28  ;;  %s27_s30 = sadd.s32 1, %s9485_s25 }
   0x8   : > { %p25_p0 = scmp.eq.s32.totalorder %s24_s29, 0  ;;  %p34_p1 = scmp.ne.s32.totalorder %s9485_s25, %s9481_s24 }
   0x9   : > { %p35_p2 = scmp.eq.s32.totalorder %s9489_s26, 0  ;;  %p6842_p3 = scmp.ge.s32.totalorder %s9489_s26, 1 }
   0xa   : > { %s9565_s8 = scalar_select %p25_p0, %s9485_s25, %s27_s30  }
   0xb   : > { %p9567_p4 = por %p35_p2, %p34_p1  ;;  %p203_p5 = scmp.lt.s32.totalorder %s9489_s26, 3 }
   0xc   : > { %12168 = sst [smem:[#allocation14_spill]] %s9565_s8  ;;  %p9574_p6 = scmp.eq.s32.totalorder %s12129_s27, 0 }
   0xd   : > { %s12169_s9 = scalar_select %p9567_p4, 1, 0 }
   0xe   : > { %s12170_s10 = scalar_select %p9574_p6, 1, 0 }
   0xf   : > { %p9578_p7 = pnand %p6842_p3, %p203_p5  ;;  %s9491_s12 = smov [#allocation5]  }
  0x10   : > { %s231_s13 = sshll.u32 %s9491_s12, 4  ;;  %s9492_s15 = smov [#allocation8]   ;;  %s9584_s13 = int_to_ptr.vmem [resolvable:$true] %s231_s13 }
  0x11   : > { %s12171_s11 = scalar_select %p9578_p7, 1, 0 }
  0x12   : > { %p8586_p8 = pneg %p9578_p7  ;;  %s257_s16 = sshll.u32 %s9492_s15, 4  ;;  %s9592_s16 = int_to_ptr.vmem [resolvable:$true] %s257_s16 }
  0x13   : > { %s9493_s17 = smov [#allocation3]   ;;  %s12173_s3 = sld [smem:[#allocation51_spill]] }
  0x14   : > { %p9588_p9 = pnand %p9574_p6, %p8586_p8  ;;  %s9594_s18 = sshll.u32 %s9493_s17, 4  ;;  %s216_s18 = int_to_ptr.vmem [resolvable:$true] %s9594_s18 }
  0x16   : > { %p9604_p11 = pneg %p9588_p9 }
  0x19   : > { %s9315_s21 = scalar_lea.hbm %s12173_s3, 384 }
  0x1a   : > { %p9316_p10 = scmp.ne.s32.totalorder %s12173_s3, %s9315_s21  ;;  %p9322_p0 = scmp.lt.u32.totalorder %s9315_s21, %s12173_s3 }
  0x1c   : > { %p9318_p12 = pnand %p9604_p11, %p9316_p10 }
  0x1e   : > { %p9319_p13 = pneg %p9318_p12 }
  0x20   : > { %p9324_p1 = pnand %p9322_p0, %p9319_p13 }
  0x22   : > { %9327 = shalt.err (!%p9324_p1)
}
  0x23   : > { %s9328_s15 = scalar_lea.vmem %s9584_s13, 384  ;;  %p9336_p8 = scmp.lt.s32.totalorder %s9584_s13, %s9584_s13 }
  0x24   : > { %p9329_p2 = scmp.ne.s32.totalorder %s9584_s13, %s9328_s15  ;;  %p9337_p6 = scmp.lt.s32.totalorder %s9328_s15, %s9328_s15 }
  0x26   : > { %p9331_p3 = pnand %p9329_p2, %p9604_p11  ;;  %p9338_p10 = por %p9337_p6, %p9336_p8 }
  0x28   : > { %p9332_p5 = pneg %p9331_p3 }
  0x2a   : > { %p9339_p12 = pnand %p9338_p10, %p9332_p5 }
  0x2c   : > { %9342 = shalt.err (!%p9339_p12)
}
  0x2d   : > { %s9494_s17 = smov 128   ;;  %s9495_s19 = smov 8  }
  0x2e   : > { %8592 = dma.hbm_to_vmem [thread:$0]  (!%p9588_p9), %s12173_s3, 384, %s9584_s13, [#allocation6], %s9494_s17, %s9494_s17, %s9495_s19  }
  0x2f   : > { %s9343_s30 = scalar_lea.hbm %s12124_s5, 3072 }
  0x30   : > { %p9344_p6 = scmp.ne.s32.totalorder %s12124_s5, %s9343_s30  ;;  %p9350_p1 = scmp.lt.u32.totalorder %s9343_s30, %s12124_s5 }
  0x32   : > { %p9346_p13 = pnand %p9344_p6, %p9604_p11 }
  0x34   : > { %p9347_p0 = pneg %p9346_p13 }
  0x36   : > { %p9352_p2 = pnand %p9350_p1, %p9347_p0 }
  0x38   : > { %9355 = shalt.err (!%p9352_p2)
}
  0x39   : > { %s9356_s13 = scalar_lea.vmem %s9592_s16, 3072  ;;  %p9364_p10 = scmp.lt.s32.totalorder %s9592_s16, %s9592_s16 }
  0x3a   : > { %p9357_p3 = scmp.ne.s32.totalorder %s9592_s16, %s9356_s13  ;;  %p9365_p12 = scmp.lt.s32.totalorder %s9356_s13, %s9356_s13 }
  0x3c   : > { %p9359_p5 = pnand %p9357_p3, %p9604_p11  ;;  %p9366_p6 = por %p9365_p12, %p9364_p10 }
  0x3e   : > { %p9360_p8 = pneg %p9359_p5 }
  0x40   : > { %p9367_p13 = pnand %p9366_p6, %p9360_p8 }
  0x42   : > { %9370 = shalt.err (!%p9367_p13)
}
  0x43   : > { %8598 = dma.hbm_to_vmem [thread:$0]  (!%p9588_p9), %s12124_s5, 3072, %s9592_s16, [#allocation9], %s9494_s17, %s9494_s17, %s9495_s19  }
  0x44   : > { %s9371_s22 = scalar_lea.hbm %s12120_s1, 256 }
  0x45   : > { %p9372_p0 = scmp.ne.s32.totalorder %s12120_s1, %s9371_s22  ;;  %p9378_p3 = scmp.lt.u32.totalorder %s9371_s22, %s12120_s1 }
  0x47   : > { %p9374_p1 = pnand %p9372_p0, %p9604_p11 }
  0x49   : > { %p9375_p2 = pneg %p9374_p1 }
  0x4b   : > { %p9380_p5 = pnand %p9378_p3, %p9375_p2 }
  0x4d   : > { %9383 = shalt.err (!%p9380_p5)
}
  0x4e   : > { %s9384_s13 = scalar_lea.vmem %s216_s18, 256  ;;  %p9392_p6 = scmp.lt.s32.totalorder %s216_s18, %s216_s18 }
  0x4f   : > { %p9385_p8 = scmp.ne.s32.totalorder %s216_s18, %s9384_s13  ;;  %p9393_p13 = scmp.lt.s32.totalorder %s9384_s13, %s9384_s13 }
  0x51   : > { %p9387_p10 = pnand %p9385_p8, %p9604_p11  ;;  %p9394_p7 = por %p9393_p13, %p9392_p6 }
  0x53   : > { %p9388_p12 = pneg %p9387_p10 }
  0x55   : > { %p9395_p4 = pnand %p9394_p7, %p9388_p12 }
  0x57   : > { %9398 = shalt.err (!%p9395_p4)
}
  0x58   : > { %8589 = dma.hbm_to_vmem [thread:$0]  (!%p9588_p9), %s12120_s1, 256, %s216_s18, [#allocation4], %s9494_s17, %s9494_s17, %s9495_s19  }
  0x59   : > { %s9496_s8 = smov [#allocation7]   ;;  %s9497_s21 = smov [#allocation10]  }
  0x5a   : > { %s244_s20 = sshll.u32 %s9496_s8, 4  ;;  %s271_s22 = sshll.u32 %s9497_s21, 4  ;;  %s245_s20 = int_to_ptr.vmem [resolvable:$true] %s244_s20  ;;  %s272_s22 = int_to_ptr.vmem [resolvable:$true] %s271_s22 }
  0x5b   : > { %s9399_s12 = scalar_lea.hbm %s12123_s4, 2304 }
  0x5c   : > { %p9400_p4 = scmp.ne.s32.totalorder %s12123_s4, %s9399_s12  ;;  %p9406_p1 = scmp.lt.u32.totalorder %s9399_s12, %s12123_s4 }
  0x5e   : > { %p9402_p7 = pnand %p9400_p4, %p9604_p11 }
  0x60   : > { %p9403_p0 = pneg %p9402_p7 }
  0x62   : > { %p9408_p2 = pnand %p9406_p1, %p9403_p0 }
  0x64   : > { %9411 = shalt.err (!%p9408_p2)
}
  0x65   : > { %s9412_s18 = scalar_lea.vmem %s245_s20, 2304  ;;  %p9420_p10 = scmp.lt.s32.totalorder %s245_s20, %s245_s20 }
  0x66   : > { %p9413_p3 = scmp.ne.s32.totalorder %s245_s20, %s9412_s18  ;;  %p9421_p12 = scmp.lt.s32.totalorder %s9412_s18, %s9412_s18 }
  0x68   : > { %p9415_p5 = pnand %p9413_p3, %p9604_p11  ;;  %p9422_p6 = por %p9421_p12, %p9420_p10 }
  0x6a   : > { %p9416_p8 = pneg %p9415_p5 }
  0x6c   : > { %p9423_p13 = pnand %p9422_p6, %p9416_p8 }
  0x6e   : > { %9426 = shalt.err (!%p9423_p13)
}
  0x6f   : > { %8595 = dma.hbm_to_vmem [thread:$0]  (!%p9588_p9), %s12123_s4, 2304, %s245_s20, [#allocation6], %s9494_s17, %s9494_s17, %s9495_s19  }
  0x70   : > { %s9427_s23 = scalar_lea.hbm %s12125_s6, 64 }
  0x71   : > { %p9428_p4 = scmp.ne.s32.totalorder %s12125_s6, %s9427_s23  ;;  %p9434_p1 = scmp.lt.u32.totalorder %s9427_s23, %s12125_s6 }
  0x73   : > { %p9430_p7 = pnand %p9428_p4, %p9604_p11 }
  0x75   : > { %p9431_p0 = pneg %p9430_p7 }
  0x77   : > { %p9436_p2 = pnand %p9434_p1, %p9431_p0 }
  0x79   : > { %9439 = shalt.err (!%p9436_p2)
}
  0x7a   : > { %s9440_s16 = scalar_lea.vmem %s272_s22, 64  ;;  %p9448_p10 = scmp.lt.s32.totalorder %s272_s22, %s272_s22 }
  0x7b   : > { %p9441_p3 = scmp.ne.s32.totalorder %s272_s22, %s9440_s16  ;;  %p9449_p12 = scmp.lt.s32.totalorder %s9440_s16, %s9440_s16 }
  0x7d   : > { %p9443_p5 = pnand %p9441_p3, %p9604_p11  ;;  %p9450_p6 = por %p9449_p12, %p9448_p10 }
  0x7f   : > { %p9444_p8 = pneg %p9443_p5 }
  0x81   : > { %p9451_p13 = pnand %p9450_p6, %p9444_p8 }
  0x83   : > { %9454 = shalt.err (!%p9451_p13)
}
  0x84   : > { %8601 = dma.hbm_to_vmem [thread:$0]  (!%p9588_p9), %s12125_s6, 64, %s272_s22, [#allocation9]  }
  0x85   : > { %p6848_p4 = scmp.ge.s32.totalorder %s9489_s26, 2 }
  0x86   : > { %p12175_p7 = scmp.ne.s32.totalorder (!%p6848_p4), %s12169_s9, 0 }
  0x87   : > { %278 = sbr.rel (%p6848_p4) target bundleno = 183 (0xb7), region = 40 }
  0x8e   : > { %281 = sbr.rel (!%p12175_p7) target bundleno = 183 (0xb7), region = 44  ;;  %s283_s29 = sand.u32 (%p12175_p7), 1, %s9485_s25  }
  0x8f   : > { %s7301_s20 = smul.u32 (%p12175_p7), 192, %s9489_s26 }
  0x90   : > { %s8564_s18 = smul.u32 (%p12175_p7), 576, %s283_s29 }
  0x91   : > { %s9723_s8 = scalar_lea.vmem (%p12175_p7), %s12119_s0, %s7301_s20 }
  0x92   : > { %v458_v0 = vld [vmem:[%s9723_s8] sm:$0xff] (%p12175_p7)  ;;  %v460_v1 = vld [vmem:[%s9723_s8 + $0x8] sm:$0xff] (%p12175_p7)  ;;  %v462_v2 = vld [vmem:[%s9723_s8 + $0x10] sm:$0xff] (%p12175_p7)  ;;  %s9728_s9 = scalar_lea.vmem (%p12175_p7), [#allocation2], %s8564_s18 }
  0x93   : > { %459 = vst [vmem:[%s9728_s9] sm:$0xff] (%p12175_p7), %v458_v0  ;;  %461 = vst [vmem:[%s9728_s9 + $0x8] sm:$0xff] (%p12175_p7), %v460_v1  ;;  %v464_v3 = vld [vmem:[%s9723_s8 + $0x18] sm:$0xff] (%p12175_p7)  ;;  %v466_v4 = vld [vmem:[%s9723_s8 + $0x20] sm:$0xff] (%p12175_p7) }
  0x94   : > { %463 = vst [vmem:[%s9728_s9 + $0x10] sm:$0xff] (%p12175_p7), %v462_v2  ;;  %v468_v5 = vld [vmem:[%s9723_s8 + $0x28] sm:$0xff] (%p12175_p7)  ;;  %465 = vst [vmem:[%s9728_s9 + $0x18] sm:$0xff] (%p12175_p7), %v464_v3  ;;  %v470_v6 = vld [vmem:[%s9723_s8 + $0x30] sm:$0xff] (%p12175_p7) }
  0x95   : > { %467 = vst [vmem:[%s9728_s9 + $0x20] sm:$0xff] %v466_v4  ;;  %469 = vst [vmem:[%s9728_s9 + $0x28] sm:$0xff] %v468_v5  ;;  %v472_v7 = vld [vmem:[%s9723_s8 + $0x38] sm:$0xff]  ;;  %v474_v8 = vld [vmem:[%s9723_s8 + $0x40] sm:$0xff] }
  0x96   : > { %471 = vst [vmem:[%s9728_s9 + $0x30] sm:$0xff] %v470_v6  ;;  %473 = vst [vmem:[%s9728_s9 + $0x38] sm:$0xff] %v472_v7  ;;  %v476_v9 = vld [vmem:[%s9723_s8 + $0x48] sm:$0xff]  ;;  %v478_v10 = vld [vmem:[%s9723_s8 + $0x50] sm:$0xff] }
  0x97   : > { %475 = vst [vmem:[%s9728_s9 + $0x40] sm:$0xff] %v474_v8  ;;  %v480_v11 = vld [vmem:[%s9723_s8 + $0x58] sm:$0xff]  ;;  %477 = vst [vmem:[%s9728_s9 + $0x48] sm:$0xff] %v476_v9  ;;  %v482_v12 = vld [vmem:[%s9723_s8 + $0x60] sm:$0xff] }
  0x98   : > { %479 = vst [vmem:[%s9728_s9 + $0x50] sm:$0xff] %v478_v10  ;;  %481 = vst [vmem:[%s9728_s9 + $0x58] sm:$0xff] %v480_v11  ;;  %v484_v13 = vld [vmem:[%s9723_s8 + $0x68] sm:$0xff]  ;;  %v486_v14 = vld [vmem:[%s9723_s8 + $0x70] sm:$0xff] }
  0x99   : > { %483 = vst [vmem:[%s9728_s9 + $0x60] sm:$0xff] %v482_v12  ;;  %485 = vst [vmem:[%s9728_s9 + $0x68] sm:$0xff] %v484_v13  ;;  %v488_v15 = vld [vmem:[%s9723_s8 + $0x78] sm:$0xff]  ;;  %v490_v16 = vld [vmem:[%s9723_s8 + $0x80] sm:$0xff] }
  0x9a   : > { %487 = vst [vmem:[%s9728_s9 + $0x70] sm:$0xff] %v486_v14  ;;  %v492_v17 = vld [vmem:[%s9723_s8 + $0x88] sm:$0xff]  ;;  %489 = vst [vmem:[%s9728_s9 + $0x78] sm:$0xff] %v488_v15  ;;  %v494_v18 = vld [vmem:[%s9723_s8 + $0x90] sm:$0xff] }
  0x9b   : > { %491 = vst [vmem:[%s9728_s9 + $0x80] sm:$0xff] %v490_v16  ;;  %493 = vst [vmem:[%s9728_s9 + $0x88] sm:$0xff] %v492_v17  ;;  %v496_v19 = vld [vmem:[%s9723_s8 + $0x98] sm:$0xff]  ;;  %v498_v20 = vld [vmem:[%s9723_s8 + $0xa0] sm:$0xff] }
  0x9c   : > { %495 = vst [vmem:[%s9728_s9 + $0x90] sm:$0xff] %v494_v18  ;;  %497 = vst [vmem:[%s9728_s9 + $0x98] sm:$0xff] %v496_v19  ;;  %v500_v21 = vld [vmem:[%s9723_s8 + $0xa8] sm:$0xff]  ;;  %v502_v22 = vld [vmem:[%s9723_s8 + $0xb0] sm:$0xff] }
  0x9d   : > { %499 = vst [vmem:[%s9728_s9 + $0xa0] sm:$0xff] %v498_v20  ;;  %v504_v23 = vld [vmem:[%s9723_s8 + $0xb8] sm:$0xff]  ;;  %501 = vst [vmem:[%s9728_s9 + $0xa8] sm:$0xff] %v500_v21  ;;  %v506_v24 = vld [vmem:[%s9723_s8 + $0x180] sm:$0xff] }
  0x9e   : > { %503 = vst [vmem:[%s9728_s9 + $0xb0] sm:$0xff] %v502_v22  ;;  %505 = vst [vmem:[%s9728_s9 + $0xb8] sm:$0xff] %v504_v23  ;;  %v508_v25 = vld [vmem:[%s9723_s8 + $0x188] sm:$0xff]  ;;  %v510_v26 = vld [vmem:[%s9723_s8 + $0x190] sm:$0xff] }
  0x9f   : > { %507 = vst [vmem:[%s9728_s9 + $0xc0] sm:$0xff] %v506_v24  ;;  %509 = vst [vmem:[%s9728_s9 + $0xc8] sm:$0xff] %v508_v25  ;;  %v512_v27 = vld [vmem:[%s9723_s8 + $0x198] sm:$0xff]  ;;  %v514_v28 = vld [vmem:[%s9723_s8 + $0x1a0] sm:$0xff] }
  0xa0   : > { %511 = vst [vmem:[%s9728_s9 + $0xd0] sm:$0xff] %v510_v26  ;;  %v516_v29 = vld [vmem:[%s9723_s8 + $0x1a8] sm:$0xff]  ;;  %513 = vst [vmem:[%s9728_s9 + $0xd8] sm:$0xff] %v512_v27  ;;  %v518_v30 = vld [vmem:[%s9723_s8 + $0x1b0] sm:$0xff] }
  0xa1   : > { %515 = vst [vmem:[%s9728_s9 + $0xe0] sm:$0xff] %v514_v28  ;;  %517 = vst [vmem:[%s9728_s9 + $0xe8] sm:$0xff] %v516_v29  ;;  %v520_v31 = vld [vmem:[%s9723_s8 + $0x1b8] sm:$0xff]  ;;  %v522_v32 = vld [vmem:[%s9723_s8 + $0x1c0] sm:$0xff] }
  0xa2   : > { %519 = vst [vmem:[%s9728_s9 + $0xf0] sm:$0xff] %v518_v30  ;;  %521 = vst [vmem:[%s9728_s9 + $0xf8] sm:$0xff] %v520_v31  ;;  %v524_v33 = vld [vmem:[%s9723_s8 + $0x1c8] sm:$0xff]  ;;  %v526_v34 = vld [vmem:[%s9723_s8 + $0x1d0] sm:$0xff] }
  0xa3   : > { %523 = vst [vmem:[%s9728_s9 + $0x100] sm:$0xff] %v522_v32  ;;  %v528_v35 = vld [vmem:[%s9723_s8 + $0x1d8] sm:$0xff]  ;;  %525 = vst [vmem:[%s9728_s9 + $0x108] sm:$0xff] %v524_v33  ;;  %v530_v36 = vld [vmem:[%s9723_s8 + $0x1e0] sm:$0xff] }
  0xa4   : > { %527 = vst [vmem:[%s9728_s9 + $0x110] sm:$0xff] %v526_v34  ;;  %529 = vst [vmem:[%s9728_s9 + $0x118] sm:$0xff] %v528_v35  ;;  %v532_v37 = vld [vmem:[%s9723_s8 + $0x1e8] sm:$0xff]  ;;  %v534_v38 = vld [vmem:[%s9723_s8 + $0x1f0] sm:$0xff] }
  0xa5   : > { %531 = vst [vmem:[%s9728_s9 + $0x120] sm:$0xff] %v530_v36  ;;  %533 = vst [vmem:[%s9728_s9 + $0x128] sm:$0xff] %v532_v37  ;;  %v536_v39 = vld [vmem:[%s9723_s8 + $0x1f8] sm:$0xff]  ;;  %v538_v40 = vld [vmem:[%s9723_s8 + $0x200] sm:$0xff] }
  0xa6   : > { %535 = vst [vmem:[%s9728_s9 + $0x130] sm:$0xff] %v534_v38  ;;  %v540_v41 = vld [vmem:[%s9723_s8 + $0x208] sm:$0xff]  ;;  %537 = vst [vmem:[%s9728_s9 + $0x138] sm:$0xff] %v536_v39  ;;  %v542_v42 = vld [vmem:[%s9723_s8 + $0x210] sm:$0xff] }
  0xa7   : > { %539 = vst [vmem:[%s9728_s9 + $0x140] sm:$0xff] %v538_v40  ;;  %541 = vst [vmem:[%s9728_s9 + $0x148] sm:$0xff] %v540_v41  ;;  %v544_v43 = vld [vmem:[%s9723_s8 + $0x218] sm:$0xff]  ;;  %v546_v44 = vld [vmem:[%s9723_s8 + $0x220] sm:$0xff] }
  0xa8   : > { %543 = vst [vmem:[%s9728_s9 + $0x150] sm:$0xff] %v542_v42  ;;  %545 = vst [vmem:[%s9728_s9 + $0x158] sm:$0xff] %v544_v43  ;;  %v548_v45 = vld [vmem:[%s9723_s8 + $0x228] sm:$0xff]  ;;  %v550_v46 = vld [vmem:[%s9723_s8 + $0x230] sm:$0xff] }
  0xa9   : > { %547 = vst [vmem:[%s9728_s9 + $0x160] sm:$0xff] %v546_v44  ;;  %v552_v47 = vld [vmem:[%s9723_s8 + $0x238] sm:$0xff]  ;;  %549 = vst [vmem:[%s9728_s9 + $0x168] sm:$0xff] %v548_v45  ;;  %v554_v48 = vld [vmem:[%s9723_s8 + $0x300] sm:$0xff] }
  0xaa   : > { %551 = vst [vmem:[%s9728_s9 + $0x170] sm:$0xff] %v550_v46  ;;  %553 = vst [vmem:[%s9728_s9 + $0x178] sm:$0xff] %v552_v47  ;;  %v556_v49 = vld [vmem:[%s9723_s8 + $0x308] sm:$0xff]  ;;  %v558_v50 = vld [vmem:[%s9723_s8 + $0x310] sm:$0xff] }
  0xab   : > { %555 = vst [vmem:[%s9728_s9 + $0x180] sm:$0xff] %v554_v48  ;;  %557 = vst [vmem:[%s9728_s9 + $0x188] sm:$0xff] %v556_v49  ;;  %v560_v51 = vld [vmem:[%s9723_s8 + $0x318] sm:$0xff]  ;;  %v562_v52 = vld [vmem:[%s9723_s8 + $0x320] sm:$0xff] }
  0xac   : > { %559 = vst [vmem:[%s9728_s9 + $0x190] sm:$0xff] %v558_v50  ;;  %v564_v53 = vld [vmem:[%s9723_s8 + $0x328] sm:$0xff]  ;;  %561 = vst [vmem:[%s9728_s9 + $0x198] sm:$0xff] %v560_v51  ;;  %v566_v54 = vld [vmem:[%s9723_s8 + $0x330] sm:$0xff] }
  0xad   : > { %563 = vst [vmem:[%s9728_s9 + $0x1a0] sm:$0xff] %v562_v52  ;;  %565 = vst [vmem:[%s9728_s9 + $0x1a8] sm:$0xff] %v564_v53  ;;  %v568_v55 = vld [vmem:[%s9723_s8 + $0x338] sm:$0xff]  ;;  %v570_v56 = vld [vmem:[%s9723_s8 + $0x340] sm:$0xff] }
  0xae   : > { %567 = vst [vmem:[%s9728_s9 + $0x1b0] sm:$0xff] %v566_v54  ;;  %569 = vst [vmem:[%s9728_s9 + $0x1b8] sm:$0xff] %v568_v55  ;;  %v572_v57 = vld [vmem:[%s9723_s8 + $0x348] sm:$0xff]  ;;  %v574_v58 = vld [vmem:[%s9723_s8 + $0x350] sm:$0xff] }
  0xaf   : > { %571 = vst [vmem:[%s9728_s9 + $0x1c0] sm:$0xff] %v570_v56  ;;  %v576_v59 = vld [vmem:[%s9723_s8 + $0x358] sm:$0xff]  ;;  %573 = vst [vmem:[%s9728_s9 + $0x1c8] sm:$0xff] %v572_v57  ;;  %v578_v60 = vld [vmem:[%s9723_s8 + $0x360] sm:$0xff] }
  0xb0   : > { %575 = vst [vmem:[%s9728_s9 + $0x1d0] sm:$0xff] %v574_v58  ;;  %577 = vst [vmem:[%s9728_s9 + $0x1d8] sm:$0xff] %v576_v59  ;;  %v580_v61 = vld [vmem:[%s9723_s8 + $0x368] sm:$0xff]  ;;  %v582_v62 = vld [vmem:[%s9723_s8 + $0x370] sm:$0xff] }
  0xb1   : > { %579 = vst [vmem:[%s9728_s9 + $0x1e0] sm:$0xff] %v578_v60  ;;  %581 = vst [vmem:[%s9728_s9 + $0x1e8] sm:$0xff] %v580_v61  ;;  %v584_v63 = vld [vmem:[%s9723_s8 + $0x378] sm:$0xff]  ;;  %v586_v0 = vld [vmem:[%s9723_s8 + $0x380] sm:$0xff] }
  0xb2   : > { %583 = vst [vmem:[%s9728_s9 + $0x1f0] sm:$0xff] %v582_v62  ;;  %v588_v1 = vld [vmem:[%s9723_s8 + $0x388] sm:$0xff]  ;;  %585 = vst [vmem:[%s9728_s9 + $0x1f8] sm:$0xff] %v584_v63  ;;  %v590_v2 = vld [vmem:[%s9723_s8 + $0x390] sm:$0xff] }
  0xb3   : > { %587 = vst [vmem:[%s9728_s9 + $0x200] sm:$0xff] %v586_v0  ;;  %589 = vst [vmem:[%s9728_s9 + $0x208] sm:$0xff] %v588_v1  ;;  %v592_v3 = vld [vmem:[%s9723_s8 + $0x398] sm:$0xff]  ;;  %v594_v4 = vld [vmem:[%s9723_s8 + $0x3a0] sm:$0xff] }
  0xb4   : > { %591 = vst [vmem:[%s9728_s9 + $0x210] sm:$0xff] %v590_v2  ;;  %593 = vst [vmem:[%s9728_s9 + $0x218] sm:$0xff] %v592_v3  ;;  %v596_v5 = vld [vmem:[%s9723_s8 + $0x3a8] sm:$0xff]  ;;  %v598_v6 = vld [vmem:[%s9723_s8 + $0x3b0] sm:$0xff] }
  0xb5   : > { %595 = vst [vmem:[%s9728_s9 + $0x220] sm:$0xff] %v594_v4  ;;  %v600_v7 = vld [vmem:[%s9723_s8 + $0x3b8] sm:$0xff]  ;;  %597 = vst [vmem:[%s9728_s9 + $0x228] sm:$0xff] %v596_v5 }
  0xb6   : > { %599 = vst [vmem:[%s9728_s9 + $0x230] sm:$0xff] %v598_v6  ;;  %601 = vst [vmem:[%s9728_s9 + $0x238] sm:$0xff] %v600_v7 }
  0xb7 PF: > { %p12176_p9 = scmp.ne.s32.totalorder %s12171_s11, 0 }
  0xb9   : > { %610 = sbr.rel (%p12176_p9) target bundleno = 1951 (0x79f), region = 82 }
  0xc0   : > { %s613_s14 = sand.u32 1, %s9481_s24   ;;  %p12177_p11 = scmp.ne.s32.totalorder %s12170_s10, 0 }
  0xc1   : > { %s8565_s22 = smul.u32 576, %s613_s14 }
  0xc3   : > { %s9874_s21 = scalar_lea.vmem [#allocation2], %s8565_s22 }
  0xc4   : > { %9468 = dma.done.wait (%p12177_p11), [#allocation4], 256  }
  0xc5   : > { %9470 = vsyncadd (%p12177_p11), [#allocation4], 4294967040 }
  0xc6   : > { %9472 = dma.done.wait (%p12177_p11), [#allocation6], 2688  }
  0xc7   : > { %9474 = vsyncadd (%p12177_p11), [#allocation6], 4294964608 }
  0xc8   : > { %9476 = dma.done.wait (%p12177_p11), [#allocation9], 3136  }
  0xc9   : > { %9478 = vsyncadd (%p12177_p11), [#allocation9], 4294964160  ;;  %vm697_vm0 = vcmask 130048   ;;  %v671_v8 = vld [vmem:[#allocation3] sm:$0xff]  ;;  %v672_v9 = vld [vmem:[#allocation3 + $0x8] sm:$0xff]  ;;  %vm2174_vm1 = vcmask 195584  }
  0xca   : > { %v685_v10 = vld [vmem:[%s9874_s21 + $0x60] sm:$0xff]  ;;  %v8406_v11 = vpack.c.bf16 %v672_v9, %v671_v8  ;;  %v686_v12 = vld [vmem:[%s9874_s21 + $0x68] sm:$0xff]  ;;  %v687_v13 = vld [vmem:[%s9874_s21 + $0x70] sm:$0xff]  ;;  %vm3221_vm2 = vcmask 64512   ;;  %vm3690_vm3 = vcmask 1046528   ;;  %vm3997_vm4 = vcmask 1045504  }
  0xcb   : > { %7768 = vmatprep.mubr.msk.f32.mxu1 %vm697_vm0, %v685_v10  ;;  %v673_v14 = vld [vmem:[%s9874_s21] sm:$0xff]  ;;  %v674_v15 = vld [vmem:[%s9874_s21 + $0x8] sm:$0xff]  ;;  %v688_v16 = vld [vmem:[%s9874_s21 + $0x78] sm:$0xff]  ;;  %vm4344_vm5 = vcmask 392192   ;;  %vm5477_vm6 = vcmask 523264   ;;  %s12250_s14 = sadd.s32 4294967295, %s9489_s26  }
  0xcc   : > { %8514 = vmatprep.subr.bf16.mxu1 %v8406_v11  ;;  %8407 = vmatprep.subr.bf16.mxu0 %v8406_v11  ;;  %v675_v17 = vld [vmem:[%s9874_s21 + $0x10] sm:$0xff]  ;;  %v689_v18 = vld [vmem:[%s9874_s21 + $0x80] sm:$0xff]  ;;  %v676_v19 = vld [vmem:[%s9874_s21 + $0x18] sm:$0xff]  ;;  %s11912_s22 = smul.u32 24, %s12250_s14  ;;  %vm6703_vm7 = vcmask 519168   ;;  %vm6605_vm8 = vcmask 1041408  }
  0xcd   : > { %8515 = vmatpush3.bf16.msra.mxu1 %v8406_v11  ;;  %8409 = vmatpush3.bf16.msra.mxu0 %v8406_v11  ;;  %v690_v20 = vld [vmem:[%s9874_s21 + $0x88] sm:$0xff]  ;;  %v677_v21 = vld [vmem:[%s9874_s21 + $0x20] sm:$0xff]  ;;  %v691_v22 = vld [vmem:[%s9874_s21 + $0x90] sm:$0xff] }
  0xce   : > { %8411 = vmatprep.subr.bf16.mxu1 %v8406_v11  ;;  %8415 = vmatprep.subr.bf16.mxu0 %v8406_v11  ;;  %v678_v23 = vld [vmem:[%s9874_s21 + $0x28] sm:$0xff]  ;;  %v692_v24 = vld [vmem:[%s9874_s21 + $0x98] sm:$0xff]  ;;  %v679_v25 = vld [vmem:[%s9874_s21 + $0x30] sm:$0xff]  ;;  %p666_p0 = scmp.lt.s32.totalorder %s11912_s22, 47 }
  0xcf   : > { %7750 = vmatprep.mubr.msk.f32.mxu0 %vm697_vm0, %v673_v14  ;;  %v693_v26 = vld [vmem:[%s9874_s21 + $0xa0] sm:$0xff]  ;;  %v680_v27 = vld [vmem:[%s9874_s21 + $0x38] sm:$0xff]  ;;  %v694_v28 = vld [vmem:[%s9874_s21 + $0xa8] sm:$0xff] }
  0xd0   : > { %7769 = vmatmul.mubr.msk.f32.vlgmr.msra.gmra.mrb[0].mxu1 %vm697_vm0, %v686_v12  ;;  %7751 = vmatmul.mubr.msk.f32.vlgmr.msra.gmra.mrb[0].mxu0 %vm697_vm0, %v674_v15  ;;  %v681_v29 = vld [vmem:[%s9874_s21 + $0x40] sm:$0xff]  ;;  %v695_v30 = vld [vmem:[%s9874_s21 + $0xb0] sm:$0xff]  ;;  %v682_v31 = vld [vmem:[%s9874_s21 + $0x48] sm:$0xff]  ;;  %s12256_s22 = smov (!%p666_p0, %s11912_s22), 47 }
  0xd1   : > { %8413 = vmatpush3.bf16.msra.mxu1 %v8406_v11  ;;  %7771 = vmatprep.mubr.msk.f32.mxu1 %vm697_vm0, %v687_v13  ;;  %v696_v32 = vld [vmem:[%s9874_s21 + $0xb8] sm:$0xff]  ;;  %v683_v33 = vld [vmem:[%s9874_s21 + $0x50] sm:$0xff]  ;;  %v6881_v34 = vld [vmem:[%s9874_s21 + $0xc0] sm:$0xff]  ;;  %s6856_s26 = sshll.u32 %s12256_s22, 2 }
  0xd2   : > { %7753 = vmatprep.mubr.msk.f32.mxu0 %vm697_vm0, %v675_v17  ;;  %8417 = vmatpush3.bf16.msra.mxu0 %v8406_v11  ;;  %v684_v35 = vld [vmem:[%s9874_s21 + $0x58] sm:$0xff]  ;;  %v6882_v36 = vld [vmem:[%s9874_s21 + $0xc8] sm:$0xff]  ;;  %v6929_v37 = vld [vmem:[%s9874_s21 + $0x180] sm:$0xff]  ;;  %s11965_s10 = scalar_lea.vmem %s12126_s7, %s6856_s26 }
  0xd3   : > { %v6883_v38 = vld [vmem:[%s9874_s21 + $0xd0] sm:$0xff]  ;;  %v6930_v39 = vld [vmem:[%s9874_s21 + $0x188] sm:$0xff]  ;;  %v6884_v40 = vld [vmem:[%s9874_s21 + $0xd8] sm:$0xff] }
  0xd4   : > { %7772 = vmatmul.mubr.msk.f32.gmra.mrb[2].mxu1 %vm697_vm0, %v688_v16  ;;  %7754 = vmatmul.mubr.msk.f32.gmra.mrb[2].mxu0 %vm697_vm0, %v676_v19  ;;  %v6931_v41 = vld [vmem:[%s9874_s21 + $0x190] sm:$0xff]  ;;  %v6885_v42 = vld [vmem:[%s9874_s21 + $0xe0] sm:$0xff]  ;;  %v6932_v43 = vld [vmem:[%s9874_s21 + $0x198] sm:$0xff] }
  0xd5   : > { %7774 = vmatprep.mubr.msk.f32.mxu1 %vm697_vm0, %v689_v18  ;;  %7756 = vmatprep.mubr.msk.f32.mxu0 %vm697_vm0, %v677_v21  ;;  %v6886_v44 = vld [vmem:[%s9874_s21 + $0xe8] sm:$0xff]  ;;  %v6933_v45 = vld [vmem:[%s9874_s21 + $0x1a0] sm:$0xff]  ;;  %v6887_v46 = vld [vmem:[%s9874_s21 + $0xf0] sm:$0xff] }
  0xd6   : > { %v6934_v47 = vld [vmem:[%s9874_s21 + $0x1a8] sm:$0xff]  ;;  %v6888_v48 = vld [vmem:[%s9874_s21 + $0xf8] sm:$0xff]  ;;  %v6935_v49 = vld [vmem:[%s9874_s21 + $0x1b0] sm:$0xff] }
  0xd7   : > { %v6889_v50 = vld [vmem:[%s9874_s21 + $0x100] sm:$0xff]  ;;  %v6936_v51 = vld [vmem:[%s9874_s21 + $0x1b8] sm:$0xff]  ;;  %v6890_v52 = vld [vmem:[%s9874_s21 + $0x108] sm:$0xff] }
  0xd8   : > { %7775 = vmatmul.mubr.msk.f32.gmra.mrb[4].mxu1 %vm697_vm0, %v690_v20  ;;  %7757 = vmatmul.mubr.msk.f32.gmra.mrb[4].mxu0 %vm697_vm0, %v678_v23  ;;  %v6937_v53 = vld [vmem:[%s9874_s21 + $0x1c0] sm:$0xff]  ;;  %v6891_v54 = vld [vmem:[%s9874_s21 + $0x110] sm:$0xff]  ;;  %v6938_v55 = vld [vmem:[%s9874_s21 + $0x1c8] sm:$0xff] }
  0xd9   : > { %7777 = vmatprep.mubr.msk.f32.mxu1 %vm697_vm0, %v691_v22  ;;  %7759 = vmatprep.mubr.msk.f32.mxu0 %vm697_vm0, %v679_v25  ;;  %v6892_v56 = vld [vmem:[%s9874_s21 + $0x118] sm:$0xff]  ;;  %v6939_v57 = vld [vmem:[%s9874_s21 + $0x1d0] sm:$0xff]  ;;  %v6893_v58 = vld [vmem:[%s9874_s21 + $0x120] sm:$0xff] }
  0xda   : > { %v6940_v59 = vld [vmem:[%s9874_s21 + $0x1d8] sm:$0xff]  ;;  %v6894_v60 = vld [vmem:[%s9874_s21 + $0x128] sm:$0xff]  ;;  %v6941_v61 = vld [vmem:[%s9874_s21 + $0x1e0] sm:$0xff] }
  0xdb   : > { %v6895_v62 = vld [vmem:[%s9874_s21 + $0x130] sm:$0xff]  ;;  %v6942_v63 = vld [vmem:[%s9874_s21 + $0x1e8] sm:$0xff]  ;;  %v6896_v0 = vld [vmem:[%s9874_s21 + $0x138] sm:$0xff] }
  0xdc   : > { %7778 = vmatmul.mubr.msk.f32.gmra.mrb[6].mxu1 %vm697_vm0, %v692_v24  ;;  %7760 = vmatmul.mubr.msk.f32.gmra.mrb[6].mxu0 %vm697_vm0, %v680_v27  ;;  %v6943_v1 = vld [vmem:[%s9874_s21 + $0x1f0] sm:$0xff]  ;;  %v6897_v2 = vld [vmem:[%s9874_s21 + $0x140] sm:$0xff]  ;;  %v6944_v3 = vld [vmem:[%s9874_s21 + $0x1f8] sm:$0xff] }
  0xdd   : > { %7780 = vmatprep.mubr.msk.f32.mxu1 %vm697_vm0, %v693_v26  ;;  %7762 = vmatprep.mubr.msk.f32.mxu0 %vm697_vm0, %v681_v29  ;;  %v6898_v4 = vld [vmem:[%s9874_s21 + $0x148] sm:$0xff]  ;;  %v6945_v5 = vld [vmem:[%s9874_s21 + $0x200] sm:$0xff]  ;;  %v6899_v6 = vld [vmem:[%s9874_s21 + $0x150] sm:$0xff] }
  0xde   : > { %v6946_v7 = vld [vmem:[%s9874_s21 + $0x208] sm:$0xff]  ;;  %v6900_v8 = vld [vmem:[%s9874_s21 + $0x158] sm:$0xff]  ;;  %v6947_v9 = vld [vmem:[%s9874_s21 + $0x210] sm:$0xff] }
  0xdf   : > { %v6901_v10 = vld [vmem:[%s9874_s21 + $0x160] sm:$0xff]  ;;  %v6948_v11 = vld [vmem:[%s9874_s21 + $0x218] sm:$0xff]  ;;  %v6902_v12 = vld [vmem:[%s9874_s21 + $0x168] sm:$0xff] }
  0xe0   : > { %7781 = vmatmul.mubr.msk.f32.gmra.mrb[8].mxu1 %vm697_vm0, %v694_v28  ;;  %7763 = vmatmul.mubr.msk.f32.gmra.mrb[8].mxu0 %vm697_vm0, %v682_v31  ;;  %v6949_v13 = vld [vmem:[%s9874_s21 + $0x220] sm:$0xff]  ;;  %v6903_v14 = vld [vmem:[%s9874_s21 + $0x170] sm:$0xff]  ;;  %v6950_v15 = vld [vmem:[%s9874_s21 + $0x228] sm:$0xff] }
  0xe1   : > { %7783 = vmatprep.mubr.msk.f32.mxu1 %vm697_vm0, %v695_v30  ;;  %7765 = vmatprep.mubr.msk.f32.mxu0 %vm697_vm0, %v683_v33  ;;  %v6904_v16 = vld [vmem:[%s9874_s21 + $0x178] sm:$0xff]  ;;  %v6951_v17 = vld [vmem:[%s9874_s21 + $0x230] sm:$0xff]  ;;  %v6978_v20 = vld [vmem:[%s12121_s2 + $0x20] sm:$0xff] }
  0xe2   : > { %v6952_v18 = vld [vmem:[%s9874_s21 + $0x238] sm:$0xff]  ;;  %v6979_v22 = vld [vmem:[%s12121_s2 + $0x28] sm:$0xff]  ;;  %v2167_v23 = vld [vmem:[%s12121_s2] sm:$0xff] }
  0xe3   : > { %v6977_v19 = vld [vmem:[%s12121_s2 + $0x18] sm:$0xff]  ;;  %v2168_v24 = vld [vmem:[%s12121_s2 + $0x8] sm:$0xff] }
  0xe4   : > { %7784 = vmatmul.mubr.msk.f32.gmra.mrb[10].mxu1 %vm697_vm0, %v696_v32  ;;  %7766 = vmatmul.mubr.msk.f32.gmra.mrb[10].mxu0 %vm697_vm0, %v684_v35  ;;  %v8418_v21 = vpack.c.bf16 %v6978_v20, %v6977_v19  ;;  %v10047_v25 = vpack.c.bf16 %v2168_v24, %v2167_v23 }
  0xe5   : > { %7790 = vmatprep.mubr.msk.f32.mxu1 %vm697_vm0, %v6881_v34  ;;  %7830 = vmatprep.mubr.msk.f32.mxu0 %vm697_vm0, %v6929_v37 }
  0xe6   : > { %8419 = vmatprep.subr.bf16.mxu1 %v8418_v21 }
  0xe8   : > { %7791 = vmatmul.mubr.msk.f32.vlgmr.msra.gmra.mrb[12].mxu1 %vm697_vm0, %v6882_v36  ;;  %7831 = vmatmul.mubr.msk.f32.vlgmr.msra.gmra.mrb[12].mxu0 %vm697_vm0, %v6930_v39 }
  0xe9   : > { %7793 = vmatprep.mubr.msk.f32.mxu1 %vm697_vm0, %v6883_v38  ;;  %7833 = vmatprep.mubr.msk.f32.mxu0 %vm697_vm0, %v6931_v41 }
  0xea   : > { %8421 = vmatpush3.bf16.msra.mxu1 %v8418_v21 }
  0xeb   : > { %7870 = vmatprep.subr.mxu1 %v6979_v22 }
  0xec   : > { %7794 = vmatmul.mubr.msk.f32.gmra.mrb[14].mxu1 %vm697_vm0, %v6884_v40  ;;  %7834 = vmatmul.mubr.msk.f32.gmra.mrb[14].mxu0 %vm697_vm0, %v6932_v43 }
  0xed   : > { %7796 = vmatprep.mubr.msk.f32.mxu1 %vm697_vm0, %v6885_v42  ;;  %7836 = vmatprep.mubr.msk.f32.mxu0 %vm697_vm0, %v6933_v45 }
  0xee   : > { %7871 = vmatpush3.msra.mxu1 %v6979_v22 }
  0xef   : > { %8423 = vmatprep.subr.bf16.mxu1 %v10047_v25 }
  0xf0   : > { %7797 = vmatmul.mubr.msk.f32.gmra.mrb[16].mxu1 %vm697_vm0, %v6886_v44  ;;  %7837 = vmatmul.mubr.msk.f32.gmra.mrb[16].mxu0 %vm697_vm0, %v6934_v47 }
  0xf1   : > { %7799 = vmatprep.mubr.msk.f32.mxu1 %vm697_vm0, %v6887_v46  ;;  %7839 = vmatprep.mubr.msk.f32.mxu0 %vm697_vm0, %v6935_v49 }
  0xf4   : > { %7800 = vmatmul.mubr.msk.f32.gmra.mrb[18].mxu1 %vm697_vm0, %v6888_v48  ;;  %7840 = vmatmul.mubr.msk.f32.gmra.mrb[18].mxu0 %vm697_vm0, %v6936_v51 }
  0xf5   : > { %7802 = vmatprep.mubr.msk.f32.mxu1 %vm697_vm0, %v6889_v50  ;;  %7842 = vmatprep.mubr.msk.f32.mxu0 %vm697_vm0, %v6937_v53 }
  0xf8   : > { %7803 = vmatmul.mubr.msk.f32.gmra.mrb[20].mxu1 %vm697_vm0, %v6890_v52  ;;  %7843 = vmatmul.mubr.msk.f32.gmra.mrb[20].mxu0 %vm697_vm0, %v6938_v55 }
  0xf9   : > { %7805 = vmatprep.mubr.msk.f32.mxu1 %vm697_vm0, %v6891_v54  ;;  %7845 = vmatprep.mubr.msk.f32.mxu0 %vm697_vm0, %v6939_v57 }
  0xfc   : > { %7806 = vmatmul.mubr.msk.f32.gmra.mrb[22].mxu1 %vm697_vm0, %v6892_v56  ;;  %7846 = vmatmul.mubr.msk.f32.gmra.mrb[22].mxu0 %vm697_vm0, %v6940_v59 }
  0xfd   : > { %7808 = vmatprep.mubr.msk.f32.mxu1 %vm697_vm0, %v6893_v58  ;;  %7848 = vmatprep.mubr.msk.f32.mxu0 %vm697_vm0, %v6941_v61 }
 0x100   : > { %7809 = vmatmul.mubr.msk.f32.gmra.mrb[24].mxu1 %vm697_vm0, %v6894_v60  ;;  %7849 = vmatmul.mubr.msk.f32.gmra.mrb[24].mxu0 %vm697_vm0, %v6942_v63 }
 0x101   : > { %7811 = vmatprep.mubr.msk.f32.mxu1 %vm697_vm0, %v6895_v62  ;;  %7851 = vmatprep.mubr.msk.f32.mxu0 %vm697_vm0, %v6943_v1 }
 0x104   : > { %7812 = vmatmul.mubr.msk.f32.gmra.mrb[26].mxu1 %vm697_vm0, %v6896_v0  ;;  %7852 = vmatmul.mubr.msk.f32.gmra.mrb[26].mxu0 %vm697_vm0, %v6944_v3 }
 0x105   : > { %7814 = vmatprep.mubr.msk.f32.mxu1 %vm697_vm0, %v6897_v2  ;;  %7854 = vmatprep.mubr.msk.f32.mxu0 %vm697_vm0, %v6945_v5 }
 0x108   : > { %7815 = vmatmul.mubr.msk.f32.gmra.mrb[28].mxu1 %vm697_vm0, %v6898_v4  ;;  %7855 = vmatmul.mubr.msk.f32.gmra.mrb[28].mxu0 %vm697_vm0, %v6946_v7 }
 0x109   : > { %7817 = vmatprep.mubr.msk.f32.mxu1 %vm697_vm0, %v6899_v6  ;;  %7857 = vmatprep.mubr.msk.f32.mxu0 %vm697_vm0, %v6947_v9 }
 0x10c   : > { %7818 = vmatmul.mubr.msk.f32.gmra.mrb[30].mxu1 %vm697_vm0, %v6900_v8  ;;  %7858 = vmatmul.mubr.msk.f32.gmra.mrb[30].mxu0 %vm697_vm0, %v6948_v11 }
 0x10d   : > { %7820 = vmatprep.mubr.msk.f32.mxu1 %vm697_vm0, %v6901_v10  ;;  %7860 = vmatprep.mubr.msk.f32.mxu0 %vm697_vm0, %v6949_v13 }
 0x110   : > { %7821 = vmatmul.mubr.msk.f32.gmra.mrb[32].mxu1 %vm697_vm0, %v6902_v12  ;;  %7861 = vmatmul.mubr.msk.f32.gmra.mrb[32].mxu0 %vm697_vm0, %v6950_v15 }
 0x111   : > { %7823 = vmatprep.mubr.msk.f32.mxu1 %vm697_vm0, %v6903_v14  ;;  %7863 = vmatprep.mubr.msk.f32.mxu0 %vm697_vm0, %v6951_v17 }
 0x114   : > { %7824 = vmatmul.mubr.msk.f32.gmra.mrb[34].mxu1 %vm697_vm0, %v6904_v16  ;;  %7864 = vmatmul.mubr.msk.f32.gmra.mrb[34].mxu0 %vm697_vm0, %v6952_v18 }
 0x1a3   : > { %v10050_v26 = vpop.f32.mrb[0].mxu1  ;;  %v10054_v28 = vpop.f32.mrb[0].mxu0 }
 0x1a4   : > { %12178 = vst [vmem:[#allocation15_spill] sm:$0xff] %v10050_v26  ;;  %v10052_v27 = vpop.f32.mrb[1].mxu1  ;;  %12180 = vst [vmem:[#allocation17_spill] sm:$0xff] %v10054_v28  ;;  %v10058_v30 = vpop.f32.mrb[1].mxu0  ;;  %v981_v1 = vmul.f32 1.442695, %v10050_v26 }
 0x1a5   : > { %12179 = vst [vmem:[#allocation16_spill] sm:$0xff] %v10052_v27  ;;  %12182 = vst [vmem:[#allocation19_spill] sm:$0xff] %v10058_v30  ;;  %v979_v2 = vmul.f32 1.442695, %v10052_v27  ;;  %v957_v5 = vmul.f32 1.442695, %v10054_v28 }
 0x1a6   : > { %v955_v24 = vmul.f32 1.442695, %v10058_v30 }
 0x1a7   : > { %v10056_v29 = vpop.f32.mrb[2].mxu1  ;;  %v10062_v32 = vpop.f32.mrb[2].mxu0 }
 0x1a8   : > { %12181 = vst [vmem:[#allocation18_spill] sm:$0xff] %v10056_v29  ;;  %v10060_v31 = vpop.f32.mrb[3].mxu1  ;;  %12184 = vst [vmem:[#allocation21_spill] sm:$0xff] %v10062_v32  ;;  %v10066_v34 = vpop.f32.mrb[3].mxu0  ;;  %v985_v12 = vmul.f32 1.442695, %v10056_v29 }
 0x1a9   : > { %12183 = vst [vmem:[#allocation20_spill] sm:$0xff] %v10060_v31  ;;  %12186 = vst [vmem:[#allocation23_spill] sm:$0xff] %v10066_v34  ;;  %v983_v19 = vmul.f32 1.442695, %v10060_v31 }
 0x1ab   : > { %v10064_v33 = vpop.f32.mrb[4].mxu1  ;;  %v10070_v36 = vpop.f32.mrb[4].mxu0 }
 0x1ac   : > { %12185 = vst [vmem:[#allocation22_spill] sm:$0xff] %v10064_v33  ;;  %v10068_v35 = vpop.f32.mrb[5].mxu1  ;;  %12188 = vst [vmem:[#allocation25_spill] sm:$0xff] %v10070_v36  ;;  %v10074_v38 = vpop.f32.mrb[5].mxu0 }
 0x1ad   : > { %12187 = vst [vmem:[#allocation24_spill] sm:$0xff] %v10068_v35  ;;  %12190 = vst [vmem:[#allocation27_spill] sm:$0xff] %v10074_v38 }
 0x1af   : > { %v10072_v37 = vpop.f32.mrb[6].mxu1  ;;  %v10078_v40 = vpop.f32.mrb[6].mxu0 }
 0x1b0   : > { %12189 = vst [vmem:[#allocation26_spill] sm:$0xff] %v10072_v37  ;;  %v10076_v39 = vpop.f32.mrb[7].mxu1  ;;  %v10082_v42 = vpop.f32.mrb[7].mxu0 }
 0x1b1   : > { %12191 = vst [vmem:[#allocation28_spill] sm:$0xff] %v10076_v39 }
 0x1b3   : > { %v10080_v41 = vpop.f32.mrb[8].mxu1  ;;  %v10086_v44 = vpop.f32.mrb[8].mxu0 }
 0x1b4   : > { %v10084_v43 = vpop.f32.mrb[9].mxu1  ;;  %v10090_v46 = vpop.f32.mrb[9].mxu0 }
 0x1b5   : > { %12192 = vst [vmem:[#allocation29_spill] sm:$0xff] %v10084_v43 }
 0x1b7   : > { %v10088_v45 = vpop.f32.mrb[10].mxu1  ;;  %v10094_v48 = vpop.f32.mrb[10].mxu0 }
 0x1b8   : > { %v10092_v47 = vpop.f32.mrb[11].mxu1  ;;  %v10098_v50 = vpop.f32.mrb[11].mxu0 }
 0x1bb   : > { %v10096_v49 = vpop.f32.mrb[12].mxu1  ;;  %v10104_v54 = vpop.f32.mrb[12].mxu0 }
 0x1bc   : > { %v1455_v51 = vmul.f32 1.442695, %v10096_v49  ;;  %v10101_v52 = vpop.f32.mrb[13].mxu1  ;;  %v10108_v56 = vpop.f32.mrb[13].mxu0 }
 0x1bd   : > { %v1453_v53 = vmul.f32 1.442695, %v10101_v52 }
 0x1be   : > { %8643 = vpow2.f32 %v1455_v51 }
 0x1bf   : > { %v10106_v55 = vpop.f32.mrb[14].mxu1  ;;  %8645 = vpow2.f32 %v1453_v53  ;;  %v10114_v60 = vpop.f32.mrb[14].mxu0 }
 0x1c0   : > { %v1459_v57 = vmul.f32 1.442695, %v10106_v55  ;;  %v10111_v58 = vpop.f32.mrb[15].mxu1  ;;  %v10118_v62 = vpop.f32.mrb[15].mxu0 }
 0x1c1   : > { %v1457_v59 = vmul.f32 1.442695, %v10111_v58  ;;  %12193 = vst [vmem:[#allocation30_spill] sm:$0xff] %v10118_v62 }
 0x1c2   : > { %8647 = vpow2.f32 %v1459_v57 }
 0x1c3   : > { %v10116_v61 = vpop.f32.mrb[16].mxu1  ;;  %8649 = vpow2.f32 %v1457_v59  ;;  %v10125_v3 = vpop.f32.mrb[16].mxu0 }
 0x1c4   : > { %v1463_v63 = vmul.f32 1.442695, %v10116_v61  ;;  %v10121_v0 = vpop.f32.mrb[17].mxu1  ;;  %12194 = vst [vmem:[#allocation31_spill] sm:$0xff] %v10125_v3  ;;  %v10130_v6 = vpop.f32.mrb[17].mxu0 }
 0x1c5   : > { %12195 = vst [vmem:[#allocation32_spill] sm:$0xff] %v10130_v6  ;;  %v1461_v8 = vmul.f32 1.442695, %v10121_v0 }
 0x1c6   : > { %8651 = vpow2.f32 %v1463_v63 }
 0x1c7   : > { %v10127_v4 = vpop.f32.mrb[18].mxu1  ;;  %8653 = vpow2.f32 %v981_v1  ;;  %v10137_v13 = vpop.f32.mrb[18].mxu0 }
 0x1c8   : > { %v8644_v7 = vpop.eup %8643  ;;  %v10133_v9 = vpop.f32.mrb[19].mxu1  ;;  %v1467_v11 = vmul.f32 1.442695, %v10127_v4  ;;  %8655 = vpow2.f32 %v979_v2  ;;  %12196 = vst [vmem:[#allocation33_spill] sm:$0xff] %v10137_v13 }
 0x1c9   : > { %v1502_v10 = vadd.f32 1.0, %v8644_v7  ;;  %v8646_v14 = vpop.eup %8645  ;;  %8657 = vpow2.f32 %v957_v5  ;;  %v10141_v17 = vpop.f32.mrb[19].mxu0 }
 0x1ca   : > { %12197 = vst [vmem:[#allocation34_spill] sm:$0xff] %v10141_v17  ;;  %v1501_v20 = vadd.f32 1.0, %v8646_v14  ;;  %8659 = vpow2.f32 %v1461_v8  ;;  %v1465_v8 = vmul.f32 1.442695, %v10133_v9  ;;  %v961_v14 = vmul.f32 1.442695, %v10062_v32 }
 0x1cb   : > { %v1526_v15 = vmul.f32 %v1502_v10, %v1502_v10  ;;  %v10139_v16 = vpop.f32.mrb[20].mxu1  ;;  %8661 = vpow2.f32 %v1467_v11  ;;  %v10147_v53 = vpop.f32.mrb[20].mxu0 }
 0x1cc   : > { %v8648_v18 = vpop.eup %8647  ;;  %v10144_v21 = vpop.f32.mrb[21].mxu1  ;;  %8663 = vpow2.f32 %v985_v12  ;;  %v1525_v51 = vmul.f32 %v1501_v20, %v1501_v20  ;;  %12198 = vst [vmem:[#allocation35_spill] sm:$0xff] %v10147_v53 }
 0x1cd   : > { %v1550_v22 = vadd.f32 1.0, %v1526_v15  ;;  %v1504_v23 = vadd.f32 1.0, %v8648_v18  ;;  %v8650_v57 = vpop.eup %8649  ;;  %v10151_v1 = vpop.f32.mrb[21].mxu0 }
 0x1ce   : > { %12199 = vst [vmem:[#allocation36_spill] sm:$0xff] %v10151_v1  ;;  %v1549_v5 = vadd.f32 1.0, %v1525_v51  ;;  %v1503_v7 = vadd.f32 1.0, %v8650_v57 }
 0x1cf   : > { %8665 = vrcp.f32 %v1550_v22  ;;  %v1528_v59 = vmul.f32 %v1504_v23, %v1504_v23  ;;  %v10149_v63 = vpop.f32.mrb[22].mxu1  ;;  %v10157_v18 = vpop.f32.mrb[22].mxu0 }
 0x1d0   : > { %v8652_v2 = vpop.eup %8651  ;;  %8667 = vpow2.f32 %v983_v19  ;;  %v10154_v10 = vpop.f32.mrb[23].mxu1  ;;  %v1527_v15 = vmul.f32 %v1503_v7, %v1503_v7  ;;  %12200 = vst [vmem:[#allocation37_spill] sm:$0xff] %v10157_v18  ;;  %v1469_v7 = vmul.f32 1.442695, %v10144_v21 }
 0x1d1   : > { %v1552_v11 = vadd.f32 1.0, %v1528_v59  ;;  %v1506_v12 = vadd.f32 1.0, %v8652_v2  ;;  %8669 = vpow2.f32 %v955_v24  ;;  %v10159_v20 = vpop.eup %8653  ;;  %v10163_v23 = vpop.f32.mrb[23].mxu0  ;;  %v1471_v24 = vmul.f32 1.442695, %v10139_v16 }
 0x1d2   : > { %8671 = vrcp.f32 %v1549_v5  ;;  %12201 = vst [vmem:[#allocation38_spill] sm:$0xff] %v10163_v23  ;;  %v10165_v51 = vpop.eup %8655  ;;  %v1551_v57 = vadd.f32 1.0, %v1527_v15  ;;  %v987_v15 = vmul.f32 1.442695, %v10068_v35 }
 0x1d3   : > { %8673 = vrcp.f32 %v1552_v11  ;;  %v1530_v22 = vmul.f32 %v1506_v12, %v1506_v12  ;;  %v10161_v19 = vpop.f32.mrb[24].mxu1  ;;  %v10170_v2 = vpop.eup %8657  ;;  %v989_v12 = vmul.f32 1.442695, %v10064_v33 }
 0x1d4   : > { %8675 = vpow2.f32 %v1465_v8  ;;  %v10168_v59 = vpop.f32.mrb[25].mxu1  ;;  %v8660_v11 = vpop.eup %8659 }
 0x1d5   : > { %v1554_v5 = vadd.f32 1.0, %v1530_v22  ;;  %8677 = vpow2.f32 %v961_v14  ;;  %v10174_v31 = vpop.f32.mrb[24].mxu0  ;;  %v8662_v18 = vpop.eup %8661  ;;  %v1505_v8 = vadd.f32 1.0, %v8660_v11  ;;  %v1475_v14 = vmul.f32 1.442695, %v10149_v63 }
 0x1d6   : > { %8679 = vrcp.f32 %v1551_v57  ;;  %12202 = vst [vmem:[#allocation39_spill] sm:$0xff] %v10174_v31  ;;  %v10179_v27 = vpop.f32.mrb[25].mxu0  ;;  %v10181_v23 = vpop.eup %8663  ;;  %v1508_v22 = vadd.f32 1.0, %v8662_v18  ;;  %v1473_v18 = vmul.f32 1.442695, %v10154_v10 }
 0x1d7   : > { %8681 = vrcp.f32 %v1554_v5  ;;  %v10177_v29 = vpop.f32.mrb[26].mxu1  ;;  %12203 = vst [vmem:[#allocation40_spill] sm:$0xff] %v10179_v27  ;;  %v1529_v33 = vmul.f32 %v1505_v8, %v1505_v8  ;;  %v10188_v35 = vpop.f32.mrb[26].mxu0 }
 0x1d8   : > { %8683 = vpow2.f32 %v1471_v24  ;;  %v10184_v53 = vpop.f32.mrb[27].mxu1  ;;  %v1532_v11 = vmul.f32 %v1508_v22, %v1508_v22  ;;  %12204 = vst [vmem:[#allocation41_spill] sm:$0xff] %v10188_v35  ;;  %v10195_v13 = vpop.f32.mrb[27].mxu0  ;;  %v965_v35 = vmul.f32 1.442695, %v10070_v36 }
 0x1d9   : > { %v8666_v57 = vpop.eup %8665  ;;  %8685 = vpow2.f32 %v1469_v7  ;;  %v1553_v27 = vadd.f32 1.0, %v1529_v33  ;;  %12205 = vst [vmem:[#allocation42_spill] sm:$0xff] %v10195_v13  ;;  %v959_v7 = vmul.f32 1.442695, %v10066_v34 }
 0x1da   : > { %v10186_v31 = vpop.eup %8667  ;;  %8687 = vpow2.f32 %v989_v12  ;;  %v1598_v5 = vmul.f32 2.0, %v8666_v57  ;;  %v1556_v8 = vadd.f32 1.0, %v1532_v11 }
 0x1db   : > { %v10190_v1 = vpop.eup %8669  ;;  %8689 = vpow2.f32 %v987_v15  ;;  %v10193_v24 = vpop.f32.mrb[28].mxu1 }
 0x1dc   : > { %v8672_v17 = vpop.eup %8671  ;;  %8691 = vpow2.f32 %v1475_v14  ;;  %v10198_v12 = vpop.f32.mrb[29].mxu1  ;;  %v1622_v33 = vsub.f32 1.0, %v1598_v5  ;;  %v1479_v14 = vmul.f32 1.442695, %v10161_v19 }
 0x1dd   : > { %v8674_v22 = vpop.eup %8673  ;;  %v1597_v57 = vmul.f32 2.0, %v8672_v17  ;;  %8693 = vrcp.f32 %v1553_v27  ;;  %v10201_v3 = vpop.f32.mrb[28].mxu0  ;;  %v993_v17 = vmul.f32 1.442695, %v10072_v37 }
 0x1de   : > { %v8676_v15 = vpop.eup %8675  ;;  %v1600_v26 = vmul.f32 2.0, %v8674_v22  ;;  %8695 = vrcp.f32 %v1556_v8  ;;  %12206 = vst [vmem:[#allocation43_spill] sm:$0xff] %v10201_v3  ;;  %v10208_v34 = vpop.f32.mrb[29].mxu0  ;;  %v1646_v36 = vmul.f32 %v10096_v49, %v1622_v33  ;;  %v963_v33 = vmul.f32 1.442695, %v10074_v38 }
 0x1df   : > { %v10203_v32 = vpop.eup %8677  ;;  %v1621_v13 = vsub.f32 1.0, %v1597_v57  ;;  %v1507_v11 = vadd.f32 1.0, %v8676_v15  ;;  %8697 = vpow2.f32 %v1473_v18  ;;  %v10206_v6 = vpop.f32.mrb[30].mxu1  ;;  %12207 = vst [vmem:[#allocation44_spill] sm:$0xff] %v10208_v34  ;;  %v991_v15 = vmul.f32 1.442695, %v10076_v39 }
 0x1e0   : > { %v8680_v27 = vpop.eup %8679  ;;  %8699 = vpow2.f32 %v959_v7  ;;  %v10211_v5 = vpop.f32.mrb[31].mxu1  ;;  %v1624_v28 = vsub.f32 1.0, %v1600_v26  ;;  %v2169_v7 = vld [vmem:[%s12121_s2 + $0x10] sm:$0xff]  ;;  %v1016_v26 = vadd.f32 1.0, %v10159_v20 }
 0x1e1   : > { %v8682_v8 = vpop.eup %8681  ;;  %v1645_v22 = vmul.f32 %v1621_v13, %v10101_v52  ;;  %v1599_v3 = vmul.f32 2.0, %v8680_v27  ;;  %v1531_v57 = vmul.f32 %v1507_v11, %v1507_v11  ;;  %8701 = vpow2.f32 %v965_v35  ;;  %v10219_v37 = vpop.f32.mrb[30].mxu0 }
 0x1e2   : > { %v8684_v18 = vpop.eup %8683  ;;  %8703 = vpow2.f32 %v1479_v14  ;;  %12208 = vst [vmem:[#allocation45_spill] sm:$0xff] %v10219_v37  ;;  %v1477_v13 = vmul.f32 1.442695, %v10168_v59 }
 0x1e3   : > { %v8686_v34 = vpop.eup %8685  ;;  %v1623_v62 = vsub.f32 1.0, %v1599_v3  ;;  %v1555_v30 = vadd.f32 1.0, %v1531_v57  ;;  %v1510_v52 = vadd.f32 1.0, %v8684_v18  ;;  %7872 = vmatprep.mubr.msk.f32.mxu1 %vm2174_vm1, %v1645_v22  ;;  %v10223_v35 = vpop.f32.mrb[32].mxu1  ;;  %8705 = vpow2.f32 %v993_v17 }
 0x1e4   : > { %v10225_v11 = vpop.eup %8687  ;;  %v1509_v49 = vadd.f32 1.0, %v8686_v34  ;;  %7873 = vmatmul.mubr.msk.f32.vlgmr.msra.gmra.mrb[36].mxu1 %vm2174_vm1, %v1646_v36  ;;  %v10230_v14 = vpop.f32.mrb[33].mxu1  ;;  %v1602_v57 = vmul.f32 2.0, %v8682_v8  ;;  %v1015_v34 = vadd.f32 1.0, %v10165_v51  ;;  %v1648_v17 = vmul.f32 %v10106_v55, %v1624_v28 }
 0x1e5   : > { %v10232_v3 = vpop.f32.mrb[31].mxu0  ;;  %v10234_v27 = vpop.eup %8689  ;;  %v1647_v22 = vmul.f32 %v1623_v62, %v10111_v58  ;;  %8707 = vrcp.f32 %v1555_v30  ;;  %v1534_v18 = vmul.f32 %v1510_v52, %v1510_v52  ;;  %8425 = vmatpush3.bf16.msra.mxu1 %v10047_v25  ;;  %v969_v58 = vmul.f32 1.442695, %v10078_v40 }
 0x1e6   : > { %12209 = vst [vmem:[#allocation46_spill] sm:$0xff] %v10232_v3  ;;  %v8692_v20 = vpop.eup %8691  ;;  %v1533_v37 = vmul.f32 %v1509_v49, %v1509_v49  ;;  %8709 = vpow2.f32 %v1477_v13  ;;  %7912 = vmatprep.subr.mxu1 %v2169_v7  ;;  %v10240_v36 = vpop.f32.mrb[32].mxu0  ;;  %v1626_v52 = vsub.f32 1.0, %v1602_v57  ;;  %v1483_v57 = vmul.f32 1.442695, %v10177_v29 }
 0x1e7   : > { %12210 = vst [vmem:[#allocation47_spill] sm:$0xff] %v10240_v36  ;;  %v8694_v3 = vpop.eup %8693  ;;  %8711 = vpow2.f32 %v991_v15  ;;  %v1558_v39 = vadd.f32 1.0, %v1534_v18  ;;  %v1512_v38 = vadd.f32 1.0, %v8692_v20  ;;  %7875 = vmatprep.mubr.msk.f32.mxu1 %vm2174_vm1, %v1647_v22  ;;  %v10244_v30 = vpop.f32.mrb[34].mxu1  ;;  %v1040_v15 = vmul.f32 %v1016_v26, %v1016_v26 }
 0x1e8   : > { %v10246_v25 = vpop.f32.mrb[33].mxu0  ;;  %v8696_v62 = vpop.eup %8695  ;;  %v1601_v51 = vmul.f32 2.0, %v8694_v3  ;;  %v1557_v28 = vadd.f32 1.0, %v1533_v37  ;;  %8713 = vpow2.f32 %v963_v33  ;;  %7876 = vmatmul.mubr.msk.f32.gmra.mrb[38].mxu1 %vm2174_vm1, %v1648_v17  ;;  %v997_v22 = vmul.f32 1.442695, %v10080_v41 }
 0x1e9   : > { %12211 = vst [vmem:[#allocation48_spill] sm:$0xff] %v10246_v25  ;;  %v10249_v55 = vpop.f32.mrb[35].mxu1  ;;  %v8698_v8 = vpop.eup %8697  ;;  %8715 = vrcp.f32 %v1558_v39  ;;  %v1536_v13 = vmul.f32 %v1512_v38, %v1512_v38  ;;  %7913 = vmatpush3.msra.mxu1 %v2169_v7  ;;  %v1039_v33 = vmul.f32 %v1015_v34, %v1015_v34  ;;  %v1604_v39 = vmul.f32 2.0, %v8696_v62 }
 0x1ea   : > { %v10251_v49 = vpop.eup %8699  ;;  %v1625_v18 = vsub.f32 1.0, %v1601_v51  ;;  %8717 = vrcp.f32 %v1557_v28  ;;  %v1511_v20 = vadd.f32 1.0, %v8698_v8  ;;  %v10254_v3 = vpop.f32.mrb[34].mxu0  ;;  %v1650_v51 = vmul.f32 %v10116_v61, %v1626_v52 }
 0x1eb   : > { %12212 = vst [vmem:[#allocation49_spill] sm:$0xff] %v10254_v3  ;;  %v10256_v37 = vpop.eup %8701  ;;  %v1560_v17 = vadd.f32 1.0, %v1536_v13  ;;  %8719 = vpow2.f32 %v969_v58  ;;  %v10258_v36 = vpop.f32.mrb[35].mxu0  ;;  %v1064_v3 = vadd.f32 1.0, %v1040_v15  ;;  %v1481_v58 = vmul.f32 1.442695, %v10184_v53 }
 0x1ec   : > { %12213 = vst [vmem:[#allocation50_spill] sm:$0xff] %v10258_v36  ;;  %v8704_v26 = vpop.eup %8703  ;;  %v1649_v38 = vmul.f32 %v1625_v18, %v10121_v0  ;;  %v1535_v7 = vmul.f32 %v1511_v20, %v1511_v20  ;;  %v1018_v0 = vadd.f32 1.0, %v10181_v23  ;;  %v1004_v62 = vadd.f32 1.0, %v10170_v2 }
 0x1ed   : > { %8721 = vrcp.f32 %v1560_v17  ;;  %v1514_v28 = vadd.f32 1.0, %v8704_v26  ;;  %v10263_v8 = vpop.eup %8705  ;;  %v1063_v52 = vadd.f32 1.0, %v1039_v33  ;;  %v1628_v20 = vsub.f32 1.0, %v1604_v39 }
 0x1ee   : > { %8723 = vpow2.f32 %v997_v22  ;;  %v1559_v34 = vadd.f32 1.0, %v1535_v7  ;;  %7878 = vmatprep.mubr.msk.f32.mxu1 %vm2174_vm1, %v1649_v38  ;;  %v1487_v38 = vmul.f32 1.442695, %v10193_v24  ;;  %v995_v23 = vmul.f32 1.442695, %v10084_v43 }
 0x1ef   : > { %v8708_v13 = vpop.eup %8707  ;;  %v1538_v18 = vmul.f32 %v1514_v28, %v1514_v28  ;;  %8725 = vpow2.f32 %v1483_v57  ;;  %7879 = vmatmul.mubr.msk.f32.gmra.mrb[40].mxu1 %vm2174_vm1, %v1650_v51  ;;  %v1485_v57 = vmul.f32 1.442695, %v10198_v12  ;;  %v1017_v33 = vadd.f32 1.0, %v10186_v31 }
 0x1f0   : > { %v8710_v61 = vpop.eup %8709  ;;  %v1603_v17 = vmul.f32 2.0, %v8708_v13  ;;  %8727 = vrcp.f32 %v1559_v34  ;;  %v1028_v39 = vmul.f32 %v1004_v62, %v1004_v62  ;;  %v1042_v25 = vmul.f32 %v1018_v0, %v1018_v0 }
 0x1f1   : > { %v10270_v15 = vpop.eup %8711  ;;  %v1562_v22 = vadd.f32 1.0, %v1538_v18  ;;  %v1513_v26 = vadd.f32 1.0, %v8710_v61  ;;  %8729 = vpow2.f32 %v1481_v58  ;;  %v1001_v58 = vmul.f32 1.442695, %v10088_v45 }
 0x1f2   : > { %v10273_v7 = vpop.eup %8713  ;;  %8731 = vrcp.f32 %v1064_v3  ;;  %v1627_v2 = vsub.f32 1.0, %v1603_v17  ;;  %v1652_v3 = vmul.f32 %v10127_v4, %v1628_v20  ;;  %v967_v31 = vmul.f32 1.442695, %v10082_v42 }
 0x1f3   : > { %v8716_v51 = vpop.eup %8715  ;;  %8733 = vrcp.f32 %v1562_v22  ;;  %v1537_v28 = vmul.f32 %v1513_v26, %v1513_v26  ;;  %v1041_v20 = vmul.f32 %v1017_v33, %v1017_v33  ;;  %v1489_v26 = vmul.f32 1.442695, %v10211_v5 }
 0x1f4   : > { %v8718_v34 = vpop.eup %8717  ;;  %8735 = vrcp.f32 %v1063_v52  ;;  %v1651_v13 = vmul.f32 %v1627_v2, %v10133_v9  ;;  %v1606_v18 = vmul.f32 2.0, %v8716_v51  ;;  %v1003_v52 = vadd.f32 1.0, %v10190_v1 }
 0x1f5   : > { %v10280_v61 = vpop.eup %8719  ;;  %v1605_v17 = vmul.f32 2.0, %v8718_v34  ;;  %v1561_v36 = vadd.f32 1.0, %v1537_v28  ;;  %8737 = vpow2.f32 %v1487_v38  ;;  %v1491_v9 = vmul.f32 1.442695, %v10206_v6 }
 0x1f6   : > { %v1630_v43 = vsub.f32 1.0, %v1606_v18  ;;  %8739 = vpow2.f32 %v1485_v57  ;;  %7881 = vmatprep.mubr.msk.f32.mxu1 %vm2174_vm1, %v1651_v13  ;;  %v10291_v2 = vadd.f32 1.0, %v1028_v39  ;;  %v1495_v1 = vmul.f32 1.442695, %v10223_v35 }
 0x1f7   : > { %v8722_v62 = vpop.eup %8721  ;;  %v1629_v22 = vsub.f32 1.0, %v1605_v17  ;;  %8741 = vrcp.f32 %v1561_v36  ;;  %7882 = vmatmul.mubr.msk.f32.gmra.mrb[42].mxu1 %vm2174_vm1, %v1652_v3  ;;  %v1493_v34 = vmul.f32 1.442695, %v10230_v14  ;;  %v1499_v18 = vmul.f32 1.442695, %v10244_v30 }
 0x1f8   : > { %v10288_v4 = vpop.eup %8723  ;;  %8743 = vpow2.f32 %v995_v23  ;;  %v1608_v0 = vmul.f32 2.0, %v8722_v62  ;;  %v1654_v51 = vmul.f32 %v10139_v16, %v1630_v43  ;;  %v1066_v23 = vadd.f32 1.0, %v1042_v25 }
 0x1f9   : > { %v8726_v38 = vpop.eup %8725  ;;  %8745 = vpow2.f32 %v1001_v58  ;;  %v1653_v57 = vmul.f32 %v1629_v22, %v10144_v21  ;;  %v10303_v16 = vadd.f32 1.0, %v10225_v11  ;;  %v1497_v25 = vmul.f32 1.442695, %v10249_v55 }
 0x1fa   : > { %v8728_v36 = vpop.eup %8727  ;;  %8747 = vpow2.f32 %v967_v31  ;;  %v1516_v28 = vadd.f32 1.0, %v8726_v38  ;;  %v1632_v21 = vsub.f32 1.0, %v1608_v0  ;;  %v1065_v62 = vadd.f32 1.0, %v1041_v20 }
 0x1fb   : > { %v8730_v33 = vpop.eup %8729  ;;  %v1607_v13 = vmul.f32 2.0, %v8728_v36  ;;  %8749 = vpow2.f32 %v1491_v9  ;;  %7884 = vmatprep.mubr.msk.f32.mxu1 %vm2174_vm1, %v1653_v57  ;;  %v1027_v38 = vmul.f32 %v1003_v52, %v1003_v52  ;;  %v971_v20 = vmul.f32 1.442695, %v10090_v46 }
 0x1fc   : > { %v10299_v39 = vpop.eup %8731  ;;  %v1540_v58 = vmul.f32 %v1516_v28, %v1516_v28  ;;  %v1515_v3 = vadd.f32 1.0, %v8730_v33  ;;  %8751 = vpow2.f32 %v1489_v26  ;;  %7885 = vmatmul.mubr.msk.f32.gmra.mrb[44].mxu1 %vm2174_vm1, %v1654_v51  ;;  %v1656_v11 = vmul.f32 %v10149_v63, %v1632_v21 }
 0x1fd   : > { %v8734_v43 = vpop.eup %8733  ;;  %v1631_v17 = vsub.f32 1.0, %v1607_v13  ;;  %8753 = vpow2.f32 %v1495_v1  ;;  %v1005_v33 = vadd.f32 1.0, %v10251_v49  ;;  %v10322_v49 = vadd.f32 1.0, %v10203_v32 }
 0x1fe   : > { %v10306_v31 = vpop.eup %8735  ;;  %v1564_v22 = vadd.f32 1.0, %v1540_v58  ;;  %v1539_v9 = vmul.f32 %v1515_v3, %v1515_v3  ;;  %8755 = vpow2.f32 %v1493_v34  ;;  %v1610_v57 = vmul.f32 2.0, %v8734_v43 }
 0x1ff   : > { %v8738_v0 = vpop.eup %8737  ;;  %v1655_v26 = vmul.f32 %v1631_v17, %v10154_v10  ;;  %8757 = vpow2.f32 %v1499_v18  ;;  %v10316_v10 = vmul.f32 1.442695, %v10092_v47  ;;  %v1051_v43 = vadd.f32 1.0, %v1027_v38 }
 0x200   : > { %v8740_v36 = vpop.eup %8739  ;;  %8759 = vrcp.f32 %v1564_v22  ;;  %v1563_v51 = vadd.f32 1.0, %v1539_v9  ;;  %v1518_v1 = vadd.f32 1.0, %v8738_v0  ;;  %v1634_v21 = vsub.f32 1.0, %v1610_v57 }
 0x201   : > { %v8742_v28 = vpop.eup %8741  ;;  %v1517_v13 = vadd.f32 1.0, %v8740_v36  ;;  %8761 = vpow2.f32 %v1497_v25  ;;  %7887 = vmatprep.mubr.msk.f32.mxu1 %vm2174_vm1, %v1655_v26  ;;  %v1029_v9 = vmul.f32 %v1005_v33, %v1005_v33  ;;  %v973_v0 = vmul.f32 1.442695, %v10086_v44 }
 0x202   : > { %v10313_v52 = vpop.eup %8743  ;;  %v1609_v34 = vmul.f32 2.0, %v8742_v28  ;;  %8763 = vrcp.f32 %v1563_v51  ;;  %v1542_v63 = vmul.f32 %v1518_v1, %v1518_v1  ;;  %7888 = vmatmul.mubr.msk.f32.gmra.mrb[46].mxu1 %vm2174_vm1, %v1656_v11  ;;  %v977_v32 = vmul.f32 1.442695, %v10094_v48  ;;  %v3220_v1 = vld [vmem:[#allocation5] sm:$0xff] }
 0x203   : > { %v10319_v18 = vpop.eup %8745  ;;  %8765 = vrcp.f32 %v1066_v23  ;;  %v1541_v58 = vmul.f32 %v1517_v13, %v1517_v13  ;;  %v1658_v51 = vmul.f32 %v10161_v19, %v1634_v21  ;;  %v1008_v33 = vadd.f32 1.0, %v10256_v37  ;;  %7992 = vmatprep.subr.mxu0 %v3220_v1 }
 0x204   : > { %v8748_v3 = vpop.eup %8747  ;;  %8767 = vrcp.f32 %v1065_v62  ;;  %v1633_v17 = vsub.f32 1.0, %v1609_v34  ;;  %v1566_v25 = vadd.f32 1.0, %v1542_v63  ;;  %v975_v62 = vmul.f32 1.442695, %v10098_v50  ;;  %7993 = vmatpush3.msra.mxu0 %v3220_v1 }
 0x205   : > { %v8750_v22 = vpop.eup %8749  ;;  %8769 = vpow2.f32 %v971_v20  ;;  %v1565_v26 = vadd.f32 1.0, %v1541_v58  ;;  %v1007_v34 = vadd.f32 1.0, %v10273_v7 }
 0x206   : > { %v8752_v36 = vpop.eup %8751  ;;  %v1657_v11 = vmul.f32 %v1633_v17, %v10168_v59  ;;  %8771 = vrcp.f32 %v1566_v25  ;;  %v1520_v23 = vadd.f32 1.0, %v8750_v22 }
 0x207   : > { %v8754_v57 = vpop.eup %8753  ;;  %8773 = vrcp.f32 %v1565_v26  ;;  %v1519_v38 = vadd.f32 1.0, %v8752_v36 }
 0x208   : > { %v8756_v28 = vpop.eup %8755  ;;  %8775 = vrcp.f32 %v1051_v43  ;;  %v1544_v20 = vmul.f32 %v1520_v23, %v1520_v23  ;;  %v1522_v13 = vadd.f32 1.0, %v8754_v57  ;;  %7890 = vmatprep.mubr.msk.f32.mxu1 %vm2174_vm1, %v1657_v11  ;;  %v1009_v57 = vadd.f32 1.0, %v8748_v3 }
 0x209   : > { %v8758_v59 = vpop.eup %8757  ;;  %8777 = vpow2.f32 %v973_v0  ;;  %v1543_v63 = vmul.f32 %v1519_v38, %v1519_v38  ;;  %v1521_v19 = vadd.f32 1.0, %v8756_v28  ;;  %7891 = vmatmul.mubr.msk.f32.gmra.mrb[48].mxu1 %vm2174_vm1, %v1658_v51  ;;  %v1032_v3 = vmul.f32 %v1008_v33, %v1008_v33 }
 0x20a   : > { %v8760_v21 = vpop.eup %8759  ;;  %8779 = vpow2.f32 %v977_v32  ;;  %v1568_v58 = vadd.f32 1.0, %v1544_v20  ;;  %v1546_v43 = vmul.f32 %v1522_v13, %v1522_v13  ;;  %v1524_v17 = vadd.f32 1.0, %v8758_v59 }
 0x20b   : > { %v8762_v37 = vpop.eup %8761  ;;  %v1612_v25 = vmul.f32 2.0, %v8760_v21  ;;  %8781 = vpow2.f32 %v975_v62  ;;  %v1567_v22 = vadd.f32 1.0, %v1543_v63  ;;  %v1545_v26 = vmul.f32 %v1521_v19, %v1521_v19 }
 0x20c   : > { %v8764_v36 = vpop.eup %8763  ;;  %8783 = vrcp.f32 %v1568_v58  ;;  %v1570_v11 = vadd.f32 1.0, %v1546_v43  ;;  %v1548_v7 = vmul.f32 %v1524_v17, %v1524_v17  ;;  %v1523_v0 = vadd.f32 1.0, %v8762_v37 }
 0x20d   : > { %v10333_v23 = vpop.eup %8765  ;;  %v1611_v51 = vmul.f32 2.0, %v8764_v36  ;;  %8785 = vrcp.f32 %v1567_v22  ;;  %v1569_v38 = vadd.f32 1.0, %v1545_v26  ;;  %v1636_v1 = vsub.f32 1.0, %v1612_v25 }
 0x20e   : > { %v10335_v32 = vpop.eup %8767  ;;  %8787 = vrcp.f32 %v1570_v11  ;;  %v1572_v28 = vadd.f32 1.0, %v1548_v7  ;;  %v1547_v20 = vmul.f32 %v1523_v0, %v1523_v0  ;;  %v1019_v13 = vadd.f32 1.0, %v10234_v27 }
 0x20f   : > { %v8770_v62 = vpop.eup %8769  ;;  %v1030_v59 = vmul.f32 %v10322_v49, %v10322_v49  ;;  %v1635_v63 = vsub.f32 1.0, %v1611_v51  ;;  %8789 = vrcp.f32 %v1569_v38  ;;  %v1053_v21 = vadd.f32 1.0, %v1029_v9 }
 0x210   : > { %v8772_v19 = vpop.eup %8771  ;;  %8791 = vrcp.f32 %v1572_v28  ;;  %v1571_v58 = vadd.f32 1.0, %v1547_v20  ;;  %v1031_v17 = vmul.f32 %v1007_v34, %v1007_v34  ;;  %v1010_v37 = vadd.f32 1.0, %v10280_v61 }
 0x211   : > { %v8774_v43 = vpop.eup %8773  ;;  %v1659_v25 = vmul.f32 %v1635_v63, %v10184_v53  ;;  %v1614_v22 = vmul.f32 2.0, %v8772_v19  ;;  %v1033_v27 = vmul.f32 %v1009_v57, %v1009_v57  ;;  %v1660_v36 = vmul.f32 %v10177_v29, %v1636_v1 }
 0x212   : > { %v10342_v26 = vpop.eup %8775  ;;  %v1613_v49 = vmul.f32 2.0, %v8774_v43  ;;  %8793 = vrcp.f32 %v1571_v58  ;;  %v1011_v9 = vadd.f32 1.0, %v8770_v62  ;;  %v1044_v61 = vmul.f32 %v10303_v16, %v10303_v16 }
 0x213   : > { %v8778_v11 = vpop.eup %8777  ;;  %8795 = vrcp.f32 %v10291_v2  ;;  %v1638_v33 = vsub.f32 1.0, %v1614_v22  ;;  %7893 = vmatprep.mubr.msk.f32.mxu1 %vm2174_vm1, %v1659_v25  ;;  %v1054_v53 = vadd.f32 1.0, %v1030_v59  ;;  %v1043_v0 = vmul.f32 %v1019_v13, %v1019_v13 }
 0x214   : > { %v8780_v34 = vpop.eup %8779  ;;  %8797 = vpow2.f32 %v10316_v10  ;;  %v1637_v7 = vsub.f32 1.0, %v1613_v49  ;;  %7894 = vmatmul.mubr.msk.f32.gmra.mrb[50].mxu1 %vm2174_vm1, %v1660_v36  ;;  %v1055_v57 = vadd.f32 1.0, %v1031_v17  ;;  %v1056_v2 = vadd.f32 1.0, %v1032_v3 }
 0x215   : > { %v8782_v29 = vpop.eup %8781  ;;  %8799 = vrcp.f32 %v1053_v21  ;;  %v1034_v38 = vmul.f32 %v1010_v37, %v1010_v37  ;;  %v1057_v1 = vadd.f32 1.0, %v1033_v27  ;;  %v1012_v62 = vadd.f32 1.0, %v8778_v11 }
 0x216   : > { %v8784_v51 = vpop.eup %8783  ;;  %v1661_v28 = vmul.f32 %v1637_v7, %v10198_v12  ;;  %v1035_v63 = vmul.f32 %v1011_v9, %v1011_v9  ;;  %v1662_v16 = vmul.f32 %v10193_v24, %v1638_v33  ;;  %v1068_v19 = vadd.f32 1.0, %v1044_v61 }
 0x217   : > { %v8786_v20 = vpop.eup %8785  ;;  %v1616_v10 = vmul.f32 2.0, %v8784_v51  ;;  %8801 = vrcp.f32 %v1054_v53  ;;  %v1013_v58 = vadd.f32 1.0, %v8782_v29  ;;  %v1022_v21 = vadd.f32 1.0, %v10263_v8 }
 0x218   : > { %v8788_v59 = vpop.eup %8787  ;;  %v1615_v43 = vmul.f32 2.0, %v8786_v20  ;;  %7896 = vmatprep.mubr.msk.f32.mxu1 %vm2174_vm1, %v1661_v28  ;;  %8803 = vrcp.f32 %v1055_v57  ;;  %v1067_v37 = vadd.f32 1.0, %v1043_v0  ;;  %v1058_v22 = vadd.f32 1.0, %v1034_v38 }
 0x219   : > { %v8790_v13 = vpop.eup %8789  ;;  %v1640_v3 = vsub.f32 1.0, %v1616_v10  ;;  %v1618_v17 = vmul.f32 2.0, %v8788_v59  ;;  %7897 = vmatmul.mubr.msk.f32.gmra.mrb[52].mxu1 %vm2174_vm1, %v1662_v16  ;;  %8805 = vrcp.f32 %v1056_v2  ;;  %v1036_v27 = vmul.f32 %v1012_v62, %v1012_v62 }
 0x21a   : > { %v8792_v12 = vpop.eup %8791  ;;  %v1639_v24 = vsub.f32 1.0, %v1615_v43  ;;  %v1617_v25 = vmul.f32 2.0, %v8790_v13  ;;  %8807 = vrcp.f32 %v1057_v1  ;;  %v1059_v36 = vadd.f32 1.0, %v1035_v63 }
 0x21b   : > { %v1014_v11 = vadd.f32 1.0, %v8780_v34  ;;  %v1037_v9 = vmul.f32 %v1013_v58, %v1013_v58  ;;  %v1664_v53 = vmul.f32 %v10206_v6, %v1640_v3  ;;  %v1642_v7 = vsub.f32 1.0, %v1618_v17  ;;  %v7028_v6 = vld [vmem:[%s12121_s2 + $0x30] sm:$0xff] }
 0x21c   : > { %v8794_v49 = vpop.eup %8793  ;;  %v1663_v33 = vmul.f32 %v1639_v24, %v10211_v5  ;;  %v1641_v8 = vsub.f32 1.0, %v1617_v25  ;;  %v1620_v29 = vmul.f32 2.0, %v8792_v12  ;;  %8809 = vrcp.f32 %v1068_v19 }
 0x21d   : > { %v8796_v61 = vpop.eup %8795  ;;  %v1619_v57 = vmul.f32 2.0, %v8794_v49  ;;  %v1021_v51 = vadd.f32 1.0, %v10270_v15  ;;  %v1099_v2 = vmul.f32 2.0, %v10342_v26  ;;  %v1046_v5 = vmul.f32 %v1022_v21, %v1022_v21  ;;  %v7029_v15 = vld [vmem:[%s12121_s2 + $0x38] sm:$0xff] }
 0x21e   : > { %v10358_v0 = vpop.eup %8797  ;;  %v1665_v38 = vmul.f32 %v1641_v8, %v10230_v14  ;;  %7899 = vmatprep.mubr.msk.f32.mxu1 %vm2174_vm1, %v1663_v33  ;;  %8811 = vrcp.f32 %v1058_v22  ;;  %v1060_v1 = vadd.f32 1.0, %v1036_v27  ;;  %v1100_v26 = vmul.f32 2.0, %v8796_v61 }
 0x21f   : > { %v8800_v34 = vpop.eup %8799  ;;  %v1643_v28 = vsub.f32 1.0, %v1619_v57  ;;  %7900 = vmatmul.mubr.msk.f32.gmra.mrb[54].mxu1 %vm2174_vm1, %v1664_v53  ;;  %8813 = vrcp.f32 %v1059_v36  ;;  %v1038_v14 = vmul.f32 %v1014_v11, %v1014_v11  ;;  %v1953_v20 = vmul.f32 1.442695, %v10104_v54  ;;  %v12214_v36 = vld [vmem:[#allocation19_spill] sm:$0xff]  ;;  %v12216_v57 = vld [vmem:[#allocation17_spill] sm:$0xff] }
 0x220   : > { %7902 = vmatprep.mubr.msk.f32.mxu1 %vm2174_vm1, %v1665_v38  ;;  %v1061_v62 = vadd.f32 1.0, %v1037_v9  ;;  %v1666_v63 = vmul.f32 %v10223_v35, %v1642_v7  ;;  %v1644_v16 = vsub.f32 1.0, %v1620_v29  ;;  %8815 = vrcp.f32 %v1067_v37 }
 0x221   : > { %v1667_v10 = vmul.f32 %v1643_v28, %v10249_v55  ;;  %v8802_v59 = vpop.eup %8801  ;;  %v1123_v19 = vsub.f32 1.0, %v1099_v2  ;;  %v1101_v58 = vmul.f32 2.0, %v8800_v34  ;;  %v8426_v43 = vpack.c.bf16 %v7029_v15, %v7028_v6  ;;  %v12217_v34 = vld [vmem:[#allocation23_spill] sm:$0xff] }
 0x222   : > { %v8804_v13 = vpop.eup %8803  ;;  %v1045_v21 = vmul.f32 %v1021_v51, %v1021_v51  ;;  %8817 = vrcp.f32 %v1060_v1  ;;  %v1951_v3 = vmul.f32 1.442695, %v10108_v56  ;;  %v1024_v12 = vadd.f32 1.0, %v10288_v4 }
 0x223   : > { %7903 = vmatmul.mubr.msk.f32.gmra.mrb[56].mxu1 %vm2174_vm1, %v1666_v63  ;;  %v8806_v17 = vpop.eup %8805  ;;  %v1124_v24 = vsub.f32 1.0, %v1100_v26  ;;  %v1062_v35 = vadd.f32 1.0, %v1038_v14  ;;  %8819 = vpow2.f32 %v1953_v20  ;;  %8427 = vmatprep.subr.bf16.mxu1 %v8426_v43  ;;  %v1102_v37 = vmul.f32 2.0, %v8802_v59  ;;  %v12218_v63 = vld [vmem:[#allocation32_spill] sm:$0xff] }
 0x224   : > { %7905 = vmatprep.mubr.msk.f32.mxu1 %vm2174_vm1, %v1667_v10  ;;  %v8808_v55 = vpop.eup %8807  ;;  %8821 = vrcp.f32 %v1061_v62  ;;  %v1668_v25 = vmul.f32 %v10244_v30, %v1644_v16  ;;  %v1957_v22 = vmul.f32 1.442695, %v10114_v60  ;;  %v1070_v27 = vadd.f32 1.0, %v1046_v5  ;;  %v12215_v30 = vld [vmem:[#allocation30_spill] sm:$0xff] }
 0x225   : > { %v1147_v49 = vmul.f32 %v1123_v19, %v12214_v36  ;;  %v1125_v11 = vsub.f32 1.0, %v1101_v58  ;;  %v1103_v9 = vmul.f32 2.0, %v8804_v13  ;;  %v1112_v4 = vmul.f32 2.0, %v10299_v39  ;;  %v12219_v19 = vld [vmem:[#allocation21_spill] sm:$0xff]  ;;  %v12220_v13 = vld [vmem:[#allocation31_spill] sm:$0xff] }
 0x226   : > { %v1069_v33 = vadd.f32 1.0, %v1045_v21  ;;  %8823 = vpow2.f32 %v1951_v3  ;;  %v10384_v8 = vpop.eup %8809  ;;  %v10387_v61 = vmul.f32 2.0, %v10306_v31  ;;  %v1048_v53 = vmul.f32 %v1024_v12, %v1024_v12  ;;  %v7030_v31 = vld [vmem:[%s12121_s2 + $0x40] sm:$0xff] }
 0x227   : > { %7906 = vmatmul.mubr.msk.f32.gmra.mrb[58].mxu1 %vm2174_vm1, %v1668_v25  ;;  %8825 = vrcp.f32 %v1062_v35  ;;  %v1955_v7 = vmul.f32 1.442695, %v12215_v30  ;;  %v1148_v51 = vmul.f32 %v12216_v57, %v1124_v24  ;;  %v1126_v2 = vsub.f32 1.0, %v1102_v37  ;;  %v12222_v37 = vld [vmem:[#allocation15_spill] sm:$0xff] }
 0x228   : > { %7914 = vmatprep.mubr.msk.f32.mxu1 %vm2174_vm1, %v1147_v49  ;;  %v8812_v29 = vpop.eup %8811  ;;  %v1104_v39 = vmul.f32 2.0, %v8806_v17  ;;  %8827 = vpow2.f32 %v1957_v22  ;;  %v1149_v5 = vmul.f32 %v1125_v11, %v12217_v34  ;;  %v1127_v1 = vsub.f32 1.0, %v1103_v9  ;;  %v12221_v17 = vld [vmem:[#allocation27_spill] sm:$0xff]  ;;  %v12223_v11 = vld [vmem:[#allocation34_spill] sm:$0xff] }
 0x229   : > { %v8814_v38 = vpop.eup %8813  ;;  %8829 = vrcp.f32 %v1070_v27  ;;  %v1105_v28 = vmul.f32 2.0, %v8808_v55  ;;  %v1136_v6 = vsub.f32 1.0, %v1112_v4  ;;  %v1023_v15 = vadd.f32 1.0, %v10313_v52 }
 0x22a   : > { %8831 = vrcp.f32 %v1069_v33  ;;  %v1025_v26 = vadd.f32 1.0, %v10358_v0  ;;  %v10399_v14 = vpop.eup %8815  ;;  %v1135_v20 = vsub.f32 1.0, %v10387_v61  ;;  %v1106_v62 = vmul.f32 2.0, %v8812_v29  ;;  %v12224_v33 = vld [vmem:[#allocation25_spill] sm:$0xff] }
 0x22b   : > { %7915 = vmatmul.mubr.msk.f32.vlgmr.msra.gmra.mrb[36].mxu1 %vm2174_vm1, %v1148_v51  ;;  %8833 = vpow2.f32 %v1955_v7  ;;  %v1959_v16 = vmul.f32 1.442695, %v12218_v63  ;;  %v1072_v59 = vadd.f32 1.0, %v1048_v53  ;;  %v1150_v58 = vmul.f32 %v12219_v19, %v1126_v2 }
 0x22c   : > { %7917 = vmatprep.mubr.msk.f32.mxu1 %vm2174_vm1, %v1149_v5  ;;  %8429 = vmatpush3.bf16.msra.mxu1 %v8426_v43  ;;  %v8818_v10 = vpop.eup %8817  ;;  %v1128_v52 = vsub.f32 1.0, %v1104_v39  ;;  %v1961_v0 = vmul.f32 1.442695, %v12220_v13  ;;  %v1026_v3 = vadd.f32 1.0, %v10319_v18  ;;  %v1151_v12 = vmul.f32 %v1127_v1, %v12221_v17 }
 0x22d   : > { %7954 = vmatprep.subr.mxu1 %v7030_v31  ;;  %v8820_v21 = vpop.eup %8819  ;;  %v1129_v24 = vsub.f32 1.0, %v1105_v28  ;;  %v1107_v35 = vmul.f32 2.0, %v8814_v38  ;;  %v10409_v25 = vmul.f32 %v12222_v37, %v1136_v6  ;;  %v10412_v43 = vmul.f32 2.0, %v10333_v23  ;;  %v12225_v23 = vld [vmem:[#allocation33_spill] sm:$0xff]  ;;  %v12226_v6 = vld [vmem:[#allocation36_spill] sm:$0xff] }
 0x22e   : > { %v8822_v55 = vpop.eup %8821  ;;  %v1047_v22 = vmul.f32 %v1023_v15, %v1023_v15  ;;  %v1049_v27 = vmul.f32 %v1025_v26, %v1025_v26  ;;  %v1130_v36 = vsub.f32 1.0, %v1106_v62  ;;  %v1108_v49 = vmul.f32 2.0, %v8818_v10 }
 0x22f   : > { %7918 = vmatmul.mubr.msk.f32.gmra.mrb[38].mxu1 %vm2174_vm1, %v1150_v58  ;;  %8835 = vpow2.f32 %v1959_v16  ;;  %v1963_v18 = vmul.f32 1.442695, %v12223_v11  ;;  %v1113_v4 = vmul.f32 2.0, %v10335_v32  ;;  %v1152_v53 = vmul.f32 %v12224_v33, %v1128_v52  ;;  %v12227_v16 = vld [vmem:[#allocation35_spill] sm:$0xff] }
 0x230   : > { %7920 = vmatprep.mubr.msk.f32.mxu1 %vm2174_vm1, %v1151_v12  ;;  %7955 = vmatpush3.msra.mxu1 %v7030_v31  ;;  %v8824_v9 = vpop.eup %8823  ;;  %8837 = vpow2.f32 %v1961_v0  ;;  %v1965_v7 = vmul.f32 1.442695, %v12225_v23  ;;  %v1153_v57 = vmul.f32 %v1129_v24, %v10082_v42  ;;  %v1131_v51 = vsub.f32 1.0, %v1107_v35  ;;  %v12228_v24 = vld [vmem:[#allocation38_spill] sm:$0xff] }
 0x231   : > { %v8826_v29 = vpop.eup %8825  ;;  %v1109_v2 = vmul.f32 2.0, %v8822_v55  ;;  %v2000_v39 = vadd.f32 1.0, %v8820_v21  ;;  %8839 = vrcp.f32 %v1072_v59  ;;  %v1071_v34 = vadd.f32 1.0, %v1047_v22 }
 0x232   : > { %v8828_v38 = vpop.eup %8827  ;;  %v1050_v5 = vmul.f32 %v1026_v3, %v1026_v3  ;;  %v1073_v1 = vadd.f32 1.0, %v1049_v27  ;;  %v1154_v32 = vmul.f32 %v10078_v40, %v1130_v36  ;;  %v1132_v31 = vsub.f32 1.0, %v1108_v49 }
 0x233   : > { %7921 = vmatmul.mubr.msk.f32.gmra.mrb[40].mxu1 %vm2174_vm1, %v1152_v53  ;;  %v8830_v28 = vpop.eup %8829  ;;  %8841 = vpow2.f32 %v1963_v18  ;;  %v1967_v15 = vmul.f32 1.442695, %v12226_v6  ;;  %v1110_v26 = vmul.f32 2.0, %v8826_v29  ;;  %v1999_v62 = vadd.f32 1.0, %v8824_v9  ;;  %v12229_v18 = vld [vmem:[#allocation16_spill] sm:$0xff] }
 0x234   : > { %7923 = vmatprep.mubr.msk.f32.mxu1 %vm2174_vm1, %v1153_v57  ;;  %v8832_v42 = vpop.eup %8831  ;;  %8843 = vpow2.f32 %v1965_v7  ;;  %v1969_v10 = vmul.f32 1.442695, %v12227_v16  ;;  %v1155_v19 = vmul.f32 %v1131_v51, %v10090_v46  ;;  %v1133_v58 = vsub.f32 1.0, %v1109_v2  ;;  %v12232_v53 = vld [vmem:[#allocation20_spill] sm:$0xff] }
 0x235   : > { %v8834_v59 = vpop.eup %8833  ;;  %v2024_v52 = vmul.f32 %v2000_v39, %v2000_v39  ;;  %v2002_v0 = vadd.f32 1.0, %v8828_v38  ;;  %v1138_v40 = vsub.f32 1.0, %v10412_v43  ;;  %v1137_v21 = vsub.f32 1.0, %v1113_v4  ;;  %v12231_v4 = vld [vmem:[#allocation37_spill] sm:$0xff] }
 0x236   : > { %8845 = vrcp.f32 %v1071_v34  ;;  %v1074_v3 = vadd.f32 1.0, %v1050_v5  ;;  %v1115_v17 = vmul.f32 2.0, %v10399_v14  ;;  %v1156_v12 = vmul.f32 %v10086_v44, %v1132_v31  ;;  %v12230_v14 = vld [vmem:[#allocation18_spill] sm:$0xff] }
 0x237   : > { %7924 = vmatmul.mubr.msk.f32.gmra.mrb[42].mxu1 %vm2174_vm1, %v1154_v32  ;;  %8847 = vpow2.f32 %v1967_v15  ;;  %v1971_v35 = vmul.f32 1.442695, %v12228_v24  ;;  %v1134_v46 = vsub.f32 1.0, %v1110_v26  ;;  %v2023_v55 = vmul.f32 %v1999_v62, %v1999_v62 }
 0x238   : > { %7926 = vmatprep.mubr.msk.f32.mxu1 %vm2174_vm1, %v1155_v19  ;;  %v2001_v37 = vadd.f32 1.0, %v8834_v59  ;;  %8849 = vpow2.f32 %v1969_v10  ;;  %v1157_v43 = vmul.f32 %v1133_v58, %v10098_v50  ;;  %v2048_v27 = vadd.f32 1.0, %v2024_v52  ;;  %v12233_v50 = vld [vmem:[#allocation40_spill] sm:$0xff] }
 0x239   : > { %v8836_v22 = vpop.eup %8835  ;;  %8851 = vrcp.f32 %v1073_v1  ;;  %v2026_v36 = vmul.f32 %v2002_v0, %v2002_v0  ;;  %v1159_v44 = vmul.f32 %v1135_v20, %v12229_v18  ;;  %v10438_v9 = vmul.f32 %v12230_v14, %v1138_v40 }
 0x23a   : > { %v8838_v49 = vpop.eup %8837  ;;  %8853 = vrcp.f32 %v1074_v3  ;;  %v1973_v33 = vmul.f32 1.442695, %v12231_v4  ;;  %v1161_v7 = vmul.f32 %v1137_v21, %v12232_v53  ;;  %v1116_v29 = vmul.f32 2.0, %v10384_v8  ;;  %v12234_v8 = vld [vmem:[#allocation39_spill] sm:$0xff]  ;;  %v12236_v21 = vld [vmem:[#allocation41_spill] sm:$0xff] }
 0x23b   : > { %7927 = vmatmul.mubr.msk.f32.gmra.mrb[44].mxu1 %vm2174_vm1, %v1156_v12  ;;  %8855 = vpow2.f32 %v1971_v35  ;;  %v1975_v57 = vmul.f32 1.442695, %v12233_v50  ;;  %v8840_v51 = vpop.eup %8839  ;;  %v1158_v61 = vmul.f32 %v10094_v48, %v1134_v46  ;;  %v2047_v20 = vadd.f32 1.0, %v2023_v55  ;;  %v12235_v48 = vld [vmem:[#allocation42_spill] sm:$0xff]  ;;  %v12237_v12 = vld [vmem:[#allocation24_spill] sm:$0xff] }
 0x23c   : > { %7929 = vmatprep.mubr.msk.f32.mxu1 %vm2174_vm1, %v1157_v43  ;;  %v2025_v2 = vmul.f32 %v2001_v37, %v2001_v37  ;;  %v2003_v39 = vadd.f32 1.0, %v8836_v22  ;;  %v1139_v34 = vsub.f32 1.0, %v1115_v17  ;;  %8857 = vrcp.f32 %v2048_v27  ;;  %v12238_v27 = vld [vmem:[#allocation44_spill] sm:$0xff] }
 0x23d   : > { %v8842_v38 = vpop.eup %8841  ;;  %v2050_v5 = vadd.f32 1.0, %v2026_v36  ;;  %v2004_v1 = vadd.f32 1.0, %v8838_v49  ;;  %v1118_v31 = vmul.f32 2.0, %v8830_v28  ;;  %v1117_v15 = vmul.f32 2.0, %v8832_v42 }
 0x23e   : > { %v8844_v32 = vpop.eup %8843  ;;  %8859 = vpow2.f32 %v1973_v33  ;;  %v1977_v26 = vmul.f32 1.442695, %v12234_v8  ;;  %v1140_v62 = vsub.f32 1.0, %v1116_v29  ;;  %v1120_v10 = vmul.f32 2.0, %v8840_v51  ;;  %v12239_v51 = vld [vmem:[#allocation22_spill] sm:$0xff] }
 0x23f   : > { %7930 = vmatmul.mubr.msk.f32.gmra.mrb[46].mxu1 %vm2174_vm1, %v1158_v61  ;;  %8861 = vpow2.f32 %v1975_v57  ;;  %v1979_v59 = vmul.f32 1.442695, %v12235_v48  ;;  %v2049_v58 = vadd.f32 1.0, %v2025_v2  ;;  %v2027_v52 = vmul.f32 %v2003_v39, %v2003_v39  ;;  %v12240_v61 = vld [vmem:[#allocation26_spill] sm:$0xff]  ;;  %v12241_v39 = vld [vmem:[#allocation43_spill] sm:$0xff] }
 0x240   : > { %7932 = vmatprep.mubr.msk.f32.mxu1 %vm2174_vm1, %v1159_v44  ;;  %v8846_v19 = vpop.eup %8845  ;;  %8863 = vrcp.f32 %v2047_v20  ;;  %v2005_v0 = vadd.f32 1.0, %v8842_v38  ;;  %v2028_v28 = vmul.f32 %v2004_v1, %v2004_v1  ;;  %v2006_v42 = vadd.f32 1.0, %v8844_v32  ;;  %v12243_v32 = vld [vmem:[#allocation46_spill] sm:$0xff] }
 0x241   : > { %v8848_v40 = vpop.eup %8847  ;;  %8865 = vrcp.f32 %v2050_v5  ;;  %v1981_v3 = vmul.f32 1.442695, %v12236_v21  ;;  %v1163_v35 = vmul.f32 %v1139_v34, %v12237_v12  ;;  %v1142_v46 = vsub.f32 1.0, %v1118_v31  ;;  %v12242_v34 = vld [vmem:[#allocation28_spill] sm:$0xff] }
 0x242   : > { %v8850_v17 = vpop.eup %8849  ;;  %v1141_v55 = vsub.f32 1.0, %v1117_v15  ;;  %8867 = vpow2.f32 %v1977_v26  ;;  %v1144_v22 = vsub.f32 1.0, %v1120_v10  ;;  %v1119_v43 = vmul.f32 2.0, %v8846_v19 }
 0x243   : > { %7933 = vmatmul.mubr.msk.f32.gmra.mrb[48].mxu1 %vm2174_vm1, %v10409_v25  ;;  %v8852_v37 = vpop.eup %8851  ;;  %8869 = vpow2.f32 %v1979_v59  ;;  %v1983_v36 = vmul.f32 1.442695, %v12238_v27  ;;  %v2051_v18 = vadd.f32 1.0, %v2027_v52  ;;  %v2029_v44 = vmul.f32 %v2005_v0, %v2005_v0 }
 0x244   : > { %7935 = vmatprep.mubr.msk.f32.mxu1 %vm2174_vm1, %v1161_v7  ;;  %v8854_v49 = vpop.eup %8853  ;;  %8871 = vrcp.f32 %v2049_v58  ;;  %v2007_v14 = vadd.f32 1.0, %v8848_v40  ;;  %v2052_v53 = vadd.f32 1.0, %v2028_v28  ;;  %v2030_v29 = vmul.f32 %v2006_v42, %v2006_v42  ;;  %v12244_v28 = vld [vmem:[#allocation45_spill] sm:$0xff] }
 0x245   : > { %v8856_v33 = vpop.eup %8855  ;;  %v2008_v57 = vadd.f32 1.0, %v8850_v17  ;;  %8873 = vpow2.f32 %v1981_v3  ;;  %v1164_v25 = vmul.f32 %v12239_v51, %v1140_v62  ;;  %v1166_v20 = vmul.f32 %v12240_v61, %v1142_v46  ;;  %v12245_v17 = vld [vmem:[#allocation29_spill] sm:$0xff]  ;;  %v12246_v46 = vld [vmem:[#allocation48_spill] sm:$0xff] }
 0x246   : > { %v1121_v2 = vmul.f32 2.0, %v8852_v37  ;;  %v1985_v38 = vmul.f32 1.442695, %v12241_v39  ;;  %v8858_v7 = vpop.eup %8857  ;;  %v1165_v5 = vmul.f32 %v1141_v55, %v12242_v34  ;;  %v1143_v1 = vsub.f32 1.0, %v1119_v43 }
 0x247   : > { %7936 = vmatmul.mubr.msk.f32.gmra.mrb[50].mxu1 %vm2174_vm1, %v10438_v9  ;;  %8875 = vpow2.f32 %v1983_v36  ;;  %v1987_v31 = vmul.f32 1.442695, %v12243_v32  ;;  %v2053_v26 = vadd.f32 1.0, %v2029_v44  ;;  %v2031_v62 = vmul.f32 %v2007_v14, %v2007_v14 }
 0x248   : > { %7938 = vmatprep.mubr.msk.f32.mxu1 %vm2174_vm1, %v1163_v35  ;;  %v8860_v15 = vpop.eup %8859  ;;  %8877 = vrcp.f32 %v2051_v18  ;;  %v2009_v10 = vadd.f32 1.0, %v8856_v33  ;;  %v1168_v19 = vmul.f32 %v10080_v41, %v1144_v22  ;;  %v2054_v58 = vadd.f32 1.0, %v2030_v29  ;;  %v12247_v29 = vld [vmem:[#allocation47_spill] sm:$0xff] }
 0x249   : > { %v8862_v59 = vpop.eup %8861  ;;  %8879 = vrcp.f32 %v2052_v53  ;;  %v2032_v9 = vmul.f32 %v2008_v57, %v2008_v57  ;;  %v1122_v0 = vmul.f32 2.0, %v8854_v49  ;;  %v1145_v40 = vsub.f32 1.0, %v1121_v2  ;;  %v12248_v2 = vld [vmem:[#allocation50_spill] sm:$0xff] }
 0x24a   : > { %v8864_v52 = vpop.eup %8863  ;;  %8881 = vpow2.f32 %v1985_v38  ;;  %v1989_v42 = vmul.f32 1.442695, %v12244_v28  ;;  %v1167_v12 = vmul.f32 %v1143_v1, %v12245_v17  ;;  %v2010_v35 = vadd.f32 1.0, %v8860_v15 }
 0x24b   : > { %7939 = vmatmul.mubr.msk.f32.gmra.mrb[52].mxu1 %vm2174_vm1, %v1164_v25  ;;  %v8866_v3 = vpop.eup %8865  ;;  %8883 = vpow2.f32 %v1987_v31  ;;  %v1991_v55 = vmul.f32 1.442695, %v12246_v46  ;;  %v2055_v37 = vadd.f32 1.0, %v2031_v62  ;;  %v2033_v22 = vmul.f32 %v2009_v10, %v2009_v10  ;;  %v12249_v10 = vld [vmem:[#allocation49_spill] sm:$0xff] }
 0x24c   : > { %7941 = vmatprep.mubr.msk.f32.mxu1 %vm2174_vm1, %v1165_v5  ;;  %v8868_v41 = vpop.eup %8867  ;;  %8885 = vrcp.f32 %v2053_v26  ;;  %v2011_v43 = vadd.f32 1.0, %v8862_v59  ;;  %v2096_v49 = vmul.f32 2.0, %v8858_v7  ;;  %v2095_v18 = vmul.f32 2.0, %v8864_v52 }
 0x24d   : > { %v8870_v36 = vpop.eup %8869  ;;  %8887 = vrcp.f32 %v2054_v58  ;;  %v2056_v44 = vadd.f32 1.0, %v2032_v9  ;;  %v1146_v33 = vsub.f32 1.0, %v1122_v0  ;;  %v1169_v53 = vmul.f32 %v1145_v40, %v10092_v47 }
 0x24e   : > { %v8872_v14 = vpop.eup %8871  ;;  %8889 = vpow2.f32 %v1989_v42  ;;  %v1993_v57 = vmul.f32 1.442695, %v12247_v29  ;;  %v2034_v25 = vmul.f32 %v2010_v35, %v2010_v35  ;;  %v2012_v61 = vadd.f32 1.0, %v8868_v41 }
 0x24f   : > { %7942 = vmatmul.mubr.msk.f32.gmra.mrb[54].mxu1 %vm2174_vm1, %v1166_v20  ;;  %v8874_v51 = vpop.eup %8873  ;;  %8891 = vpow2.f32 %v1991_v55  ;;  %v1995_v38 = vmul.f32 1.442695, %v12248_v2  ;;  %v2057_v7 = vadd.f32 1.0, %v2033_v22  ;;  %v2035_v34 = vmul.f32 %v2011_v43, %v2011_v43 }
 0x250   : > { %7944 = vmatprep.mubr.msk.f32.mxu1 %vm2174_vm1, %v1167_v12  ;;  %8893 = vrcp.f32 %v2055_v37  ;;  %v2013_v5 = vadd.f32 1.0, %v8870_v36  ;;  %v2120_v31 = vsub.f32 1.0, %v2096_v49  ;;  %v2119_v47 = vsub.f32 1.0, %v2095_v18 }
 0x251   : > { %v8876_v1 = vpop.eup %8875  ;;  %v2097_v15 = vmul.f32 2.0, %v8872_v14  ;;  %8895 = vrcp.f32 %v2056_v44  ;;  %v2098_v62 = vmul.f32 2.0, %v8866_v3  ;;  %v2014_v20 = vadd.f32 1.0, %v8874_v51 }
 0x252   : > { %v8878_v26 = vpop.eup %8877  ;;  %8897 = vpow2.f32 %v1993_v57  ;;  %v1997_v59 = vmul.f32 1.442695, %v12249_v10  ;;  %v1170_v9 = vmul.f32 %v10088_v45, %v1146_v33  ;;  %v2058_v52 = vadd.f32 1.0, %v2034_v25 }
 0x253   : > { %7945 = vmatmul.mubr.msk.f32.gmra.mrb[56].mxu1 %vm2174_vm1, %v1168_v19  ;;  %v8880_v58 = vpop.eup %8879  ;;  %v2036_v0 = vmul.f32 %v2012_v61, %v2012_v61  ;;  %8899 = vpow2.f32 %v1995_v38  ;;  %v2059_v42 = vadd.f32 1.0, %v2035_v34  ;;  %v2037_v17 = vmul.f32 %v2013_v5, %v2013_v5 }
 0x254   : > { %7947 = vmatprep.mubr.msk.f32.mxu1 %vm2174_vm1, %v1169_v53  ;;  %v8882_v40 = vpop.eup %8881  ;;  %8901 = vrcp.f32 %v2057_v7  ;;  %v2015_v12 = vadd.f32 1.0, %v8876_v1  ;;  %v2143_v35 = vmul.f32 %v2119_v47, %v10108_v56  ;;  %v2121_v55 = vsub.f32 1.0, %v2097_v15 }
 0x255   : > { %v8884_v3 = vpop.eup %8883  ;;  %v2099_v41 = vmul.f32 2.0, %v8878_v26  ;;  %v2144_v19 = vmul.f32 %v10104_v54, %v2120_v31  ;;  %v2122_v22 = vsub.f32 1.0, %v2098_v62  ;;  %v2038_v45 = vmul.f32 %v2014_v20, %v2014_v20 }
 0x256   : > { %v8886_v37 = vpop.eup %8885  ;;  %8903 = vpow2.f32 %v1997_v59  ;;  %v2100_v36 = vmul.f32 2.0, %v8880_v58  ;;  %v2060_v49 = vadd.f32 1.0, %v2036_v0  ;;  %v2016_v18 = vadd.f32 1.0, %v8882_v40 }
 0x257   : > { %7948 = vmatmul.mubr.msk.f32.gmra.mrb[58].mxu1 %vm2174_vm1, %v1170_v9  ;;  %v8888_v43 = vpop.eup %8887  ;;  %8905 = vrcp.f32 %v2058_v52  ;;  %v2061_v56 = vadd.f32 1.0, %v2037_v17  ;;  %v2039_v14 = vmul.f32 %v2015_v12, %v2015_v12  ;;  %v2017_v33 = vadd.f32 1.0, %v8884_v3 }
 0x258   : > { %7956 = vmatprep.mubr.msk.f32.mxu1 %vm2174_vm1, %v2143_v35  ;;  %v8890_v44 = vpop.eup %8889  ;;  %8907 = vrcp.f32 %v2059_v42  ;;  %v2145_v54 = vmul.f32 %v2121_v55, %v12215_v30  ;;  %v2123_v57 = vsub.f32 1.0, %v2099_v41  ;;  %v2101_v51 = vmul.f32 2.0, %v8886_v37 }
 0x259   : > { %v8892_v53 = vpop.eup %8891  ;;  %v2146_v61 = vmul.f32 %v10114_v60, %v2122_v22  ;;  %v2102_v38 = vmul.f32 2.0, %v8888_v43  ;;  %v2062_v7 = vadd.f32 1.0, %v2038_v45  ;;  %v2124_v5 = vsub.f32 1.0, %v2100_v36 }
 0x25a   : > { %v8894_v25 = vpop.eup %8893  ;;  %8909 = vrcp.f32 %v2060_v49  ;;  %v2040_v1 = vmul.f32 %v2016_v18, %v2016_v18  ;;  %v2018_v31 = vadd.f32 1.0, %v8890_v44  ;;  %v2063_v15 = vadd.f32 1.0, %v2039_v14 }
 0x25b   : > { %7957 = vmatmul.mubr.msk.f32.vlgmr.msra.gmra.mrb[36].mxu1 %vm2174_vm1, %v2144_v19  ;;  %v8896_v34 = vpop.eup %8895  ;;  %8911 = vrcp.f32 %v2061_v56  ;;  %v2041_v30 = vmul.f32 %v2017_v33, %v2017_v33  ;;  %v2019_v26 = vadd.f32 1.0, %v8892_v53  ;;  %v2147_v20 = vmul.f32 %v2123_v57, %v12218_v63 }
 0x25c   : > { %7959 = vmatprep.mubr.msk.f32.mxu1 %vm2174_vm1, %v2145_v54  ;;  %v8898_v47 = vpop.eup %8897  ;;  %v2125_v60 = vsub.f32 1.0, %v2101_v51  ;;  %v2103_v59 = vmul.f32 2.0, %v8894_v25  ;;  %v2126_v9 = vsub.f32 1.0, %v2102_v38  ;;  %v2104_v52 = vmul.f32 2.0, %v8896_v34 }
 0x25d   : > { %v8900_v62 = vpop.eup %8899  ;;  %8913 = vrcp.f32 %v2062_v7  ;;  %v2148_v0 = vmul.f32 %v12220_v13, %v2124_v5  ;;  %v2064_v40 = vadd.f32 1.0, %v2040_v1  ;;  %v2042_v42 = vmul.f32 %v2018_v31, %v2018_v31 }
 0x25e   : > { %v8902_v58 = vpop.eup %8901  ;;  %v2020_v17 = vadd.f32 1.0, %v8898_v47  ;;  %8915 = vrcp.f32 %v2063_v15  ;;  %v2065_v3 = vadd.f32 1.0, %v2041_v30  ;;  %v2043_v35 = vmul.f32 %v2019_v26, %v2019_v26 }
 0x25f   : > { %7960 = vmatmul.mubr.msk.f32.gmra.mrb[38].mxu1 %vm2174_vm1, %v2146_v61  ;;  %v2021_v63 = vadd.f32 1.0, %v8900_v62  ;;  %v2149_v41 = vmul.f32 %v2125_v60, %v12223_v11  ;;  %v2127_v37 = vsub.f32 1.0, %v2103_v59  ;;  %v2105_v19 = vmul.f32 2.0, %v8902_v58 }
 0x260   : > { %7962 = vmatprep.mubr.msk.f32.mxu1 %vm2174_vm1, %v2147_v20  ;;  %v8904_v12 = vpop.eup %8903  ;;  %v2150_v45 = vmul.f32 %v12225_v23, %v2126_v9  ;;  %v2128_v43 = vsub.f32 1.0, %v2104_v52  ;;  %8917 = vrcp.f32 %v2064_v40  ;;  %v2066_v13 = vadd.f32 1.0, %v2042_v42 }
 0x261   : > { %v8906_v55 = vpop.eup %8905  ;;  %v2044_v36 = vmul.f32 %v2020_v17, %v2020_v17  ;;  %v2022_v49 = vadd.f32 1.0, %v8904_v12  ;;  %8919 = vrcp.f32 %v2065_v3  ;;  %v2067_v44 = vadd.f32 1.0, %v2043_v35 }
 0x262   : > { %v8908_v22 = vpop.eup %8907  ;;  %v2106_v18 = vmul.f32 2.0, %v8906_v55  ;;  %v2045_v56 = vmul.f32 %v2021_v63, %v2021_v63  ;;  %v2151_v11 = vmul.f32 %v2127_v37, %v12226_v6  ;;  %v2129_v33 = vsub.f32 1.0, %v2105_v19 }
 0x263   : > { %7963 = vmatmul.mubr.msk.f32.gmra.mrb[40].mxu1 %vm2174_vm1, %v2148_v0  ;;  %v2107_v53 = vmul.f32 2.0, %v8908_v22  ;;  %v2152_v23 = vmul.f32 %v12227_v16, %v2128_v43  ;;  %8921 = vrcp.f32 %v2066_v13  ;;  %v2068_v57 = vadd.f32 1.0, %v2044_v36 }
 0x264   : > { %7965 = vmatprep.mubr.msk.f32.mxu1 %vm2174_vm1, %v2149_v41  ;;  %v8910_v14 = vpop.eup %8909  ;;  %v2046_v51 = vmul.f32 %v2022_v49, %v2022_v49  ;;  %v2130_v61 = vsub.f32 1.0, %v2106_v18  ;;  %8923 = vrcp.f32 %v2067_v44  ;;  %v2069_v7 = vadd.f32 1.0, %v2045_v56  ;;  %v10529_v18 = vld [vmem:[#allocation5 + $0x8] sm:$0xff] }
 0x265   : > { %v8912_v54 = vpop.eup %8911  ;;  %v2108_v38 = vmul.f32 2.0, %v8910_v14  ;;  %v2153_v34 = vmul.f32 %v2129_v33, %v12228_v24  ;;  %v2131_v6 = vsub.f32 1.0, %v2107_v53  ;;  %8925 = vrcp.f32 %v2068_v57  ;;  %8030 = vmatprep.subr.mxu0 %v10529_v18 }
 0x266   : > { %v2109_v5 = vmul.f32 2.0, %v8912_v54  ;;  %v2070_v31 = vadd.f32 1.0, %v2046_v51  ;;  %v2154_v16 = vmul.f32 %v12231_v4, %v2130_v61  ;;  %8927 = vrcp.f32 %v2069_v7 }
 0x267   : > { %7966 = vmatmul.mubr.msk.f32.gmra.mrb[42].mxu1 %vm2174_vm1, %v2150_v45  ;;  %v8914_v25 = vpop.eup %8913  ;;  %v2132_v47 = vsub.f32 1.0, %v2108_v38  ;;  %v2155_v26 = vmul.f32 %v2131_v6, %v12233_v50 }
 0x268   : > { %7968 = vmatprep.mubr.msk.f32.mxu1 %vm2174_vm1, %v2151_v11  ;;  %v8916_v1 = vpop.eup %8915  ;;  %v2110_v15 = vmul.f32 2.0, %v8914_v25  ;;  %v2133_v62 = vsub.f32 1.0, %v2109_v5  ;;  %8929 = vrcp.f32 %v2070_v31 }
 0x269   : > { %v2111_v20 = vmul.f32 2.0, %v8916_v1  ;;  %v2156_v60 = vmul.f32 %v12234_v8, %v2132_v47 }
 0x26a   : > { %v8918_v30 = vpop.eup %8917  ;;  %v2134_v59 = vsub.f32 1.0, %v2110_v15  ;;  %v2157_v4 = vmul.f32 %v2133_v62, %v12235_v48 }
 0x26b   : > { %7969 = vmatmul.mubr.msk.f32.gmra.mrb[44].mxu1 %vm2174_vm1, %v2152_v23  ;;  %v8920_v24 = vpop.eup %8919  ;;  %v2112_v58 = vmul.f32 2.0, %v8918_v30  ;;  %v2135_v52 = vsub.f32 1.0, %v2111_v20 }
 0x26c   : > { %7971 = vmatprep.mubr.msk.f32.mxu1 %vm2174_vm1, %v2153_v34  ;;  %v2113_v0 = vmul.f32 2.0, %v8920_v24  ;;  %v2158_v50 = vmul.f32 %v12236_v21, %v2134_v59 }
 0x26d   : > { %v8922_v9 = vpop.eup %8921  ;;  %v2136_v42 = vsub.f32 1.0, %v2112_v58  ;;  %v2159_v3 = vmul.f32 %v2135_v52, %v12238_v27 }
 0x26e   : > { %v8924_v40 = vpop.eup %8923  ;;  %v2114_v17 = vmul.f32 2.0, %v8922_v9  ;;  %v2137_v8 = vsub.f32 1.0, %v2113_v0 }
 0x26f   : > { %7972 = vmatmul.mubr.msk.f32.gmra.mrb[46].mxu1 %vm2174_vm1, %v2154_v16  ;;  %v8926_v12 = vpop.eup %8925  ;;  %v2115_v35 = vmul.f32 2.0, %v8924_v40  ;;  %v2160_v48 = vmul.f32 %v12241_v39, %v2136_v42 }
 0x270   : > { %7974 = vmatprep.mubr.msk.f32.mxu1 %vm2174_vm1, %v2155_v26  ;;  %v8928_v63 = vpop.eup %8927  ;;  %v2138_v55 = vsub.f32 1.0, %v2114_v17  ;;  %v2116_v41 = vmul.f32 2.0, %v8926_v12  ;;  %v2161_v19 = vmul.f32 %v2137_v8, %v12243_v32 }
 0x271   : > { %v2139_v21 = vsub.f32 1.0, %v2115_v35  ;;  %v2117_v22 = vmul.f32 2.0, %v8928_v63 }
 0x272   : > { %v8930_v37 = vpop.eup %8929  ;;  %v2162_v27 = vmul.f32 %v12244_v28, %v2138_v55  ;;  %v2140_v45 = vsub.f32 1.0, %v2116_v41 }
 0x273   : > { %7975 = vmatmul.mubr.msk.f32.gmra.mrb[48].mxu1 %vm2174_vm1, %v2156_v60  ;;  %v2118_v43 = vmul.f32 2.0, %v8930_v37  ;;  %v2163_v13 = vmul.f32 %v2139_v21, %v12246_v46  ;;  %v2141_v36 = vsub.f32 1.0, %v2117_v22  ;;  %v10532_v46 = vld [vmem:[#allocation10] ss:$0 sm:$0xff] }
 0x274   : > { %7977 = vmatprep.mubr.msk.f32.mxu1 %vm2174_vm1, %v2157_v4  ;;  %v2164_v39 = vmul.f32 %v12247_v29, %v2140_v45 }
 0x275   : > { %v2142_v32 = vsub.f32 1.0, %v2118_v43  ;;  %v2165_v49 = vmul.f32 %v2141_v36, %v12248_v2 }
 0x277   : > { %7978 = vmatmul.mubr.msk.f32.gmra.mrb[50].mxu1 %vm2174_vm1, %v2158_v50  ;;  %v2166_v28 = vmul.f32 %v12249_v10, %v2142_v32 }
 0x278   : > { %7980 = vmatprep.mubr.msk.f32.mxu1 %vm2174_vm1, %v2159_v3 }
 0x27b   : > { %7981 = vmatmul.mubr.msk.f32.gmra.mrb[52].mxu1 %vm2174_vm1, %v2160_v48 }
 0x27c   : > { %7983 = vmatprep.mubr.msk.f32.mxu1 %vm2174_vm1, %v2161_v19 }
 0x27f   : > { %7984 = vmatmul.mubr.msk.f32.gmra.mrb[54].mxu1 %vm2174_vm1, %v2162_v27 }
 0x280   : > { %7986 = vmatprep.mubr.msk.f32.mxu1 %vm2174_vm1, %v2163_v13 }
 0x283   : > { %7987 = vmatmul.mubr.msk.f32.gmra.mrb[56].mxu1 %vm2174_vm1, %v2164_v39 }
 0x284   : > { %7989 = vmatprep.mubr.msk.f32.mxu1 %vm2174_vm1, %v2165_v49 }
 0x287   : > { %7990 = vmatmul.mubr.msk.f32.gmra.mrb[58].mxu1 %vm2174_vm1, %v2166_v28 }
 0x32e   : > { %v7958_v44 = vpop.f32.mrb[36].mxu1 }
 0x32f   : > { %v10535_v29 = vadd.f32 %v7958_v44, %v10532_v46  ;;  %v2831_v56 = vpop.f32.mrb[37].mxu1 }
 0x330   : > { %v10538_v2 = vadd.f32 %v10532_v46, %v2831_v56 }
 0x331   : > { %v3005_v14 = vmul.f32 1.442695, %v10535_v29 }
 0x332   : > { %v3003_v10 = vmul.f32 1.442695, %v10538_v2  ;;  %v7961_v11 = vpop.f32.mrb[38].mxu1 }
 0x333   : > { %8931 = vpow2.f32 %v3005_v14  ;;  %v10543_v33 = vadd.f32 %v7961_v11, %v10532_v46  ;;  %v2841_v53 = vpop.f32.mrb[39].mxu1 }
 0x334   : > { %8933 = vpow2.f32 %v3003_v10  ;;  %v10546_v54 = vadd.f32 %v10532_v46, %v2841_v53 }
 0x335   : > { %v3009_v23 = vmul.f32 1.442695, %v10543_v33 }
 0x336   : > { %v3007_v57 = vmul.f32 1.442695, %v10546_v54  ;;  %v7964_v51 = vpop.f32.mrb[40].mxu1 }
 0x337   : > { %8935 = vpow2.f32 %v3009_v23  ;;  %v10551_v25 = vadd.f32 %v7964_v51, %v10532_v46  ;;  %v2851_v61 = vpop.f32.mrb[41].mxu1 }
 0x338   : > { %8937 = vpow2.f32 %v3007_v57  ;;  %v10554_v38 = vadd.f32 %v10532_v46, %v2851_v61 }
 0x339   : > { %v3013_v7 = vmul.f32 1.442695, %v10551_v25 }
 0x33a   : > { %v3011_v34 = vmul.f32 1.442695, %v10554_v38  ;;  %v7967_v6 = vpop.f32.mrb[42].mxu1 }
 0x33b   : > { %8939 = vpow2.f32 %v3013_v7  ;;  %v10559_v5 = vadd.f32 %v7967_v6, %v10532_v46  ;;  %v2861_v1 = vpop.f32.mrb[43].mxu1 }
 0x33c   : > { %8941 = vpow2.f32 %v3011_v34  ;;  %v10562_v31 = vadd.f32 %v10532_v46, %v2861_v1 }
 0x33d   : > { %v8932_v16 = vpop.eup %8931  ;;  %v3017_v47 = vmul.f32 1.442695, %v10559_v5 }
 0x33e   : > { %v8934_v15 = vpop.eup %8933  ;;  %v3052_v30 = vadd.f32 1.0, %v8932_v16  ;;  %v3015_v26 = vmul.f32 1.442695, %v10562_v31  ;;  %v7970_v62 = vpop.f32.mrb[44].mxu1 }
 0x33f   : > { %v3051_v20 = vadd.f32 1.0, %v8934_v15  ;;  %8943 = vpow2.f32 %v3017_v47  ;;  %v10567_v24 = vadd.f32 %v7970_v62, %v10532_v46  ;;  %v2871_v60 = vpop.f32.mrb[45].mxu1 }
 0x340   : > { %v3076_v59 = vmul.f32 %v3052_v30, %v3052_v30  ;;  %8945 = vpow2.f32 %v3015_v26  ;;  %v10570_v58 = vadd.f32 %v10532_v46, %v2871_v60 }
 0x341   : > { %v8936_v9 = vpop.eup %8935  ;;  %v3075_v4 = vmul.f32 %v3051_v20, %v3051_v20  ;;  %v3021_v52 = vmul.f32 1.442695, %v10567_v24 }
 0x342   : > { %v8938_v0 = vpop.eup %8937  ;;  %v3100_v40 = vadd.f32 1.0, %v3076_v59  ;;  %v3054_v50 = vadd.f32 1.0, %v8936_v9  ;;  %v3019_v42 = vmul.f32 1.442695, %v10570_v58  ;;  %v7973_v17 = vpop.f32.mrb[46].mxu1 }
 0x343   : > { %v3099_v12 = vadd.f32 1.0, %v3075_v4  ;;  %v3053_v3 = vadd.f32 1.0, %v8938_v0  ;;  %8947 = vpow2.f32 %v3021_v52  ;;  %v10575_v8 = vadd.f32 %v7973_v17, %v10532_v46  ;;  %v2881_v35 = vpop.f32.mrb[47].mxu1 }
 0x344   : > { %8949 = vrcp.f32 %v3100_v40  ;;  %v3078_v63 = vmul.f32 %v3054_v50, %v3054_v50  ;;  %v10578_v48 = vadd.f32 %v10532_v46, %v2881_v35 }
 0x345   : > { %v8940_v55 = vpop.eup %8939  ;;  %8951 = vrcp.f32 %v3099_v12  ;;  %v3077_v41 = vmul.f32 %v3053_v3, %v3053_v3  ;;  %v3025_v37 = vmul.f32 1.442695, %v10575_v8 }
 0x346   : > { %v8942_v19 = vpop.eup %8941  ;;  %v3102_v21 = vadd.f32 1.0, %v3078_v63  ;;  %v3056_v22 = vadd.f32 1.0, %v8940_v55  ;;  %8953 = vpow2.f32 %v3019_v42  ;;  %v3023_v27 = vmul.f32 1.442695, %v10578_v48  ;;  %v7976_v45 = vpop.f32.mrb[48].mxu1 }
 0x347   : > { %v3101_v43 = vadd.f32 1.0, %v3077_v41  ;;  %v3055_v13 = vadd.f32 1.0, %v8942_v19  ;;  %8955 = vpow2.f32 %v3025_v37  ;;  %v10583_v36 = vadd.f32 %v7976_v45, %v10532_v46  ;;  %v2891_v39 = vpop.f32.mrb[49].mxu1 }
 0x348   : > { %8957 = vrcp.f32 %v3102_v21  ;;  %v3080_v32 = vmul.f32 %v3056_v22, %v3056_v22  ;;  %v10586_v49 = vadd.f32 %v10532_v46, %v2891_v39 }
 0x349   : > { %v8944_v28 = vpop.eup %8943  ;;  %8959 = vrcp.f32 %v3101_v43  ;;  %v3079_v44 = vmul.f32 %v3055_v13, %v3055_v13  ;;  %v3029_v56 = vmul.f32 1.442695, %v10583_v36 }
 0x34a   : > { %v8946_v14 = vpop.eup %8945  ;;  %v3104_v10 = vadd.f32 1.0, %v3080_v32  ;;  %v3058_v11 = vadd.f32 1.0, %v8944_v28  ;;  %8961 = vpow2.f32 %v3023_v27  ;;  %v3027_v53 = vmul.f32 1.442695, %v10586_v49  ;;  %v7979_v23 = vpop.f32.mrb[50].mxu1 }
 0x34b   : > { %v3103_v57 = vadd.f32 1.0, %v3079_v44  ;;  %v3057_v51 = vadd.f32 1.0, %v8946_v14  ;;  %8963 = vpow2.f32 %v3029_v56  ;;  %v10591_v61 = vadd.f32 %v7979_v23, %v10532_v46  ;;  %v2901_v7 = vpop.f32.mrb[51].mxu1 }
 0x34c   : > { %8965 = vrcp.f32 %v3104_v10  ;;  %v3082_v34 = vmul.f32 %v3058_v11, %v3058_v11  ;;  %v10594_v6 = vadd.f32 %v10532_v46, %v2901_v7 }
 0x34d   : > { %v8948_v1 = vpop.eup %8947  ;;  %8967 = vrcp.f32 %v3103_v57  ;;  %v3081_v16 = vmul.f32 %v3057_v51, %v3057_v51  ;;  %v3033_v47 = vmul.f32 1.442695, %v10591_v61 }
 0x34e   : > { %v8950_v15 = vpop.eup %8949  ;;  %v3106_v30 = vadd.f32 1.0, %v3082_v34  ;;  %v3060_v26 = vadd.f32 1.0, %v8948_v1  ;;  %8969 = vpow2.f32 %v3027_v53  ;;  %v3031_v62 = vmul.f32 1.442695, %v10594_v6  ;;  %v7982_v20 = vpop.f32.mrb[52].mxu1 }
 0x34f   : > { %v8952_v60 = vpop.eup %8951  ;;  %v3148_v59 = vmul.f32 2.0, %v8950_v15  ;;  %v3105_v9 = vadd.f32 1.0, %v3081_v16  ;;  %8971 = vpow2.f32 %v3033_v47  ;;  %v10599_v4 = vadd.f32 %v7982_v20, %v10532_v46  ;;  %v2911_v52 = vpop.f32.mrb[53].mxu1 }
 0x350   : > { %v8954_v0 = vpop.eup %8953  ;;  %v3147_v40 = vmul.f32 2.0, %v8952_v60  ;;  %8973 = vrcp.f32 %v3106_v30  ;;  %v3084_v50 = vmul.f32 %v3060_v26, %v3060_v26  ;;  %v10602_v42 = vadd.f32 %v10532_v46, %v2911_v52 }
 0x351   : > { %v8956_v17 = vpop.eup %8955  ;;  %v3172_v12 = vsub.f32 1.0, %v3148_v59  ;;  %8975 = vrcp.f32 %v3105_v9  ;;  %v3059_v3 = vadd.f32 1.0, %v8954_v0  ;;  %v3037_v35 = vmul.f32 1.442695, %v10599_v4 }
 0x352   : > { %v8958_v63 = vpop.eup %8957  ;;  %v3171_v55 = vsub.f32 1.0, %v3147_v40  ;;  %v3108_v41 = vadd.f32 1.0, %v3084_v50  ;;  %v3062_v37 = vadd.f32 1.0, %v8956_v17  ;;  %8977 = vpow2.f32 %v3031_v62  ;;  %v7985_v19 = vpop.f32.mrb[54].mxu1 }
 0x353   : > { %v8960_v21 = vpop.eup %8959  ;;  %v10606_v22 = vmul.f32 %v3172_v12, %v10535_v29  ;;  %v3150_v27 = vmul.f32 2.0, %v8958_v63  ;;  %v3083_v45 = vmul.f32 %v3059_v3, %v3059_v3  ;;  %8979 = vpow2.f32 %v3037_v35  ;;  %v10608_v43 = vpop.f32.mrb[55].mxu1 }
 0x354   : > { %v8962_v13 = vpop.eup %8961  ;;  %v10611_v39 = vmul.f32 %v3171_v55, %v10538_v2  ;;  %v3149_v32 = vmul.f32 2.0, %v8960_v21  ;;  %8981 = vrcp.f32 %v3108_v41  ;;  %v3086_v28 = vmul.f32 %v3062_v37, %v3062_v37  ;;  %v10621_v2 = vld [vmem:[#allocation5 + $0x10] sm:$0xff] }
 0x355   : > { %v8964_v44 = vpop.eup %8963  ;;  %v3174_v56 = vsub.f32 1.0, %v3150_v27  ;;  %v3107_v14 = vadd.f32 1.0, %v3083_v45  ;;  %v3061_v10 = vadd.f32 1.0, %v8962_v13  ;;  %v3035_v11 = vmul.f32 1.442695, %v10602_v42 }
 0x356   : > { %v8966_v29 = vpop.eup %8965  ;;  %v3173_v53 = vsub.f32 1.0, %v3149_v32  ;;  %v3110_v23 = vadd.f32 1.0, %v3086_v28  ;;  %v3064_v57 = vadd.f32 1.0, %v8964_v44  ;;  %v10615_v51 = vadd.f32 %v7985_v19, %v10532_v46  ;;  %v10617_v7 = vpop.f32.mrb[56].mxu1  ;;  %7994 = vmatprep.mubr.msk.f32.mxu0 %vm3221_vm2, %v10611_v39 }
 0x357   : > { %v8968_v34 = vpop.eup %8967  ;;  %v10624_v1 = vmul.f32 %v3174_v56, %v10543_v33  ;;  %v3152_v16 = vmul.f32 2.0, %v8966_v29  ;;  %8983 = vrcp.f32 %v3107_v14  ;;  %v3085_v47 = vmul.f32 %v3061_v10, %v3061_v10  ;;  %v2931_v15 = vpop.f32.mrb[57].mxu1  ;;  %7995 = vmatmul.mubr.msk.f32.vlgmr.msra.gmra.mrb[36].mxu0 %vm3221_vm2, %v10606_v22 }
 0x358   : > { %v8970_v30 = vpop.eup %8969  ;;  %v10629_v26 = vmul.f32 %v3173_v53, %v10546_v54  ;;  %v3151_v62 = vmul.f32 2.0, %v8968_v34  ;;  %8985 = vrcp.f32 %v3110_v23  ;;  %v3088_v20 = vmul.f32 %v3064_v57, %v3064_v57  ;;  %8031 = vmatpush3.msra.mxu0 %v10529_v18 }
 0x359   : > { %v8972_v60 = vpop.eup %8971  ;;  %v3176_v59 = vsub.f32 1.0, %v3152_v16  ;;  %v3109_v33 = vadd.f32 1.0, %v3085_v47  ;;  %v3063_v9 = vadd.f32 1.0, %v8970_v30  ;;  %8987 = vpow2.f32 %v3035_v11  ;;  %8068 = vmatprep.subr.mxu0 %v10621_v2 }
 0x35a   : > { %v8974_v52 = vpop.eup %8973  ;;  %v3175_v0 = vsub.f32 1.0, %v3151_v62  ;;  %v3112_v40 = vadd.f32 1.0, %v3088_v20  ;;  %v3066_v50 = vadd.f32 1.0, %v8972_v60  ;;  %v3041_v17 = vmul.f32 1.442695, %v10615_v51  ;;  %v7991_v54 = vpop.f32.mrb[58].mxu1  ;;  %7997 = vmatprep.mubr.msk.f32.mxu0 %vm3221_vm2, %v10629_v26 }
 0x35b   : > { %v8976_v12 = vpop.eup %8975  ;;  %v10637_v18 = vmul.f32 %v3176_v59, %v10551_v25  ;;  %v3154_v3 = vmul.f32 2.0, %v8974_v52  ;;  %8989 = vrcp.f32 %v3109_v33  ;;  %v3087_v35 = vmul.f32 %v3063_v9, %v3063_v9  ;;  %v2941_v63 = vpop.f32.mrb[59].mxu1  ;;  %7998 = vmatmul.mubr.msk.f32.gmra.mrb[38].mxu0 %vm3221_vm2, %v10624_v1 }
 0x35c   : > { %v8978_v55 = vpop.eup %8977  ;;  %v10642_v41 = vmul.f32 %v3175_v0, %v10554_v38  ;;  %v3153_v37 = vmul.f32 2.0, %v8976_v12  ;;  %8991 = vrcp.f32 %v3112_v40  ;;  %v3090_v19 = vmul.f32 %v3066_v50, %v3066_v50 }
 0x35d   : > { %v8980_v21 = vpop.eup %8979  ;;  %v3178_v27 = vsub.f32 1.0, %v3154_v3  ;;  %v3111_v45 = vadd.f32 1.0, %v3087_v35  ;;  %v3065_v13 = vadd.f32 1.0, %v8978_v55  ;;  %8993 = vpow2.f32 %v3041_v17 }
 0x35e   : > { %v8982_v25 = vpop.eup %8981  ;;  %v3177_v32 = vsub.f32 1.0, %v3153_v37  ;;  %v3114_v28 = vadd.f32 1.0, %v3090_v19  ;;  %v3068_v44 = vadd.f32 1.0, %v8980_v21  ;;  %v10646_v56 = vadd.f32 %v10532_v46, %v10608_v43  ;;  %8000 = vmatprep.mubr.msk.f32.mxu0 %vm3221_vm2, %v10642_v41 }
 0x35f   : > { %v10651_v38 = vmul.f32 %v3178_v27, %v10559_v5  ;;  %v3156_v14 = vmul.f32 2.0, %v8982_v25  ;;  %8995 = vrcp.f32 %v3111_v45  ;;  %v3089_v10 = vmul.f32 %v3065_v13, %v3065_v13  ;;  %8001 = vmatmul.mubr.msk.f32.gmra.mrb[40].mxu0 %vm3221_vm2, %v10637_v18 }
 0x360   : > { %v10656_v11 = vmul.f32 %v3177_v32, %v10562_v31  ;;  %8997 = vrcp.f32 %v3114_v28  ;;  %v3092_v29 = vmul.f32 %v3068_v44, %v3068_v44  ;;  %v3039_v43 = vmul.f32 1.442695, %v10646_v56 }
 0x361   : > { %v8984_v53 = vpop.eup %8983  ;;  %v3180_v23 = vsub.f32 1.0, %v3156_v14  ;;  %v3113_v57 = vadd.f32 1.0, %v3089_v10  ;;  %v10661_v5 = vadd.f32 %v10617_v7, %v10532_v46  ;;  %v10664_v34 = vadd.f32 %v10532_v46, %v2931_v15 }
 0x362   : > { %v8986_v16 = vpop.eup %8985  ;;  %v3155_v47 = vmul.f32 2.0, %v8984_v53  ;;  %v3116_v30 = vadd.f32 1.0, %v3092_v29  ;;  %8999 = vpow2.f32 %v3039_v43  ;;  %v10667_v31 = vadd.f32 %v7991_v54, %v10532_v46  ;;  %8003 = vmatprep.mubr.msk.f32.mxu0 %vm3221_vm2, %v10656_v11 }
 0x363   : > { %v8988_v62 = vpop.eup %8987  ;;  %v3158_v20 = vmul.f32 2.0, %v8986_v16  ;;  %9001 = vrcp.f32 %v3113_v57  ;;  %v3045_v60 = vmul.f32 1.442695, %v10661_v5  ;;  %8004 = vmatmul.mubr.msk.f32.gmra.mrb[42].mxu0 %vm3221_vm2, %v10651_v38  ;;  %v3043_v59 = vmul.f32 1.442695, %v10664_v34 }
 0x364   : > { %v3179_v7 = vsub.f32 1.0, %v3155_v47  ;;  %9003 = vrcp.f32 %v3116_v30  ;;  %v3067_v15 = vadd.f32 1.0, %v8988_v62  ;;  %v10676_v9 = vmul.f32 %v3180_v23, %v10567_v24 }
 0x365   : > { %v8990_v33 = vpop.eup %8989  ;;  %9005 = vpow2.f32 %v3045_v60  ;;  %v3049_v52 = vmul.f32 1.442695, %v10667_v31  ;;  %v10680_v0 = vadd.f32 %v10532_v46, %v2941_v63  ;;  %v3182_v3 = vsub.f32 1.0, %v3158_v20 }
 0x366   : > { %v8992_v40 = vpop.eup %8991  ;;  %v10683_v50 = vmul.f32 %v3179_v7, %v10570_v58  ;;  %v3157_v17 = vmul.f32 2.0, %v8990_v33  ;;  %v3091_v54 = vmul.f32 %v3067_v15, %v3067_v15  ;;  %9007 = vpow2.f32 %v3043_v59 }
 0x367   : > { %v8994_v12 = vpop.eup %8993  ;;  %v3160_v35 = vmul.f32 2.0, %v8992_v40  ;;  %9009 = vpow2.f32 %v3049_v52  ;;  %v3047_v24 = vmul.f32 1.442695, %v10680_v0  ;;  %v10694_v45 = vmul.f32 %v3182_v3, %v10575_v8 }
 0x368   : > { %v3181_v55 = vsub.f32 1.0, %v3157_v17  ;;  %v3115_v37 = vadd.f32 1.0, %v3091_v54  ;;  %v3070_v19 = vadd.f32 1.0, %v8994_v12  ;;  %8006 = vmatprep.mubr.msk.f32.mxu0 %vm3221_vm2, %v10683_v50 }
 0x369   : > { %v8996_v46 = vpop.eup %8995  ;;  %9011 = vpow2.f32 %v3047_v24  ;;  %8007 = vmatmul.mubr.msk.f32.gmra.mrb[44].mxu0 %vm3221_vm2, %v10676_v9  ;;  %v3184_v13 = vsub.f32 1.0, %v3160_v35 }
 0x36a   : > { %v8998_v58 = vpop.eup %8997  ;;  %v10691_v63 = vmul.f32 %v3181_v55, %v10578_v48  ;;  %v3159_v21 = vmul.f32 2.0, %v8996_v46  ;;  %9013 = vrcp.f32 %v3115_v37  ;;  %v3094_v27 = vmul.f32 %v3070_v19, %v3070_v19 }
 0x36b   : > { %v3162_v25 = vmul.f32 2.0, %v8998_v58  ;;  %v10704_v53 = vmul.f32 %v3184_v13, %v10583_v36 }
 0x36c   : > { %v9000_v32 = vpop.eup %8999  ;;  %v3183_v28 = vsub.f32 1.0, %v3159_v21  ;;  %v3118_v44 = vadd.f32 1.0, %v3094_v27  ;;  %8009 = vmatprep.mubr.msk.f32.mxu0 %vm3221_vm2, %v10691_v63 }
 0x36d   : > { %v9002_v14 = vpop.eup %9001  ;;  %v3069_v10 = vadd.f32 1.0, %v9000_v32  ;;  %8010 = vmatmul.mubr.msk.f32.gmra.mrb[46].mxu0 %vm3221_vm2, %v10694_v45  ;;  %v3186_v23 = vsub.f32 1.0, %v3162_v25 }
 0x36e   : > { %v9004_v48 = vpop.eup %9003  ;;  %v10701_v29 = vmul.f32 %v3183_v28, %v10586_v49  ;;  %v3161_v43 = vmul.f32 2.0, %v9002_v14  ;;  %9015 = vrcp.f32 %v3118_v44 }
 0x36f   : > { %v9006_v8 = vpop.eup %9005  ;;  %v3093_v57 = vmul.f32 %v3069_v10, %v3069_v10  ;;  %v3164_v7 = vmul.f32 2.0, %v9004_v48  ;;  %v10714_v33 = vmul.f32 %v3186_v23, %v10591_v61 }
 0x370   : > { %v9008_v16 = vpop.eup %9007  ;;  %v3185_v47 = vsub.f32 1.0, %v3161_v43  ;;  %v3072_v30 = vadd.f32 1.0, %v9006_v8  ;;  %8012 = vmatprep.mubr.msk.f32.mxu0 %vm3221_vm2, %v10701_v29 }
 0x371   : > { %v9010_v62 = vpop.eup %9009  ;;  %v3117_v20 = vadd.f32 1.0, %v3093_v57  ;;  %v3071_v60 = vadd.f32 1.0, %v9008_v16  ;;  %8013 = vmatmul.mubr.msk.f32.gmra.mrb[48].mxu0 %vm3221_vm2, %v10704_v53 }
 0x372   : > { %v10711_v49 = vmul.f32 %v3185_v47, %v10594_v6  ;;  %v3096_v36 = vmul.f32 %v3072_v30, %v3072_v30  ;;  %v3074_v15 = vadd.f32 1.0, %v9010_v62  ;;  %v3188_v6 = vsub.f32 1.0, %v3164_v7 }
 0x373   : > { %v9012_v59 = vpop.eup %9011  ;;  %9017 = vrcp.f32 %v3117_v20  ;;  %v3095_v52 = vmul.f32 %v3071_v60, %v3071_v60  ;;  %v4606_v60 = vld [vmem:[#allocation7 + $0x48] sm:$0xff] }
 0x374   : > { %v9014_v40 = vpop.eup %9013  ;;  %v3120_v17 = vadd.f32 1.0, %v3096_v36  ;;  %v3098_v54 = vmul.f32 %v3074_v15, %v3074_v15  ;;  %v3073_v12 = vadd.f32 1.0, %v9012_v59  ;;  %8015 = vmatprep.mubr.msk.f32.mxu0 %vm3221_vm2, %v10711_v49  ;;  %v10724_v58 = vmul.f32 %v3188_v6, %v10599_v4  ;;  %v4342_v15 = vld [vmem:[#allocation7 + $0x20] sm:$0xff]  ;;  %v4343_v59 = vld [vmem:[#allocation7 + $0x28] sm:$0xff] }
 0x375   : > { %v3163_v3 = vmul.f32 2.0, %v9014_v40  ;;  %v3119_v35 = vadd.f32 1.0, %v3095_v52  ;;  %8016 = vmatmul.mubr.msk.f32.gmra.mrb[50].mxu0 %vm3221_vm2, %v10714_v33  ;;  %v8438_v52 = vpack.c.bf16 %v4343_v59, %v4342_v15 }
 0x376   : > { %9019 = vrcp.f32 %v3120_v17  ;;  %v3122_v24 = vadd.f32 1.0, %v3098_v54  ;;  %v3097_v55 = vmul.f32 %v3073_v12, %v3073_v12  ;;  %v4607_v12 = vld [vmem:[#allocation7 + $0x50] sm:$0xff] }
 0x377   : > { %v3187_v61 = vsub.f32 1.0, %v3163_v3  ;;  %9021 = vrcp.f32 %v3119_v35  ;;  %v4608_v3 = vld [vmem:[#allocation7 + $0x58] sm:$0xff] }
 0x378   : > { %v9016_v37 = vpop.eup %9015  ;;  %9023 = vrcp.f32 %v3122_v24  ;;  %v3121_v19 = vadd.f32 1.0, %v3097_v55  ;;  %v8450_v6 = vpack.c.bf16 %v4608_v3, %v4607_v12 }
 0x379   : > { %v10721_v46 = vmul.f32 %v3187_v61, %v10602_v42  ;;  %v3166_v21 = vmul.f32 2.0, %v9016_v37 }
 0x37a   : > { %9025 = vrcp.f32 %v3121_v19 }
 0x37b   : > { %8018 = vmatprep.mubr.msk.f32.mxu0 %vm3221_vm2, %v10721_v46  ;;  %v3190_v25 = vsub.f32 1.0, %v3166_v21 }
 0x37c   : > { %8019 = vmatmul.mubr.msk.f32.gmra.mrb[52].mxu0 %vm3221_vm2, %v10724_v58 }
 0x37d   : > { %v9018_v27 = vpop.eup %9017  ;;  %v3214_v48 = vmul.f32 %v3190_v25, %v10615_v51 }
 0x37e   : > { %v3165_v13 = vmul.f32 2.0, %v9018_v27 }
 0x380   : > { %v9020_v32 = vpop.eup %9019  ;;  %v3189_v28 = vsub.f32 1.0, %v3165_v13 }
 0x381   : > { %v9022_v44 = vpop.eup %9021  ;;  %v3168_v14 = vmul.f32 2.0, %v9020_v32 }
 0x382   : > { %v9024_v42 = vpop.eup %9023  ;;  %v10731_v10 = vmul.f32 %v3189_v28, %v10646_v56  ;;  %v3167_v4 = vmul.f32 2.0, %v9022_v44 }
 0x383   : > { %v3192_v43 = vsub.f32 1.0, %v3168_v14  ;;  %v3170_v8 = vmul.f32 2.0, %v9024_v42 }
 0x384   : > { %v9026_v23 = vpop.eup %9025  ;;  %v3191_v57 = vsub.f32 1.0, %v3167_v4  ;;  %8021 = vmatprep.mubr.msk.f32.mxu0 %vm3221_vm2, %v10731_v10 }
 0x385   : > { %v3169_v16 = vmul.f32 2.0, %v9026_v23  ;;  %8022 = vmatmul.mubr.msk.f32.gmra.mrb[54].mxu0 %vm3221_vm2, %v3214_v48  ;;  %v3216_v30 = vmul.f32 %v3192_v43, %v10661_v5  ;;  %v3194_v62 = vsub.f32 1.0, %v3170_v8  ;;  %v4915_v43 = vld [vmem:[#allocation7 + $0x68] sm:$0xff] }
 0x386   : > { %v3215_v47 = vmul.f32 %v3191_v57, %v10664_v34 }
 0x387   : > { %v3193_v56 = vsub.f32 1.0, %v3169_v16  ;;  %v3218_v20 = vmul.f32 %v3194_v62, %v10667_v31  ;;  %v4603_v31 = vld [vmem:[#allocation7 + $0x30] sm:$0xff] }
 0x388   : > { %8024 = vmatprep.mubr.msk.f32.mxu0 %vm3221_vm2, %v3215_v47 }
 0x389   : > { %v3217_v51 = vmul.f32 %v3193_v56, %v10680_v0  ;;  %8025 = vmatmul.mubr.msk.f32.gmra.mrb[56].mxu0 %vm3221_vm2, %v3216_v30 }
 0x38b   : > { %8027 = vmatprep.mubr.msk.f32.mxu0 %vm3221_vm2, %v3217_v51 }
 0x38d   : > { %8028 = vmatmul.mubr.msk.f32.gmra.mrb[58].mxu0 %vm3221_vm2, %v3218_v20 }
 0x38e   : > { %8032 = vmatprep.mubr.msk.f32.mxu0 %vm3221_vm2, %v10611_v39 }
 0x391   : > { %8033 = vmatmul.mubr.msk.f32.vlgmr.msra.gmra.mrb[60].mxu0 %vm3221_vm2, %v10606_v22 }
 0x392   : > { %8035 = vmatprep.mubr.msk.f32.mxu0 %vm3221_vm2, %v10629_v26  ;;  %8069 = vmatpush3.msra.mxu0 %v10621_v2  ;;  %v4339_v2 = vld [vmem:[#allocation7 + $0x8] sm:$0xff] }
 0x395   : > { %8036 = vmatmul.mubr.msk.f32.gmra.mrb[62].mxu0 %vm3221_vm2, %v10624_v1 }
 0x396   : > { %8038 = vmatprep.mubr.msk.f32.mxu0 %vm3221_vm2, %v10642_v41 }
 0x399   : > { %8039 = vmatmul.mubr.msk.f32.gmra.mrb[64].mxu0 %vm3221_vm2, %v10637_v18 }
 0x39a   : > { %8041 = vmatprep.mubr.msk.f32.mxu0 %vm3221_vm2, %v10656_v11 }
 0x39d   : > { %8042 = vmatmul.mubr.msk.f32.gmra.mrb[66].mxu0 %vm3221_vm2, %v10651_v38 }
 0x39e   : > { %8044 = vmatprep.mubr.msk.f32.mxu0 %vm3221_vm2, %v10683_v50 }
 0x3a1   : > { %8045 = vmatmul.mubr.msk.f32.gmra.mrb[68].mxu0 %vm3221_vm2, %v10676_v9 }
 0x3a2   : > { %8047 = vmatprep.mubr.msk.f32.mxu0 %vm3221_vm2, %v10691_v63 }
 0x3a5   : > { %8048 = vmatmul.mubr.msk.f32.gmra.mrb[70].mxu0 %vm3221_vm2, %v10694_v45 }
 0x3a6   : > { %8050 = vmatprep.mubr.msk.f32.mxu0 %vm3221_vm2, %v10701_v29 }
 0x3a9   : > { %8051 = vmatmul.mubr.msk.f32.gmra.mrb[72].mxu0 %vm3221_vm2, %v10704_v53 }
 0x3aa   : > { %8053 = vmatprep.mubr.msk.f32.mxu0 %vm3221_vm2, %v10711_v49 }
 0x3ad   : > { %8054 = vmatmul.mubr.msk.f32.gmra.mrb[74].mxu0 %vm3221_vm2, %v10714_v33 }
 0x3ae   : > { %8056 = vmatprep.mubr.msk.f32.mxu0 %vm3221_vm2, %v10721_v46 }
 0x3b1   : > { %8057 = vmatmul.mubr.msk.f32.gmra.mrb[76].mxu0 %vm3221_vm2, %v10724_v58 }
 0x3b2   : > { %8059 = vmatprep.mubr.msk.f32.mxu0 %vm3221_vm2, %v10731_v10 }
 0x3b5   : > { %8060 = vmatmul.mubr.msk.f32.gmra.mrb[78].mxu0 %vm3221_vm2, %v3214_v48 }
 0x3b6   : > { %8062 = vmatprep.mubr.msk.f32.mxu0 %vm3221_vm2, %v3215_v47 }
 0x3b9   : > { %8063 = vmatmul.mubr.msk.f32.gmra.mrb[80].mxu0 %vm3221_vm2, %v3216_v30 }
 0x3ba   : > { %8065 = vmatprep.mubr.msk.f32.mxu0 %vm3221_vm2, %v3217_v51 }
 0x3bd   : > { %8066 = vmatmul.mubr.msk.f32.gmra.mrb[82].mxu0 %vm3221_vm2, %v3218_v20 }
 0x3be   : > { %8070 = vmatprep.mubr.msk.f32.mxu0 %vm3221_vm2, %v10611_v39  ;;  %v4338_v39 = vld [vmem:[#allocation7] sm:$0xff] }
 0x3c1   : > { %8071 = vmatmul.mubr.msk.f32.vlgmr.msra.gmra.mrb[84].mxu0 %vm3221_vm2, %v10606_v22 }
 0x3c2   : > { %8073 = vmatprep.mubr.msk.f32.mxu0 %vm3221_vm2, %v10629_v26  ;;  %v8430_v26 = vpack.c.bf16 %v4339_v2, %v4338_v39 }
 0x3c4   : > { %8431 = vmatprep.subr.bf16.mxu1 %v8430_v26 }
 0x3c5   : > { %8074 = vmatmul.mubr.msk.f32.gmra.mrb[86].mxu0 %vm3221_vm2, %v10624_v1  ;;  %8433 = vmatpush3.bf16.msra.mxu1 %v8430_v26 }
 0x3c6   : > { %8076 = vmatprep.mubr.msk.f32.mxu0 %vm3221_vm2, %v10642_v41 }
 0x3c9   : > { %8077 = vmatmul.mubr.msk.f32.gmra.mrb[88].mxu0 %vm3221_vm2, %v10637_v18 }
 0x3ca   : > { %8079 = vmatprep.mubr.msk.f32.mxu0 %vm3221_vm2, %v10656_v11 }
 0x3cd   : > { %8080 = vmatmul.mubr.msk.f32.gmra.mrb[90].mxu0 %vm3221_vm2, %v10651_v38 }
 0x3ce   : > { %8082 = vmatprep.mubr.msk.f32.mxu0 %vm3221_vm2, %v10683_v50  ;;  %v4340_v50 = vld [vmem:[#allocation7 + $0x10] sm:$0xff] }
 0x3d1   : > { %8083 = vmatmul.mubr.msk.f32.gmra.mrb[92].mxu0 %vm3221_vm2, %v10676_v9  ;;  %v4604_v9 = vld [vmem:[#allocation7 + $0x38] sm:$0xff] }
 0x3d2   : > { %8085 = vmatprep.mubr.msk.f32.mxu0 %vm3221_vm2, %v10691_v63  ;;  %v8442_v0 = vpack.c.bf16 %v4604_v9, %v4603_v31  ;;  %v4341_v63 = vld [vmem:[#allocation7 + $0x18] sm:$0xff] }
 0x3d4   : > { %8443 = vmatprep.subr.bf16.mxu0 %v8442_v0 }
 0x3d5   : > { %8086 = vmatmul.mubr.msk.f32.gmra.mrb[94].mxu0 %vm3221_vm2, %v10694_v45 }
 0x3d6   : > { %8088 = vmatprep.mubr.msk.f32.mxu0 %vm3221_vm2, %v10701_v29  ;;  %v8434_v29 = vpack.c.bf16 %v4341_v63, %v4340_v50  ;;  %8445 = vmatpush3.bf16.msra.mxu0 %v8442_v0 }
 0x3d8   : > { %8435 = vmatprep.subr.bf16.mxu1 %v8434_v29 }
 0x3d9   : > { %8089 = vmatmul.mubr.msk.f32.gmra.mrb[96].mxu0 %vm3221_vm2, %v10704_v53  ;;  %v4605_v53 = vld [vmem:[#allocation7 + $0x40] sm:$0xff]  ;;  %8437 = vmatpush3.bf16.msra.mxu1 %v8434_v29 }
 0x3da   : > { %8091 = vmatprep.mubr.msk.f32.mxu0 %vm3221_vm2, %v10711_v49  ;;  %v8446_v7 = vpack.c.bf16 %v4606_v60, %v4605_v53  ;;  %8439 = vmatprep.subr.bf16.mxu1 %v8438_v52 }
 0x3dc   : > { %8447 = vmatprep.subr.bf16.mxu0 %v8446_v7 }
 0x3dd   : > { %8092 = vmatmul.mubr.msk.f32.gmra.mrb[98].mxu0 %vm3221_vm2, %v10714_v33  ;;  %8441 = vmatpush3.bf16.msra.mxu1 %v8438_v52 }
 0x3de   : > { %8094 = vmatprep.mubr.msk.f32.mxu0 %vm3221_vm2, %v10721_v46  ;;  %8449 = vmatpush3.bf16.msra.mxu0 %v8446_v7 }
 0x3df   : > { %8451 = vmatprep.subr.bf16.mxu0 %v8450_v6 }
 0x3e1   : > { %8095 = vmatmul.mubr.msk.f32.gmra.mrb[100].mxu0 %vm3221_vm2, %v10724_v58 }
 0x3e2   : > { %8097 = vmatprep.mubr.msk.f32.mxu0 %vm3221_vm2, %v10731_v10  ;;  %8453 = vmatpush3.bf16.msra.mxu0 %v8450_v6 }
 0x3e5   : > { %8098 = vmatmul.mubr.msk.f32.gmra.mrb[102].mxu0 %vm3221_vm2, %v3214_v48  ;;  %v4914_v48 = vld [vmem:[#allocation7 + $0x60] sm:$0xff] }
 0x3e6   : > { %8100 = vmatprep.mubr.msk.f32.mxu0 %vm3221_vm2, %v3215_v47  ;;  %v10881_v8 = vpack.c.bf16 %v4915_v43, %v4914_v48 }
 0x3e8   : > { %8455 = vmatprep.subr.bf16.mxu1 %v10881_v8 }
 0x3e9   : > { %8101 = vmatmul.mubr.msk.f32.gmra.mrb[104].mxu0 %vm3221_vm2, %v3216_v30 }
 0x3ea   : > { %8103 = vmatprep.mubr.msk.f32.mxu0 %vm3221_vm2, %v3217_v51 }
 0x3ed   : > { %8104 = vmatmul.mubr.msk.f32.gmra.mrb[106].mxu0 %vm3221_vm2, %v3218_v20 }
 0x42a   : > { %v10832_v22 = vpop.f32.mrb[36].mxu0 }
 0x42b   : > { %v3360_v1 = vpop.f32.mrb[37].mxu0 }
 0x42e   : > { %v10834_v18 = vpop.f32.mrb[38].mxu0 }
 0x42f   : > { %v10836_v41 = vpop.f32.mrb[39].mxu0 }
 0x432   : > { %v10838_v38 = vpop.f32.mrb[40].mxu0 }
 0x433   : > { %v10840_v11 = vpop.f32.mrb[41].mxu0 }
 0x436   : > { %v10842_v5 = vpop.f32.mrb[42].mxu0 }
 0x437   : > { %v10844_v34 = vpop.f32.mrb[43].mxu0 }
 0x43c   : > { %v10846_v45 = vpop.f32.mrb[44].mxu0 }
 0x43d   : > { %v10848_v49 = vpop.f32.mrb[45].mxu0 }
 0x440   : > { %v10850_v36 = vpop.f32.mrb[46].mxu0 }
 0x441   : > { %v10852_v33 = vpop.f32.mrb[47].mxu0 }
 0x444   : > { %v10854_v40 = vpop.f32.mrb[48].mxu0 }
 0x445   : > { %v10856_v17 = vpop.f32.mrb[49].mxu0 }
 0x448   : > { %v10858_v54 = vpop.f32.mrb[50].mxu0 }
 0x449   : > { %v10860_v35 = vpop.f32.mrb[51].mxu0 }
 0x44f   : > { %v10862_v24 = vpop.f32.mrb[52].mxu0 }
 0x450   : > { %v10864_v55 = vpop.f32.mrb[53].mxu0 }
 0x458   : > { %v10866_v61 = vpop.f32.mrb[54].mxu0 }
 0x459   : > { %v10868_v37 = vpop.f32.mrb[55].mxu0 }
 0x45c   : > { %v10870_v19 = vpop.f32.mrb[56].mxu0 }
 0x45d   : > { %v10872_v46 = vpop.f32.mrb[57].mxu0 }
 0x460   : > { %v10874_v58 = vpop.f32.mrb[58].mxu0 }
 0x461   : > { %v10876_v21 = vpop.f32.mrb[59].mxu0 }
 0x464   : > { %v8034_v27 = vpop.f32.mrb[60].mxu0 }
 0x465   : > { %v3692_v13 = vrot.slane %v8034_v27, 1  ;;  %v3547_v25 = vpop.f32.mrb[61].mxu0 }
 0x466   : > { %v3691_v32 = vrot.slane %v3547_v25, 1 }
 0x468   : > { %v3693_v28 = vsel %vm3690_vm3, %v3691_v32, %v3692_v13  ;;  %v8037_v44 = vpop.f32.mrb[62].mxu0 }
 0x469   : > { %v10879_v14 = vadd.f32 %v3693_v28, %v3360_v1  ;;  %v3696_v42 = vrot.slane %v8037_v44, 1  ;;  %v3557_v10 = vpop.f32.mrb[63].mxu0 }
 0x46a   : > { %v3694_v4 = vrot.slane %v3557_v10, 1 }
 0x46c   : > { %v3695_v23 = vsel %vm3690_vm3, %v3692_v13, %v3694_v4  ;;  %v3697_v57 = vsel %vm3690_vm3, %v3694_v4, %v3696_v42  ;;  %v8040_v16 = vpop.f32.mrb[64].mxu0 }
 0x46d   : > { %v10886_v47 = vadd.f32 %v10832_v22, %v3695_v23  ;;  %v10889_v30 = vadd.f32 %v3697_v57, %v10836_v41  ;;  %v3700_v62 = vrot.slane %v8040_v16, 1  ;;  %v3567_v56 = vpop.f32.mrb[65].mxu0 }
 0x46e   : > { %v3698_v51 = vrot.slane %v3567_v56, 1 }
 0x470   : > { %v3699_v20 = vsel %vm3690_vm3, %v3696_v42, %v3698_v51  ;;  %v3701_v39 = vsel %vm3690_vm3, %v3698_v51, %v3700_v62  ;;  %v8043_v2 = vpop.f32.mrb[66].mxu0 }
 0x471   : > { %v10895_v1 = vadd.f32 %v10834_v18, %v3699_v20  ;;  %v10898_v26 = vadd.f32 %v3701_v39, %v10840_v11  ;;  %v3704_v22 = vrot.slane %v8043_v2, 1  ;;  %v3577_v31 = vpop.f32.mrb[67].mxu0 }
 0x472   : > { %v3702_v41 = vrot.slane %v3577_v31, 1 }
 0x474   : > { %v3703_v9 = vsel %vm3690_vm3, %v3700_v62, %v3702_v41  ;;  %v3705_v0 = vsel %vm3690_vm3, %v3702_v41, %v3704_v22  ;;  %v8046_v50 = vpop.f32.mrb[68].mxu0 }
 0x475   : > { %v10903_v63 = vadd.f32 %v10838_v38, %v3703_v9  ;;  %v10906_v29 = vadd.f32 %v3705_v0, %v10844_v34  ;;  %v3708_v53 = vrot.slane %v8046_v50, 1  ;;  %v3587_v18 = vpop.f32.mrb[69].mxu0 }
 0x476   : > { %v3706_v60 = vrot.slane %v3587_v18, 1 }
 0x478   : > { %v3707_v11 = vsel %vm3690_vm3, %v3704_v22, %v3706_v60  ;;  %v3709_v7 = vsel %vm3690_vm3, %v3706_v60, %v3708_v53  ;;  %v8049_v15 = vpop.f32.mrb[70].mxu0 }
 0x479   : > { %v10911_v59 = vadd.f32 %v10842_v5, %v3707_v11  ;;  %v10914_v52 = vadd.f32 %v3709_v7, %v10848_v49  ;;  %v3712_v12 = vrot.slane %v8049_v15, 1  ;;  %v3597_v38 = vpop.f32.mrb[71].mxu0 }
 0x47a   : > { %v3710_v3 = vrot.slane %v3597_v38, 1 }
 0x47c   : > { %v3711_v34 = vsel %vm3690_vm3, %v3708_v53, %v3710_v3  ;;  %v3713_v6 = vsel %vm3690_vm3, %v3710_v3, %v3712_v12  ;;  %v8052_v27 = vpop.f32.mrb[72].mxu0 }
 0x47d   : > { %v10919_v13 = vadd.f32 %v10846_v45, %v3711_v34  ;;  %v10922_v25 = vadd.f32 %v3713_v6, %v10852_v33  ;;  %v3716_v32 = vrot.slane %v8052_v27, 1  ;;  %v3607_v5 = vpop.f32.mrb[73].mxu0 }
 0x47e   : > { %v3714_v28 = vrot.slane %v3607_v5, 1 }
 0x480   : > { %v3715_v49 = vsel %vm3690_vm3, %v3712_v12, %v3714_v28  ;;  %v3717_v44 = vsel %vm3690_vm3, %v3714_v28, %v3716_v32  ;;  %v8055_v42 = vpop.f32.mrb[74].mxu0 }
 0x481   : > { %v10927_v10 = vadd.f32 %v10850_v36, %v3715_v49  ;;  %v10930_v4 = vadd.f32 %v3717_v44, %v10856_v17  ;;  %v3720_v48 = vrot.slane %v8055_v42, 1  ;;  %v3617_v45 = vpop.f32.mrb[75].mxu0  ;;  %v10975_v49 = vld [vmem:[#allocation10 + $0x1] ss:$0 sm:$0xff] }
 0x482   : > { %v3718_v43 = vrot.slane %v3617_v45, 1 }
 0x484   : > { %v3719_v33 = vsel %vm3690_vm3, %v3716_v32, %v3718_v43  ;;  %v3721_v23 = vsel %vm3690_vm3, %v3718_v43, %v3720_v48  ;;  %v8058_v57 = vpop.f32.mrb[76].mxu0 }
 0x485   : > { %v10935_v16 = vadd.f32 %v10854_v40, %v3719_v33  ;;  %v10938_v62 = vadd.f32 %v3721_v23, %v10860_v35  ;;  %v3724_v56 = vrot.slane %v8058_v57, 1  ;;  %v3627_v36 = vpop.f32.mrb[77].mxu0 }
 0x486   : > { %v3722_v51 = vrot.slane %v3627_v36, 1 }
 0x488   : > { %v3723_v17 = vsel %vm3690_vm3, %v3720_v48, %v3722_v51  ;;  %v3725_v20 = vsel %vm3690_vm3, %v3722_v51, %v3724_v56  ;;  %v8061_v39 = vpop.f32.mrb[78].mxu0 }
 0x489   : > { %v10943_v2 = vadd.f32 %v10858_v54, %v3723_v17  ;;  %v10946_v22 = vadd.f32 %v3725_v20, %v10864_v55  ;;  %v3728_v31 = vrot.slane %v8061_v39, 1  ;;  %v3637_v40 = vpop.f32.mrb[79].mxu0 }
 0x48a   : > { %v3726_v41 = vrot.slane %v3637_v40, 1 }
 0x48c   : > { %v3727_v35 = vsel %vm3690_vm3, %v3724_v56, %v3726_v41  ;;  %v3729_v9 = vsel %vm3690_vm3, %v3726_v41, %v3728_v31  ;;  %v8064_v0 = vpop.f32.mrb[80].mxu0 }
 0x48d   : > { %v10951_v50 = vadd.f32 %v10862_v24, %v3727_v35  ;;  %v10954_v53 = vadd.f32 %v3729_v9, %v10868_v37  ;;  %v3732_v18 = vrot.slane %v8064_v0, 1  ;;  %v3647_v54 = vpop.f32.mrb[81].mxu0 }
 0x48e   : > { %v3730_v60 = vrot.slane %v3647_v54, 1 }
 0x490   : > { %v3731_v55 = vsel %vm3690_vm3, %v3728_v31, %v3730_v60  ;;  %v3733_v11 = vsel %vm3690_vm3, %v3730_v60, %v3732_v18  ;;  %v8067_v7 = vpop.f32.mrb[82].mxu0 }
 0x491   : > { %v10959_v15 = vadd.f32 %v10866_v61, %v3731_v55  ;;  %v10962_v12 = vadd.f32 %v3733_v11, %v10872_v46  ;;  %v3736_v38 = vrot.slane %v8067_v7, 1  ;;  %v3657_v24 = vpop.f32.mrb[83].mxu0 }
 0x492   : > { %v3734_v3 = vrot.slane %v3657_v24, 1 }
 0x493   : > { %v10965_v37 = vadd.f32 %v10874_v58, %v3736_v38 }
 0x494   : > { %v3735_v34 = vsel %vm3690_vm3, %v3732_v18, %v3734_v3  ;;  %v3737_v6 = vsel %vm3690_vm3, %v3734_v3, %v3736_v38  ;;  %v8072_v27 = vpop.f32.mrb[84].mxu0 }
 0x495   : > { %v10970_v32 = vadd.f32 %v10870_v19, %v3735_v34  ;;  %v10973_v61 = vadd.f32 %v3737_v6, %v10876_v21  ;;  %v3999_v5 = vrot.slane %v8072_v27, 2  ;;  %v3854_v46 = vpop.f32.mrb[85].mxu0 }
 0x496   : > { %v3998_v28 = vrot.slane %v3854_v46, 2 }
 0x498   : > { %v4000_v58 = vsel %vm3997_vm4, %v3998_v28, %v3999_v5  ;;  %v8075_v44 = vpop.f32.mrb[86].mxu0 }
 0x499   : > { %v4069_v42 = vadd.f32 %v4000_v58, %v10879_v14  ;;  %v4003_v48 = vrot.slane %v8075_v44, 2  ;;  %v3864_v45 = vpop.f32.mrb[87].mxu0 }
 0x49a   : > { %v4001_v43 = vrot.slane %v3864_v45, 2 }
 0x49b   : > { %v10980_v19 = vadd.f32 %v10975_v49, %v4069_v42 }
 0x49c   : > { %v4002_v21 = vsel %vm3997_vm4, %v3999_v5, %v4001_v43  ;;  %v4004_v33 = vsel %vm3997_vm4, %v4001_v43, %v4003_v48  ;;  %v8078_v23 = vpop.f32.mrb[88].mxu0  ;;  %v4916_v43 = vld [vmem:[#allocation7 + $0x70] sm:$0xff] }
 0x49d   : > { %v4121_v57 = vmul.f32 1.442695, %v10980_v19  ;;  %v4070_v56 = vadd.f32 %v4002_v21, %v10886_v47  ;;  %v4071_v36 = vadd.f32 %v4004_v33, %v10889_v30  ;;  %v4007_v51 = vrot.slane %v8078_v23, 2  ;;  %v3874_v17 = vpop.f32.mrb[89].mxu0  ;;  %v4917_v21 = vld [vmem:[#allocation7 + $0x78] sm:$0xff] }
 0x49e   : > { %v4005_v14 = vrot.slane %v3874_v17, 2 }
 0x49f   : > { %9027 = vpow2.f32 %v4121_v57  ;;  %v10988_v20 = vadd.f32 %v10975_v49, %v4070_v56  ;;  %v10991_v39 = vadd.f32 %v10975_v49, %v4071_v36 }
 0x4a0   : > { %v4006_v31 = vsel %vm3997_vm4, %v4003_v48, %v4005_v14  ;;  %v4008_v40 = vsel %vm3997_vm4, %v4005_v14, %v4007_v51  ;;  %v8081_v41 = vpop.f32.mrb[90].mxu0  ;;  %v11031_v14 = vpack.c.bf16 %v4917_v21, %v4916_v43 }
 0x4a1   : > { %v4123_v35 = vmul.f32 1.442695, %v10988_v20  ;;  %v4125_v47 = vmul.f32 1.442695, %v10991_v39  ;;  %v4072_v30 = vadd.f32 %v4006_v31, %v10895_v1  ;;  %v4073_v9 = vadd.f32 %v4008_v40, %v10898_v26  ;;  %v3884_v0 = vpop.f32.mrb[91].mxu0 }
 0x4a2   : > { %v4011_v18 = vrot.slane %v8081_v41, 2  ;;  %v4009_v54 = vrot.slane %v3884_v0, 2 }
 0x4a3   : > { %9029 = vpow2.f32 %v4123_v35  ;;  %v11000_v60 = vadd.f32 %v10975_v49, %v4072_v30  ;;  %v11003_v55 = vadd.f32 %v10975_v49, %v4073_v9 }
 0x4a4   : > { %v4010_v11 = vsel %vm3997_vm4, %v4007_v51, %v4009_v54  ;;  %v4012_v7 = vsel %vm3997_vm4, %v4009_v54, %v4011_v18  ;;  %v8084_v38 = vpop.f32.mrb[92].mxu0  ;;  %9031 = vpow2.f32 %v4125_v47 }
 0x4a5   : > { %v4127_v1 = vmul.f32 1.442695, %v11000_v60  ;;  %v4074_v26 = vadd.f32 %v4010_v11, %v10903_v63  ;;  %v4075_v24 = vadd.f32 %v4012_v7, %v10906_v29  ;;  %v3894_v3 = vpop.f32.mrb[93].mxu0  ;;  %v4129_v34 = vmul.f32 1.442695, %v11003_v55 }
 0x4a6   : > { %v4015_v6 = vrot.slane %v8084_v38, 2  ;;  %v4013_v27 = vrot.slane %v3894_v3, 2  ;;  %v4919_v3 = vld [vmem:[#allocation7 + $0x88] sm:$0xff] }
 0x4a7   : > { %v11012_v5 = vadd.f32 %v10975_v49, %v4074_v26  ;;  %v11015_v46 = vadd.f32 %v10975_v49, %v4075_v24  ;;  %9033 = vpow2.f32 %v4127_v1  ;;  %v4918_v24 = vld [vmem:[#allocation7 + $0x80] sm:$0xff] }
 0x4a8   : > { %v4014_v28 = vsel %vm3997_vm4, %v4011_v18, %v4013_v27  ;;  %v4016_v58 = vsel %vm3997_vm4, %v4013_v27, %v4015_v6  ;;  %v8087_v44 = vpop.f32.mrb[94].mxu0  ;;  %9035 = vpow2.f32 %v4129_v34  ;;  %v11055_v21 = vpack.c.bf16 %v4919_v3, %v4918_v24 }
 0x4a9   : > { %v9028_v63 = vpop.eup %9027  ;;  %v4131_v29 = vmul.f32 1.442695, %v11012_v5  ;;  %v4076_v42 = vadd.f32 %v4014_v28, %v10911_v59  ;;  %v4077_v48 = vadd.f32 %v4016_v58, %v10914_v52  ;;  %v3904_v45 = vpop.f32.mrb[95].mxu0  ;;  %v4133_v33 = vmul.f32 1.442695, %v11015_v46 }
 0x4aa   : > { %v4019_v23 = vrot.slane %v8087_v44, 2  ;;  %v4017_v57 = vrot.slane %v3904_v45, 2  ;;  %v4169_v56 = vadd.f32 1.0, %v9028_v63 }
 0x4ab   : > { %9037 = vpow2.f32 %v4131_v29  ;;  %v11024_v36 = vadd.f32 %v10975_v49, %v4076_v42  ;;  %v11027_v51 = vadd.f32 %v10975_v49, %v4077_v48 }
 0x4ac   : > { %v4018_v59 = vsel %vm3997_vm4, %v4015_v6, %v4017_v57  ;;  %v4020_v52 = vsel %vm3997_vm4, %v4017_v57, %v4019_v23  ;;  %v8090_v17 = vpop.f32.mrb[96].mxu0  ;;  %9039 = vpow2.f32 %v4133_v33  ;;  %v4193_v38 = vmul.f32 %v4169_v56, %v4169_v56 }
 0x4ad   : > { %v9030_v31 = vpop.eup %9029  ;;  %v4135_v40 = vmul.f32 1.442695, %v11024_v36  ;;  %v4137_v41 = vmul.f32 1.442695, %v11027_v51  ;;  %v4078_v35 = vadd.f32 %v4018_v59, %v10919_v13  ;;  %v4079_v47 = vadd.f32 %v4020_v52, %v10922_v25  ;;  %v3914_v30 = vpop.f32.mrb[97].mxu0 }
 0x4ae   : > { %v4170_v9 = vadd.f32 1.0, %v9030_v31  ;;  %v4023_v0 = vrot.slane %v8090_v17, 2  ;;  %v4021_v18 = vrot.slane %v3914_v30, 2  ;;  %v9032_v54 = vpop.eup %9031  ;;  %v4217_v57 = vadd.f32 1.0, %v4193_v38 }
 0x4af   : > { %9041 = vpow2.f32 %v4135_v40  ;;  %v11038_v11 = vadd.f32 %v10975_v49, %v4078_v35  ;;  %v11041_v7 = vadd.f32 %v10975_v49, %v4079_v47  ;;  %v4171_v63 = vadd.f32 1.0, %v9032_v54 }
 0x4b0   : > { %v4194_v1 = vmul.f32 %v4170_v9, %v4170_v9  ;;  %9043 = vpow2.f32 %v4137_v41  ;;  %v4022_v13 = vsel %vm3997_vm4, %v4019_v23, %v4021_v18  ;;  %v4024_v25 = vsel %vm3997_vm4, %v4021_v18, %v4023_v0  ;;  %v8093_v26 = vpop.f32.mrb[98].mxu0 }
 0x4b1   : > { %v4139_v34 = vmul.f32 1.442695, %v11038_v11  ;;  %v4141_v6 = vmul.f32 1.442695, %v11041_v7  ;;  %v4080_v27 = vadd.f32 %v4022_v13, %v10927_v10  ;;  %v4081_v28 = vadd.f32 %v4024_v25, %v10930_v4  ;;  %v3924_v58 = vpop.f32.mrb[99].mxu0  ;;  %v9034_v44 = vpop.eup %9033 }
 0x4b2   : > { %v4218_v29 = vadd.f32 1.0, %v4194_v1  ;;  %v4027_v42 = vrot.slane %v8093_v26, 2  ;;  %v4025_v48 = vrot.slane %v3924_v58, 2  ;;  %v9036_v33 = vpop.eup %9035  ;;  %v4172_v59 = vadd.f32 1.0, %v9034_v44 }
 0x4b3   : > { %9045 = vpow2.f32 %v4139_v34  ;;  %v11050_v45 = vadd.f32 %v10975_v49, %v4080_v27  ;;  %v11053_v43 = vadd.f32 %v10975_v49, %v4081_v28  ;;  %v4195_v47 = vmul.f32 %v4171_v63, %v4171_v63 }
 0x4b4   : > { %9047 = vrcp.f32 %v4218_v29  ;;  %v4026_v10 = vsel %vm3997_vm4, %v4023_v0, %v4025_v48  ;;  %v4028_v4 = vsel %vm3997_vm4, %v4025_v48, %v4027_v42  ;;  %v8096_v23 = vpop.f32.mrb[100].mxu0  ;;  %v11062_v30 = vadd.f32 1.0, %v9036_v33 }
 0x4b5   : > { %v9038_v56 = vpop.eup %9037  ;;  %9049 = vpow2.f32 %v4141_v6  ;;  %v4143_v52 = vmul.f32 1.442695, %v11050_v45  ;;  %v4082_v17 = vadd.f32 %v4026_v10, %v10935_v16  ;;  %v3934_v31 = vpop.f32.mrb[101].mxu0  ;;  %v4083_v40 = vadd.f32 %v4028_v4, %v10938_v62 }
 0x4b6   : > { %v4031_v41 = vrot.slane %v8096_v23, 2  ;;  %v4029_v35 = vrot.slane %v3934_v31, 2  ;;  %v4145_v9 = vmul.f32 1.442695, %v11053_v43  ;;  %v9040_v18 = vpop.eup %9039  ;;  %v11068_v54 = vadd.f32 1.0, %v9038_v56 }
 0x4b7   : > { %9051 = vpow2.f32 %v4143_v52  ;;  %v11066_v0 = vadd.f32 %v10975_v49, %v4082_v17  ;;  %v11071_v38 = vadd.f32 %v10975_v49, %v4083_v40  ;;  %v4219_v58 = vadd.f32 1.0, %v4195_v47 }
 0x4b8   : > { %v4030_v16 = vsel %vm3997_vm4, %v4027_v42, %v4029_v35  ;;  %v4032_v62 = vsel %vm3997_vm4, %v4029_v35, %v4031_v41  ;;  %v8099_v1 = vpop.f32.mrb[102].mxu0  ;;  %9053 = vrcp.f32 %v4217_v57  ;;  %v11079_v44 = vadd.f32 1.0, %v9040_v18 }
 0x4b9   : > { %v9042_v13 = vpop.eup %9041  ;;  %v4147_v25 = vmul.f32 1.442695, %v11066_v0  ;;  %v4084_v26 = vadd.f32 %v4030_v16, %v10943_v2  ;;  %v4085_v24 = vadd.f32 %v4032_v62, %v10946_v22  ;;  %v4035_v3 = vrot.slane %v8099_v1, 2  ;;  %v3944_v34 = vpop.f32.mrb[103].mxu0 }
 0x4ba   : > { %v9044_v6 = vpop.eup %9043  ;;  %v4149_v27 = vmul.f32 1.442695, %v11071_v38  ;;  %v4033_v28 = vrot.slane %v3944_v34, 2  ;;  %9055 = vpow2.f32 %v4145_v9  ;;  %v11087_v2 = vadd.f32 1.0, %v9042_v13 }
 0x4bb   : > { %v11082_v63 = vadd.f32 %v10975_v49, %v4084_v26  ;;  %v11085_v29 = vadd.f32 %v10975_v49, %v4085_v24  ;;  %9057 = vpow2.f32 %v4147_v25  ;;  %v11094_v52 = vadd.f32 1.0, %v9044_v6 }
 0x4bc   : > { %v4034_v22 = vsel %vm3997_vm4, %v4031_v41, %v4033_v28  ;;  %v4036_v42 = vsel %vm3997_vm4, %v4033_v28, %v4035_v3  ;;  %v8102_v48 = vpop.f32.mrb[104].mxu0  ;;  %9059 = vpow2.f32 %v4149_v27  ;;  %v4196_v62 = vmul.f32 %v4172_v59, %v4172_v59 }
 0x4bd   : > { %v9046_v33 = vpop.eup %9045  ;;  %v4151_v10 = vmul.f32 1.442695, %v11082_v63  ;;  %v4086_v4 = vadd.f32 %v4034_v22, %v10951_v50  ;;  %v4087_v23 = vadd.f32 %v4036_v42, %v10954_v53  ;;  %v3954_v57 = vpop.f32.mrb[105].mxu0  ;;  %v4039_v17 = vrot.slane %v8102_v48, 2 }
 0x4be   : > { %v9048_v56 = vpop.eup %9047  ;;  %v4037_v31 = vrot.slane %v3954_v57, 2  ;;  %9061 = vrcp.f32 %v4219_v58  ;;  %v4153_v35 = vmul.f32 1.442695, %v11085_v29  ;;  %v11103_v50 = vadd.f32 1.0, %v9046_v33 }
 0x4bf   : > { %v9050_v40 = vpop.eup %9049  ;;  %v4266_v41 = vmul.f32 2.0, %v9048_v56  ;;  %v11098_v47 = vadd.f32 %v10975_v49, %v4086_v4  ;;  %v11101_v9 = vadd.f32 %v10975_v49, %v4087_v23  ;;  %9063 = vpow2.f32 %v4151_v10 }
 0x4c0   : > { %v4038_v53 = vsel %vm3997_vm4, %v4035_v3, %v4037_v31  ;;  %v4040_v18 = vsel %vm3997_vm4, %v4037_v31, %v4039_v17  ;;  %v8105_v16 = vpop.f32.mrb[106].mxu0  ;;  %v11107_v13 = vadd.f32 1.0, %v9050_v40  ;;  %9065 = vpow2.f32 %v4153_v35 }
 0x4c1   : > { %v9052_v1 = vpop.eup %9051  ;;  %v4155_v25 = vmul.f32 1.442695, %v11098_v47  ;;  %v4088_v26 = vadd.f32 %v4038_v53, %v10959_v15  ;;  %v3964_v24 = vpop.f32.mrb[107].mxu0  ;;  %v4157_v34 = vmul.f32 1.442695, %v11101_v9  ;;  %v4089_v6 = vadd.f32 %v4040_v18, %v10962_v12 }
 0x4c2   : > { %v4043_v27 = vrot.slane %v8105_v16, 2  ;;  %v4041_v3 = vrot.slane %v3964_v24, 2  ;;  %v4290_v28 = vsub.f32 1.0, %v4266_v41  ;;  %v11113_v58 = vadd.f32 1.0, %v9052_v1  ;;  %v9054_v22 = vpop.eup %9053 }
 0x4c3   : > { %v11116_v59 = vadd.f32 %v10975_v49, %v4088_v26  ;;  %9067 = vpow2.f32 %v4155_v25  ;;  %v11119_v42 = vadd.f32 %v10975_v49, %v4089_v6  ;;  %v4265_v23 = vmul.f32 2.0, %v9054_v22 }
 0x4c4   : > { %v4092_v15 = vadd.f32 %v4043_v27, %v10965_v37  ;;  %v4042_v48 = vsel %vm3997_vm4, %v4039_v17, %v4041_v3  ;;  %v9056_v33 = vpop.eup %9055  ;;  %v4044_v10 = vsel %vm3997_vm4, %v4041_v3, %v4043_v27  ;;  %9069 = vpow2.f32 %v4157_v34 }
 0x4c5   : > { %v4159_v12 = vmul.f32 1.442695, %v11116_v59  ;;  %v4090_v4 = vadd.f32 %v4042_v48, %v10970_v32  ;;  %v9058_v57 = vpop.eup %9057  ;;  %v4161_v56 = vmul.f32 1.442695, %v11119_v42  ;;  %v4091_v40 = vadd.f32 %v4044_v10, %v10973_v61 }
 0x4c6   : > { %v11128_v31 = vadd.f32 %v10975_v49, %v4092_v15  ;;  %v9060_v37 = vpop.eup %9059  ;;  %v11132_v17 = vmul.f32 %v4290_v28, %v10988_v20  ;;  %v4289_v35 = vsub.f32 1.0, %v4265_v23  ;;  %v4220_v16 = vadd.f32 1.0, %v4196_v62 }
 0x4c7   : > { %9071 = vpow2.f32 %v4159_v12  ;;  %v11135_v41 = vadd.f32 %v10975_v49, %v4090_v4  ;;  %v11139_v18 = vadd.f32 %v10975_v49, %v4091_v40  ;;  %v4197_v25 = vmul.f32 %v11062_v30, %v11062_v30 }
 0x4c8   : > { %v9062_v32 = vpop.eup %9061  ;;  %9073 = vpow2.f32 %v4161_v56  ;;  %v4167_v53 = vmul.f32 1.442695, %v11128_v31  ;;  %v11143_v61 = vmul.f32 %v4289_v35, %v10980_v19  ;;  %v4181_v26 = vadd.f32 1.0, %v9056_v33 }
 0x4c9   : > { %v4163_v1 = vmul.f32 1.442695, %v11135_v41  ;;  %v4267_v20 = vmul.f32 2.0, %v9062_v32  ;;  %v4165_v24 = vmul.f32 1.442695, %v11139_v18  ;;  %v4198_v34 = vmul.f32 %v11068_v54, %v11068_v54  ;;  %v9064_v6 = vpop.eup %9063 }
 0x4ca   : > { %9075 = vpow2.f32 %v4167_v53  ;;  %v4182_v49 = vadd.f32 1.0, %v9058_v57  ;;  %8118 = vmatprep.mubr.msk.f32.mxu1 %vm4344_vm5, %v11143_v61  ;;  %8166 = vmatprep.mubr.msk.f32.mxu0 %vm4344_vm5, %v11143_v61  ;;  %v4221_v62 = vadd.f32 1.0, %v4197_v25  ;;  %v4199_v54 = vmul.f32 %v11079_v44, %v11079_v44  ;;  %v9066_v3 = vpop.eup %9065 }
 0x4cb   : > { %9077 = vpow2.f32 %v4163_v1  ;;  %v4291_v19 = vsub.f32 1.0, %v4267_v20  ;;  %8119 = vmatmul.mubr.msk.f32.vlgmr.msra.gmra.mrb[60].mxu1 %vm4344_vm5, %v11132_v17  ;;  %8167 = vmatmul.mubr.msk.f32.vlgmr.msra.gmra.mrb[108].mxu0 %vm4344_vm5, %v11132_v17  ;;  %v4222_v30 = vadd.f32 1.0, %v4198_v34  ;;  %v4200_v27 = vmul.f32 %v11087_v2, %v11087_v2 }
 0x4cc   : > { %9079 = vpow2.f32 %v4165_v24  ;;  %8457 = vmatpush3.bf16.msra.mxu1 %v10881_v8  ;;  %v4201_v22 = vmul.f32 %v11094_v52, %v11094_v52  ;;  %v4202_v15 = vmul.f32 %v11103_v50, %v11103_v50  ;;  %v4183_v33 = vadd.f32 1.0, %v9060_v37 }
 0x4cd   : > { %v11163_v28 = vmul.f32 %v4291_v19, %v10991_v39  ;;  %9081 = vrcp.f32 %v4220_v16  ;;  %v9068_v48 = vpop.eup %9067  ;;  %v4223_v44 = vadd.f32 1.0, %v4199_v54  ;;  %v4224_v12 = vadd.f32 1.0, %v4200_v27  ;;  %8459 = vmatprep.subr.bf16.mxu1 %v11031_v14 }
 0x4ce   : > { %9083 = vrcp.f32 %v4221_v62  ;;  %v4184_v2 = vadd.f32 1.0, %v9064_v6  ;;  %v4225_v8 = vadd.f32 1.0, %v4201_v22  ;;  %v4226_v39 = vadd.f32 1.0, %v4202_v15  ;;  %v9070_v52 = vpop.eup %9069 }
 0x4cf   : > { %8121 = vmatprep.mubr.msk.f32.mxu1 %vm4344_vm5, %v11163_v28  ;;  %8169 = vmatprep.mubr.msk.f32.mxu0 %vm4344_vm5, %v11163_v28  ;;  %9085 = vrcp.f32 %v4222_v30  ;;  %v4203_v50 = vmul.f32 %v11107_v13, %v11107_v13  ;;  %v4204_v10 = vmul.f32 %v11113_v58, %v11113_v58  ;;  %v4205_v4 = vmul.f32 %v4181_v26, %v4181_v26 }
 0x4d0   : > { %9087 = vrcp.f32 %v4223_v44  ;;  %v4185_v57 = vadd.f32 1.0, %v9066_v3  ;;  %8461 = vmatpush3.bf16.msra.mxu1 %v11031_v14  ;;  %v4206_v56 = vmul.f32 %v4182_v49, %v4182_v49  ;;  %v4207_v32 = vmul.f32 %v4183_v33, %v4183_v33 }
 0x4d1   : > { %v9072_v23 = vpop.eup %9071  ;;  %9089 = vrcp.f32 %v4224_v12  ;;  %v4227_v37 = vadd.f32 1.0, %v4203_v50  ;;  %v4228_v35 = vadd.f32 1.0, %v4204_v10  ;;  %8463 = vmatprep.subr.bf16.mxu1 %v11055_v21  ;;  %v4186_v53 = vadd.f32 1.0, %v9068_v48 }
 0x4d2   : > { %v9074_v40 = vpop.eup %9073  ;;  %9091 = vrcp.f32 %v4225_v8  ;;  %v4187_v16 = vadd.f32 1.0, %v9070_v52  ;;  %v4229_v13 = vadd.f32 1.0, %v4205_v4  ;;  %v4208_v58 = vmul.f32 %v4184_v2, %v4184_v2 }
 0x4d3   : > { %9093 = vrcp.f32 %v4226_v39  ;;  %v4188_v25 = vadd.f32 1.0, %v9072_v23  ;;  %v4230_v14 = vadd.f32 1.0, %v4206_v56  ;;  %v4209_v26 = vmul.f32 %v4185_v57, %v4185_v57 }
 0x4d4   : > { %v11181_v1 = vpop.eup %9075  ;;  %9095 = vrcp.f32 %v4227_v37  ;;  %8465 = vmatpush3.bf16.msra.mxu1 %v11055_v21  ;;  %v4231_v34 = vadd.f32 1.0, %v4207_v32  ;;  %v4210_v49 = vmul.f32 %v4186_v53, %v4186_v53  ;;  %v4211_v19 = vmul.f32 %v4187_v16, %v4187_v16 }
 0x4d5   : > { %v9078_v20 = vpop.eup %9077  ;;  %9097 = vrcp.f32 %v4228_v35  ;;  %v4189_v30 = vadd.f32 1.0, %v9074_v40  ;;  %v4232_v3 = vadd.f32 1.0, %v4208_v58  ;;  %v4233_v48 = vadd.f32 1.0, %v4209_v26 }
 0x4d6   : > { %v9080_v24 = vpop.eup %9079  ;;  %9099 = vrcp.f32 %v4229_v13  ;;  %v4190_v54 = vadd.f32 1.0, %v9078_v20  ;;  %v4212_v33 = vmul.f32 %v4188_v25, %v4188_v25  ;;  %v4234_v50 = vadd.f32 1.0, %v4210_v49 }
 0x4d7   : > { %v9082_v6 = vpop.eup %9081  ;;  %9101 = vrcp.f32 %v4230_v14  ;;  %v4191_v12 = vadd.f32 1.0, %v9080_v24  ;;  %v4235_v10 = vadd.f32 1.0, %v4211_v19  ;;  %v4213_v53 = vmul.f32 %v4189_v30, %v4189_v30 }
 0x4d8   : > { %v9084_v62 = vpop.eup %9083  ;;  %v4268_v27 = vmul.f32 2.0, %v9082_v6  ;;  %9103 = vrcp.f32 %v4231_v34  ;;  %v4236_v24 = vadd.f32 1.0, %v4212_v33  ;;  %v4214_v34 = vmul.f32 %v4190_v54, %v4190_v54 }
 0x4d9   : > { %v9086_v22 = vpop.eup %9085  ;;  %v4269_v15 = vmul.f32 2.0, %v9084_v62  ;;  %9105 = vrcp.f32 %v4232_v3  ;;  %v4215_v19 = vmul.f32 %v4191_v12, %v4191_v12  ;;  %v4192_v30 = vadd.f32 1.0, %v11181_v1 }
 0x4da   : > { %v9088_v44 = vpop.eup %9087  ;;  %v4292_v2 = vsub.f32 1.0, %v4268_v27  ;;  %v4270_v21 = vmul.f32 2.0, %v9086_v22  ;;  %9107 = vrcp.f32 %v4233_v48 }
 0x4db   : > { %v9090_v8 = vpop.eup %9089  ;;  %v4293_v39 = vsub.f32 1.0, %v4269_v15  ;;  %v4271_v52 = vmul.f32 2.0, %v9088_v44  ;;  %9109 = vrcp.f32 %v4234_v50  ;;  %v4216_v44 = vmul.f32 %v4192_v30, %v4192_v30 }
 0x4dc   : > { %v9092_v4 = vpop.eup %9091  ;;  %v11185_v23 = vmul.f32 %v4292_v2, %v11000_v60  ;;  %v4294_v57 = vsub.f32 1.0, %v4270_v21  ;;  %v4272_v56 = vmul.f32 2.0, %v9090_v8  ;;  %9111 = vrcp.f32 %v4235_v10 }
 0x4dd   : > { %v9094_v40 = vpop.eup %9093  ;;  %v11188_v37 = vmul.f32 %v4293_v39, %v11003_v55  ;;  %v4295_v35 = vsub.f32 1.0, %v4271_v52  ;;  %v4273_v32 = vmul.f32 2.0, %v9092_v4  ;;  %9113 = vrcp.f32 %v4236_v24 }
 0x4de   : > { %v9096_v16 = vpop.eup %9095  ;;  %8122 = vmatmul.mubr.msk.f32.gmra.mrb[62].mxu1 %vm4344_vm5, %v11185_v23  ;;  %8170 = vmatmul.mubr.msk.f32.gmra.mrb[110].mxu0 %vm4344_vm5, %v11185_v23  ;;  %v11195_v60 = vmul.f32 %v4294_v57, %v11012_v5  ;;  %v4296_v13 = vsub.f32 1.0, %v4272_v56  ;;  %v4274_v58 = vmul.f32 2.0, %v9094_v40  ;;  %v4237_v5 = vadd.f32 1.0, %v4213_v53 }
 0x4df   : > { %v9098_v20 = vpop.eup %9097  ;;  %8124 = vmatprep.mubr.msk.f32.mxu1 %vm4344_vm5, %v11188_v37  ;;  %8172 = vmatprep.mubr.msk.f32.mxu0 %vm4344_vm5, %v11188_v37  ;;  %v11202_v55 = vmul.f32 %v4295_v35, %v11015_v46  ;;  %v4297_v25 = vsub.f32 1.0, %v4273_v32  ;;  %v4275_v14 = vmul.f32 2.0, %v9096_v16 }
 0x4e0   : > { %v9100_v26 = vpop.eup %9099  ;;  %v11209_v6 = vmul.f32 %v4296_v13, %v11024_v36  ;;  %v4298_v49 = vsub.f32 1.0, %v4274_v58  ;;  %v4276_v46 = vmul.f32 2.0, %v9098_v20  ;;  %9115 = vrcp.f32 %v4237_v5 }
 0x4e1   : > { %v9102_v62 = vpop.eup %9101  ;;  %v11217_v54 = vmul.f32 %v4297_v25, %v11027_v51  ;;  %v4299_v27 = vsub.f32 1.0, %v4275_v14  ;;  %v4277_v3 = vmul.f32 2.0, %v9100_v26  ;;  %v4238_v36 = vadd.f32 1.0, %v4214_v34 }
 0x4e2   : > { %8125 = vmatmul.mubr.msk.f32.gmra.mrb[64].mxu1 %vm4344_vm5, %v11195_v60  ;;  %8173 = vmatmul.mubr.msk.f32.gmra.mrb[112].mxu0 %vm4344_vm5, %v11195_v60  ;;  %v9104_v22 = vpop.eup %9103  ;;  %v11224_v1 = vmul.f32 %v4298_v49, %v11038_v11  ;;  %v4300_v48 = vsub.f32 1.0, %v4276_v46  ;;  %v4278_v33 = vmul.f32 2.0, %v9102_v62  ;;  %v4239_v51 = vadd.f32 1.0, %v4215_v19 }
 0x4e3   : > { %8127 = vmatprep.mubr.msk.f32.mxu1 %vm4344_vm5, %v11202_v55  ;;  %8175 = vmatprep.mubr.msk.f32.mxu0 %vm4344_vm5, %v11202_v55  ;;  %v9106_v15 = vpop.eup %9105  ;;  %v11231_v12 = vmul.f32 %v4299_v27, %v11041_v7  ;;  %v4301_v2 = vsub.f32 1.0, %v4277_v3  ;;  %v4279_v21 = vmul.f32 2.0, %v9104_v22  ;;  %9117 = vrcp.f32 %v4238_v36  ;;  %v5473_v36 = vld [vmem:[#allocation8 + $0x20] sm:$0xff] }
 0x4e4   : > { %v9108_v8 = vpop.eup %9107  ;;  %v11238_v11 = vmul.f32 %v4300_v48, %v11050_v45  ;;  %v4302_v52 = vsub.f32 1.0, %v4278_v33  ;;  %v4280_v50 = vmul.f32 2.0, %v9106_v15  ;;  %9119 = vrcp.f32 %v4239_v51  ;;  %v5474_v15 = vld [vmem:[#allocation8 + $0x28] sm:$0xff] }
 0x4e5   : > { %v9110_v39 = vpop.eup %9109  ;;  %v4240_v7 = vadd.f32 1.0, %v4216_v44  ;;  %v11245_v4 = vmul.f32 %v4301_v2, %v11053_v43  ;;  %v4303_v57 = vsub.f32 1.0, %v4279_v21  ;;  %v4281_v56 = vmul.f32 2.0, %v9108_v8  ;;  %v5741_v33 = vld [vmem:[#allocation8 + $0x68] sm:$0xff]  ;;  %v5475_v44 = vld [vmem:[#allocation8 + $0x30] sm:$0xff]  ;;  %v5743_v8 = vld [vmem:[#allocation8 + $0x78] sm:$0xff] }
 0x4e6   : > { %8128 = vmatmul.mubr.msk.f32.gmra.mrb[66].mxu1 %vm4344_vm5, %v11209_v6  ;;  %8176 = vmatmul.mubr.msk.f32.gmra.mrb[114].mxu0 %vm4344_vm5, %v11209_v6  ;;  %v9112_v10 = vpop.eup %9111  ;;  %v11252_v45 = vmul.f32 %v4302_v52, %v11066_v0  ;;  %v4304_v35 = vsub.f32 1.0, %v4280_v50  ;;  %v4282_v32 = vmul.f32 2.0, %v9110_v39  ;;  %v8474_v48 = vpack.c.bf16 %v5474_v15, %v5473_v36  ;;  %v5742_v21 = vld [vmem:[#allocation8 + $0x70] sm:$0xff] }
 0x4e7   : > { %8130 = vmatprep.mubr.msk.f32.mxu1 %vm4344_vm5, %v11217_v54  ;;  %8178 = vmatprep.mubr.msk.f32.mxu0 %vm4344_vm5, %v11217_v54  ;;  %v9114_v40 = vpop.eup %9113  ;;  %9121 = vrcp.f32 %v4240_v7  ;;  %v11259_v43 = vmul.f32 %v4303_v57, %v11071_v38  ;;  %v4305_v16 = vsub.f32 1.0, %v4281_v56  ;;  %v4283_v13 = vmul.f32 2.0, %v9112_v10 }
 0x4e8   : > { %v4328_v0 = vmul.f32 %v4304_v35, %v11082_v63  ;;  %v4306_v58 = vsub.f32 1.0, %v4282_v32  ;;  %v4284_v20 = vmul.f32 2.0, %v9114_v40  ;;  %v8494_v39 = vpack.c.bf16 %v5743_v8, %v5742_v21 }
 0x4e9   : > { %v4329_v38 = vmul.f32 %v4305_v16, %v11085_v29  ;;  %v4307_v14 = vsub.f32 1.0, %v4283_v13  ;;  %v6049_v16 = vld [vmem:[#allocation8 + $0x80] sm:$0xff]  ;;  %v6050_v13 = vld [vmem:[#allocation8 + $0x88] sm:$0xff] }
 0x4ea   : > { %8131 = vmatmul.mubr.msk.f32.gmra.mrb[68].mxu1 %vm4344_vm5, %v11224_v1  ;;  %8179 = vmatmul.mubr.msk.f32.gmra.mrb[116].mxu0 %vm4344_vm5, %v11224_v1  ;;  %v9116_v53 = vpop.eup %9115  ;;  %v4330_v63 = vmul.f32 %v4306_v58, %v11098_v47  ;;  %v4308_v5 = vsub.f32 1.0, %v4284_v20 }
 0x4eb   : > { %8133 = vmatprep.mubr.msk.f32.mxu1 %vm4344_vm5, %v11231_v12  ;;  %8181 = vmatprep.mubr.msk.f32.mxu0 %vm4344_vm5, %v11231_v12  ;;  %v4285_v26 = vmul.f32 2.0, %v9116_v53  ;;  %v4331_v49 = vmul.f32 %v4307_v14, %v11101_v9 }
 0x4ec   : > { %v4332_v62 = vmul.f32 %v4308_v5, %v11116_v59 }
 0x4ed   : > { %v9118_v25 = vpop.eup %9117  ;;  %v4309_v46 = vsub.f32 1.0, %v4285_v26 }
 0x4ee   : > { %8134 = vmatmul.mubr.msk.f32.gmra.mrb[70].mxu1 %vm4344_vm5, %v11238_v11  ;;  %8182 = vmatmul.mubr.msk.f32.gmra.mrb[118].mxu0 %vm4344_vm5, %v11238_v11  ;;  %v9120_v24 = vpop.eup %9119  ;;  %v4286_v34 = vmul.f32 2.0, %v9118_v25 }
 0x4ef   : > { %8136 = vmatprep.mubr.msk.f32.mxu1 %vm4344_vm5, %v11245_v4  ;;  %8184 = vmatprep.mubr.msk.f32.mxu0 %vm4344_vm5, %v11245_v4  ;;  %v4287_v19 = vmul.f32 2.0, %v9120_v24  ;;  %v4333_v47 = vmul.f32 %v4309_v46, %v11119_v42 }
 0x4f0   : > { %v4310_v30 = vsub.f32 1.0, %v4286_v34 }
 0x4f1   : > { %v9122_v29 = vpop.eup %9121  ;;  %v4311_v27 = vsub.f32 1.0, %v4287_v19 }
 0x4f2   : > { %8137 = vmatmul.mubr.msk.f32.gmra.mrb[72].mxu1 %vm4344_vm5, %v11252_v45  ;;  %8185 = vmatmul.mubr.msk.f32.gmra.mrb[120].mxu0 %vm4344_vm5, %v11252_v45  ;;  %v4288_v3 = vmul.f32 2.0, %v9122_v29  ;;  %v4334_v9 = vmul.f32 %v4310_v30, %v11135_v41 }
 0x4f3   : > { %8139 = vmatprep.mubr.msk.f32.mxu1 %vm4344_vm5, %v11259_v43  ;;  %8187 = vmatprep.mubr.msk.f32.mxu0 %vm4344_vm5, %v11259_v43  ;;  %v4335_v59 = vmul.f32 %v4311_v27, %v11139_v18  ;;  %v5736_v18 = vld [vmem:[#allocation8 + $0x40] sm:$0xff] }
 0x4f4   : > { %v4312_v22 = vsub.f32 1.0, %v4288_v3 }
 0x4f6   : > { %8140 = vmatmul.mubr.msk.f32.gmra.mrb[74].mxu1 %vm4344_vm5, %v4328_v0  ;;  %8188 = vmatmul.mubr.msk.f32.gmra.mrb[122].mxu0 %vm4344_vm5, %v4328_v0  ;;  %v4336_v42 = vmul.f32 %v4312_v22, %v11128_v31  ;;  %v5469_v31 = vld [vmem:[#allocation8] sm:$0xff] }
 0x4f7   : > { %8142 = vmatprep.mubr.msk.f32.mxu1 %vm4344_vm5, %v4329_v38  ;;  %8190 = vmatprep.mubr.msk.f32.mxu0 %vm4344_vm5, %v4329_v38 }
 0x4fa   : > { %8143 = vmatmul.mubr.msk.f32.gmra.mrb[76].mxu1 %vm4344_vm5, %v4330_v63  ;;  %8191 = vmatmul.mubr.msk.f32.gmra.mrb[124].mxu0 %vm4344_vm5, %v4330_v63 }
 0x4fb   : > { %8145 = vmatprep.mubr.msk.f32.mxu1 %vm4344_vm5, %v4331_v49  ;;  %8193 = vmatprep.mubr.msk.f32.mxu0 %vm4344_vm5, %v4331_v49 }
 0x4fe   : > { %8146 = vmatmul.mubr.msk.f32.gmra.mrb[78].mxu1 %vm4344_vm5, %v4332_v62  ;;  %8194 = vmatmul.mubr.msk.f32.gmra.mrb[126].mxu0 %vm4344_vm5, %v4332_v62 }
 0x4ff   : > { %8148 = vmatprep.mubr.msk.f32.mxu1 %vm4344_vm5, %v4333_v47  ;;  %8196 = vmatprep.mubr.msk.f32.mxu0 %vm4344_vm5, %v4333_v47 }
 0x502   : > { %8149 = vmatmul.mubr.msk.f32.gmra.mrb[80].mxu1 %vm4344_vm5, %v4334_v9  ;;  %8197 = vmatmul.mubr.msk.f32.gmra.mrb[128].mxu0 %vm4344_vm5, %v4334_v9 }
 0x503   : > { %8151 = vmatprep.mubr.msk.f32.mxu1 %vm4344_vm5, %v4335_v59  ;;  %8199 = vmatprep.mubr.msk.f32.mxu0 %vm4344_vm5, %v4335_v59 }
 0x506   : > { %8152 = vmatmul.mubr.msk.f32.gmra.mrb[82].mxu1 %vm4344_vm5, %v4336_v42  ;;  %8200 = vmatmul.mubr.msk.f32.gmra.mrb[130].mxu0 %vm4344_vm5, %v4336_v42 }
 0x507   : > { %8214 = vmatprep.mubr.msk.f32.mxu1 %vm4344_vm5, %v11143_v61  ;;  %v5737_v61 = vld [vmem:[#allocation8 + $0x48] sm:$0xff] }
 0x50a   : > { %8215 = vmatmul.mubr.msk.f32.vlgmr.msra.gmra.mrb[84].mxu1 %vm4344_vm5, %v11132_v17  ;;  %v5470_v17 = vld [vmem:[#allocation8 + $0x8] sm:$0xff] }
 0x50b   : > { %8217 = vmatprep.mubr.msk.f32.mxu1 %vm4344_vm5, %v11163_v28  ;;  %v8466_v41 = vpack.c.bf16 %v5470_v17, %v5469_v31  ;;  %v8482_v28 = vpack.c.bf16 %v5737_v61, %v5736_v18 }
 0x50d   : > { %8467 = vmatprep.subr.bf16.mxu0 %v8466_v41  ;;  %8483 = vmatprep.subr.bf16.mxu1 %v8482_v28 }
 0x50e   : > { %8218 = vmatmul.mubr.msk.f32.gmra.mrb[86].mxu1 %vm4344_vm5, %v11185_v23  ;;  %8469 = vmatpush3.bf16.msra.mxu0 %v8466_v41  ;;  %v5471_v23 = vld [vmem:[#allocation8 + $0x10] sm:$0xff] }
 0x50f   : > { %8220 = vmatprep.mubr.msk.f32.mxu1 %vm4344_vm5, %v11188_v37  ;;  %v5472_v37 = vld [vmem:[#allocation8 + $0x18] sm:$0xff]  ;;  %8485 = vmatpush3.bf16.msra.mxu1 %v8482_v28 }
 0x512   : > { %8221 = vmatmul.mubr.msk.f32.gmra.mrb[88].mxu1 %vm4344_vm5, %v11195_v60  ;;  %v8470_v60 = vpack.c.bf16 %v5472_v37, %v5471_v23 }
 0x513   : > { %8223 = vmatprep.mubr.msk.f32.mxu1 %vm4344_vm5, %v11202_v55  ;;  %v5738_v55 = vld [vmem:[#allocation8 + $0x50] sm:$0xff] }
 0x514   : > { %8471 = vmatprep.subr.bf16.mxu0 %v8470_v60 }
 0x515   : > { %8473 = vmatpush3.bf16.msra.mxu0 %v8470_v60 }
 0x516   : > { %8224 = vmatmul.mubr.msk.f32.gmra.mrb[90].mxu1 %vm4344_vm5, %v11209_v6  ;;  %v5739_v6 = vld [vmem:[#allocation8 + $0x58] sm:$0xff]  ;;  %8475 = vmatprep.subr.bf16.mxu0 %v8474_v48 }
 0x517   : > { %8226 = vmatprep.mubr.msk.f32.mxu1 %vm4344_vm5, %v11217_v54  ;;  %v8486_v54 = vpack.c.bf16 %v5739_v6, %v5738_v55 }
 0x519   : > { %8487 = vmatprep.subr.bf16.mxu1 %v8486_v54  ;;  %8477 = vmatpush3.bf16.msra.mxu0 %v8474_v48 }
 0x51a   : > { %8227 = vmatmul.mubr.msk.f32.gmra.mrb[92].mxu1 %vm4344_vm5, %v11224_v1  ;;  %v5740_v1 = vld [vmem:[#allocation8 + $0x60] sm:$0xff] }
 0x51b   : > { %8229 = vmatprep.mubr.msk.f32.mxu1 %vm4344_vm5, %v11231_v12  ;;  %8489 = vmatpush3.bf16.msra.mxu1 %v8486_v54  ;;  %v8490_v51 = vpack.c.bf16 %v5741_v33, %v5740_v1  ;;  %v5476_v12 = vld [vmem:[#allocation8 + $0x38] sm:$0xff] }
 0x51c   : > { %v8478_v2 = vpack.c.bf16 %v5476_v12, %v5475_v44 }
 0x51d   : > { %8491 = vmatprep.subr.bf16.mxu1 %v8490_v51 }
 0x51e   : > { %8230 = vmatmul.mubr.msk.f32.gmra.mrb[94].mxu1 %vm4344_vm5, %v11238_v11  ;;  %8479 = vmatprep.subr.bf16.mxu0 %v8478_v2 }
 0x51f   : > { %8232 = vmatprep.mubr.msk.f32.mxu1 %vm4344_vm5, %v11245_v4  ;;  %8493 = vmatpush3.bf16.msra.mxu1 %v8490_v51 }
 0x520   : > { %8481 = vmatpush3.bf16.msra.mxu0 %v8478_v2  ;;  %8495 = vmatprep.subr.bf16.mxu1 %v8494_v39 }
 0x522   : > { %8233 = vmatmul.mubr.msk.f32.gmra.mrb[96].mxu1 %vm4344_vm5, %v11252_v45 }
 0x523   : > { %8235 = vmatprep.mubr.msk.f32.mxu1 %vm4344_vm5, %v11259_v43  ;;  %8497 = vmatpush3.bf16.msra.mxu1 %v8494_v39 }
 0x526   : > { %8236 = vmatmul.mubr.msk.f32.gmra.mrb[98].mxu1 %vm4344_vm5, %v4328_v0  ;;  %v11338_v0 = vpack.c.bf16 %v6050_v13, %v6049_v16 }
 0x527   : > { %8238 = vmatprep.mubr.msk.f32.mxu1 %vm4344_vm5, %v4329_v38 }
 0x528   : > { %8499 = vmatprep.subr.bf16.mxu0 %v11338_v0 }
 0x52a   : > { %8239 = vmatmul.mubr.msk.f32.gmra.mrb[100].mxu1 %vm4344_vm5, %v4330_v63 }
 0x52b   : > { %8241 = vmatprep.mubr.msk.f32.mxu1 %vm4344_vm5, %v4331_v49 }
 0x52e   : > { %8242 = vmatmul.mubr.msk.f32.gmra.mrb[102].mxu1 %vm4344_vm5, %v4332_v62 }
 0x52f   : > { %8244 = vmatprep.mubr.msk.f32.mxu1 %vm4344_vm5, %v4333_v47 }
 0x532   : > { %8245 = vmatmul.mubr.msk.f32.gmra.mrb[104].mxu1 %vm4344_vm5, %v4334_v9 }
 0x533   : > { %8247 = vmatprep.mubr.msk.f32.mxu1 %vm4344_vm5, %v4335_v59 }
 0x536   : > { %8248 = vmatmul.mubr.msk.f32.gmra.mrb[106].mxu1 %vm4344_vm5, %v4336_v42 }
 0x59e   : > { %v8120_v11 = vpop.f32.mrb[60].mxu1  ;;  %v8168_v52 = vpop.f32.mrb[108].mxu0 }
 0x59f   : > { %v4819_v50 = vrot.slane %v8168_v52, 1  ;;  %v4483_v10 = vpop.f32.mrb[61].mxu1  ;;  %v4675_v7 = vpop.f32.mrb[109].mxu0 }
 0x5a0   : > { %v4818_v4 = vrot.slane %v4675_v7, 1 }
 0x5a2   : > { %v4820_v57 = vsel %vm3690_vm3, %v4818_v4, %v4819_v50 }
 0x5a3   : > { %v11336_v56 = vadd.f32 %v4820_v57, %v4483_v10 }
 0x5b1   : > { %v8123_v40 = vpop.f32.mrb[62].mxu1  ;;  %v8171_v45 = vpop.f32.mrb[110].mxu0 }
 0x5b2   : > { %v4823_v35 = vrot.slane %v8171_v45, 1  ;;  %v4493_v32 = vpop.f32.mrb[63].mxu1  ;;  %v4685_v53 = vpop.f32.mrb[111].mxu0 }
 0x5b3   : > { %v4821_v43 = vrot.slane %v4685_v53, 1 }
 0x5b5   : > { %v4822_v58 = vsel %vm3690_vm3, %v4819_v50, %v4821_v43  ;;  %v4824_v20 = vsel %vm3690_vm3, %v4821_v43, %v4823_v35  ;;  %v8126_v25 = vpop.f32.mrb[64].mxu1  ;;  %v8174_v38 = vpop.f32.mrb[112].mxu0 }
 0x5b6   : > { %v11342_v14 = vadd.f32 %v8120_v11, %v4822_v58  ;;  %v11344_v26 = vadd.f32 %v4824_v20, %v4493_v32  ;;  %v4827_v24 = vrot.slane %v8174_v38, 1  ;;  %v4503_v63 = vpop.f32.mrb[65].mxu1  ;;  %v4695_v5 = vpop.f32.mrb[113].mxu0 }
 0x5b7   : > { %v4825_v34 = vrot.slane %v4695_v5, 1 }
 0x5b9   : > { %v4826_v49 = vsel %vm3690_vm3, %v4823_v35, %v4825_v34  ;;  %v4828_v46 = vsel %vm3690_vm3, %v4825_v34, %v4827_v24  ;;  %v8129_v19 = vpop.f32.mrb[66].mxu1  ;;  %v8177_v29 = vpop.f32.mrb[114].mxu0 }
 0x5ba   : > { %v11349_v62 = vadd.f32 %v8123_v40, %v4826_v49  ;;  %v11351_v30 = vadd.f32 %v4828_v46, %v4503_v63  ;;  %v4831_v47 = vrot.slane %v8177_v29, 1  ;;  %v4513_v27 = vpop.f32.mrb[67].mxu1  ;;  %v4705_v3 = vpop.f32.mrb[115].mxu0 }
 0x5bb   : > { %v4829_v9 = vrot.slane %v4705_v3, 1 }
 0x5bd   : > { %v4830_v59 = vsel %vm3690_vm3, %v4827_v24, %v4829_v9  ;;  %v4832_v22 = vsel %vm3690_vm3, %v4829_v9, %v4831_v47  ;;  %v8132_v42 = vpop.f32.mrb[68].mxu1  ;;  %v8180_v31 = vpop.f32.mrb[116].mxu0 }
 0x5be   : > { %v11355_v17 = vadd.f32 %v8126_v25, %v4830_v59  ;;  %v11357_v41 = vadd.f32 %v4832_v22, %v4513_v27  ;;  %v4835_v18 = vrot.slane %v8180_v31, 1  ;;  %v4523_v61 = vpop.f32.mrb[69].mxu1  ;;  %v4715_v28 = vpop.f32.mrb[117].mxu0 }
 0x5bf   : > { %v4833_v23 = vrot.slane %v4715_v28, 1 }
 0x5c1   : > { %v4834_v37 = vsel %vm3690_vm3, %v4831_v47, %v4833_v23  ;;  %v4836_v60 = vsel %vm3690_vm3, %v4833_v23, %v4835_v18  ;;  %v8135_v55 = vpop.f32.mrb[70].mxu1  ;;  %v8183_v6 = vpop.f32.mrb[118].mxu0 }
 0x5c2   : > { %v11361_v54 = vadd.f32 %v8129_v19, %v4834_v37  ;;  %v11363_v36 = vadd.f32 %v4836_v60, %v4523_v61  ;;  %v4839_v15 = vrot.slane %v8183_v6, 1  ;;  %v4533_v1 = vpop.f32.mrb[71].mxu1  ;;  %v4725_v48 = vpop.f32.mrb[119].mxu0 }
 0x5c3   : > { %v4837_v33 = vrot.slane %v4725_v48, 1 }
 0x5c5   : > { %v4838_v51 = vsel %vm3690_vm3, %v4835_v18, %v4837_v33  ;;  %v4840_v44 = vsel %vm3690_vm3, %v4837_v33, %v4839_v15  ;;  %v8138_v12 = vpop.f32.mrb[72].mxu1  ;;  %v8186_v2 = vpop.f32.mrb[120].mxu0 }
 0x5c6   : > { %v11367_v21 = vadd.f32 %v8132_v42, %v4838_v51  ;;  %v11369_v8 = vadd.f32 %v4840_v44, %v4533_v1  ;;  %v4843_v39 = vrot.slane %v8186_v2, 1  ;;  %v4543_v11 = vpop.f32.mrb[73].mxu1  ;;  %v4735_v52 = vpop.f32.mrb[121].mxu0 }
 0x5c7   : > { %v4841_v50 = vrot.slane %v4735_v52, 1 }
 0x5c9   : > { %v4842_v10 = vsel %vm3690_vm3, %v4839_v15, %v4841_v50  ;;  %v4844_v7 = vsel %vm3690_vm3, %v4841_v50, %v4843_v39  ;;  %v8141_v4 = vpop.f32.mrb[74].mxu1  ;;  %v8189_v57 = vpop.f32.mrb[122].mxu0 }
 0x5ca   : > { %v11373_v40 = vadd.f32 %v8135_v55, %v4842_v10  ;;  %v11375_v45 = vadd.f32 %v4844_v7, %v4543_v11  ;;  %v4847_v35 = vrot.slane %v8189_v57, 1  ;;  %v4553_v32 = vpop.f32.mrb[75].mxu1  ;;  %v4745_v53 = vpop.f32.mrb[123].mxu0 }
 0x5cb   : > { %v4845_v43 = vrot.slane %v4745_v53, 1 }
 0x5cd   : > { %v4846_v16 = vsel %vm3690_vm3, %v4843_v39, %v4845_v43  ;;  %v4848_v13 = vsel %vm3690_vm3, %v4845_v43, %v4847_v35  ;;  %v8144_v58 = vpop.f32.mrb[76].mxu1  ;;  %v8192_v20 = vpop.f32.mrb[124].mxu0  ;;  %v11409_v43 = vld [vmem:[#allocation10 + $0x2] ss:$0 sm:$0xff] }
 0x5ce   : > { %v11379_v25 = vadd.f32 %v8138_v12, %v4846_v16  ;;  %v11381_v38 = vadd.f32 %v4848_v13, %v4553_v32  ;;  %v4851_v24 = vrot.slane %v8192_v20, 1  ;;  %v4563_v63 = vpop.f32.mrb[77].mxu1  ;;  %v4755_v5 = vpop.f32.mrb[125].mxu0 }
 0x5cf   : > { %v4849_v34 = vrot.slane %v4755_v5, 1 }
 0x5d1   : > { %v4850_v49 = vsel %vm3690_vm3, %v4847_v35, %v4849_v34  ;;  %v4852_v46 = vsel %vm3690_vm3, %v4849_v34, %v4851_v24  ;;  %v8147_v19 = vpop.f32.mrb[78].mxu1  ;;  %v8195_v29 = vpop.f32.mrb[126].mxu0 }
 0x5d2   : > { %v11385_v47 = vadd.f32 %v8141_v4, %v4850_v49  ;;  %v11387_v27 = vadd.f32 %v4852_v46, %v4563_v63  ;;  %v4855_v3 = vrot.slane %v8195_v29, 1  ;;  %v4573_v9 = vpop.f32.mrb[79].mxu1  ;;  %v4765_v59 = vpop.f32.mrb[127].mxu0 }
 0x5d3   : > { %v4853_v22 = vrot.slane %v4765_v59, 1 }
 0x5d5   : > { %v4854_v42 = vsel %vm3690_vm3, %v4851_v24, %v4853_v22  ;;  %v4856_v31 = vsel %vm3690_vm3, %v4853_v22, %v4855_v3  ;;  %v8150_v18 = vpop.f32.mrb[80].mxu1  ;;  %v8198_v61 = vpop.f32.mrb[128].mxu0 }
 0x5d6   : > { %v11391_v28 = vadd.f32 %v8144_v58, %v4854_v42  ;;  %v11393_v23 = vadd.f32 %v4856_v31, %v4573_v9  ;;  %v4859_v37 = vrot.slane %v8198_v61, 1  ;;  %v4583_v60 = vpop.f32.mrb[81].mxu1  ;;  %v4775_v55 = vpop.f32.mrb[129].mxu0 }
 0x5d7   : > { %v4857_v6 = vrot.slane %v4775_v55, 1 }
 0x5d9   : > { %v4858_v15 = vsel %vm3690_vm3, %v4855_v3, %v4857_v6  ;;  %v4860_v1 = vsel %vm3690_vm3, %v4857_v6, %v4859_v37  ;;  %v8153_v48 = vpop.f32.mrb[82].mxu1  ;;  %v8201_v33 = vpop.f32.mrb[130].mxu0 }
 0x5da   : > { %v11397_v51 = vadd.f32 %v8147_v19, %v4858_v15  ;;  %v11399_v44 = vadd.f32 %v4860_v1, %v4583_v60  ;;  %v4863_v12 = vrot.slane %v8201_v33, 1  ;;  %v4593_v2 = vpop.f32.mrb[83].mxu1  ;;  %v4785_v39 = vpop.f32.mrb[131].mxu0 }
 0x5db   : > { %v4861_v11 = vrot.slane %v4785_v39, 1 }
 0x5dc   : > { %v11401_v52 = vadd.f32 %v8153_v48, %v4863_v12 }
 0x5dd   : > { %v4862_v50 = vsel %vm3690_vm3, %v4859_v37, %v4861_v11  ;;  %v4864_v10 = vsel %vm3690_vm3, %v4861_v11, %v4863_v12  ;;  %v8216_v7 = vpop.f32.mrb[84].mxu1 }
 0x5de   : > { %v11405_v4 = vadd.f32 %v8150_v18, %v4862_v50  ;;  %v11407_v57 = vadd.f32 %v4864_v10, %v4593_v2  ;;  %v5130_v35 = vrot.slane %v8216_v7, 2  ;;  %v4986_v32 = vpop.f32.mrb[85].mxu1 }
 0x5df   : > { %v5129_v53 = vrot.slane %v4986_v32, 2 }
 0x5e1   : > { %v5131_v16 = vsel %vm3997_vm4, %v5129_v53, %v5130_v35  ;;  %v8219_v13 = vpop.f32.mrb[86].mxu1 }
 0x5e2   : > { %v5200_v58 = vadd.f32 %v5131_v16, %v11336_v56  ;;  %v5134_v20 = vrot.slane %v8219_v13, 2  ;;  %v4996_v24 = vpop.f32.mrb[87].mxu1 }
 0x5e3   : > { %v5132_v63 = vrot.slane %v4996_v24, 2 }
 0x5e4   : > { %v11414_v5 = vadd.f32 %v11409_v43, %v5200_v58 }
 0x5e5   : > { %v5133_v34 = vsel %vm3997_vm4, %v5130_v35, %v5132_v63  ;;  %v5135_v49 = vsel %vm3997_vm4, %v5132_v63, %v5134_v20  ;;  %v8222_v46 = vpop.f32.mrb[88].mxu1  ;;  %v6051_v63 = vld [vmem:[#allocation8 + $0x90] sm:$0xff] }
 0x5e6   : > { %v5252_v19 = vmul.f32 1.442695, %v11414_v5  ;;  %v5201_v29 = vadd.f32 %v5133_v34, %v11342_v14  ;;  %v5202_v3 = vadd.f32 %v5135_v49, %v11344_v26  ;;  %v5138_v9 = vrot.slane %v8222_v46, 2  ;;  %v5006_v59 = vpop.f32.mrb[89].mxu1  ;;  %v6052_v34 = vld [vmem:[#allocation8 + $0x98] sm:$0xff] }
 0x5e7   : > { %v5136_v56 = vrot.slane %v5006_v59, 2 }
 0x5e8   : > { %9123 = vpow2.f32 %v5252_v19  ;;  %v11422_v22 = vadd.f32 %v11409_v43, %v5201_v29  ;;  %v11425_v42 = vadd.f32 %v11409_v43, %v5202_v3 }
 0x5e9   : > { %v5137_v31 = vsel %vm3997_vm4, %v5134_v20, %v5136_v56  ;;  %v5139_v18 = vsel %vm3997_vm4, %v5136_v56, %v5138_v9  ;;  %v8225_v61 = vpop.f32.mrb[90].mxu1  ;;  %v11465_v56 = vpack.c.bf16 %v6052_v34, %v6051_v63 }
 0x5ea   : > { %v5254_v37 = vmul.f32 1.442695, %v11422_v22  ;;  %v5256_v14 = vmul.f32 1.442695, %v11425_v42  ;;  %v5203_v26 = vadd.f32 %v5137_v31, %v11349_v62  ;;  %v5204_v60 = vadd.f32 %v5139_v18, %v11351_v30  ;;  %v5016_v55 = vpop.f32.mrb[91].mxu1 }
 0x5eb   : > { %v5142_v6 = vrot.slane %v8225_v61, 2  ;;  %v5140_v15 = vrot.slane %v5016_v55, 2 }
 0x5ec   : > { %9125 = vpow2.f32 %v5254_v37  ;;  %v11434_v1 = vadd.f32 %v11409_v43, %v5203_v26  ;;  %v11437_v48 = vadd.f32 %v11409_v43, %v5204_v60 }
 0x5ed   : > { %v5141_v33 = vsel %vm3997_vm4, %v5138_v9, %v5140_v15  ;;  %v5143_v12 = vsel %vm3997_vm4, %v5140_v15, %v5142_v6  ;;  %v8228_v2 = vpop.f32.mrb[92].mxu1  ;;  %9127 = vpow2.f32 %v5256_v14 }
 0x5ee   : > { %v5258_v62 = vmul.f32 1.442695, %v11434_v1  ;;  %v5205_v30 = vadd.f32 %v5141_v33, %v11355_v17  ;;  %v5206_v39 = vadd.f32 %v5143_v12, %v11357_v41  ;;  %v5026_v11 = vpop.f32.mrb[93].mxu1  ;;  %v5260_v50 = vmul.f32 1.442695, %v11437_v48 }
 0x5ef   : > { %v5146_v10 = vrot.slane %v8228_v2, 2  ;;  %v5144_v7 = vrot.slane %v5026_v11, 2  ;;  %v6054_v11 = vld [vmem:[#allocation8 + $0xa8] sm:$0xff] }
 0x5f0   : > { %v11446_v35 = vadd.f32 %v11409_v43, %v5205_v30  ;;  %v11449_v32 = vadd.f32 %v11409_v43, %v5206_v39  ;;  %9129 = vpow2.f32 %v5258_v62  ;;  %v6053_v39 = vld [vmem:[#allocation8 + $0xa0] sm:$0xff] }
 0x5f1   : > { %v5145_v53 = vsel %vm3997_vm4, %v5142_v6, %v5144_v7  ;;  %v5147_v16 = vsel %vm3997_vm4, %v5144_v7, %v5146_v10  ;;  %v8231_v13 = vpop.f32.mrb[94].mxu1  ;;  %9131 = vpow2.f32 %v5260_v50  ;;  %v11489_v34 = vpack.c.bf16 %v6054_v11, %v6053_v39 }
 0x5f2   : > { %v9124_v17 = vpop.eup %9123  ;;  %v5262_v41 = vmul.f32 1.442695, %v11446_v35  ;;  %v5207_v58 = vadd.f32 %v5145_v53, %v11361_v54  ;;  %v5208_v20 = vadd.f32 %v5147_v16, %v11363_v36  ;;  %v5036_v24 = vpop.f32.mrb[95].mxu1  ;;  %v5264_v49 = vmul.f32 1.442695, %v11449_v32 }
 0x5f3   : > { %v5150_v46 = vrot.slane %v8231_v13, 2  ;;  %v5148_v19 = vrot.slane %v5036_v24, 2  ;;  %v5300_v29 = vadd.f32 1.0, %v9124_v17 }
 0x5f4   : > { %9133 = vpow2.f32 %v5262_v41  ;;  %v11458_v3 = vadd.f32 %v11409_v43, %v5207_v58  ;;  %v11461_v9 = vadd.f32 %v11409_v43, %v5208_v20 }
 0x5f5   : > { %v5149_v54 = vsel %vm3997_vm4, %v5146_v10, %v5148_v19  ;;  %v5151_v36 = vsel %vm3997_vm4, %v5148_v19, %v5150_v46  ;;  %v8234_v59 = vpop.f32.mrb[96].mxu1  ;;  %9135 = vpow2.f32 %v5264_v49  ;;  %v5324_v2 = vmul.f32 %v5300_v29, %v5300_v29 }
 0x5f6   : > { %v9126_v31 = vpop.eup %9125  ;;  %v5266_v18 = vmul.f32 1.442695, %v11458_v3  ;;  %v5268_v61 = vmul.f32 1.442695, %v11461_v9  ;;  %v5209_v37 = vadd.f32 %v5149_v54, %v11367_v21  ;;  %v5210_v14 = vadd.f32 %v5151_v36, %v11369_v8  ;;  %v5046_v26 = vpop.f32.mrb[97].mxu1 }
 0x5f7   : > { %v5301_v60 = vadd.f32 1.0, %v9126_v31  ;;  %v5154_v55 = vrot.slane %v8234_v59, 2  ;;  %v5152_v6 = vrot.slane %v5046_v26, 2  ;;  %v9128_v15 = vpop.eup %9127  ;;  %v5348_v19 = vadd.f32 1.0, %v5324_v2 }
 0x5f8   : > { %9137 = vpow2.f32 %v5266_v18  ;;  %v11472_v33 = vadd.f32 %v11409_v43, %v5209_v37  ;;  %v11475_v12 = vadd.f32 %v11409_v43, %v5210_v14  ;;  %v5302_v17 = vadd.f32 1.0, %v9128_v15 }
 0x5f9   : > { %v5325_v62 = vmul.f32 %v5301_v60, %v5301_v60  ;;  %9139 = vpow2.f32 %v5268_v61  ;;  %v5153_v21 = vsel %vm3997_vm4, %v5150_v46, %v5152_v6  ;;  %v5155_v8 = vsel %vm3997_vm4, %v5152_v6, %v5154_v55  ;;  %v8237_v30 = vpop.f32.mrb[98].mxu1 }
 0x5fa   : > { %v5270_v50 = vmul.f32 1.442695, %v11472_v33  ;;  %v5272_v10 = vmul.f32 1.442695, %v11475_v12  ;;  %v5211_v7 = vadd.f32 %v5153_v21, %v11373_v40  ;;  %v5212_v53 = vadd.f32 %v5155_v8, %v11375_v45  ;;  %v5056_v16 = vpop.f32.mrb[99].mxu1  ;;  %v9130_v13 = vpop.eup %9129 }
 0x5fb   : > { %v5349_v41 = vadd.f32 1.0, %v5325_v62  ;;  %v5158_v58 = vrot.slane %v8237_v30, 2  ;;  %v5156_v20 = vrot.slane %v5056_v16, 2  ;;  %v9132_v49 = vpop.eup %9131  ;;  %v5303_v54 = vadd.f32 1.0, %v9130_v13 }
 0x5fc   : > { %9141 = vpow2.f32 %v5270_v50  ;;  %v11484_v24 = vadd.f32 %v11409_v43, %v5211_v7  ;;  %v11487_v63 = vadd.f32 %v11409_v43, %v5212_v53  ;;  %v5326_v14 = vmul.f32 %v5302_v17, %v5302_v17 }
 0x5fd   : > { %9143 = vrcp.f32 %v5349_v41  ;;  %v5157_v40 = vsel %vm3997_vm4, %v5154_v55, %v5156_v20  ;;  %v5159_v45 = vsel %vm3997_vm4, %v5156_v20, %v5158_v58  ;;  %v8240_v46 = vpop.f32.mrb[100].mxu1  ;;  %v11496_v26 = vadd.f32 1.0, %v9132_v49 }
 0x5fe   : > { %v9134_v29 = vpop.eup %9133  ;;  %9145 = vpow2.f32 %v5272_v10  ;;  %v5274_v36 = vmul.f32 1.442695, %v11484_v24  ;;  %v5213_v59 = vadd.f32 %v5157_v40, %v11379_v25  ;;  %v5066_v31 = vpop.f32.mrb[101].mxu1  ;;  %v5214_v18 = vadd.f32 %v5159_v45, %v11381_v38 }
 0x5ff   : > { %v5162_v61 = vrot.slane %v8240_v46, 2  ;;  %v5160_v37 = vrot.slane %v5066_v31, 2  ;;  %v5276_v60 = vmul.f32 1.442695, %v11487_v63  ;;  %v9136_v6 = vpop.eup %9135  ;;  %v11502_v15 = vadd.f32 1.0, %v9134_v29 }
 0x600   : > { %9147 = vpow2.f32 %v5274_v36  ;;  %v11500_v55 = vadd.f32 %v11409_v43, %v5213_v59  ;;  %v11505_v2 = vadd.f32 %v11409_v43, %v5214_v18  ;;  %v5350_v16 = vadd.f32 1.0, %v5326_v14 }
 0x601   : > { %v5161_v25 = vsel %vm3997_vm4, %v5158_v58, %v5160_v37  ;;  %v5163_v38 = vsel %vm3997_vm4, %v5160_v37, %v5162_v61  ;;  %v8243_v62 = vpop.f32.mrb[102].mxu1  ;;  %9149 = vrcp.f32 %v5348_v19  ;;  %v11513_v13 = vadd.f32 1.0, %v9136_v6 }
 0x602   : > { %v9138_v21 = vpop.eup %9137  ;;  %v5278_v8 = vmul.f32 1.442695, %v11500_v55  ;;  %v5215_v30 = vadd.f32 %v5161_v25, %v11385_v47  ;;  %v5216_v39 = vadd.f32 %v5163_v38, %v11387_v27  ;;  %v5166_v11 = vrot.slane %v8243_v62, 2  ;;  %v5076_v50 = vpop.f32.mrb[103].mxu1 }
 0x603   : > { %v9140_v10 = vpop.eup %9139  ;;  %v5280_v7 = vmul.f32 1.442695, %v11505_v2  ;;  %v5164_v53 = vrot.slane %v5076_v50, 2  ;;  %9151 = vpow2.f32 %v5276_v60  ;;  %v11521_v47 = vadd.f32 1.0, %v9138_v21 }
 0x604   : > { %v11516_v17 = vadd.f32 %v11409_v43, %v5215_v30  ;;  %v11519_v41 = vadd.f32 %v11409_v43, %v5216_v39  ;;  %9153 = vpow2.f32 %v5278_v8  ;;  %v11528_v36 = vadd.f32 1.0, %v9140_v10 }
 0x605   : > { %v5165_v27 = vsel %vm3997_vm4, %v5162_v61, %v5164_v53  ;;  %v5167_v58 = vsel %vm3997_vm4, %v5164_v53, %v5166_v11  ;;  %v8246_v20 = vpop.f32.mrb[104].mxu1  ;;  %9155 = vpow2.f32 %v5280_v7  ;;  %v5327_v38 = vmul.f32 %v5303_v54, %v5303_v54 }
 0x606   : > { %v9142_v49 = vpop.eup %9141  ;;  %v5282_v40 = vmul.f32 1.442695, %v11516_v17  ;;  %v5217_v45 = vadd.f32 %v5165_v27, %v11391_v28  ;;  %v5218_v46 = vadd.f32 %v5167_v58, %v11393_v23  ;;  %v5086_v19 = vpop.f32.mrb[105].mxu1  ;;  %v5170_v59 = vrot.slane %v8246_v20, 2 }
 0x607   : > { %v9144_v29 = vpop.eup %9143  ;;  %v5168_v31 = vrot.slane %v5086_v19, 2  ;;  %9157 = vrcp.f32 %v5350_v16  ;;  %v5284_v37 = vmul.f32 1.442695, %v11519_v41  ;;  %v11537_v28 = vadd.f32 1.0, %v9142_v49 }
 0x608   : > { %v9146_v18 = vpop.eup %9145  ;;  %v5397_v61 = vmul.f32 2.0, %v9144_v29  ;;  %v11532_v14 = vadd.f32 %v11409_v43, %v5217_v45  ;;  %v11535_v60 = vadd.f32 %v11409_v43, %v5218_v46  ;;  %9159 = vpow2.f32 %v5282_v40 }
 0x609   : > { %v5169_v23 = vsel %vm3997_vm4, %v5166_v11, %v5168_v31  ;;  %v5171_v6 = vsel %vm3997_vm4, %v5168_v31, %v5170_v59  ;;  %v8249_v25 = vpop.f32.mrb[106].mxu1  ;;  %v11541_v21 = vadd.f32 1.0, %v9146_v18  ;;  %9161 = vpow2.f32 %v5284_v37 }
 0x60a   : > { %v9148_v62 = vpop.eup %9147  ;;  %v5286_v8 = vmul.f32 1.442695, %v11532_v14  ;;  %v5219_v30 = vadd.f32 %v5169_v23, %v11397_v51  ;;  %v5096_v39 = vpop.f32.mrb[107].mxu1  ;;  %v5288_v50 = vmul.f32 1.442695, %v11535_v60  ;;  %v5220_v10 = vadd.f32 %v5171_v6, %v11399_v44 }
 0x60b   : > { %v5174_v7 = vrot.slane %v8249_v25, 2  ;;  %v5172_v11 = vrot.slane %v5096_v39, 2  ;;  %v5421_v53 = vsub.f32 1.0, %v5397_v61  ;;  %v11547_v16 = vadd.f32 1.0, %v9148_v62  ;;  %v9150_v27 = vpop.eup %9149 }
 0x60c   : > { %v11550_v54 = vadd.f32 %v11409_v43, %v5219_v30  ;;  %9163 = vpow2.f32 %v5286_v8  ;;  %v11553_v58 = vadd.f32 %v11409_v43, %v5220_v10  ;;  %v5396_v46 = vmul.f32 2.0, %v9150_v27 }
 0x60d   : > { %v5223_v51 = vadd.f32 %v5174_v7, %v11401_v52  ;;  %v5173_v20 = vsel %vm3997_vm4, %v5170_v59, %v5172_v11  ;;  %v9152_v49 = vpop.eup %9151  ;;  %v5175_v40 = vsel %vm3997_vm4, %v5172_v11, %v5174_v7  ;;  %9165 = vpow2.f32 %v5288_v50 }
 0x60e   : > { %v5290_v44 = vmul.f32 1.442695, %v11550_v54  ;;  %v5221_v45 = vadd.f32 %v5173_v20, %v11405_v4  ;;  %v9154_v19 = vpop.eup %9153  ;;  %v5292_v29 = vmul.f32 1.442695, %v11553_v58  ;;  %v5222_v18 = vadd.f32 %v5175_v40, %v11407_v57  ;;  %v6056_v40 = vld [vmem:[#allocation8 + $0xb8] sm:$0xff] }
 0x60f   : > { %v11562_v31 = vadd.f32 %v11409_v43, %v5223_v51  ;;  %v9156_v52 = vpop.eup %9155  ;;  %v11566_v59 = vmul.f32 %v5421_v53, %v11422_v22  ;;  %v5420_v37 = vsub.f32 1.0, %v5396_v46  ;;  %v5351_v25 = vadd.f32 1.0, %v5327_v38 }
 0x610   : > { %9167 = vpow2.f32 %v5290_v44  ;;  %v11569_v61 = vadd.f32 %v11409_v43, %v5221_v45  ;;  %v11573_v6 = vadd.f32 %v11409_v43, %v5222_v18  ;;  %v5328_v8 = vmul.f32 %v11496_v26, %v11496_v26 }
 0x611   : > { %v9158_v4 = vpop.eup %9157  ;;  %9169 = vpow2.f32 %v5292_v29  ;;  %v5298_v23 = vmul.f32 1.442695, %v11562_v31  ;;  %v11577_v57 = vmul.f32 %v5420_v37, %v11414_v5  ;;  %v5312_v30 = vadd.f32 1.0, %v9152_v49 }
 0x612   : > { %v5294_v62 = vmul.f32 1.442695, %v11569_v61  ;;  %v5398_v22 = vmul.f32 2.0, %v9158_v4  ;;  %v5296_v39 = vmul.f32 1.442695, %v11573_v6  ;;  %v5329_v50 = vmul.f32 %v11502_v15, %v11502_v15  ;;  %v9160_v10 = vpop.eup %9159 }
 0x613   : > { %9171 = vpow2.f32 %v5298_v23  ;;  %v5313_v43 = vadd.f32 1.0, %v9154_v19  ;;  %8266 = vmatprep.mubr.msk.f32.mxu0 %vm5477_vm6, %v11577_v57  ;;  %8318 = vmatprep.mubr.msk.f32.mxu1 %vm5477_vm6, %v11577_v57  ;;  %v5352_v38 = vadd.f32 1.0, %v5328_v8  ;;  %v5330_v15 = vmul.f32 %v11513_v13, %v11513_v13  ;;  %v9162_v11 = vpop.eup %9161 }
 0x614   : > { %9173 = vpow2.f32 %v5294_v62  ;;  %v5422_v5 = vsub.f32 1.0, %v5398_v22  ;;  %8267 = vmatmul.mubr.msk.f32.vlgmr.msra.gmra.mrb[132].mxu0 %vm5477_vm6, %v11566_v59  ;;  %8319 = vmatmul.mubr.msk.f32.vlgmr.msra.gmra.mrb[108].mxu1 %vm5477_vm6, %v11566_v59  ;;  %v5353_v26 = vadd.f32 1.0, %v5329_v50  ;;  %v5331_v7 = vmul.f32 %v11521_v47, %v11521_v47  ;;  %v6055_v47 = vld [vmem:[#allocation8 + $0xb0] sm:$0xff] }
 0x615   : > { %9175 = vpow2.f32 %v5296_v39  ;;  %8501 = vmatpush3.bf16.msra.mxu0 %v11338_v0  ;;  %v5332_v27 = vmul.f32 %v11528_v36, %v11528_v36  ;;  %v5333_v51 = vmul.f32 %v11537_v28, %v11537_v28  ;;  %v5314_v49 = vadd.f32 1.0, %v9156_v52 }
 0x616   : > { %v11597_v53 = vmul.f32 %v5422_v5, %v11425_v42  ;;  %9177 = vrcp.f32 %v5351_v25  ;;  %v9164_v20 = vpop.eup %9163  ;;  %v5354_v13 = vadd.f32 1.0, %v5330_v15  ;;  %v5355_v44 = vadd.f32 1.0, %v5331_v7  ;;  %8503 = vmatprep.subr.bf16.mxu0 %v11465_v56 }
 0x617   : > { %9179 = vrcp.f32 %v5352_v38  ;;  %v5315_v42 = vadd.f32 1.0, %v9160_v10  ;;  %v5356_v0 = vadd.f32 1.0, %v5332_v27  ;;  %v5357_v36 = vadd.f32 1.0, %v5333_v51  ;;  %v9166_v28 = vpop.eup %9165 }
 0x618   : > { %8269 = vmatprep.mubr.msk.f32.mxu0 %vm5477_vm6, %v11597_v53  ;;  %8321 = vmatprep.mubr.msk.f32.mxu1 %vm5477_vm6, %v11597_v53  ;;  %9181 = vrcp.f32 %v5353_v26  ;;  %v5334_v45 = vmul.f32 %v11541_v21, %v11541_v21  ;;  %v5335_v46 = vmul.f32 %v11547_v16, %v11547_v16  ;;  %v5336_v19 = vmul.f32 %v5312_v30, %v5312_v30 }
 0x619   : > { %9183 = vrcp.f32 %v5354_v13  ;;  %v5316_v18 = vadd.f32 1.0, %v9162_v11  ;;  %8505 = vmatpush3.bf16.msra.mxu0 %v11465_v56  ;;  %v5337_v52 = vmul.f32 %v5313_v43, %v5313_v43  ;;  %v8510_v37 = vpack.c.bf16 %v6056_v40, %v6055_v47 }
 0x61a   : > { %v9168_v29 = vpop.eup %9167  ;;  %9185 = vrcp.f32 %v5355_v44  ;;  %v5358_v23 = vadd.f32 1.0, %v5334_v45  ;;  %v5359_v25 = vadd.f32 1.0, %v5335_v46  ;;  %8507 = vmatprep.subr.bf16.mxu0 %v11489_v34  ;;  %v5338_v62 = vmul.f32 %v5314_v49, %v5314_v49 }
 0x61b   : > { %v9170_v4 = vpop.eup %9169  ;;  %9187 = vrcp.f32 %v5356_v0  ;;  %v5317_v22 = vadd.f32 1.0, %v9164_v20  ;;  %v5318_v21 = vadd.f32 1.0, %v9166_v28  ;;  %v5360_v8 = vadd.f32 1.0, %v5336_v19 }
 0x61c   : > { %9189 = vrcp.f32 %v5357_v36  ;;  %v5339_v30 = vmul.f32 %v5315_v42, %v5315_v42  ;;  %v5319_v50 = vadd.f32 1.0, %v9168_v29  ;;  %v5361_v56 = vadd.f32 1.0, %v5337_v52 }
 0x61d   : > { %v11615_v16 = vpop.eup %9171  ;;  %9191 = vrcp.f32 %v5358_v23  ;;  %8509 = vmatpush3.bf16.msra.mxu0 %v11489_v34  ;;  %v5340_v10 = vmul.f32 %v5316_v18, %v5316_v18  ;;  %v5362_v5 = vadd.f32 1.0, %v5338_v62  ;;  %v5341_v26 = vmul.f32 %v5317_v22, %v5317_v22 }
 0x61e   : > { %v9174_v39 = vpop.eup %9173  ;;  %9193 = vrcp.f32 %v5359_v25  ;;  %8511 = vmatprep.subr.bf16.mxu0 %v8510_v37  ;;  %v5342_v15 = vmul.f32 %v5318_v21, %v5318_v21  ;;  %v5320_v11 = vadd.f32 1.0, %v9170_v4  ;;  %v5363_v20 = vadd.f32 1.0, %v5339_v30 }
 0x61f   : > { %v9176_v43 = vpop.eup %9175  ;;  %9195 = vrcp.f32 %v5360_v8  ;;  %v5321_v27 = vadd.f32 1.0, %v9174_v39  ;;  %v5364_v44 = vadd.f32 1.0, %v5340_v10  ;;  %v5343_v47 = vmul.f32 %v5319_v50, %v5319_v50 }
 0x620   : > { %v9178_v38 = vpop.eup %9177  ;;  %9197 = vrcp.f32 %v5361_v56  ;;  %v5322_v40 = vadd.f32 1.0, %v9176_v43  ;;  %v5365_v46 = vadd.f32 1.0, %v5341_v26  ;;  %v5366_v19 = vadd.f32 1.0, %v5342_v15 }
 0x621   : > { %v9180_v7 = vpop.eup %9179  ;;  %v5399_v51 = vmul.f32 2.0, %v9178_v38  ;;  %8513 = vmatpush3.bf16.msra.mxu0 %v8510_v37  ;;  %9199 = vrcp.f32 %v5362_v5  ;;  %v5344_v22 = vmul.f32 %v5320_v11, %v5320_v11  ;;  %v5367_v43 = vadd.f32 1.0, %v5343_v47 }
 0x622   : > { %v9182_v49 = vpop.eup %9181  ;;  %v5400_v13 = vmul.f32 2.0, %v9180_v7  ;;  %9201 = vrcp.f32 %v5363_v20  ;;  %v5345_v5 = vmul.f32 %v5321_v27, %v5321_v27  ;;  %v5346_v15 = vmul.f32 %v5322_v40, %v5322_v40 }
 0x623   : > { %v9184_v34 = vpop.eup %9183  ;;  %v5423_v42 = vsub.f32 1.0, %v5399_v51  ;;  %v5401_v0 = vmul.f32 2.0, %v9182_v49  ;;  %9203 = vrcp.f32 %v5364_v44  ;;  %v5323_v11 = vadd.f32 1.0, %v11615_v16 }
 0x624   : > { %v9186_v36 = vpop.eup %9185  ;;  %v5424_v28 = vsub.f32 1.0, %v5400_v13  ;;  %v5402_v45 = vmul.f32 2.0, %v9184_v34  ;;  %9205 = vrcp.f32 %v5365_v46 }
 0x625   : > { %v9188_v29 = vpop.eup %9187  ;;  %v11619_v18 = vmul.f32 %v5423_v42, %v11434_v1  ;;  %v5425_v52 = vsub.f32 1.0, %v5401_v0  ;;  %v5403_v4 = vmul.f32 2.0, %v9186_v36  ;;  %9207 = vrcp.f32 %v5366_v19 }
 0x626   : > { %v9190_v23 = vpop.eup %9189  ;;  %v11622_v37 = vmul.f32 %v5424_v28, %v11437_v48  ;;  %v5426_v25 = vsub.f32 1.0, %v5402_v45  ;;  %v5404_v62 = vmul.f32 2.0, %v9188_v29  ;;  %9209 = vrcp.f32 %v5367_v43 }
 0x627   : > { %v9192_v21 = vpop.eup %9191  ;;  %8270 = vmatmul.mubr.msk.f32.gmra.mrb[134].mxu0 %vm5477_vm6, %v11619_v18  ;;  %8322 = vmatmul.mubr.msk.f32.gmra.mrb[110].mxu1 %vm5477_vm6, %v11619_v18  ;;  %v11629_v1 = vmul.f32 %v5425_v52, %v11446_v35  ;;  %v5427_v8 = vsub.f32 1.0, %v5403_v4  ;;  %v5405_v30 = vmul.f32 2.0, %v9190_v23  ;;  %v5368_v35 = vadd.f32 1.0, %v5344_v22 }
 0x628   : > { %v9194_v39 = vpop.eup %9193  ;;  %8272 = vmatprep.mubr.msk.f32.mxu0 %vm5477_vm6, %v11622_v37  ;;  %8324 = vmatprep.mubr.msk.f32.mxu1 %vm5477_vm6, %v11622_v37  ;;  %v11636_v48 = vmul.f32 %v5426_v25, %v11449_v32  ;;  %v5428_v50 = vsub.f32 1.0, %v5404_v62  ;;  %v5406_v56 = vmul.f32 2.0, %v9192_v21  ;;  %v5347_v34 = vmul.f32 %v5323_v11, %v5323_v11 }
 0x629   : > { %v9196_v10 = vpop.eup %9195  ;;  %v11643_v38 = vmul.f32 %v5427_v8, %v11458_v3  ;;  %v5429_v26 = vsub.f32 1.0, %v5405_v30  ;;  %v5407_v32 = vmul.f32 2.0, %v9194_v39  ;;  %9211 = vrcp.f32 %v5368_v35 }
 0x62a   : > { %v9198_v7 = vpop.eup %9197  ;;  %v11651_v27 = vmul.f32 %v5428_v50, %v11461_v9  ;;  %v5430_v51 = vsub.f32 1.0, %v5406_v56  ;;  %v5408_v20 = vmul.f32 2.0, %v9196_v10  ;;  %v5369_v3 = vadd.f32 1.0, %v5345_v5 }
 0x62b   : > { %8273 = vmatmul.mubr.msk.f32.gmra.mrb[136].mxu0 %vm5477_vm6, %v11629_v1  ;;  %8325 = vmatmul.mubr.msk.f32.gmra.mrb[112].mxu1 %vm5477_vm6, %v11629_v1  ;;  %v9200_v49 = vpop.eup %9199  ;;  %v11658_v16 = vmul.f32 %v5429_v26, %v11472_v33  ;;  %v5431_v44 = vsub.f32 1.0, %v5407_v32  ;;  %v5409_v47 = vmul.f32 2.0, %v9198_v7  ;;  %v5370_v9 = vadd.f32 1.0, %v5346_v15 }
 0x62c   : > { %8275 = vmatprep.mubr.msk.f32.mxu0 %vm5477_vm6, %v11636_v48  ;;  %8327 = vmatprep.mubr.msk.f32.mxu1 %vm5477_vm6, %v11636_v48  ;;  %v9202_v13 = vpop.eup %9201  ;;  %v11665_v40 = vmul.f32 %v5430_v51, %v11475_v12  ;;  %v5432_v42 = vsub.f32 1.0, %v5408_v20  ;;  %v5410_v0 = vmul.f32 2.0, %v9200_v49  ;;  %9213 = vrcp.f32 %v5369_v3 }
 0x62d   : > { %v9204_v36 = vpop.eup %9203  ;;  %v11672_v33 = vmul.f32 %v5431_v44, %v11484_v24  ;;  %v5433_v45 = vsub.f32 1.0, %v5409_v47  ;;  %v5411_v46 = vmul.f32 2.0, %v9202_v13  ;;  %9215 = vrcp.f32 %v5370_v9 }
 0x62e   : > { %v9206_v28 = vpop.eup %9205  ;;  %v5371_v12 = vadd.f32 1.0, %v5347_v34  ;;  %v11679_v29 = vmul.f32 %v5432_v42, %v11487_v63  ;;  %v5434_v52 = vsub.f32 1.0, %v5410_v0  ;;  %v5412_v4 = vmul.f32 2.0, %v9204_v36 }
 0x62f   : > { %8276 = vmatmul.mubr.msk.f32.gmra.mrb[138].mxu0 %vm5477_vm6, %v11643_v38  ;;  %8328 = vmatmul.mubr.msk.f32.gmra.mrb[114].mxu1 %vm5477_vm6, %v11643_v38  ;;  %v9208_v19 = vpop.eup %9207  ;;  %v11686_v24 = vmul.f32 %v5433_v45, %v11500_v55  ;;  %v5435_v25 = vsub.f32 1.0, %v5411_v46  ;;  %v5413_v62 = vmul.f32 2.0, %v9206_v28 }
 0x630   : > { %8278 = vmatprep.mubr.msk.f32.mxu0 %vm5477_vm6, %v11651_v27  ;;  %8330 = vmatprep.mubr.msk.f32.mxu1 %vm5477_vm6, %v11651_v27  ;;  %v9210_v23 = vpop.eup %9209  ;;  %9217 = vrcp.f32 %v5371_v12  ;;  %v11693_v63 = vmul.f32 %v5434_v52, %v11505_v2  ;;  %v5436_v21 = vsub.f32 1.0, %v5412_v4  ;;  %v5414_v8 = vmul.f32 2.0, %v9208_v19 }
 0x631   : > { %v5459_v55 = vmul.f32 %v5435_v25, %v11516_v17  ;;  %v5437_v30 = vsub.f32 1.0, %v5413_v62  ;;  %v5415_v39 = vmul.f32 2.0, %v9210_v23 }
 0x632   : > { %v5460_v2 = vmul.f32 %v5436_v21, %v11519_v41  ;;  %v5438_v56 = vsub.f32 1.0, %v5414_v8 }
 0x633   : > { %8279 = vmatmul.mubr.msk.f32.gmra.mrb[140].mxu0 %vm5477_vm6, %v11658_v16  ;;  %8331 = vmatmul.mubr.msk.f32.gmra.mrb[116].mxu1 %vm5477_vm6, %v11658_v16  ;;  %v9212_v22 = vpop.eup %9211  ;;  %v5461_v17 = vmul.f32 %v5437_v30, %v11532_v14  ;;  %v5439_v35 = vsub.f32 1.0, %v5415_v39 }
 0x634   : > { %8281 = vmatprep.mubr.msk.f32.mxu0 %vm5477_vm6, %v11665_v40  ;;  %8333 = vmatprep.mubr.msk.f32.mxu1 %vm5477_vm6, %v11665_v40  ;;  %v5416_v10 = vmul.f32 2.0, %v9212_v22  ;;  %v5462_v26 = vmul.f32 %v5438_v56, %v11535_v60 }
 0x635   : > { %v5463_v7 = vmul.f32 %v5439_v35, %v11550_v54 }
 0x636   : > { %v9214_v50 = vpop.eup %9213  ;;  %v5440_v32 = vsub.f32 1.0, %v5416_v10 }
 0x637   : > { %8282 = vmatmul.mubr.msk.f32.gmra.mrb[142].mxu0 %vm5477_vm6, %v11672_v33  ;;  %8334 = vmatmul.mubr.msk.f32.gmra.mrb[118].mxu1 %vm5477_vm6, %v11672_v33  ;;  %v9216_v43 = vpop.eup %9215  ;;  %v5417_v5 = vmul.f32 2.0, %v9214_v50 }
 0x638   : > { %8284 = vmatprep.mubr.msk.f32.mxu0 %vm5477_vm6, %v11679_v29  ;;  %8336 = vmatprep.mubr.msk.f32.mxu1 %vm5477_vm6, %v11679_v29  ;;  %v5418_v15 = vmul.f32 2.0, %v9216_v43  ;;  %v5464_v14 = vmul.f32 %v5440_v32, %v11553_v58 }
 0x639   : > { %v5441_v11 = vsub.f32 1.0, %v5417_v5 }
 0x63a   : > { %v9218_v41 = vpop.eup %9217  ;;  %v5442_v51 = vsub.f32 1.0, %v5418_v15 }
 0x63b   : > { %8285 = vmatmul.mubr.msk.f32.gmra.mrb[144].mxu0 %vm5477_vm6, %v11686_v24  ;;  %8337 = vmatmul.mubr.msk.f32.gmra.mrb[120].mxu1 %vm5477_vm6, %v11686_v24  ;;  %v5419_v20 = vmul.f32 2.0, %v9218_v41  ;;  %v5465_v60 = vmul.f32 %v5441_v11, %v11569_v61 }
 0x63c   : > { %8287 = vmatprep.mubr.msk.f32.mxu0 %vm5477_vm6, %v11693_v63  ;;  %8339 = vmatprep.mubr.msk.f32.mxu1 %vm5477_vm6, %v11693_v63  ;;  %v5466_v54 = vmul.f32 %v5442_v51, %v11573_v6 }
 0x63d   : > { %v5443_v49 = vsub.f32 1.0, %v5419_v20 }
 0x63f   : > { %8288 = vmatmul.mubr.msk.f32.gmra.mrb[146].mxu0 %vm5477_vm6, %v5459_v55  ;;  %8340 = vmatmul.mubr.msk.f32.gmra.mrb[122].mxu1 %vm5477_vm6, %v5459_v55  ;;  %v5467_v58 = vmul.f32 %v5443_v49, %v11562_v31 }
 0x640   : > { %8290 = vmatprep.mubr.msk.f32.mxu0 %vm5477_vm6, %v5460_v2  ;;  %8342 = vmatprep.mubr.msk.f32.mxu1 %vm5477_vm6, %v5460_v2 }
 0x643   : > { %8291 = vmatmul.mubr.msk.f32.gmra.mrb[148].mxu0 %vm5477_vm6, %v5461_v17  ;;  %8343 = vmatmul.mubr.msk.f32.gmra.mrb[124].mxu1 %vm5477_vm6, %v5461_v17 }
 0x644   : > { %8293 = vmatprep.mubr.msk.f32.mxu0 %vm5477_vm6, %v5462_v26  ;;  %8345 = vmatprep.mubr.msk.f32.mxu1 %vm5477_vm6, %v5462_v26 }
 0x647   : > { %8294 = vmatmul.mubr.msk.f32.gmra.mrb[150].mxu0 %vm5477_vm6, %v5463_v7  ;;  %8346 = vmatmul.mubr.msk.f32.gmra.mrb[126].mxu1 %vm5477_vm6, %v5463_v7 }
 0x648   : > { %8296 = vmatprep.mubr.msk.f32.mxu0 %vm5477_vm6, %v5464_v14  ;;  %8348 = vmatprep.mubr.msk.f32.mxu1 %vm5477_vm6, %v5464_v14 }
 0x64b   : > { %8297 = vmatmul.mubr.msk.f32.gmra.mrb[152].mxu0 %vm5477_vm6, %v5465_v60  ;;  %8349 = vmatmul.mubr.msk.f32.gmra.mrb[128].mxu1 %vm5477_vm6, %v5465_v60 }
 0x64c   : > { %8299 = vmatprep.mubr.msk.f32.mxu0 %vm5477_vm6, %v5466_v54  ;;  %8351 = vmatprep.mubr.msk.f32.mxu1 %vm5477_vm6, %v5466_v54 }
 0x64f   : > { %8300 = vmatmul.mubr.msk.f32.gmra.mrb[154].mxu0 %vm5477_vm6, %v5467_v58  ;;  %8352 = vmatmul.mubr.msk.f32.gmra.mrb[130].mxu1 %vm5477_vm6, %v5467_v58 }
 0x650   : > { %8370 = vmatprep.mubr.msk.f32.mxu0 %vm5477_vm6, %v11577_v57 }
 0x653   : > { %8371 = vmatmul.mubr.msk.f32.vlgmr.msra.gmra.mrb[156].mxu0 %vm5477_vm6, %v11566_v59 }
 0x654   : > { %8373 = vmatprep.mubr.msk.f32.mxu0 %vm5477_vm6, %v11597_v53 }
 0x657   : > { %8374 = vmatmul.mubr.msk.f32.gmra.mrb[158].mxu0 %vm5477_vm6, %v11619_v18 }
 0x658   : > { %8376 = vmatprep.mubr.msk.f32.mxu0 %vm5477_vm6, %v11622_v37 }
 0x65b   : > { %8377 = vmatmul.mubr.msk.f32.gmra.mrb[160].mxu0 %vm5477_vm6, %v11629_v1 }
 0x65c   : > { %8379 = vmatprep.mubr.msk.f32.mxu0 %vm5477_vm6, %v11636_v48 }
 0x65f   : > { %8380 = vmatmul.mubr.msk.f32.gmra.mrb[162].mxu0 %vm5477_vm6, %v11643_v38 }
 0x660   : > { %8382 = vmatprep.mubr.msk.f32.mxu0 %vm5477_vm6, %v11651_v27 }
 0x663   : > { %8383 = vmatmul.mubr.msk.f32.gmra.mrb[164].mxu0 %vm5477_vm6, %v11658_v16 }
 0x664   : > { %8385 = vmatprep.mubr.msk.f32.mxu0 %vm5477_vm6, %v11665_v40 }
 0x667   : > { %8386 = vmatmul.mubr.msk.f32.gmra.mrb[166].mxu0 %vm5477_vm6, %v11672_v33 }
 0x668   : > { %8388 = vmatprep.mubr.msk.f32.mxu0 %vm5477_vm6, %v11679_v29 }
 0x66b   : > { %8389 = vmatmul.mubr.msk.f32.gmra.mrb[168].mxu0 %vm5477_vm6, %v11686_v24 }
 0x66c   : > { %8391 = vmatprep.mubr.msk.f32.mxu0 %vm5477_vm6, %v11693_v63 }
 0x66f   : > { %8392 = vmatmul.mubr.msk.f32.gmra.mrb[170].mxu0 %vm5477_vm6, %v5459_v55 }
 0x670   : > { %8394 = vmatprep.mubr.msk.f32.mxu0 %vm5477_vm6, %v5460_v2 }
 0x673   : > { %8395 = vmatmul.mubr.msk.f32.gmra.mrb[172].mxu0 %vm5477_vm6, %v5461_v17 }
 0x674   : > { %8397 = vmatprep.mubr.msk.f32.mxu0 %vm5477_vm6, %v5462_v26 }
 0x677   : > { %8398 = vmatmul.mubr.msk.f32.gmra.mrb[174].mxu0 %vm5477_vm6, %v5463_v7 }
 0x678   : > { %8400 = vmatprep.mubr.msk.f32.mxu0 %vm5477_vm6, %v5464_v14 }
 0x67b   : > { %8401 = vmatmul.mubr.msk.f32.gmra.mrb[176].mxu0 %vm5477_vm6, %v5465_v60 }
 0x67c   : > { %8403 = vmatprep.mubr.msk.f32.mxu0 %vm5477_vm6, %v5466_v54 }
 0x67f   : > { %8404 = vmatmul.mubr.msk.f32.gmra.mrb[178].mxu0 %vm5477_vm6, %v5467_v58 }
 0x6e7   : > { %v8268_v31 = vpop.f32.mrb[132].mxu0  ;;  %v8320_v59 = vpop.f32.mrb[108].mxu1 }
 0x6e8   : > { %v5954_v61 = vrot.slane %v8320_v59, 1  ;;  %v5616_v6 = vpop.f32.mrb[133].mxu0  ;;  %v5810_v57 = vpop.f32.mrb[109].mxu1 }
 0x6e9   : > { %v5953_v53 = vrot.slane %v5810_v57, 1 }
 0x6eb   : > { %v5955_v18 = vsel %vm3690_vm3, %v5953_v53, %v5954_v61 }
 0x6ec   : > { %v11770_v37 = vadd.f32 %v5955_v18, %v5616_v6 }
 0x6fa   : > { %v8271_v1 = vpop.f32.mrb[134].mxu0  ;;  %v8323_v48 = vpop.f32.mrb[110].mxu1 }
 0x6fb   : > { %v5958_v38 = vrot.slane %v8323_v48, 1  ;;  %v5626_v27 = vpop.f32.mrb[135].mxu0  ;;  %v5820_v3 = vpop.f32.mrb[111].mxu1 }
 0x6fc   : > { %v5956_v13 = vrot.slane %v5820_v3, 1 }
 0x6fe   : > { %v5957_v16 = vsel %vm3690_vm3, %v5954_v61, %v5956_v13  ;;  %v5959_v44 = vsel %vm3690_vm3, %v5956_v13, %v5958_v38  ;;  %v8274_v47 = vpop.f32.mrb[136].mxu0  ;;  %v8326_v9 = vpop.f32.mrb[112].mxu1 }
 0x6ff   : > { %v11774_v34 = vadd.f32 %v8268_v31, %v5957_v16  ;;  %v11776_v40 = vadd.f32 %v5959_v44, %v5626_v27  ;;  %v5962_v42 = vrot.slane %v8326_v9, 1  ;;  %v5636_v0 = vpop.f32.mrb[137].mxu0  ;;  %v5830_v36 = vpop.f32.mrb[113].mxu1 }
 0x700   : > { %v5960_v28 = vrot.slane %v5830_v36, 1 }
 0x702   : > { %v5961_v33 = vsel %vm3690_vm3, %v5958_v38, %v5960_v28  ;;  %v5963_v45 = vsel %vm3690_vm3, %v5960_v28, %v5962_v42  ;;  %v8277_v46 = vpop.f32.mrb[138].mxu0  ;;  %v8329_v19 = vpop.f32.mrb[114].mxu1 }
 0x703   : > { %v11780_v12 = vadd.f32 %v8271_v1, %v5961_v33  ;;  %v11782_v29 = vadd.f32 %v5963_v45, %v5636_v0  ;;  %v5966_v52 = vrot.slane %v8329_v19, 1  ;;  %v5646_v4 = vpop.f32.mrb[139].mxu0  ;;  %v5840_v23 = vpop.f32.mrb[115].mxu1 }
 0x704   : > { %v5964_v24 = vrot.slane %v5840_v23, 1 }
 0x706   : > { %v5965_v25 = vsel %vm3690_vm3, %v5962_v42, %v5964_v24  ;;  %v5967_v62 = vsel %vm3690_vm3, %v5964_v24, %v5966_v52  ;;  %v8280_v22 = vpop.f32.mrb[140].mxu0  ;;  %v8332_v63 = vpop.f32.mrb[116].mxu1 }
 0x707   : > { %v11786_v21 = vadd.f32 %v8274_v47, %v5965_v25  ;;  %v11788_v8 = vadd.f32 %v5967_v62, %v5646_v4  ;;  %v5970_v55 = vrot.slane %v8332_v63, 1  ;;  %v5656_v30 = vpop.f32.mrb[141].mxu0  ;;  %v5850_v39 = vpop.f32.mrb[117].mxu1 }
 0x708   : > { %v5968_v50 = vrot.slane %v5850_v39, 1 }
 0x70a   : > { %v5969_v2 = vsel %vm3690_vm3, %v5966_v52, %v5968_v50  ;;  %v5971_v56 = vsel %vm3690_vm3, %v5968_v50, %v5970_v55  ;;  %v8283_v10 = vpop.f32.mrb[142].mxu0  ;;  %v8335_v43 = vpop.f32.mrb[118].mxu1 }
 0x70b   : > { %v11792_v17 = vadd.f32 %v8277_v46, %v5969_v2  ;;  %v11794_v35 = vadd.f32 %v5971_v56, %v5656_v30  ;;  %v5974_v5 = vrot.slane %v8335_v43, 1  ;;  %v5666_v26 = vpop.f32.mrb[143].mxu0  ;;  %v5860_v32 = vpop.f32.mrb[119].mxu1 }
 0x70c   : > { %v5972_v15 = vrot.slane %v5860_v32, 1 }
 0x70e   : > { %v5973_v41 = vsel %vm3690_vm3, %v5970_v55, %v5972_v15  ;;  %v5975_v7 = vsel %vm3690_vm3, %v5972_v15, %v5974_v5  ;;  %v8286_v11 = vpop.f32.mrb[144].mxu0  ;;  %v8338_v14 = vpop.f32.mrb[120].mxu1 }
 0x70f   : > { %v11798_v51 = vadd.f32 %v8280_v22, %v5973_v41  ;;  %v11800_v20 = vadd.f32 %v5975_v7, %v5666_v26  ;;  %v5978_v60 = vrot.slane %v8338_v14, 1  ;;  %v5676_v54 = vpop.f32.mrb[145].mxu0  ;;  %v5870_v49 = vpop.f32.mrb[121].mxu1 }
 0x710   : > { %v5976_v58 = vrot.slane %v5870_v49, 1 }
 0x712   : > { %v5977_v31 = vsel %vm3690_vm3, %v5974_v5, %v5976_v58  ;;  %v5979_v59 = vsel %vm3690_vm3, %v5976_v58, %v5978_v60  ;;  %v8289_v61 = vpop.f32.mrb[146].mxu0  ;;  %v8341_v6 = vpop.f32.mrb[122].mxu1 }
 0x713   : > { %v11804_v57 = vadd.f32 %v8283_v10, %v5977_v31  ;;  %v11806_v53 = vadd.f32 %v5979_v59, %v5676_v54  ;;  %v5982_v18 = vrot.slane %v8341_v6, 1  ;;  %v5686_v1 = vpop.f32.mrb[147].mxu0  ;;  %v5880_v48 = vpop.f32.mrb[123].mxu1 }
 0x714   : > { %v5980_v38 = vrot.slane %v5880_v48, 1  ;;  %v11840_v48 = vld [vmem:[#allocation10 + $0x3] ss:$0 sm:$0xff] }
 0x716   : > { %v5981_v27 = vsel %vm3690_vm3, %v5978_v60, %v5980_v38  ;;  %v5983_v3 = vsel %vm3690_vm3, %v5980_v38, %v5982_v18  ;;  %v8292_v13 = vpop.f32.mrb[148].mxu0  ;;  %v8344_v16 = vpop.f32.mrb[124].mxu1 }
 0x717   : > { %v11810_v44 = vadd.f32 %v8286_v11, %v5981_v27  ;;  %v11812_v47 = vadd.f32 %v5983_v3, %v5686_v1  ;;  %v5986_v9 = vrot.slane %v8344_v16, 1  ;;  %v5696_v42 = vpop.f32.mrb[149].mxu0  ;;  %v5890_v0 = vpop.f32.mrb[125].mxu1 }
 0x718   : > { %v5984_v36 = vrot.slane %v5890_v0, 1 }
 0x71a   : > { %v5985_v28 = vsel %vm3690_vm3, %v5982_v18, %v5984_v36  ;;  %v5987_v33 = vsel %vm3690_vm3, %v5984_v36, %v5986_v9  ;;  %v8295_v45 = vpop.f32.mrb[150].mxu0  ;;  %v8347_v46 = vpop.f32.mrb[126].mxu1 }
 0x71b   : > { %v11816_v19 = vadd.f32 %v8289_v61, %v5985_v28  ;;  %v11818_v52 = vadd.f32 %v5987_v33, %v5696_v42  ;;  %v5990_v4 = vrot.slane %v8347_v46, 1  ;;  %v5706_v23 = vpop.f32.mrb[151].mxu0  ;;  %v5900_v24 = vpop.f32.mrb[127].mxu1 }
 0x71c   : > { %v5988_v25 = vrot.slane %v5900_v24, 1 }
 0x71e   : > { %v5989_v62 = vsel %vm3690_vm3, %v5986_v9, %v5988_v25  ;;  %v5991_v22 = vsel %vm3690_vm3, %v5988_v25, %v5990_v4  ;;  %v8298_v63 = vpop.f32.mrb[152].mxu0  ;;  %v8350_v55 = vpop.f32.mrb[128].mxu1 }
 0x71f   : > { %v11822_v30 = vadd.f32 %v8292_v13, %v5989_v62  ;;  %v11824_v39 = vadd.f32 %v5991_v22, %v5706_v23  ;;  %v5994_v50 = vrot.slane %v8350_v55, 1  ;;  %v5716_v2 = vpop.f32.mrb[153].mxu0  ;;  %v5910_v56 = vpop.f32.mrb[129].mxu1 }
 0x720   : > { %v5992_v10 = vrot.slane %v5910_v56, 1 }
 0x722   : > { %v5993_v43 = vsel %vm3690_vm3, %v5990_v4, %v5992_v10  ;;  %v5995_v5 = vsel %vm3690_vm3, %v5992_v10, %v5994_v50  ;;  %v8301_v26 = vpop.f32.mrb[154].mxu0  ;;  %v8353_v32 = vpop.f32.mrb[130].mxu1 }
 0x723   : > { %v11828_v15 = vadd.f32 %v8295_v45, %v5993_v43  ;;  %v11830_v41 = vadd.f32 %v5995_v5, %v5716_v2  ;;  %v5998_v7 = vrot.slane %v8353_v32, 1  ;;  %v5726_v11 = vpop.f32.mrb[155].mxu0  ;;  %v5920_v14 = vpop.f32.mrb[131].mxu1 }
 0x724   : > { %v5996_v60 = vrot.slane %v5920_v14, 1 }
 0x725   : > { %v11832_v54 = vadd.f32 %v8301_v26, %v5998_v7 }
 0x726   : > { %v5997_v49 = vsel %vm3690_vm3, %v5994_v50, %v5996_v60  ;;  %v5999_v58 = vsel %vm3690_vm3, %v5996_v60, %v5998_v7  ;;  %v8372_v31 = vpop.f32.mrb[156].mxu0 }
 0x727   : > { %v11836_v59 = vadd.f32 %v8298_v63, %v5997_v49  ;;  %v11838_v61 = vadd.f32 %v5999_v58, %v5726_v11  ;;  %v6267_v6 = vrot.slane %v8372_v31, 2  ;;  %v6123_v18 = vpop.f32.mrb[157].mxu0 }
 0x728   : > { %v6266_v1 = vrot.slane %v6123_v18, 2 }
 0x72a   : > { %v6268_v38 = vsel %vm3997_vm4, %v6266_v1, %v6267_v6  ;;  %v8375_v27 = vpop.f32.mrb[158].mxu0 }
 0x72b   : > { %v6337_v3 = vadd.f32 %v6268_v38, %v11770_v37  ;;  %v6271_v13 = vrot.slane %v8375_v27, 2  ;;  %v6133_v16 = vpop.f32.mrb[159].mxu0 }
 0x72c   : > { %v6269_v9 = vrot.slane %v6133_v16, 2 }
 0x72d   : > { %v11845_v42 = vadd.f32 %v11840_v48, %v6337_v3 }
 0x72e   : > { %v6270_v0 = vsel %vm3997_vm4, %v6267_v6, %v6269_v9  ;;  %v6272_v36 = vsel %vm3997_vm4, %v6269_v9, %v6271_v13  ;;  %v8378_v28 = vpop.f32.mrb[160].mxu0 }
 0x72f   : > { %v6389_v33 = vmul.f32 1.442695, %v11845_v42  ;;  %v6338_v45 = vadd.f32 %v6270_v0, %v11774_v34  ;;  %v6339_v46 = vadd.f32 %v6272_v36, %v11776_v40  ;;  %v6275_v4 = vrot.slane %v8378_v28, 2  ;;  %v6143_v23 = vpop.f32.mrb[161].mxu0 }
 0x730   : > { %v6273_v37 = vrot.slane %v6143_v23, 2 }
 0x731   : > { %9219 = vpow2.f32 %v6389_v33  ;;  %v11853_v24 = vadd.f32 %v11840_v48, %v6338_v45  ;;  %v11856_v25 = vadd.f32 %v11840_v48, %v6339_v46 }
 0x732   : > { %v6274_v62 = vsel %vm3997_vm4, %v6271_v13, %v6273_v37  ;;  %v6276_v22 = vsel %vm3997_vm4, %v6273_v37, %v6275_v4  ;;  %v8381_v63 = vpop.f32.mrb[162].mxu0 }
 0x733   : > { %v6391_v55 = vmul.f32 1.442695, %v11853_v24  ;;  %v6393_v34 = vmul.f32 1.442695, %v11856_v25  ;;  %v6340_v40 = vadd.f32 %v6274_v62, %v11780_v12  ;;  %v6341_v50 = vadd.f32 %v6276_v22, %v11782_v29  ;;  %v6153_v2 = vpop.f32.mrb[163].mxu0 }
 0x734   : > { %v6279_v56 = vrot.slane %v8381_v63, 2  ;;  %v6277_v10 = vrot.slane %v6153_v2, 2 }
 0x735   : > { %9221 = vpow2.f32 %v6391_v55  ;;  %v11865_v43 = vadd.f32 %v11840_v48, %v6340_v40  ;;  %v11868_v5 = vadd.f32 %v11840_v48, %v6341_v50 }
 0x736   : > { %9223 = vpow2.f32 %v6393_v34  ;;  %v6278_v26 = vsel %vm3997_vm4, %v6275_v4, %v6277_v10  ;;  %v6280_v32 = vsel %vm3997_vm4, %v6277_v10, %v6279_v56  ;;  %v8384_v7 = vpop.f32.mrb[164].mxu0 }
 0x737   : > { %v6395_v12 = vmul.f32 1.442695, %v11865_v43  ;;  %v6397_v29 = vmul.f32 1.442695, %v11868_v5  ;;  %v6342_v11 = vadd.f32 %v6278_v26, %v11786_v21  ;;  %v6343_v14 = vadd.f32 %v6280_v32, %v11788_v8  ;;  %v6163_v60 = vpop.f32.mrb[165].mxu0 }
 0x738   : > { %v6283_v49 = vrot.slane %v8384_v7, 2  ;;  %v6281_v58 = vrot.slane %v6163_v60, 2 }
 0x739   : > { %9225 = vpow2.f32 %v6395_v12  ;;  %v11877_v31 = vadd.f32 %v11840_v48, %v6342_v11  ;;  %v11880_v6 = vadd.f32 %v11840_v48, %v6343_v14 }
 0x73a   : > { %9227 = vpow2.f32 %v6397_v29  ;;  %v6282_v18 = vsel %vm3997_vm4, %v6279_v56, %v6281_v58  ;;  %v6284_v1 = vsel %vm3997_vm4, %v6281_v58, %v6283_v49  ;;  %v8387_v38 = vpop.f32.mrb[166].mxu0 }
 0x73b   : > { %v9220_v27 = vpop.eup %9219  ;;  %v6399_v21 = vmul.f32 1.442695, %v11877_v31  ;;  %v6401_v8 = vmul.f32 1.442695, %v11880_v6  ;;  %v6344_v3 = vadd.f32 %v6282_v18, %v11792_v17  ;;  %v6345_v13 = vadd.f32 %v6284_v1, %v11794_v35  ;;  %v6173_v16 = vpop.f32.mrb[167].mxu0 }
 0x73c   : > { %v6437_v9 = vadd.f32 1.0, %v9220_v27  ;;  %v6287_v0 = vrot.slane %v8387_v38, 2  ;;  %v6285_v36 = vrot.slane %v6173_v16, 2 }
 0x73d   : > { %9229 = vpow2.f32 %v6399_v21  ;;  %v11889_v28 = vadd.f32 %v11840_v48, %v6344_v3  ;;  %v11892_v33 = vadd.f32 %v11840_v48, %v6345_v13 }
 0x73e   : > { %v6461_v45 = vmul.f32 %v6437_v9, %v6437_v9  ;;  %9231 = vpow2.f32 %v6401_v8  ;;  %v6286_v46 = vsel %vm3997_vm4, %v6283_v49, %v6285_v36  ;;  %v6288_v4 = vsel %vm3997_vm4, %v6285_v36, %v6287_v0  ;;  %v8390_v17 = vpop.f32.mrb[168].mxu0 }
 0x73f   : > { %v9222_v23 = vpop.eup %9221  ;;  %v6403_v35 = vmul.f32 1.442695, %v11889_v28  ;;  %v6405_v37 = vmul.f32 1.442695, %v11892_v33  ;;  %v6346_v62 = vadd.f32 %v6286_v46, %v11798_v51  ;;  %v6347_v22 = vadd.f32 %v6288_v4, %v11800_v20  ;;  %v6183_v63 = vpop.f32.mrb[169].mxu0 }
 0x740   : > { %v9224_v55 = vpop.eup %9223  ;;  %v6485_v34 = vadd.f32 1.0, %v6461_v45  ;;  %v6438_v40 = vadd.f32 1.0, %v9222_v23  ;;  %v6291_v50 = vrot.slane %v8390_v17, 2  ;;  %v6289_v2 = vrot.slane %v6183_v63, 2 }
 0x741   : > { %v6439_v56 = vadd.f32 1.0, %v9224_v55  ;;  %9233 = vpow2.f32 %v6403_v35  ;;  %v11901_v10 = vadd.f32 %v11840_v48, %v6346_v62  ;;  %v11904_v26 = vadd.f32 %v11840_v48, %v6347_v22 }
 0x742   : > { %9235 = vrcp.f32 %v6485_v34  ;;  %v6462_v32 = vmul.f32 %v6438_v40, %v6438_v40  ;;  %v6290_v51 = vsel %vm3997_vm4, %v6287_v0, %v6289_v2  ;;  %v6292_v20 = vsel %vm3997_vm4, %v6289_v2, %v6291_v50  ;;  %v11908_v7 = vpop.f32.mrb[170].mxu0 }
 0x743   : > { %v9226_v12 = vpop.eup %9225  ;;  %v6463_v29 = vmul.f32 %v6439_v56, %v6439_v56  ;;  %9237 = vpow2.f32 %v6405_v37  ;;  %v6407_v11 = vmul.f32 1.442695, %v11901_v10  ;;  %v6409_v14 = vmul.f32 1.442695, %v11904_v26  ;;  %v6193_v60 = vpop.f32.mrb[171].mxu0 }
 0x744   : > { %v9228_v49 = vpop.eup %9227  ;;  %v6486_v58 = vadd.f32 1.0, %v6462_v32  ;;  %v6440_v18 = vadd.f32 1.0, %v9226_v12  ;;  %v6348_v1 = vadd.f32 %v6290_v51, %v11804_v57  ;;  %v6349_v38 = vadd.f32 %v6292_v20, %v11806_v53 }
 0x745   : > { %v6487_v27 = vadd.f32 1.0, %v6463_v29  ;;  %v6441_v21 = vadd.f32 1.0, %v9228_v49  ;;  %9239 = vpow2.f32 %v6407_v11  ;;  %v6295_v8 = vrot.slane %v11908_v7, 2 }
 0x746   : > { %9241 = vrcp.f32 %v6486_v58  ;;  %v6464_v3 = vmul.f32 %v6440_v18, %v6440_v18  ;;  %v11920_v13 = vadd.f32 %v11840_v48, %v6348_v1  ;;  %v11923_v16 = vadd.f32 %v11840_v48, %v6349_v38  ;;  %v11925_v9 = vpop.f32.mrb[172].mxu0 }
 0x747   : > { %v9230_v0 = vpop.eup %9229  ;;  %9243 = vrcp.f32 %v6487_v27  ;;  %v6465_v57 = vmul.f32 %v6441_v21, %v6441_v21  ;;  %v6293_v53 = vrot.slane %v6193_v60, 2  ;;  %v6299_v36 = vrot.slane %v11925_v9, 2  ;;  %v6203_v45 = vpop.f32.mrb[173].mxu0 }
 0x748   : > { %v9232_v46 = vpop.eup %9231  ;;  %v6488_v4 = vadd.f32 1.0, %v6464_v3  ;;  %v6442_v17 = vadd.f32 1.0, %v9230_v0  ;;  %9245 = vpow2.f32 %v6409_v14  ;;  %v6411_v23 = vmul.f32 1.442695, %v11920_v13 }
 0x749   : > { %v6489_v35 = vadd.f32 1.0, %v6465_v57  ;;  %v6443_v37 = vadd.f32 1.0, %v9232_v46  ;;  %v6413_v62 = vmul.f32 1.442695, %v11923_v16  ;;  %v6294_v22 = vsel %vm3997_vm4, %v6291_v50, %v6293_v53 }
 0x74a   : > { %9247 = vrcp.f32 %v6488_v4  ;;  %v6466_v63 = vmul.f32 %v6442_v17, %v6442_v17  ;;  %v6296_v55 = vsel %vm3997_vm4, %v6293_v53, %v6295_v8  ;;  %v6350_v34 = vadd.f32 %v6294_v22, %v11810_v44  ;;  %v11934_v40 = vpop.f32.mrb[174].mxu0 }
 0x74b   : > { %v9234_v2 = vpop.eup %9233  ;;  %9249 = vrcp.f32 %v6489_v35  ;;  %v6467_v56 = vmul.f32 %v6443_v37, %v6443_v37  ;;  %v6351_v32 = vadd.f32 %v6296_v55, %v11812_v47  ;;  %v6297_v51 = vrot.slane %v6203_v45, 2  ;;  %v11942_v20 = vpop.f32.mrb[175].mxu0 }
 0x74c   : > { %v9236_v50 = vpop.eup %9235  ;;  %v6490_v7 = vadd.f32 1.0, %v6466_v63  ;;  %v6444_v12 = vadd.f32 1.0, %v9234_v2  ;;  %9251 = vpow2.f32 %v6411_v23  ;;  %v11945_v44 = vadd.f32 %v11840_v48, %v6350_v34 }
 0x74d   : > { %v9238_v29 = vpop.eup %9237  ;;  %v6533_v11 = vmul.f32 2.0, %v9236_v50  ;;  %v6491_v14 = vadd.f32 1.0, %v6467_v56  ;;  %9253 = vpow2.f32 %v6413_v62  ;;  %v11948_v60 = vadd.f32 %v11840_v48, %v6351_v32 }
 0x74e   : > { %9255 = vrcp.f32 %v6490_v7  ;;  %v6445_v47 = vadd.f32 1.0, %v9238_v29  ;;  %v6468_v49 = vmul.f32 %v6444_v12, %v6444_v12  ;;  %v6415_v58 = vmul.f32 1.442695, %v11945_v44  ;;  %v11951_v18 = vpop.f32.mrb[176].mxu0 }
 0x74f   : > { %v9240_v1 = vpop.eup %9239  ;;  %v6557_v38 = vsub.f32 1.0, %v6533_v11  ;;  %9257 = vrcp.f32 %v6491_v14  ;;  %v6417_v27 = vmul.f32 1.442695, %v11948_v60  ;;  %v6298_v21 = vsel %vm3997_vm4, %v6295_v8, %v6297_v51  ;;  %v11956_v3 = vpop.f32.mrb[177].mxu0 }
 0x750   : > { %v9242_v0 = vpop.eup %9241  ;;  %v6469_v57 = vmul.f32 %v6445_v47, %v6445_v47  ;;  %v6492_v53 = vadd.f32 1.0, %v6468_v49  ;;  %v6446_v45 = vadd.f32 1.0, %v9240_v1  ;;  %9259 = vpow2.f32 %v6415_v58 }
 0x751   : > { %v9244_v46 = vpop.eup %9243  ;;  %v6581_v4 = vmul.f32 %v6557_v38, %v11845_v42  ;;  %v6534_v17 = vmul.f32 2.0, %v9242_v0  ;;  %9261 = vpow2.f32 %v6417_v27  ;;  %v6300_v23 = vsel %vm3997_vm4, %v6297_v51, %v6299_v36 }
 0x752   : > { %v9246_v35 = vpop.eup %9245  ;;  %v6535_v8 = vmul.f32 2.0, %v9244_v46  ;;  %v6493_v37 = vadd.f32 1.0, %v6469_v57  ;;  %9263 = vrcp.f32 %v6492_v53  ;;  %v6470_v62 = vmul.f32 %v6446_v45, %v6446_v45  ;;  %v11967_v22 = vpop.f32.mrb[178].mxu0 }
 0x753   : > { %v7302_v42 = vpack.c.bf16 %v6581_v4, %v6581_v4  ;;  %v6558_v63 = vsub.f32 1.0, %v6534_v17  ;;  %v6447_v55 = vadd.f32 1.0, %v9246_v35  ;;  %v6352_v34 = vadd.f32 %v6298_v21, %v11816_v19  ;;  %v11970_v2 = vpop.f32.mrb[179].mxu0 }
 0x754   : > { %v9248_v56 = vpop.eup %9247  ;;  %v6559_v32 = vsub.f32 1.0, %v6535_v8  ;;  %9265 = vrcp.f32 %v6493_v37  ;;  %v6494_v51 = vadd.f32 1.0, %v6470_v62  ;;  %v6353_v50 = vadd.f32 %v6300_v23, %v11818_v52 }
 0x755   : > { %v9250_v7 = vpop.eup %9249  ;;  %6704 = vst.msk [vmem:[%s11965_s10] sm:$0xf] %vm6703_vm7, %v7302_v42  ;;  %v6582_v12 = vmul.f32 %v6558_v63, %v11853_v24  ;;  %v6536_v29 = vmul.f32 2.0, %v9248_v56  ;;  %v6471_v11 = vmul.f32 %v6447_v55, %v6447_v55  ;;  %v11977_v14 = vadd.f32 %v11840_v48, %v6352_v34 }
 0x756   : > { %v9252_v47 = vpop.eup %9251  ;;  %v6583_v19 = vmul.f32 %v6559_v32, %v11856_v25  ;;  %v6537_v49 = vmul.f32 2.0, %v9250_v7  ;;  %9267 = vrcp.f32 %v6494_v51  ;;  %v11981_v58 = vadd.f32 %v11840_v48, %v6353_v50 }
 0x757   : > { %v9254_v52 = vpop.eup %9253  ;;  %v7303_v1 = vpack.c.bf16 %v6582_v12, %v6582_v12  ;;  %v6560_v38 = vsub.f32 1.0, %v6536_v29  ;;  %v6495_v27 = vadd.f32 1.0, %v6471_v11  ;;  %v6448_v24 = vadd.f32 1.0, %v9252_v47 }
 0x758   : > { %v9256_v21 = vpop.eup %9255  ;;  %v7304_v0 = vpack.c.bf16 %v6583_v19, %v6583_v19  ;;  %v6561_v57 = vsub.f32 1.0, %v6537_v49  ;;  %v6449_v53 = vadd.f32 1.0, %v9254_v52  ;;  %v6419_v45 = vmul.f32 1.442695, %v11977_v14 }
 0x759   : > { %v9258_v46 = vpop.eup %9257  ;;  %6705 = vst.msk [vmem:[%s11965_s10 + $0x4] sm:$0xf] %vm6703_vm7, %v7303_v1  ;;  %v6584_v25 = vmul.f32 %v6560_v38, %v11865_v43  ;;  %v6538_v4 = vmul.f32 2.0, %v9256_v21  ;;  %9269 = vrcp.f32 %v6495_v27  ;;  %v6472_v17 = vmul.f32 %v6448_v24, %v6448_v24 }
 0x75a   : > { %v9260_v23 = vpop.eup %9259  ;;  %6706 = vst.msk [vmem:[%s11965_s10 + $0x8] sm:$0xf] %vm6703_vm7, %v7304_v0  ;;  %v6585_v35 = vmul.f32 %v6561_v57, %v11868_v5  ;;  %v6539_v8 = vmul.f32 2.0, %v9258_v46  ;;  %v6473_v37 = vmul.f32 %v6449_v53, %v6449_v53  ;;  %9271 = vpow2.f32 %v6419_v45 }
 0x75b   : > { %v9262_v62 = vpop.eup %9261  ;;  %v7305_v42 = vpack.c.bf16 %v6584_v25, %v6584_v25  ;;  %v6562_v63 = vsub.f32 1.0, %v6538_v4  ;;  %v6496_v55 = vadd.f32 1.0, %v6472_v17  ;;  %v6450_v34 = vadd.f32 1.0, %v9260_v23 }
 0x75c   : > { %v9264_v56 = vpop.eup %9263  ;;  %v7306_v43 = vpack.c.bf16 %v6585_v35, %v6585_v35  ;;  %v6563_v32 = vsub.f32 1.0, %v6539_v8  ;;  %v6497_v51 = vadd.f32 1.0, %v6473_v37  ;;  %v6451_v50 = vadd.f32 1.0, %v9262_v62 }
 0x75d   : > { %6707 = vst.msk [vmem:[%s11965_s10 + $0xc] sm:$0xf] %vm6703_vm7, %v7305_v42  ;;  %v6586_v7 = vmul.f32 %v6562_v63, %v11877_v31  ;;  %v6540_v12 = vmul.f32 2.0, %v9264_v56  ;;  %9273 = vrcp.f32 %v6496_v55  ;;  %v6474_v5 = vmul.f32 %v6450_v34, %v6450_v34 }
 0x75e   : > { %v9266_v29 = vpop.eup %9265  ;;  %6708 = vst.msk [vmem:[%s11965_s10 + $0x10] sm:$0xf] %vm6703_vm7, %v7306_v43  ;;  %v6587_v11 = vmul.f32 %v6563_v32, %v11880_v6  ;;  %9275 = vrcp.f32 %v6497_v51  ;;  %v6475_v47 = vmul.f32 %v6451_v50, %v6451_v50  ;;  %v6421_v19 = vmul.f32 1.442695, %v11981_v58 }
 0x75f   : > { %v7307_v49 = vpack.c.bf16 %v6586_v7, %v6586_v7  ;;  %v6541_v52 = vmul.f32 2.0, %v9266_v29  ;;  %v6564_v1 = vsub.f32 1.0, %v6540_v12  ;;  %v6498_v38 = vadd.f32 1.0, %v6474_v5 }
 0x760   : > { %v9268_v27 = vpop.eup %9267  ;;  %v7308_v31 = vpack.c.bf16 %v6587_v11, %v6587_v11  ;;  %v6499_v24 = vadd.f32 1.0, %v6475_v47  ;;  %9277 = vpow2.f32 %v6421_v19  ;;  %v6303_v21 = vrot.slane %v11934_v40, 2 }
 0x761   : > { %6709 = vst.msk [vmem:[%s11965_s10 + $0x14] sm:$0xf] %vm6703_vm7, %v7307_v49  ;;  %v6565_v0 = vsub.f32 1.0, %v6541_v52  ;;  %v6588_v6 = vmul.f32 %v6564_v1, %v11889_v28  ;;  %v6542_v57 = vmul.f32 2.0, %v9268_v27  ;;  %9279 = vrcp.f32 %v6498_v38 }
 0x762   : > { %6710 = vst.msk [vmem:[%s11965_s10 + $0x18] sm:$0xf] %vm6703_vm7, %v7308_v31  ;;  %9281 = vrcp.f32 %v6499_v24  ;;  %v6301_v53 = vrot.slane %v11942_v20, 2  ;;  %v6307_v45 = vrot.slane %v11951_v18, 2  ;;  %v6305_v46 = vrot.slane %v11956_v3, 2 }
 0x763   : > { %v9270_v25 = vpop.eup %9269  ;;  %v6589_v40 = vmul.f32 %v6565_v0, %v11892_v33  ;;  %v7309_v4 = vpack.c.bf16 %v6588_v6, %v6588_v6  ;;  %v6566_v17 = vsub.f32 1.0, %v6542_v57  ;;  %v6311_v23 = vrot.slane %v11967_v22, 2 }
 0x764   : > { %v9272_v28 = vpop.eup %9271  ;;  %v6543_v35 = vmul.f32 2.0, %v9270_v25  ;;  %v6302_v8 = vsel %vm3997_vm4, %v6299_v36, %v6301_v53  ;;  %v6304_v20 = vsel %vm3997_vm4, %v6301_v53, %v6303_v21  ;;  %v6306_v37 = vsel %vm3997_vm4, %v6303_v21, %v6305_v46 }
 0x765   : > { %v7310_v62 = vpack.c.bf16 %v6589_v40, %v6589_v40  ;;  %6711 = vst.msk [vmem:[%s11965_s10 + $0x1c] sm:$0xf] %vm6703_vm7, %v7309_v4  ;;  %v6590_v33 = vmul.f32 %v6566_v17, %v11901_v10  ;;  %v6452_v3 = vadd.f32 1.0, %v9272_v28  ;;  %v6354_v42 = vadd.f32 %v6302_v8, %v11822_v30 }
 0x766   : > { %v6567_v63 = vsub.f32 1.0, %v6543_v35  ;;  %v6355_v55 = vadd.f32 %v6304_v20, %v11824_v39  ;;  %v6308_v9 = vsel %vm3997_vm4, %v6305_v46, %v6307_v45  ;;  %v6356_v36 = vadd.f32 %v6306_v37, %v11828_v15 }
 0x767   : > { %v9274_v34 = vpop.eup %9273  ;;  %6712 = vst.msk [vmem:[%s11965_s10 + $0x20] sm:$0xf] %vm6703_vm7, %v7310_v62  ;;  %v7311_v56 = vpack.c.bf16 %v6590_v33, %v6590_v33  ;;  %v6476_v43 = vmul.f32 %v6452_v3, %v6452_v3  ;;  %v12025_v10 = vadd.f32 %v11840_v48, %v6354_v42  ;;  %v6357_v30 = vadd.f32 %v6308_v9, %v11830_v41 }
 0x768   : > { %v9276_v32 = vpop.eup %9275  ;;  %v6591_v51 = vmul.f32 %v6567_v63, %v11904_v26  ;;  %v6544_v39 = vmul.f32 2.0, %v9274_v34  ;;  %v12030_v50 = vadd.f32 %v11840_v48, %v6355_v55  ;;  %v12033_v7 = vadd.f32 %v11840_v48, %v6356_v36 }
 0x769   : > { %6713 = vst.msk [vmem:[%s11965_s10 + $0x24] sm:$0xf] %vm6703_vm7, %v7311_v56  ;;  %v6545_v15 = vmul.f32 2.0, %v9276_v32  ;;  %v6500_v12 = vadd.f32 1.0, %v6476_v43  ;;  %v6423_v5 = vmul.f32 1.442695, %v12025_v10  ;;  %v12039_v29 = vadd.f32 %v11840_v48, %v6357_v30 }
 0x76a   : > { %v9278_v41 = vpop.eup %9277  ;;  %v7312_v11 = vpack.c.bf16 %v6591_v51, %v6591_v51  ;;  %v6568_v26 = vsub.f32 1.0, %v6544_v39  ;;  %v6425_v47 = vmul.f32 1.442695, %v12030_v50  ;;  %v6427_v19 = vmul.f32 1.442695, %v12033_v7 }
 0x76b   : > { %v9280_v49 = vpop.eup %9279  ;;  %v6569_v52 = vsub.f32 1.0, %v6545_v15  ;;  %v6453_v1 = vadd.f32 1.0, %v9278_v41  ;;  %9283 = vrcp.f32 %v6500_v12  ;;  %v6429_v38 = vmul.f32 1.442695, %v12039_v29 }
 0x76c   : > { %v9282_v27 = vpop.eup %9281  ;;  %6714 = vst.msk [vmem:[%s11965_s10 + $0x28] sm:$0xf] %vm6703_vm7, %v7312_v11  ;;  %v6592_v31 = vmul.f32 %v6568_v26, %v11920_v13  ;;  %v6546_v24 = vmul.f32 2.0, %v9280_v49  ;;  %9285 = vpow2.f32 %v6423_v5  ;;  %v6360_v21 = vadd.f32 %v6311_v23, %v11832_v54 }
 0x76d   : > { %v6593_v0 = vmul.f32 %v6569_v52, %v11923_v16  ;;  %v6547_v6 = vmul.f32 2.0, %v9282_v27  ;;  %v6477_v57 = vmul.f32 %v6453_v1, %v6453_v1  ;;  %9287 = vpow2.f32 %v6425_v47 }
 0x76e   : > { %v7313_v53 = vpack.c.bf16 %v6592_v31, %v6592_v31  ;;  %v6570_v46 = vsub.f32 1.0, %v6546_v24  ;;  %9289 = vpow2.f32 %v6427_v19  ;;  %v12052_v25 = vadd.f32 %v11840_v48, %v6360_v21 }
 0x76f   : > { %v7314_v13 = vpack.c.bf16 %v6593_v0, %v6593_v0  ;;  %v6571_v40 = vsub.f32 1.0, %v6547_v6  ;;  %v6501_v4 = vadd.f32 1.0, %v6477_v57  ;;  %9291 = vpow2.f32 %v6429_v38 }
 0x770   : > { %6715 = vst.msk [vmem:[%s11965_s10 + $0x2c] sm:$0xf] %vm6703_vm7, %v7313_v53  ;;  %v6594_v54 = vmul.f32 %v6570_v46, %v11945_v44  ;;  %v6435_v16 = vmul.f32 1.442695, %v12052_v25  ;;  %v6309_v17 = vrot.slane %v11970_v2, 2 }
 0x771   : > { %6716 = vst.msk [vmem:[%s11965_s10 + $0x30] sm:$0xf] %vm6703_vm7, %v7314_v13  ;;  %v6595_v28 = vmul.f32 %v6571_v40, %v11948_v60  ;;  %9293 = vrcp.f32 %v6501_v4 }
 0x772   : > { %v7315_v35 = vpack.c.bf16 %v6594_v54, %v6594_v54  ;;  %9295 = vpow2.f32 %v6435_v16  ;;  %v6310_v8 = vsel %vm3997_vm4, %v6307_v45, %v6309_v17  ;;  %v6312_v20 = vsel %vm3997_vm4, %v6309_v17, %v6311_v23 }
 0x773   : > { %v7316_v44 = vpack.c.bf16 %v6595_v28, %v6595_v28  ;;  %v6358_v37 = vadd.f32 %v6310_v8, %v11836_v59  ;;  %v6359_v2 = vadd.f32 %v6312_v20, %v11838_v61 }
 0x774   : > { %6717 = vst.msk [vmem:[%s11965_s10 + $0x34] sm:$0xf] %vm6703_vm7, %v7315_v35 }
 0x775   : > { %v9284_v62 = vpop.eup %9283  ;;  %6718 = vst.msk [vmem:[%s11965_s10 + $0x38] sm:$0xf] %vm6703_vm7, %v7316_v44  ;;  %v12075_v60 = vadd.f32 %v11840_v48, %v6358_v37  ;;  %v12078_v18 = vadd.f32 %v11840_v48, %v6359_v2 }
 0x776   : > { %v9286_v45 = vpop.eup %9285  ;;  %v6548_v22 = vmul.f32 2.0, %v9284_v62 }
 0x777   : > { %v9288_v33 = vpop.eup %9287  ;;  %v6454_v23 = vadd.f32 1.0, %v9286_v45  ;;  %v6431_v3 = vmul.f32 1.442695, %v12075_v60  ;;  %v6433_v59 = vmul.f32 1.442695, %v12078_v18 }
 0x778   : > { %v9290_v61 = vpop.eup %9289  ;;  %v6572_v42 = vsub.f32 1.0, %v6548_v22  ;;  %v6455_v63 = vadd.f32 1.0, %v9288_v33 }
 0x779   : > { %v9292_v55 = vpop.eup %9291  ;;  %v6478_v9 = vmul.f32 %v6454_v23, %v6454_v23  ;;  %v6456_v36 = vadd.f32 1.0, %v9290_v61  ;;  %9297 = vpow2.f32 %v6431_v3 }
 0x77a   : > { %v6596_v34 = vmul.f32 %v6572_v42, %v11977_v14  ;;  %v6479_v48 = vmul.f32 %v6455_v63, %v6455_v63  ;;  %v6457_v56 = vadd.f32 1.0, %v9292_v55  ;;  %9299 = vpow2.f32 %v6433_v59 }
 0x77b   : > { %v9294_v43 = vpop.eup %9293  ;;  %v6502_v30 = vadd.f32 1.0, %v6478_v9  ;;  %v6480_v32 = vmul.f32 %v6456_v36, %v6456_v36 }
 0x77c   : > { %v9296_v51 = vpop.eup %9295  ;;  %v6549_v39 = vmul.f32 2.0, %v9294_v43  ;;  %v7317_v15 = vpack.c.bf16 %v6596_v34, %v6596_v34  ;;  %v6503_v12 = vadd.f32 1.0, %v6479_v48  ;;  %v6481_v5 = vmul.f32 %v6457_v56, %v6457_v56 }
 0x77d   : > { %9301 = vrcp.f32 %v6502_v30  ;;  %v6504_v41 = vadd.f32 1.0, %v6480_v32  ;;  %v6460_v11 = vadd.f32 1.0, %v9296_v51 }
 0x77e   : > { %v6573_v26 = vsub.f32 1.0, %v6549_v39  ;;  %6719 = vst.msk [vmem:[%s11965_s10 + $0x3c] sm:$0xf] %vm6703_vm7, %v7317_v15  ;;  %9303 = vrcp.f32 %v6503_v12  ;;  %v6505_v14 = vadd.f32 1.0, %v6481_v5 }
 0x77f   : > { %9305 = vrcp.f32 %v6504_v41  ;;  %v6484_v47 = vmul.f32 %v6460_v11, %v6460_v11 }
 0x780   : > { %v6597_v19 = vmul.f32 %v6573_v26, %v11981_v58  ;;  %9307 = vrcp.f32 %v6505_v14 }
 0x781   : > { %v6508_v49 = vadd.f32 1.0, %v6484_v47 }
 0x782   : > { %v7318_v52 = vpack.c.bf16 %v6597_v19, %v6597_v19 }
 0x783   : > { %v9298_v1 = vpop.eup %9297  ;;  %9309 = vrcp.f32 %v6508_v49 }
 0x784   : > { %v9300_v38 = vpop.eup %9299  ;;  %6720 = vst.msk [vmem:[%s11965_s10 + $0x40] sm:$0xf] %vm6703_vm7, %v7318_v52  ;;  %v6458_v27 = vadd.f32 1.0, %v9298_v1 }
 0x785   : > { %v6459_v31 = vadd.f32 1.0, %v9300_v38 }
 0x786   : > { %v6482_v24 = vmul.f32 %v6458_v27, %v6458_v27 }
 0x787   : > { %v9302_v21 = vpop.eup %9301  ;;  %v6483_v0 = vmul.f32 %v6459_v31, %v6459_v31 }
 0x788   : > { %v9304_v6 = vpop.eup %9303  ;;  %v6550_v57 = vmul.f32 2.0, %v9302_v21  ;;  %v6506_v53 = vadd.f32 1.0, %v6482_v24 }
 0x789   : > { %v9306_v46 = vpop.eup %9305  ;;  %v6551_v13 = vmul.f32 2.0, %v9304_v6  ;;  %v6507_v40 = vadd.f32 1.0, %v6483_v0 }
 0x78a   : > { %v9308_v58 = vpop.eup %9307  ;;  %v6574_v4 = vsub.f32 1.0, %v6550_v57  ;;  %v6552_v54 = vmul.f32 2.0, %v9306_v46  ;;  %9311 = vrcp.f32 %v6506_v53 }
 0x78b   : > { %v6575_v16 = vsub.f32 1.0, %v6551_v13  ;;  %v6553_v17 = vmul.f32 2.0, %v9308_v58  ;;  %9313 = vrcp.f32 %v6507_v40 }
 0x78c   : > { %v6598_v28 = vmul.f32 %v6574_v4, %v12025_v10  ;;  %v6576_v35 = vsub.f32 1.0, %v6552_v54 }
 0x78d   : > { %v9310_v8 = vpop.eup %9309  ;;  %v6599_v20 = vmul.f32 %v6575_v16, %v12030_v50  ;;  %v6577_v44 = vsub.f32 1.0, %v6553_v17 }
 0x78e   : > { %v7319_v37 = vpack.c.bf16 %v6598_v28, %v6598_v28  ;;  %v6600_v2 = vmul.f32 %v6576_v35, %v12033_v7  ;;  %v6556_v62 = vmul.f32 2.0, %v9310_v8 }
 0x78f   : > { %v7320_v45 = vpack.c.bf16 %v6599_v20, %v6599_v20  ;;  %v6601_v22 = vmul.f32 %v6577_v44, %v12039_v29 }
 0x790   : > { %6721 = vst.msk [vmem:[%s11965_s10 + $0x44] sm:$0xf] %vm6703_vm7, %v7319_v37  ;;  %v7321_v33 = vpack.c.bf16 %v6600_v2, %v6600_v2  ;;  %v6580_v23 = vsub.f32 1.0, %v6556_v62 }
 0x791   : > { %6722 = vst.msk [vmem:[%s11965_s10 + $0x48] sm:$0xf] %vm6703_vm7, %v7320_v45  ;;  %v7322_v10 = vpack.c.bf16 %v6601_v22, %v6601_v22 }
 0x792   : > { %6723 = vst.msk [vmem:[%s11965_s10 + $0x4c] sm:$0xf] %vm6703_vm7, %v7321_v33  ;;  %v6604_v50 = vmul.f32 %v6580_v23, %v12052_v25 }
 0x793   : > { %6724 = vst.msk [vmem:[%s11965_s10 + $0x50] sm:$0xf] %vm6703_vm7, %v7322_v10 }
 0x794   : > { %v9312_v7 = vpop.eup %9311  ;;  %v6606_v3 = vsel %vm6605_vm8, %v6604_v50, 0.0 }
 0x795   : > { %v9314_v29 = vpop.eup %9313  ;;  %v7325_v59 = vpack.c.bf16 %v6606_v3, %v6606_v3  ;;  %v6554_v61 = vmul.f32 2.0, %v9312_v7 }
 0x796   : > { %v6555_v42 = vmul.f32 2.0, %v9314_v29 }
 0x797   : > { %6727 = vst.msk [vmem:[%s11965_s10 + $0x5c] sm:$0xf] %vm6703_vm7, %v7325_v59  ;;  %v6578_v63 = vsub.f32 1.0, %v6554_v61 }
 0x798   : > { %v6579_v55 = vsub.f32 1.0, %v6555_v42 }
 0x799   : > { %v6602_v9 = vmul.f32 %v6578_v63, %v12075_v60 }
 0x79a   : > { %v6603_v36 = vmul.f32 %v6579_v55, %v12078_v18 }
 0x79b   : > { %v7323_v34 = vpack.c.bf16 %v6602_v9, %v6602_v9 }
 0x79c   : > { %v7324_v48 = vpack.c.bf16 %v6603_v36, %v6603_v36 }
 0x79d   : > { %6725 = vst.msk [vmem:[%s11965_s10 + $0x54] sm:$0xf] %vm6703_vm7, %v7323_v34 }
 0x79e   : > { %6726 = vst.msk [vmem:[%s11965_s10 + $0x58] sm:$0xf] %vm6703_vm7, %v7324_v48 }
 0x79f PF: > { %s12251_s11 = sld [smem:[#allocation14_spill]]  ;;  %p17_p1 = scmp.ge.s32.totalorder %s9555_s28, 4  }
 0x7a0   : > { %s12252_s24 = smov %s9485_s25  ;;  %s12254_s26 = smov %s9555_s28 }
 0x7a1   :  { %19 = sbr.rel (!%p17_p1) target bundleno = 6 (0x6), region = 152 }
 0x7a5   : > { %s12253_s25 = smov %s12251_s11 }
 0x7a8   :  { %6750 = vsyncpa [#allocation4], 1 }
 0x7a9   :  { %6752 = vsyncpa [#allocation4 + $0x1], 1 }
 0x7aa   :  { %6753 = vsyncpa [#allocation6], 1 }
 0x7ab   :  { %6754 = vsyncpa [#allocation9], 1 }

// kernel: deep_qmp_forward.3
= control target key start
LH: loop header
LB: loop body
LE: loop exit
PB: predicated region body
PF: predicated region fallthrough
CT: control target
= control target key end

     0   :  { %s11152_s0 = inlined_call_operand.vmem [shape: bf16[8,3072], index: 0, kind: input, shape index: {}]   ;;  %s11153_s1 = inlined_call_operand.vmem [shape: bf16[3072,128], index: 1, kind: input, shape index: {}]   ;;  %s11154_s2 = inlined_call_operand.hbm [shape: bf16[128,128], index: 2, kind: input, shape index: {}]   ;;  %s11155_s3 = inlined_call_operand.hbm [shape: bf16[128,128], index: 3, kind: input, shape index: {}]   ;;  %s11156_s4 = inlined_call_operand.hbm [shape: bf16[128,256], index: 4, kind: input, shape index: {}]   ;;  %s11157_s5 = inlined_call_operand.hbm [shape: f32[1,640], index: 5, kind: input, shape index: {}]   ;;  %s11158_s6 = inlined_call_operand.hbm [shape: bf16[2,256,4096], index: 6, kind: input, shape index: {}]   ;;  %s11159_s7 = inlined_call_operand.hbm [shape: f32[1,8192], index: 7, kind: input, shape index: {}]   ;;  %s11160_s8 = inlined_call_operand.vmem [shape: f32[8,8192], index: 8, kind: output, shape index: {}]  }
   0x1   :  { %11170 = sst [smem:[#allocation16_spill]] %s11154_s2 }
   0x2   :  { %11171 = sst [smem:[#allocation17_spill]] %s11155_s3 }
   0x3   :  { %11172 = sst [smem:[#allocation18_spill]] %s11158_s6 }
   0x4   :  { %13 = vsyncpa [#allocation3], 0 }
   0x5   :  { %14 = vsyncpa [#allocation5], 0 }
   0x6   :  { %15 = vsyncpa [#allocation8], 0  ;;  %s9298_s27 = smov 0   ;;  %s9300_s28 = smov 0  }
   0x7   :  { %s9302_s29 = smov 0   ;;  %s9304_s30 = smov 0  }
   0x8 LB: > { %s9317_s9 = sadd.s32 4294967295, %s9237_s30   ;;  %p167_p0 = scmp.ne.s32.totalorder %s9229_s28, %s9225_s27  ;;  %s9237_s30 = sphi %s9304_s30, %s11199_s30   ;;  %s9233_s29 = sphi %s9302_s29, %s11198_s29   ;;  %s9229_s28 = sphi %s9300_s28, %s11197_s28   ;;  %s9225_s27 = sphi %s9298_s27, %s11196_s27  }
   0x9   : > { %p11161_p1 = scmp.eq.s32.totalorder %s9317_s9, 0  ;;  %p7377_p2 = scmp.ge.s32.totalorder %s9237_s30, 1 }
   0xa   : > { %p230_p3 = scmp.lt.s32.totalorder %s9237_s30, 3  ;;  %s9239_s12 = smov [#allocation2]  }
   0xb   : > { %p9325_p4 = por %p11161_p1, %p167_p0  ;;  %s248_s13 = sshll.u32 %s9239_s12, 4  ;;  %s249_s13 = int_to_ptr.vmem [resolvable:$true] %s248_s13 }
   0xc   : > { %p9329_p5 = pnand %p7377_p2, %p230_p3  ;;  %s9240_s15 = smov [#allocation4]  }
   0xd   : > { %s11173_s10 = scalar_select %p9325_p4, 1, 0 }
   0xe   : > { %s11174_s11 = scalar_select %p9329_p5, 1, 0 }
   0xf   : > { %p8542_p6 = pneg %p9329_p5  ;;  %s261_s16 = sshll.u32 %s9240_s15, 4  ;;  %s9341_s16 = int_to_ptr.vmem [resolvable:$true] %s261_s16 }
  0x10   : > { %s11176_s2 = sld [smem:[#allocation16_spill]] }
  0x11   : > { %p9337_p7 = pnand %p8542_p6, %p11161_p1 }
  0x13   : > { %s11175_s14 = scalar_select %p9337_p7, 1, 0 }
  0x14   : > { %p9351_p9 = pneg %p9337_p7 }
  0x16   : > { %s9019_s19 = scalar_lea.hbm %s11176_s2, 1024 }
  0x17   : > { %p9020_p8 = scmp.ne.s32.totalorder %s11176_s2, %s9019_s19  ;;  %p9026_p12 = scmp.lt.u32.totalorder %s9019_s19, %s11176_s2 }
  0x19   : > { %p9022_p10 = pnand %p9351_p9, %p9020_p8 }
  0x1b   : > { %p9023_p11 = pneg %p9022_p10 }
  0x1d   : > { %p9028_p13 = pnand %p9026_p12, %p9023_p11 }
  0x1f   : > { %9031 = shalt.err (!%p9028_p13)
}
  0x20   : > { %s9032_s25 = scalar_lea.vmem %s249_s13, 1024  ;;  %p9040_p6 = scmp.lt.s32.totalorder %s249_s13, %s249_s13 }
  0x21   : > { %p9033_p0 = scmp.ne.s32.totalorder %s249_s13, %s9032_s25  ;;  %p9041_p1 = scmp.lt.s32.totalorder %s9032_s25, %s9032_s25 }
  0x23   : > { %p9035_p2 = pnand %p9033_p0, %p9351_p9  ;;  %p9042_p4 = por %p9041_p1, %p9040_p6 }
  0x25   : > { %p9036_p3 = pneg %p9035_p2 }
  0x27   : > { %p9043_p5 = pnand %p9042_p4, %p9036_p3 }
  0x29   : > { %9046 = shalt.err (!%p9043_p5)
}
  0x2a   : > { %s9241_s26 = smov 64   ;;  %s9242_s27 = smov 4  }
  0x2b   : > { %8545 = dma.hbm_to_vmem [thread:$0]  (!%p9337_p7), %s11176_s2, 1024, %s249_s13, [#allocation3], %s9241_s26, %s9241_s26, %s9242_s27  }
  0x2c   : > { %s11178_s3 = sld [smem:[#allocation17_spill]] }
  0x32   : > { %s9047_s19 = scalar_lea.hbm %s11178_s3, 1024 }
  0x33   : > { %p9048_p8 = scmp.ne.s32.totalorder %s11178_s3, %s9047_s19  ;;  %p9054_p5 = scmp.lt.u32.totalorder %s9047_s19, %s11178_s3 }
  0x35   : > { %p9050_p1 = pnand %p9048_p8, %p9351_p9 }
  0x37   : > { %p9051_p4 = pneg %p9050_p1 }
  0x39   : > { %p9056_p10 = pnand %p9054_p5, %p9051_p4 }
  0x3b   : > { %9059 = shalt.err (!%p9056_p10)
}
  0x3c   : > { %s9060_s13 = scalar_lea.vmem %s9341_s16, 1024  ;;  %p9068_p0 = scmp.lt.s32.totalorder %s9341_s16, %s9341_s16 }
  0x3d   : > { %p9061_p11 = scmp.ne.s32.totalorder %s9341_s16, %s9060_s13  ;;  %p9069_p2 = scmp.lt.s32.totalorder %s9060_s13, %s9060_s13 }
  0x3f   : > { %p9063_p12 = pnand %p9061_p11, %p9351_p9  ;;  %p9070_p3 = por %p9069_p2, %p9068_p0 }
  0x41   : > { %p9064_p13 = pneg %p9063_p12 }
  0x43   : > { %p9071_p6 = pnand %p9070_p3, %p9064_p13 }
  0x45   : > { %9074 = shalt.err (!%p9071_p6)
}
  0x46   : > { %8548 = dma.hbm_to_vmem [thread:$0]  (!%p9337_p7), %s11178_s3, 1024, %s9341_s16, [#allocation5], %s9241_s26, %s9241_s26, %s9242_s27  }
  0x47   : > { %s9391_s15 = sadd.s32 1, %s9237_s30   ;;  %s154_s17 = sadd.s32 1, %s9233_s29 }
  0x48   : > { %s151_s18 = ssub.s32 %s9237_s30, %s9391_s15  ;;  %p161_p8 = scmp.ne.s32.totalorder %s9233_s29, %s9229_s28 }
  0x49   : > { %p152_p1 = scmp.eq.s32.totalorder %s151_s18, 0  ;;  %p162_p4 = scmp.eq.s32.totalorder %s9237_s30, 0 }
  0x4a   : > { %p8566_p5 = scmp.lt.s32.totalorder %s9237_s30, 2  ;;  %s299_s20 = sand.u32 1, %s9237_s30  }
  0x4b   : > { %s9401_s19 = scalar_select %p152_p1, %s9233_s29, %s154_s17  }
  0x4c   : > { %p163_p10 = por %p162_p4, %p161_p8  ;;  %s11166_s21 = sand.u32 1, %s9233_s29  }
  0x4d   : > { %11179 = sst [smem:[#allocation15_spill]] %s9401_s19  ;;  %s7383_s23 = sshll.u32 %s11166_s21, 12 }
  0x4e   : > { %s8198_s24 = sshll.u32 %s9237_s30, 16  ;;  %s11180_s6 = sld [smem:[#allocation18_spill]] }
  0x4f   : > { %s303_s26 = scalar_lea.vmem [#allocation9], %s7383_s23  ;;  %p9413_p11 = pnand %p8566_p5, %p163_p10 }
  0x50   : > { %s310_s27 = sshll.u32 %s303_s26, 4  ;;  %s9419_s17 = scalar_lea.sflag [#allocation3], %s299_s20  ;;  %s9417_s27 = int_to_ptr.vmem [resolvable:$true] %s310_s27 }
  0x51   : > { %s11181_s12 = scalar_select %p9413_p11, 1, 0 }
  0x52   : > { %p11167_p13 = pneg %p9413_p11 }
  0x54   : > { %s9411_s16 = scalar_lea.hbm %s11180_s6, %s8198_s24  ;;  %s9080_s13 = scalar_lea.hbm %s11180_s6, 131072 }
  0x55   : > { %s9075_s18 = scalar_lea.hbm %s9411_s16, 65536  ;;  %p9081_p3 = scmp.lt.u32.totalorder %s9411_s16, %s11180_s6 }
  0x56   : > { %p9076_p12 = scmp.ne.s32.totalorder %s9411_s16, %s9075_s18  ;;  %p9082_p6 = scmp.lt.u32.totalorder %s9080_s13, %s9075_s18 }
  0x57   : > { %p9084_p1 = scmp.lt.u32.totalorder %s9075_s18, %s9411_s16 }
  0x58   : > { %p9078_p0 = pnand %p11167_p13, %p9076_p12  ;;  %p9083_p8 = por %p9082_p6, %p9081_p3 }
  0x5a   : > { %p9079_p2 = pneg %p9078_p0  ;;  %p9085_p4 = por %p9084_p1, %p9083_p8 }
  0x5c   : > { %p9086_p5 = pnand %p9085_p4, %p9079_p2 }
  0x5e   : > { %9089 = shalt.err (!%p9086_p5)
}
  0x5f   : > { %s9090_s20 = scalar_lea.vmem %s9417_s27, 65536  ;;  %s9243_s23 = smov [#allocation9]  }
  0x60   : > { %p9091_p10 = scmp.ne.s32.totalorder %s9417_s27, %s9090_s20  ;;  %s9095_s24 = sshll.u32 %s9243_s23, 4  ;;  %s9096_s24 = int_to_ptr.vmem [resolvable:$false] %s9095_s24 }
  0x61   : > { %s9097_s25 = scalar_lea.vmem %s9096_s24, 131072  ;;  %p9098_p7 = scmp.lt.s32.totalorder %s9417_s27, %s9096_s24 }
  0x62   : > { %p9093_p12 = pnand %p9091_p10, %p11167_p13  ;;  %p9099_p3 = scmp.lt.s32.totalorder %s9097_s25, %s9090_s20 }
  0x64   : > { %p9094_p0 = pneg %p9093_p12  ;;  %p9100_p6 = por %p9099_p3, %p9098_p7 }
  0x66   : > { %p9101_p8 = pnand %p9100_p6, %p9094_p0 }
  0x68   : > { %9104 = shalt.err (!%p9101_p8)
}
  0x69   : > { %s9244_s18 = smov 2048   ;;  %s9245_s13 = smov 128  }
  0x6a   : > { %8558 = dma.hbm_to_vmem [thread:$0]  (!%p9413_p11), %s9411_s16, 65536, %s9417_s27, %s9419_s17, %s9244_s18, %s9244_s18, %s9245_s13  }
  0x6b   : > { %s9246_s26 = smov [#allocation6]   ;;  %s9105_s24 = scalar_lea.hbm %s11156_s4, 2048 }
  0x6c   : > { %s274_s21 = sshll.u32 %s9246_s26, 4  ;;  %p9106_p7 = scmp.ne.s32.totalorder %s11156_s4, %s9105_s24  ;;  %s275_s21 = int_to_ptr.vmem [resolvable:$true] %s274_s21 }
  0x6d   : > { %p9112_p4 = scmp.lt.u32.totalorder %s9105_s24, %s11156_s4 }
  0x6e   : > { %p9108_p2 = pnand %p9106_p7, %p9351_p9 }
  0x70   : > { %p9109_p1 = pneg %p9108_p2 }
  0x72   : > { %p9114_p5 = pnand %p9112_p4, %p9109_p1 }
  0x74   : > { %9117 = shalt.err (!%p9114_p5)
}
  0x75   : > { %s9118_s16 = scalar_lea.vmem %s275_s21, 2048  ;;  %p9126_p3 = scmp.lt.s32.totalorder %s275_s21, %s275_s21 }
  0x76   : > { %p9119_p10 = scmp.ne.s32.totalorder %s275_s21, %s9118_s16  ;;  %p9127_p6 = scmp.lt.s32.totalorder %s9118_s16, %s9118_s16 }
  0x78   : > { %p9121_p12 = pnand %p9119_p10, %p9351_p9  ;;  %p9128_p8 = por %p9127_p6, %p9126_p3 }
  0x7a   : > { %p9122_p0 = pneg %p9121_p12 }
  0x7c   : > { %p9129_p13 = pnand %p9128_p8, %p9122_p0 }
  0x7e   : > { %9132 = shalt.err (!%p9129_p13)
}
  0x7f   : > { %s9247_s2 = smov 8   ;;  %p11182_p7 = scmp.ne.s32.totalorder %s11175_s14, 0 }
  0x80   : > { %s9248_s3 = smov [#allocation7]   ;;  %s11183_s26 = sand.u32 1, %s9233_s29  }
  0x81   : > { %8551 = dma.hbm_to_vmem [thread:$0]  (!%p11182_p7), %s11156_s4, 2048, %s275_s21, [#allocation5], %s9245_s13, %s9245_s13, %s9247_s2  }
  0x82   : > { %s288_s6 = sshll.u32 %s9248_s3, 4  ;;  %s7386_s23 = sshll.u32 %s11183_s26, 5  ;;  %s289_s6 = int_to_ptr.vmem [resolvable:$true] %s288_s6 }
  0x83   : > { %s9133_s25 = scalar_lea.hbm %s11157_s5, 80 }
  0x84   : > { %p9134_p13 = scmp.ne.s32.totalorder %s11157_s5, %s9133_s25  ;;  %p9140_p4 = scmp.lt.u32.totalorder %s9133_s25, %s11157_s5 }
  0x86   : > { %p9136_p2 = pnand %p9134_p13, %p9351_p9 }
  0x88   : > { %p9137_p1 = pneg %p9136_p2 }
  0x8a   : > { %p9142_p5 = pnand %p9140_p4, %p9137_p1 }
  0x8c   : > { %9145 = shalt.err (!%p9142_p5)
}
  0x8d   : > { %s9146_s21 = scalar_lea.vmem %s289_s6, 80  ;;  %s9153_s13 = scalar_lea.vmem %s289_s6, 96 }
  0x8e   : > { %p9147_p10 = scmp.ne.s32.totalorder %s289_s6, %s9146_s21  ;;  %p9154_p3 = scmp.lt.s32.totalorder %s289_s6, %s289_s6 }
  0x8f   : > { %p9155_p6 = scmp.lt.s32.totalorder %s9153_s13, %s9146_s21 }
  0x90   : > { %p9149_p12 = pnand %p9147_p10, %p9351_p9 }
  0x91   : > { %p9156_p8 = por %p9155_p6, %p9154_p3 }
  0x92   : > { %p9150_p0 = pneg %p9149_p12 }
  0x94   : > { %p9157_p11 = pnand %p9156_p8, %p9150_p0 }
  0x96   : > { %9160 = shalt.err (!%p9157_p11)
}
  0x97   : > { %8554 = dma.hbm_to_vmem [thread:$0]  (!%p11182_p7), %s11157_s5, 80, %s289_s6, [#allocation8]  }
  0x98   : > { %s8199_s3 = sshll.u32 %s9237_s30, 9  ;;  %s324_s26 = scalar_lea.vmem [#allocation10], %s7386_s23 }
  0x99   : > { %s332_s24 = sshll.u32 %s324_s26, 4  ;;  %s330_s25 = scalar_lea.hbm %s11159_s7, %s8199_s3  ;;  %s333_s24 = int_to_ptr.vmem [resolvable:$true] %s332_s24 }
  0x9a   : > { %s9161_s16 = scalar_lea.hbm %s330_s25, 512  ;;  %p11184_p13 = scmp.ne.s32.totalorder %s11181_s12, 0 }
  0x9b   : > { %p9162_p9 = scmp.ne.s32.totalorder %s330_s25, %s9161_s16  ;;  %s9166_s18 = scalar_lea.hbm %s11159_s7, 1024 }
  0x9c   : > { %p11185_p11 = pneg %p11184_p13  ;;  %p9167_p7 = scmp.lt.u32.totalorder %s330_s25, %s11159_s7 }
  0x9d   : > { %p9168_p4 = scmp.lt.u32.totalorder %s9166_s18, %s9161_s16  ;;  %p9170_p10 = scmp.lt.u32.totalorder %s9161_s16, %s330_s25 }
  0x9e   : > { %p9164_p2 = pnand %p9162_p9, %p11185_p11 }
  0x9f   : > { %p9169_p5 = por %p9168_p4, %p9167_p7 }
  0xa0   : > { %p9165_p1 = pneg %p9164_p2 }
  0xa1   : > { %p9171_p12 = por %p9170_p10, %p9169_p5 }
  0xa3   : > { %p9172_p0 = pnand %p9171_p12, %p9165_p1 }
  0xa5   : > { %9175 = shalt.err (!%p9172_p0)
}
  0xa6   : > { %s9176_s30 = scalar_lea.vmem %s333_s24, 512  ;;  %p11186_p6 = pmov %p11185_p11 }
  0xa7   : > { %p9177_p3 = scmp.ne.s32.totalorder %s333_s24, %s9176_s30  ;;  %s9249_s23 = smov [#allocation10]  }
  0xa8   : > { %s9181_s13 = sshll.u32 %s9249_s23, 4  ;;  %s9182_s13 = int_to_ptr.vmem [resolvable:$false] %s9181_s13 }
  0xa9   : > { %p9179_p8 = pnand %p9177_p3, %p11186_p6  ;;  %s9183_s19 = scalar_lea.vmem %s9182_s13, 1024 }
  0xaa   : > { %p9184_p11 = scmp.lt.s32.totalorder %s333_s24, %s9182_s13  ;;  %p9185_p2 = scmp.lt.s32.totalorder %s9183_s19, %s9176_s30 }
  0xab   : > { %p9180_p9 = pneg %p9179_p8 }
  0xac   : > { %p9186_p4 = por %p9185_p2, %p9184_p11 }
  0xae   : > { %p9187_p7 = pnand %p9186_p4, %p9180_p9 }
  0xb0   : > { %9190 = shalt.err (!%p9187_p7)
}
  0xb1   : > { %8561 = dma.hbm_to_vmem [thread:$0]  (!%p11184_p13), %s330_s25, 512, %s333_s24, %s9419_s17  }
  0xb2   : > { %p11187_p1 = scmp.ne.s32.totalorder %s11174_s11, 0 }
  0xb3   : > { %p11188_p5 = scmp.eq.s32.totalorder (!%p11187_p1), %s9317_s9, 0 }
  0xb4   : > { %341 = sbr.rel (%p11187_p1) target bundleno = 2161 (0x871), region = 52 }
  0xbb   : > { %9208 = dma.done.wait (%p11188_p5), [#allocation3], 1024   ;;  %p11189_p10 = pmov %p11188_p5 }
  0xbc   : > { %p11190_p12 = pmov %p11188_p5 }
  0xbd   : > { %9210 = vsyncadd (%p11189_p10), [#allocation3], 4294966272 }
  0xbe   : > { %9212 = dma.done.wait (%p11190_p12), [#allocation5], 3072   ;;  %p11191_p0 = pmov %p11188_p5 }
  0xc0   : > { %9214 = vsyncadd (%p11191_p0), [#allocation5], 4294964224  ;;  %p11192_p3 = pmov %p11191_p0 }
  0xc1   : > { %p11193_p13 = pmov %p11191_p0 }
  0xc2   : > { %9216 = dma.done.wait (%p11192_p3), [#allocation8], 80  }
  0xc3   : > { %9218 = vsyncadd (%p11193_p13), [#allocation8], 4294967216  ;;  %s359_s11 = sand.u32 1, %s9317_s9   ;;  %s361_s12 = sand.u32 1, %s9229_s28  }
  0xc4   : > { %s7394_s17 = sshll.u32 %s361_s12, 12  ;;  %s360_s2 = scalar_lea.sflag [#allocation3], %s359_s11 }
  0xc5   : > { %s9522_s3 = scalar_lea.vmem [#allocation9], %s7394_s17  ;;  %p11194_p6 = scmp.ne.s32.totalorder %s11173_s10, 0 }
  0xc7   : > { %9220 = dma.done.wait (%p11194_p6), %s360_s2, 66048  }
  0xc8   : > { %9222 = vsyncadd (%p11194_p6), %s360_s2, 4294901248  ;;  %s7396_s26 = sshll.u32 %s9317_s9, 5  ;;  %v8615_v0 = vld [vmem:[%s11153_s1 + $0x40] sm:$0xff]   ;;  %v8619_v4 = vld [vmem:[%s11153_s1 + $0x48] sm:$0xff]   ;;  %vm9251_vm0 = vmmov 0   ;;  %s7395_s17 = sshll.u32 %s361_s12, 5 }
  0xc9   : > { %p412_p8 = scmp.lt.s32.totalorder %s7396_s26, 63  ;;  %v8616_v1 = vld [vmem:[%s11153_s1 + $0xc0] sm:$0xff]   ;;  %8200 = vmatprep.subr.bf16.mxu0 %v8615_v0  ;;  %v8620_v5 = vld [vmem:[%s11153_s1 + $0xc8] sm:$0xff]   ;;  %v8623_v8 = vld [vmem:[%s11153_s1 + $0x50] sm:$0xff]   ;;  %s10486_s12 = scalar_lea.vmem [#allocation10], %s7395_s17 }
  0xca   : > { %v8617_v2 = vld [vmem:[%s11153_s1] sm:$0xff]   ;;  %8222 = vmatprep.subr.bf16.mxu1 %v8616_v1  ;;  %v8621_v6 = vld [vmem:[%s11153_s1 + $0x8] sm:$0xff]   ;;  %v8624_v9 = vld [vmem:[%s11153_s1 + $0xd0] sm:$0xff]  }
  0xcb   : > { %s11201_s26 = smov (!%p412_p8, %s7396_s26), 63  ;;  %v8618_v3 = vld [vmem:[%s11153_s1 + $0x80] sm:$0xff]   ;;  %8201 = vmatpush3.bf16.msra.mxu0 %v8617_v2  ;;  %v8622_v7 = vld [vmem:[%s11153_s1 + $0x88] sm:$0xff]   ;;  %v8625_v10 = vld [vmem:[%s11153_s1 + $0x10] sm:$0xff]  }
  0xcc   : > { %s7397_s24 = sshll.u32 %s11201_s26, 3  ;;  %8223 = vmatpush3.bf16.msra.mxu1 %v8618_v3  ;;  %8202 = vmatprep.subr.bf16.mxu0 %v8619_v4  ;;  %v8626_v11 = vld [vmem:[%s11153_s1 + $0x90] sm:$0xff]   ;;  %v8627_v12 = vld [vmem:[%s11153_s1 + $0x58] sm:$0xff]   ;;  %v8631_v16 = vld [vmem:[%s11153_s1 + $0x60] sm:$0xff]  }
  0xcd   : > { %s9532_s25 = scalar_lea.vmem %s11160_s8, %s7397_s24  ;;  %8224 = vmatprep.subr.bf16.mxu1 %v8620_v5  ;;  %v8628_v13 = vld [vmem:[%s11153_s1 + $0xd8] sm:$0xff]   ;;  %v8632_v17 = vld [vmem:[%s11153_s1 + $0xe0] sm:$0xff]   ;;  %v8635_v20 = vld [vmem:[%s11153_s1 + $0x68] sm:$0xff]  }
  0xce   : > { %v8629_v14 = vld [vmem:[%s11153_s1 + $0x18] sm:$0xff]   ;;  %v8633_v18 = vld [vmem:[%s11153_s1 + $0x20] sm:$0xff]   ;;  %v8636_v21 = vld [vmem:[%s11153_s1 + $0xe8] sm:$0xff]  }
  0xcf   : > { %8203 = vmatpush3.bf16.msra.mxu0 %v8621_v6  ;;  %v8630_v15 = vld [vmem:[%s11153_s1 + $0x98] sm:$0xff]   ;;  %v8634_v19 = vld [vmem:[%s11153_s1 + $0xa0] sm:$0xff]   ;;  %v8637_v22 = vld [vmem:[%s11153_s1 + $0x28] sm:$0xff]  }
  0xd0   : > { %8225 = vmatpush3.bf16.msra.mxu1 %v8622_v7  ;;  %8204 = vmatprep.subr.bf16.mxu0 %v8623_v8  ;;  %v8638_v23 = vld [vmem:[%s11153_s1 + $0xa8] sm:$0xff]   ;;  %v8639_v24 = vld [vmem:[%s11153_s1 + $0x70] sm:$0xff]   ;;  %v8643_v28 = vld [vmem:[%s11153_s1 + $0x78] sm:$0xff]  }
  0xd1   : > { %8226 = vmatprep.subr.bf16.mxu1 %v8624_v9  ;;  %v8640_v25 = vld [vmem:[%s11153_s1 + $0xf0] sm:$0xff]   ;;  %v8644_v29 = vld [vmem:[%s11153_s1 + $0xf8] sm:$0xff]   ;;  %v418_v32 = vld [vmem:[%s11152_s0] sm:$0xff] }
  0xd2   : > { %v8641_v26 = vld [vmem:[%s11153_s1 + $0x30] sm:$0xff]   ;;  %v8645_v30 = vld [vmem:[%s11153_s1 + $0x38] sm:$0xff]   ;;  %v419_v33 = vld [vmem:[%s11152_s0 + $0x8] sm:$0xff]  ;;  %v7399_v34 = vcombine.low %v418_v32, %v418_v32  ;;  %v7400_v35 = vcombine.high %v418_v32, %v418_v32 }
  0xd3   : > { %8205 = vmatpush3.bf16.msra.mxu0 %v8625_v10  ;;  %v8642_v27 = vld [vmem:[%s11153_s1 + $0xb0] sm:$0xff]   ;;  %v8646_v31 = vld [vmem:[%s11153_s1 + $0xb8] sm:$0xff]   ;;  %v7401_v36 = vcombine.low %v419_v33, %v419_v33  ;;  %v7402_v37 = vcombine.high %v419_v33, %v419_v33  ;;  %v8651_v38 = vld [vmem:[%s11153_s1 + $0x140] sm:$0xff]  }
  0xd4   : > { %8227 = vmatpush3.bf16.msra.mxu1 %v8626_v11  ;;  %8206 = vmatprep.subr.bf16.mxu0 %v8627_v12  ;;  %v8652_v39 = vld [vmem:[%s11153_s1 + $0x1c0] sm:$0xff]   ;;  %v8655_v42 = vld [vmem:[%s11153_s1 + $0x148] sm:$0xff]   ;;  %v8659_v46 = vld [vmem:[%s11153_s1 + $0x150] sm:$0xff]  }
  0xd5   : > { %8228 = vmatprep.subr.bf16.mxu1 %v8628_v13  ;;  %2089 = vmatprep.mubr.bf16.mxu0 %v7400_v35  ;;  %v8653_v40 = vld [vmem:[%s11153_s1 + $0x100] sm:$0xff]   ;;  %v8656_v43 = vld [vmem:[%s11153_s1 + $0x1c8] sm:$0xff]   ;;  %v8660_v47 = vld [vmem:[%s11153_s1 + $0x1d0] sm:$0xff]  }
  0xd6   : > { %2129 = vmatprep.mubr.bf16.mxu1 %v7402_v37  ;;  %v8654_v41 = vld [vmem:[%s11153_s1 + $0x180] sm:$0xff]   ;;  %v8657_v44 = vld [vmem:[%s11153_s1 + $0x108] sm:$0xff]   ;;  %v8661_v48 = vld [vmem:[%s11153_s1 + $0x110] sm:$0xff]  }
  0xd7   : > { %8207 = vmatpush3.bf16.msra.mxu0 %v8629_v14  ;;  %v8658_v45 = vld [vmem:[%s11153_s1 + $0x188] sm:$0xff]   ;;  %v8662_v49 = vld [vmem:[%s11153_s1 + $0x190] sm:$0xff]   ;;  %v8663_v50 = vld [vmem:[%s11153_s1 + $0x158] sm:$0xff]  }
  0xd8   : > { %8229 = vmatpush3.bf16.msra.mxu1 %v8630_v15  ;;  %8208 = vmatprep.subr.bf16.mxu0 %v8631_v16  ;;  %v8664_v51 = vld [vmem:[%s11153_s1 + $0x1d8] sm:$0xff]   ;;  %v8667_v54 = vld [vmem:[%s11153_s1 + $0x160] sm:$0xff]   ;;  %v8671_v58 = vld [vmem:[%s11153_s1 + $0x168] sm:$0xff]  }
  0xd9   : > { %8230 = vmatprep.subr.bf16.mxu1 %v8632_v17  ;;  %v8665_v52 = vld [vmem:[%s11153_s1 + $0x118] sm:$0xff]   ;;  %v8668_v55 = vld [vmem:[%s11153_s1 + $0x1e0] sm:$0xff]   ;;  %v8672_v59 = vld [vmem:[%s11153_s1 + $0x1e8] sm:$0xff]  }
  0xda   : > { %v8666_v53 = vld [vmem:[%s11153_s1 + $0x198] sm:$0xff]   ;;  %v8669_v56 = vld [vmem:[%s11153_s1 + $0x120] sm:$0xff]   ;;  %v8673_v60 = vld [vmem:[%s11153_s1 + $0x128] sm:$0xff]  }
  0xdb   : > { %8209 = vmatpush3.bf16.msra.mxu0 %v8633_v18  ;;  %v8670_v57 = vld [vmem:[%s11153_s1 + $0x1a0] sm:$0xff]   ;;  %v8674_v61 = vld [vmem:[%s11153_s1 + $0x1a8] sm:$0xff]   ;;  %v8675_v62 = vld [vmem:[%s11153_s1 + $0x170] sm:$0xff]  }
  0xdc   : > { %8231 = vmatpush3.bf16.msra.mxu1 %v8634_v19  ;;  %8210 = vmatprep.subr.bf16.mxu0 %v8635_v20  ;;  %v8676_v63 = vld [vmem:[%s11153_s1 + $0x1f0] sm:$0xff]   ;;  %v8679_v2 = vld [vmem:[%s11153_s1 + $0x178] sm:$0xff]   ;;  %v8687_v12 = vld [vmem:[%s11153_s1 + $0x240] sm:$0xff]  }
  0xdd   : > { %8232 = vmatprep.subr.bf16.mxu1 %v8636_v21  ;;  %v8677_v0 = vld [vmem:[%s11153_s1 + $0x130] sm:$0xff]   ;;  %v8680_v3 = vld [vmem:[%s11153_s1 + $0x1f8] sm:$0xff]   ;;  %v8688_v13 = vld [vmem:[%s11153_s1 + $0x2c0] sm:$0xff]  }
  0xde   : > { %v8678_v1 = vld [vmem:[%s11153_s1 + $0x1b0] sm:$0xff]   ;;  %v8681_v4 = vld [vmem:[%s11153_s1 + $0x138] sm:$0xff]   ;;  %v8689_v14 = vld [vmem:[%s11153_s1 + $0x200] sm:$0xff]  }
  0xdf   : > { %8211 = vmatpush3.bf16.msra.mxu0 %v8637_v22  ;;  %v8682_v5 = vld [vmem:[%s11153_s1 + $0x1b8] sm:$0xff]   ;;  %v420_v6 = vld [vmem:[%s11152_s0 + $0x10] sm:$0xff]  ;;  %v8690_v15 = vld [vmem:[%s11153_s1 + $0x280] sm:$0xff]  }
  0xe0   : > { %8233 = vmatpush3.bf16.msra.mxu1 %v8638_v23  ;;  %8212 = vmatprep.subr.bf16.mxu0 %v8639_v24  ;;  %v7403_v7 = vcombine.low %v420_v6, %v420_v6  ;;  %v7404_v8 = vcombine.high %v420_v6, %v420_v6  ;;  %v421_v9 = vld [vmem:[%s11152_s0 + $0x18] sm:$0xff]  ;;  %v8691_v16 = vld [vmem:[%s11153_s1 + $0x248] sm:$0xff]   ;;  %v8695_v20 = vld [vmem:[%s11153_s1 + $0x250] sm:$0xff]  }
  0xe1   : > { %8234 = vmatprep.subr.bf16.mxu1 %v8640_v25  ;;  %v7405_v10 = vcombine.low %v421_v9, %v421_v9  ;;  %v7406_v11 = vcombine.high %v421_v9, %v421_v9  ;;  %v8692_v17 = vld [vmem:[%s11153_s1 + $0x2c8] sm:$0xff]   ;;  %v8696_v21 = vld [vmem:[%s11153_s1 + $0x2d0] sm:$0xff]   ;;  %v8699_v24 = vld [vmem:[%s11153_s1 + $0x258] sm:$0xff]  }
  0xe2   : > { %v8693_v18 = vld [vmem:[%s11153_s1 + $0x208] sm:$0xff]   ;;  %v8697_v22 = vld [vmem:[%s11153_s1 + $0x210] sm:$0xff]   ;;  %v8700_v25 = vld [vmem:[%s11153_s1 + $0x2d8] sm:$0xff]  }
  0xe3   : > { %8213 = vmatpush3.bf16.msra.mxu0 %v8641_v26  ;;  %v8694_v19 = vld [vmem:[%s11153_s1 + $0x288] sm:$0xff]   ;;  %v8698_v23 = vld [vmem:[%s11153_s1 + $0x290] sm:$0xff]   ;;  %v8701_v26 = vld [vmem:[%s11153_s1 + $0x218] sm:$0xff]  }
  0xe4   : > { %8235 = vmatpush3.bf16.msra.mxu1 %v8642_v27  ;;  %8214 = vmatprep.subr.bf16.mxu0 %v8643_v28  ;;  %v8702_v27 = vld [vmem:[%s11153_s1 + $0x298] sm:$0xff]   ;;  %v8703_v28 = vld [vmem:[%s11153_s1 + $0x260] sm:$0xff]   ;;  %v8707_v32 = vld [vmem:[%s11153_s1 + $0x268] sm:$0xff]  }
  0xe5   : > { %8236 = vmatprep.subr.bf16.mxu1 %v8644_v29  ;;  %v8704_v29 = vld [vmem:[%s11153_s1 + $0x2e0] sm:$0xff]   ;;  %v8708_v33 = vld [vmem:[%s11153_s1 + $0x2e8] sm:$0xff]   ;;  %v8712_v37 = vld [vmem:[%s11153_s1 + $0x2f0] sm:$0xff]  }
  0xe6   : > { %v8710_v35 = vld [vmem:[%s11153_s1 + $0x2a8] sm:$0xff]  }
  0xe7   : > { %8215 = vmatpush3.bf16.msra.mxu0 %v8645_v30  ;;  %v8705_v30 = vld [vmem:[%s11153_s1 + $0x220] sm:$0xff]   ;;  %v8743_v6 = vld [vmem:[%s11153_s1 + $0x368] sm:$0xff]  }
  0xe8   : > { %8237 = vmatpush3.bf16.msra.mxu1 %v8646_v31  ;;  %8244 = vmatprep.subr.bf16.mxu0 %v8651_v38  ;;  %v8706_v31 = vld [vmem:[%s11153_s1 + $0x2a0] sm:$0xff]   ;;  %v8713_v38 = vld [vmem:[%s11153_s1 + $0x230] sm:$0xff]   ;;  %v8746_v9 = vld [vmem:[%s11153_s1 + $0x3a8] sm:$0xff]  }
  0xe9   : > { %8266 = vmatprep.subr.bf16.mxu1 %v8652_v39  ;;  %v8714_v39 = vld [vmem:[%s11153_s1 + $0x2b0] sm:$0xff]  }
  0xea   : > { %2090 = vmatmul.mubr.bf16.vlgmr.msra.gmra.mrb[0].mxu0 %v7399_v34  ;;  %v8709_v34 = vld [vmem:[%s11153_s1 + $0x228] sm:$0xff]  }
  0xeb   : > { %2130 = vmatmul.mubr.bf16.vlgmr.msra.gmra.mrb[0].mxu1 %v7401_v36  ;;  %8245 = vmatpush3.bf16.msra.mxu0 %v8653_v40  ;;  %v8711_v36 = vld [vmem:[%s11153_s1 + $0x270] sm:$0xff]   ;;  %v8715_v40 = vld [vmem:[%s11153_s1 + $0x278] sm:$0xff]  }
  0xec   : > { %8267 = vmatpush3.bf16.msra.mxu1 %v8654_v41  ;;  %8246 = vmatprep.subr.bf16.mxu0 %v8655_v42  ;;  %v8716_v41 = vld [vmem:[%s11153_s1 + $0x2f8] sm:$0xff]  }
  0xed   : > { %8268 = vmatprep.subr.bf16.mxu1 %v8656_v43  ;;  %2169 = vmatprep.mubr.bf16.mxu0 %v7404_v8  ;;  %v8717_v42 = vld [vmem:[%s11153_s1 + $0x238] sm:$0xff]   ;;  %v8745_v8 = vld [vmem:[%s11153_s1 + $0x328] sm:$0xff]  }
  0xee   : > { %2209 = vmatprep.mubr.bf16.mxu1 %v7406_v11  ;;  %v8718_v43 = vld [vmem:[%s11153_s1 + $0x2b8] sm:$0xff]   ;;  %v8748_v11 = vld [vmem:[%s11153_s1 + $0x3f0] sm:$0xff]  }
  0xef   : > { %8247 = vmatpush3.bf16.msra.mxu0 %v8657_v44  ;;  %v422_v44 = vld [vmem:[%s11152_s0 + $0x20] sm:$0xff] }
  0xf0   : > { %8269 = vmatpush3.bf16.msra.mxu1 %v8658_v45  ;;  %8248 = vmatprep.subr.bf16.mxu0 %v8659_v46  ;;  %v423_v45 = vld [vmem:[%s11152_s0 + $0x28] sm:$0xff]  ;;  %v7407_v46 = vcombine.low %v422_v44, %v422_v44 }
  0xf1   : > { %8270 = vmatprep.subr.bf16.mxu1 %v8660_v47  ;;  %v7408_v47 = vcombine.high %v422_v44, %v422_v44  ;;  %v8779_v44 = vld [vmem:[%s11153_s1 + $0x468] sm:$0xff]  }
  0xf3   : > { %8249 = vmatpush3.bf16.msra.mxu0 %v8661_v48  ;;  %v7409_v48 = vcombine.low %v423_v45, %v423_v45 }
  0xf4   : > { %8271 = vmatpush3.bf16.msra.mxu1 %v8662_v49  ;;  %8250 = vmatprep.subr.bf16.mxu0 %v8663_v50  ;;  %v7410_v49 = vcombine.high %v423_v45, %v423_v45  ;;  %v8723_v50 = vld [vmem:[%s11153_s1 + $0x340] sm:$0xff]   ;;  %v8780_v45 = vld [vmem:[%s11153_s1 + $0x4e8] sm:$0xff]  }
  0xf5   : > { %8272 = vmatprep.subr.bf16.mxu1 %v8664_v51  ;;  %v8724_v51 = vld [vmem:[%s11153_s1 + $0x3c0] sm:$0xff]  }
  0xf7   : > { %8251 = vmatpush3.bf16.msra.mxu0 %v8665_v52  ;;  %v8725_v52 = vld [vmem:[%s11153_s1 + $0x300] sm:$0xff]  }
  0xf8   : > { %8273 = vmatpush3.bf16.msra.mxu1 %v8666_v53  ;;  %8252 = vmatprep.subr.bf16.mxu0 %v8667_v54  ;;  %v8726_v53 = vld [vmem:[%s11153_s1 + $0x380] sm:$0xff]   ;;  %v8727_v54 = vld [vmem:[%s11153_s1 + $0x348] sm:$0xff]  }
  0xf9   : > { %8274 = vmatprep.subr.bf16.mxu1 %v8668_v55  ;;  %v8728_v55 = vld [vmem:[%s11153_s1 + $0x3c8] sm:$0xff]  }
  0xfb   : > { %8253 = vmatpush3.bf16.msra.mxu0 %v8669_v56  ;;  %v8729_v56 = vld [vmem:[%s11153_s1 + $0x308] sm:$0xff]  }
  0xfc   : > { %8275 = vmatpush3.bf16.msra.mxu1 %v8670_v57  ;;  %8254 = vmatprep.subr.bf16.mxu0 %v8671_v58  ;;  %v8730_v57 = vld [vmem:[%s11153_s1 + $0x388] sm:$0xff]   ;;  %v8731_v58 = vld [vmem:[%s11153_s1 + $0x350] sm:$0xff]  }
  0xfd   : > { %8276 = vmatprep.subr.bf16.mxu1 %v8672_v59  ;;  %v8732_v59 = vld [vmem:[%s11153_s1 + $0x3d0] sm:$0xff]  }
  0xff   : > { %8255 = vmatpush3.bf16.msra.mxu0 %v8673_v60  ;;  %v8733_v60 = vld [vmem:[%s11153_s1 + $0x310] sm:$0xff]  }
 0x100   : > { %8277 = vmatpush3.bf16.msra.mxu1 %v8674_v61  ;;  %8256 = vmatprep.subr.bf16.mxu0 %v8675_v62  ;;  %v8734_v61 = vld [vmem:[%s11153_s1 + $0x390] sm:$0xff]   ;;  %v8735_v62 = vld [vmem:[%s11153_s1 + $0x358] sm:$0xff]  }
 0x101   : > { %8278 = vmatprep.subr.bf16.mxu1 %v8676_v63  ;;  %v8736_v63 = vld [vmem:[%s11153_s1 + $0x3d8] sm:$0xff]  }
 0x103   : > { %8257 = vmatpush3.bf16.msra.mxu0 %v8677_v0  ;;  %v8737_v0 = vld [vmem:[%s11153_s1 + $0x318] sm:$0xff]  }
 0x104   : > { %8279 = vmatpush3.bf16.msra.mxu1 %v8678_v1  ;;  %8258 = vmatprep.subr.bf16.mxu0 %v8679_v2  ;;  %v8738_v1 = vld [vmem:[%s11153_s1 + $0x398] sm:$0xff]   ;;  %v8739_v2 = vld [vmem:[%s11153_s1 + $0x360] sm:$0xff]  }
 0x105   : > { %8280 = vmatprep.subr.bf16.mxu1 %v8680_v3  ;;  %v8740_v3 = vld [vmem:[%s11153_s1 + $0x3e0] sm:$0xff]  }
 0x107   : > { %8259 = vmatpush3.bf16.msra.mxu0 %v8681_v4  ;;  %v8741_v4 = vld [vmem:[%s11153_s1 + $0x320] sm:$0xff]  }
 0x108   : > { %8281 = vmatpush3.bf16.msra.mxu1 %v8682_v5  ;;  %8288 = vmatprep.subr.bf16.mxu0 %v8687_v12  ;;  %v8742_v5 = vld [vmem:[%s11153_s1 + $0x3a0] sm:$0xff]   ;;  %v8749_v12 = vld [vmem:[%s11153_s1 + $0x330] sm:$0xff]  }
 0x109   : > { %8310 = vmatprep.subr.bf16.mxu1 %v8688_v13  ;;  %v8750_v13 = vld [vmem:[%s11153_s1 + $0x3b0] sm:$0xff]  }
 0x10a   : > { %2170 = vmatmul.mubr.bf16.vlgmr.msra.gmra.mrb[4].mxu0 %v7403_v7  ;;  %v8744_v7 = vld [vmem:[%s11153_s1 + $0x3e8] sm:$0xff]  }
 0x10b   : > { %2210 = vmatmul.mubr.bf16.vlgmr.msra.gmra.mrb[4].mxu1 %v7405_v10  ;;  %8289 = vmatpush3.bf16.msra.mxu0 %v8689_v14  ;;  %v8747_v10 = vld [vmem:[%s11153_s1 + $0x370] sm:$0xff]   ;;  %v8751_v14 = vld [vmem:[%s11153_s1 + $0x378] sm:$0xff]  }
 0x10c   : > { %8311 = vmatpush3.bf16.msra.mxu1 %v8690_v15  ;;  %8290 = vmatprep.subr.bf16.mxu0 %v8691_v16  ;;  %v8752_v15 = vld [vmem:[%s11153_s1 + $0x3f8] sm:$0xff]  }
 0x10d   : > { %8312 = vmatprep.subr.bf16.mxu1 %v8692_v17  ;;  %2249 = vmatprep.mubr.bf16.mxu0 %v7408_v47  ;;  %v8753_v16 = vld [vmem:[%s11153_s1 + $0x338] sm:$0xff]   ;;  %v8782_v47 = vld [vmem:[%s11153_s1 + $0x4a8] sm:$0xff]  }
 0x10e   : > { %2289 = vmatprep.mubr.bf16.mxu1 %v7410_v49  ;;  %v8754_v17 = vld [vmem:[%s11153_s1 + $0x3b8] sm:$0xff]   ;;  %v8784_v49 = vld [vmem:[%s11153_s1 + $0x4f0] sm:$0xff]  }
 0x10f   : > { %8291 = vmatpush3.bf16.msra.mxu0 %v8693_v18  ;;  %v424_v18 = vld [vmem:[%s11152_s0 + $0x30] sm:$0xff] }
 0x110   : > { %8313 = vmatpush3.bf16.msra.mxu1 %v8694_v19  ;;  %8292 = vmatprep.subr.bf16.mxu0 %v8695_v20  ;;  %v425_v19 = vld [vmem:[%s11152_s0 + $0x38] sm:$0xff]  ;;  %v7411_v20 = vcombine.low %v424_v18, %v424_v18 }
 0x111   : > { %8314 = vmatprep.subr.bf16.mxu1 %v8696_v21  ;;  %v7412_v21 = vcombine.high %v424_v18, %v424_v18  ;;  %v8815_v18 = vld [vmem:[%s11153_s1 + $0x568] sm:$0xff]  }
 0x113   : > { %8293 = vmatpush3.bf16.msra.mxu0 %v8697_v22  ;;  %v7413_v22 = vcombine.low %v425_v19, %v425_v19 }
 0x114   : > { %8315 = vmatpush3.bf16.msra.mxu1 %v8698_v23  ;;  %8294 = vmatprep.subr.bf16.mxu0 %v8699_v24  ;;  %v8759_v23 = vld [vmem:[%s11153_s1 + $0x440] sm:$0xff]   ;;  %v7414_v24 = vcombine.high %v425_v19, %v425_v19  ;;  %v8816_v19 = vld [vmem:[%s11153_s1 + $0x5e8] sm:$0xff]  }
 0x115   : > { %8316 = vmatprep.subr.bf16.mxu1 %v8700_v25  ;;  %v8760_v25 = vld [vmem:[%s11153_s1 + $0x4c0] sm:$0xff]  }
 0x117   : > { %8295 = vmatpush3.bf16.msra.mxu0 %v8701_v26  ;;  %v8761_v26 = vld [vmem:[%s11153_s1 + $0x400] sm:$0xff]  }
 0x118   : > { %8317 = vmatpush3.bf16.msra.mxu1 %v8702_v27  ;;  %8296 = vmatprep.subr.bf16.mxu0 %v8703_v28  ;;  %v8762_v27 = vld [vmem:[%s11153_s1 + $0x480] sm:$0xff]   ;;  %v8763_v28 = vld [vmem:[%s11153_s1 + $0x448] sm:$0xff]  }
 0x119   : > { %8318 = vmatprep.subr.bf16.mxu1 %v8704_v29  ;;  %v8764_v29 = vld [vmem:[%s11153_s1 + $0x4c8] sm:$0xff]  }
 0x11b   : > { %8297 = vmatpush3.bf16.msra.mxu0 %v8705_v30  ;;  %v8765_v30 = vld [vmem:[%s11153_s1 + $0x408] sm:$0xff]  }
 0x11c   : > { %8319 = vmatpush3.bf16.msra.mxu1 %v8706_v31  ;;  %8298 = vmatprep.subr.bf16.mxu0 %v8707_v32  ;;  %v8766_v31 = vld [vmem:[%s11153_s1 + $0x488] sm:$0xff]   ;;  %v8767_v32 = vld [vmem:[%s11153_s1 + $0x450] sm:$0xff]  }
 0x11d   : > { %8320 = vmatprep.subr.bf16.mxu1 %v8708_v33  ;;  %v8768_v33 = vld [vmem:[%s11153_s1 + $0x4d0] sm:$0xff]  }
 0x11f   : > { %8299 = vmatpush3.bf16.msra.mxu0 %v8709_v34  ;;  %v8769_v34 = vld [vmem:[%s11153_s1 + $0x410] sm:$0xff]  }
 0x120   : > { %8321 = vmatpush3.bf16.msra.mxu1 %v8710_v35  ;;  %8300 = vmatprep.subr.bf16.mxu0 %v8711_v36  ;;  %v8770_v35 = vld [vmem:[%s11153_s1 + $0x490] sm:$0xff]   ;;  %v8771_v36 = vld [vmem:[%s11153_s1 + $0x458] sm:$0xff]  }
 0x121   : > { %8322 = vmatprep.subr.bf16.mxu1 %v8712_v37  ;;  %v8772_v37 = vld [vmem:[%s11153_s1 + $0x4d8] sm:$0xff]  }
 0x123   : > { %8301 = vmatpush3.bf16.msra.mxu0 %v8713_v38  ;;  %v8773_v38 = vld [vmem:[%s11153_s1 + $0x418] sm:$0xff]  }
 0x124   : > { %8323 = vmatpush3.bf16.msra.mxu1 %v8714_v39  ;;  %8302 = vmatprep.subr.bf16.mxu0 %v8715_v40  ;;  %v8774_v39 = vld [vmem:[%s11153_s1 + $0x498] sm:$0xff]   ;;  %v8775_v40 = vld [vmem:[%s11153_s1 + $0x460] sm:$0xff]  }
 0x125   : > { %8324 = vmatprep.subr.bf16.mxu1 %v8716_v41  ;;  %v8776_v41 = vld [vmem:[%s11153_s1 + $0x4e0] sm:$0xff]  }
 0x127   : > { %8303 = vmatpush3.bf16.msra.mxu0 %v8717_v42  ;;  %v8777_v42 = vld [vmem:[%s11153_s1 + $0x420] sm:$0xff]  }
 0x128   : > { %8325 = vmatpush3.bf16.msra.mxu1 %v8718_v43  ;;  %8332 = vmatprep.subr.bf16.mxu0 %v8723_v50  ;;  %v8778_v43 = vld [vmem:[%s11153_s1 + $0x4a0] sm:$0xff]   ;;  %v8785_v50 = vld [vmem:[%s11153_s1 + $0x430] sm:$0xff]  }
 0x129   : > { %8354 = vmatprep.subr.bf16.mxu1 %v8724_v51  ;;  %v8786_v51 = vld [vmem:[%s11153_s1 + $0x4b0] sm:$0xff]  }
 0x12a   : > { %2250 = vmatmul.mubr.bf16.vlgmr.msra.gmra.mrb[8].mxu0 %v7407_v46  ;;  %v8781_v46 = vld [vmem:[%s11153_s1 + $0x428] sm:$0xff]  }
 0x12b   : > { %2290 = vmatmul.mubr.bf16.vlgmr.msra.gmra.mrb[8].mxu1 %v7409_v48  ;;  %8333 = vmatpush3.bf16.msra.mxu0 %v8725_v52  ;;  %v8783_v48 = vld [vmem:[%s11153_s1 + $0x470] sm:$0xff]   ;;  %v8787_v52 = vld [vmem:[%s11153_s1 + $0x478] sm:$0xff]  }
 0x12c   : > { %8355 = vmatpush3.bf16.msra.mxu1 %v8726_v53  ;;  %8334 = vmatprep.subr.bf16.mxu0 %v8727_v54  ;;  %v8788_v53 = vld [vmem:[%s11153_s1 + $0x4f8] sm:$0xff]  }
 0x12d   : > { %8356 = vmatprep.subr.bf16.mxu1 %v8728_v55  ;;  %2329 = vmatprep.mubr.bf16.mxu0 %v7412_v21  ;;  %v8789_v54 = vld [vmem:[%s11153_s1 + $0x438] sm:$0xff]   ;;  %v8818_v21 = vld [vmem:[%s11153_s1 + $0x5a8] sm:$0xff]  }
 0x12e   : > { %2369 = vmatprep.mubr.bf16.mxu1 %v7414_v24  ;;  %v8790_v55 = vld [vmem:[%s11153_s1 + $0x4b8] sm:$0xff]   ;;  %v8821_v24 = vld [vmem:[%s11153_s1 + $0x530] sm:$0xff]  }
 0x12f   : > { %8335 = vmatpush3.bf16.msra.mxu0 %v8729_v56  ;;  %v426_v56 = vld [vmem:[%s11152_s0 + $0x40] sm:$0xff] }
 0x130   : > { %8357 = vmatpush3.bf16.msra.mxu1 %v8730_v57  ;;  %8336 = vmatprep.subr.bf16.mxu0 %v8731_v58  ;;  %v7415_v57 = vcombine.low %v426_v56, %v426_v56  ;;  %v7416_v58 = vcombine.high %v426_v56, %v426_v56 }
 0x131   : > { %8358 = vmatprep.subr.bf16.mxu1 %v8732_v59  ;;  %v427_v59 = vld [vmem:[%s11152_s0 + $0x48] sm:$0xff] }
 0x133   : > { %8337 = vmatpush3.bf16.msra.mxu0 %v8733_v60  ;;  %v7417_v60 = vcombine.low %v427_v59, %v427_v59 }
 0x134   : > { %8359 = vmatpush3.bf16.msra.mxu1 %v8734_v61  ;;  %8338 = vmatprep.subr.bf16.mxu0 %v8735_v62  ;;  %v7418_v61 = vcombine.high %v427_v59, %v427_v59  ;;  %v8795_v62 = vld [vmem:[%s11153_s1 + $0x540] sm:$0xff]  }
 0x135   : > { %8360 = vmatprep.subr.bf16.mxu1 %v8736_v63  ;;  %v8796_v63 = vld [vmem:[%s11153_s1 + $0x5c0] sm:$0xff]  }
 0x137   : > { %8339 = vmatpush3.bf16.msra.mxu0 %v8737_v0  ;;  %v8797_v0 = vld [vmem:[%s11153_s1 + $0x500] sm:$0xff]  }
 0x138   : > { %8361 = vmatpush3.bf16.msra.mxu1 %v8738_v1  ;;  %8340 = vmatprep.subr.bf16.mxu0 %v8739_v2  ;;  %v8798_v1 = vld [vmem:[%s11153_s1 + $0x580] sm:$0xff]   ;;  %v8799_v2 = vld [vmem:[%s11153_s1 + $0x548] sm:$0xff]  }
 0x139   : > { %8362 = vmatprep.subr.bf16.mxu1 %v8740_v3  ;;  %v8800_v3 = vld [vmem:[%s11153_s1 + $0x5c8] sm:$0xff]  }
 0x13b   : > { %8341 = vmatpush3.bf16.msra.mxu0 %v8741_v4  ;;  %v8801_v4 = vld [vmem:[%s11153_s1 + $0x508] sm:$0xff]  }
 0x13c   : > { %8363 = vmatpush3.bf16.msra.mxu1 %v8742_v5  ;;  %8342 = vmatprep.subr.bf16.mxu0 %v8743_v6  ;;  %v8802_v5 = vld [vmem:[%s11153_s1 + $0x588] sm:$0xff]   ;;  %v8803_v6 = vld [vmem:[%s11153_s1 + $0x550] sm:$0xff]  }
 0x13d   : > { %8364 = vmatprep.subr.bf16.mxu1 %v8744_v7  ;;  %v8804_v7 = vld [vmem:[%s11153_s1 + $0x5d0] sm:$0xff]  }
 0x13f   : > { %8343 = vmatpush3.bf16.msra.mxu0 %v8745_v8  ;;  %v8805_v8 = vld [vmem:[%s11153_s1 + $0x510] sm:$0xff]  }
 0x140   : > { %8365 = vmatpush3.bf16.msra.mxu1 %v8746_v9  ;;  %8344 = vmatprep.subr.bf16.mxu0 %v8747_v10  ;;  %v8806_v9 = vld [vmem:[%s11153_s1 + $0x590] sm:$0xff]   ;;  %v8807_v10 = vld [vmem:[%s11153_s1 + $0x558] sm:$0xff]  }
 0x141   : > { %8366 = vmatprep.subr.bf16.mxu1 %v8748_v11  ;;  %v8808_v11 = vld [vmem:[%s11153_s1 + $0x5d8] sm:$0xff]  }
 0x143   : > { %8345 = vmatpush3.bf16.msra.mxu0 %v8749_v12  ;;  %v8809_v12 = vld [vmem:[%s11153_s1 + $0x518] sm:$0xff]  }
 0x144   : > { %8367 = vmatpush3.bf16.msra.mxu1 %v8750_v13  ;;  %8346 = vmatprep.subr.bf16.mxu0 %v8751_v14  ;;  %v8810_v13 = vld [vmem:[%s11153_s1 + $0x598] sm:$0xff]   ;;  %v8811_v14 = vld [vmem:[%s11153_s1 + $0x560] sm:$0xff]  }
 0x145   : > { %8368 = vmatprep.subr.bf16.mxu1 %v8752_v15  ;;  %v8812_v15 = vld [vmem:[%s11153_s1 + $0x5e0] sm:$0xff]  }
 0x147   : > { %8347 = vmatpush3.bf16.msra.mxu0 %v8753_v16  ;;  %v8813_v16 = vld [vmem:[%s11153_s1 + $0x520] sm:$0xff]  }
 0x148   : > { %8369 = vmatpush3.bf16.msra.mxu1 %v8754_v17  ;;  %8376 = vmatprep.subr.bf16.mxu0 %v8759_v23  ;;  %v8814_v17 = vld [vmem:[%s11153_s1 + $0x5a0] sm:$0xff]   ;;  %v8820_v23 = vld [vmem:[%s11153_s1 + $0x5f0] sm:$0xff]  }
 0x149   : > { %8398 = vmatprep.subr.bf16.mxu1 %v8760_v25  ;;  %v8822_v25 = vld [vmem:[%s11153_s1 + $0x5b0] sm:$0xff]  }
 0x14a   : > { %2330 = vmatmul.mubr.bf16.vlgmr.msra.gmra.mrb[12].mxu0 %v7411_v20  ;;  %v8817_v20 = vld [vmem:[%s11153_s1 + $0x528] sm:$0xff]  }
 0x14b   : > { %2370 = vmatmul.mubr.bf16.vlgmr.msra.gmra.mrb[12].mxu1 %v7413_v22  ;;  %8377 = vmatpush3.bf16.msra.mxu0 %v8761_v26  ;;  %v8819_v22 = vld [vmem:[%s11153_s1 + $0x570] sm:$0xff]   ;;  %v8823_v26 = vld [vmem:[%s11153_s1 + $0x578] sm:$0xff]  }
 0x14c   : > { %8399 = vmatpush3.bf16.msra.mxu1 %v8762_v27  ;;  %8378 = vmatprep.subr.bf16.mxu0 %v8763_v28  ;;  %v8824_v27 = vld [vmem:[%s11153_s1 + $0x5f8] sm:$0xff]  }
 0x14d   : > { %8400 = vmatprep.subr.bf16.mxu1 %v8764_v29  ;;  %2409 = vmatprep.mubr.bf16.mxu0 %v7416_v58  ;;  %v8825_v28 = vld [vmem:[%s11153_s1 + $0x538] sm:$0xff]  }
 0x14e   : > { %2449 = vmatprep.mubr.bf16.mxu1 %v7418_v61  ;;  %v8826_v29 = vld [vmem:[%s11153_s1 + $0x5b8] sm:$0xff]   ;;  %v8831_v61 = vld [vmem:[#allocation2] sm:$0xff]  }
 0x14f   : > { %8379 = vmatpush3.bf16.msra.mxu0 %v8765_v30  ;;  %v428_v30 = vld [vmem:[%s11152_s0 + $0x50] sm:$0xff] }
 0x150   : > { %8401 = vmatpush3.bf16.msra.mxu1 %v8766_v31  ;;  %8380 = vmatprep.subr.bf16.mxu0 %v8767_v32  ;;  %v429_v31 = vld [vmem:[%s11152_s0 + $0x58] sm:$0xff]  ;;  %v7419_v32 = vcombine.low %v428_v30, %v428_v30 }
 0x151   : > { %8402 = vmatprep.subr.bf16.mxu1 %v8768_v33  ;;  %v7420_v33 = vcombine.high %v428_v30, %v428_v30 }
 0x153   : > { %8381 = vmatpush3.bf16.msra.mxu0 %v8769_v34  ;;  %v7421_v34 = vcombine.low %v429_v31, %v429_v31 }
 0x154   : > { %8403 = vmatpush3.bf16.msra.mxu1 %v8770_v35  ;;  %8382 = vmatprep.subr.bf16.mxu0 %v8771_v36  ;;  %v7422_v35 = vcombine.high %v429_v31, %v429_v31 }
 0x155   : > { %8404 = vmatprep.subr.bf16.mxu1 %v8772_v37 }
 0x157   : > { %8383 = vmatpush3.bf16.msra.mxu0 %v8773_v38  ;;  %v7398_v38 = vld [vmem:[#allocation7] ss:$0 sm:$0xff] }
 0x158   : > { %8405 = vmatpush3.bf16.msra.mxu1 %v8774_v39  ;;  %8384 = vmatprep.subr.bf16.mxu0 %v8775_v40 }
 0x159   : > { %8406 = vmatprep.subr.bf16.mxu1 %v8776_v41 }
 0x15b   : > { %8385 = vmatpush3.bf16.msra.mxu0 %v8777_v42 }
 0x15c   : > { %8407 = vmatpush3.bf16.msra.mxu1 %v8778_v43  ;;  %8386 = vmatprep.subr.bf16.mxu0 %v8779_v44 }
 0x15d   : > { %8408 = vmatprep.subr.bf16.mxu1 %v8780_v45 }
 0x15f   : > { %8387 = vmatpush3.bf16.msra.mxu0 %v8781_v46 }
 0x160   : > { %8409 = vmatpush3.bf16.msra.mxu1 %v8782_v47  ;;  %8388 = vmatprep.subr.bf16.mxu0 %v8783_v48 }
 0x161   : > { %8410 = vmatprep.subr.bf16.mxu1 %v8784_v49 }
 0x163   : > { %8389 = vmatpush3.bf16.msra.mxu0 %v8785_v50 }
 0x164   : > { %8411 = vmatpush3.bf16.msra.mxu1 %v8786_v51  ;;  %8390 = vmatprep.subr.bf16.mxu0 %v8787_v52 }
 0x165   : > { %8412 = vmatprep.subr.bf16.mxu1 %v8788_v53 }
 0x167   : > { %8391 = vmatpush3.bf16.msra.mxu0 %v8789_v54 }
 0x168   : > { %8413 = vmatpush3.bf16.msra.mxu1 %v8790_v55  ;;  %8420 = vmatprep.subr.bf16.mxu0 %v8795_v62  ;;  %v9250_v62 = vmov 0.0  }
 0x169   : > { %8442 = vmatprep.subr.bf16.mxu1 %v8796_v63  ;;  %v8832_v63 = vld [vmem:[#allocation2 + $0x8] sm:$0xff]  }
 0x16a   : > { %2410 = vmatmul.mubr.bf16.vlgmr.msra.gmra.mrb[16].mxu0 %v7415_v57 }
 0x16b   : > { %2450 = vmatmul.mubr.bf16.vlgmr.msra.gmra.mrb[16].mxu1 %v7417_v60  ;;  %8421 = vmatpush3.bf16.msra.mxu0 %v8797_v0  ;;  %v8833_v0 = vld [vmem:[#allocation2 + $0x10] sm:$0xff]  }
 0x16c   : > { %8443 = vmatpush3.bf16.msra.mxu1 %v8798_v1  ;;  %8422 = vmatprep.subr.bf16.mxu0 %v8799_v2  ;;  %v8834_v1 = vld [vmem:[#allocation2 + $0x18] sm:$0xff]  }
 0x16d   : > { %8444 = vmatprep.subr.bf16.mxu1 %v8800_v3  ;;  %2489 = vmatprep.mubr.bf16.mxu0 %v7420_v33  ;;  %v8835_v3 = vld [vmem:[#allocation2 + $0x20] sm:$0xff]  }
 0x16e   : > { %2529 = vmatprep.mubr.bf16.mxu1 %v7422_v35 }
 0x16f   : > { %8423 = vmatpush3.bf16.msra.mxu0 %v8801_v4 }
 0x170   : > { %8445 = vmatpush3.bf16.msra.mxu1 %v8802_v5  ;;  %8424 = vmatprep.subr.bf16.mxu0 %v8803_v6 }
 0x171   : > { %8446 = vmatprep.subr.bf16.mxu1 %v8804_v7 }
 0x173   : > { %8425 = vmatpush3.bf16.msra.mxu0 %v8805_v8 }
 0x174   : > { %8447 = vmatpush3.bf16.msra.mxu1 %v8806_v9  ;;  %8426 = vmatprep.subr.bf16.mxu0 %v8807_v10 }
 0x175   : > { %8448 = vmatprep.subr.bf16.mxu1 %v8808_v11 }
 0x177   : > { %8427 = vmatpush3.bf16.msra.mxu0 %v8809_v12 }
 0x178   : > { %8449 = vmatpush3.bf16.msra.mxu1 %v8810_v13  ;;  %8428 = vmatprep.subr.bf16.mxu0 %v8811_v14  ;;  %v8836_v14 = vld [vmem:[#allocation2 + $0x28] sm:$0xff]  }
 0x179   : > { %8450 = vmatprep.subr.bf16.mxu1 %v8812_v15 }
 0x17b   : > { %8429 = vmatpush3.bf16.msra.mxu0 %v8813_v16  ;;  %v8837_v16 = vld [vmem:[#allocation2 + $0x30] sm:$0xff]  }
 0x17c   : > { %8451 = vmatpush3.bf16.msra.mxu1 %v8814_v17  ;;  %8430 = vmatprep.subr.bf16.mxu0 %v8815_v18  ;;  %v8838_v17 = vld [vmem:[#allocation2 + $0x38] sm:$0xff]  }
 0x17d   : > { %8452 = vmatprep.subr.bf16.mxu1 %v8816_v19 }
 0x17f   : > { %8431 = vmatpush3.bf16.msra.mxu0 %v8817_v20 }
 0x180   : > { %8453 = vmatpush3.bf16.msra.mxu1 %v8818_v21  ;;  %8432 = vmatprep.subr.bf16.mxu0 %v8819_v22 }
 0x181   : > { %8454 = vmatprep.subr.bf16.mxu1 %v8820_v23 }
 0x183   : > { %8433 = vmatpush3.bf16.msra.mxu0 %v8821_v24 }
 0x184   : > { %8455 = vmatpush3.bf16.msra.mxu1 %v8822_v25  ;;  %8434 = vmatprep.subr.bf16.mxu0 %v8823_v26 }
 0x185   : > { %8456 = vmatprep.subr.bf16.mxu1 %v8824_v27 }
 0x187   : > { %8435 = vmatpush3.bf16.msra.mxu0 %v8825_v28 }
 0x188   : > { %8457 = vmatpush3.bf16.msra.mxu1 %v8826_v29  ;;  %8482 = vmatprep.subr.bf16.mxu0 %v9250_v62 }
 0x189   : > { %8502 = vmatprep.subr.bf16.mxu1 %v9250_v62 }
 0x18a   : > { %2490 = vmatmul.mubr.bf16.vlgmr.msra.gmra.mrb[20].mxu0 %v7419_v32 }
 0x18b   : > { %2530 = vmatmul.mubr.bf16.vlgmr.msra.gmra.mrb[20].mxu1 %v7421_v34  ;;  %8483 = vmatpush3.bf16.msra.mxu0 %v8831_v61 }
 0x18c   : > { %8484 = vmatprep.subr.bf16.mxu0 %v9250_v62  ;;  %8498 = vmatprep.mubr.msk.bf16.mxu0 %vm9251_vm0, %v9250_v62 }
 0x18d   : > { %8518 = vmatprep.mubr.msk.bf16.mxu1 %vm9251_vm0, %v9250_v62 }
 0x18f   : > { %8485 = vmatpush3.bf16.msra.mxu0 %v8832_v63 }
 0x190   : > { %8486 = vmatprep.subr.bf16.mxu0 %v9250_v62 }
 0x193   : > { %8487 = vmatpush3.bf16.msra.mxu0 %v8833_v0 }
 0x194   : > { %8488 = vmatprep.subr.bf16.mxu0 %v9250_v62 }
 0x197   : > { %8489 = vmatpush3.bf16.msra.mxu0 %v8834_v1  ;;  %v8839_v1 = vld [vmem:[#allocation4] sm:$0xff]  }
 0x198   : > { %8490 = vmatprep.subr.bf16.mxu0 %v9250_v62  ;;  %8503 = vmatpush3.bf16.msra.mxu1 %v8839_v1 }
 0x199   : > { %8504 = vmatprep.subr.bf16.mxu1 %v9250_v62 }
 0x19b   : > { %8491 = vmatpush3.bf16.msra.mxu0 %v8835_v3  ;;  %v8841_v3 = vld [vmem:[#allocation4 + $0x10] sm:$0xff]  }
 0x19c   : > { %8492 = vmatprep.subr.bf16.mxu0 %v9250_v62 }
 0x19f   : > { %8493 = vmatpush3.bf16.msra.mxu0 %v8836_v14 }
 0x1a0   : > { %8494 = vmatprep.subr.bf16.mxu0 %v9250_v62 }
 0x1a3   : > { %8495 = vmatpush3.bf16.msra.mxu0 %v8837_v16 }
 0x1a4   : > { %8496 = vmatprep.subr.bf16.mxu0 %v9250_v62 }
 0x1a7   : > { %8497 = vmatpush3.bf16.msra.mxu0 %v8838_v17 }
 0x1bd   : > { %v8216_v36 = vpop.f32.mrb[0].mxu0 }
 0x1be   : > { %v8238_v37 = vpop.f32.mrb[0].mxu1  ;;  %v8217_v39 = vpop.f32.mrb[1].mxu0 }
 0x1bf   : > { %v8239_v40 = vpop.f32.mrb[1].mxu1  ;;  %v8218_v41 = vadd.f32 %v8217_v39, %v8216_v36  ;;  %v8219_v43 = vpop.f32.mrb[2].mxu0 }
 0x1c0   : > { %v8240_v42 = vadd.f32 %v8239_v40, %v8238_v37  ;;  %v8241_v44 = vpop.f32.mrb[2].mxu1  ;;  %v8220_v45 = vpop.f32.mrb[3].mxu0 }
 0x1c1   : > { %v8242_v46 = vpop.f32.mrb[3].mxu1  ;;  %v2092_v47 = vadd.f32 %v8218_v41, %v7398_v38 }
 0x1c3   : > { %v2132_v48 = vadd.f32 %v8240_v42, %v2092_v47 }
 0x1dd   : > { %v8260_v49 = vpop.f32.mrb[4].mxu0 }
 0x1de   : > { %v8282_v50 = vpop.f32.mrb[4].mxu1  ;;  %v8261_v51 = vpop.f32.mrb[5].mxu0 }
 0x1df   : > { %v8283_v52 = vpop.f32.mrb[5].mxu1  ;;  %v8262_v53 = vadd.f32 %v8261_v51, %v8260_v49  ;;  %v8263_v55 = vpop.f32.mrb[6].mxu0 }
 0x1e0   : > { %v8284_v54 = vadd.f32 %v8283_v52, %v8282_v50  ;;  %v8285_v56 = vpop.f32.mrb[6].mxu1  ;;  %v8264_v57 = vpop.f32.mrb[7].mxu0 }
 0x1e1   : > { %v8286_v58 = vpop.f32.mrb[7].mxu1  ;;  %v2172_v59 = vadd.f32 %v8262_v53, %v2132_v48 }
 0x1e3   : > { %v2212_v60 = vadd.f32 %v8284_v54, %v2172_v59 }
 0x1fd   : > { %v8304_v2 = vpop.f32.mrb[8].mxu0 }
 0x1fe   : > { %v8326_v4 = vpop.f32.mrb[8].mxu1  ;;  %v8305_v5 = vpop.f32.mrb[9].mxu0 }
 0x1ff   : > { %v8306_v6 = vadd.f32 %v8305_v5, %v8304_v2  ;;  %v8327_v7 = vpop.f32.mrb[9].mxu1  ;;  %v8307_v8 = vpop.f32.mrb[10].mxu0  ;;  %v8840_v2 = vld [vmem:[#allocation4 + $0x8] sm:$0xff]   ;;  %v8843_v5 = vld [vmem:[#allocation4 + $0x20] sm:$0xff]  }
 0x200   : > { %v8328_v9 = vadd.f32 %v8327_v7, %v8326_v4  ;;  %v8329_v10 = vpop.f32.mrb[10].mxu1  ;;  %v8308_v11 = vpop.f32.mrb[11].mxu0  ;;  %8505 = vmatpush3.bf16.msra.mxu1 %v8840_v2  ;;  %v8842_v4 = vld [vmem:[#allocation4 + $0x18] sm:$0xff]   ;;  %v8845_v7 = vld [vmem:[#allocation4 + $0x30] sm:$0xff]   ;;  %v3118_v2 = vld [vmem:[%s9522_s3 + $0x500] sm:$0xff] }
 0x201   : > { %v2252_v12 = vadd.f32 %v8306_v6, %v2212_v60  ;;  %v8330_v13 = vpop.f32.mrb[11].mxu1  ;;  %8506 = vmatprep.subr.bf16.mxu1 %v9250_v62  ;;  %v8844_v6 = vld [vmem:[#allocation4 + $0x28] sm:$0xff]   ;;  %v8846_v8 = vld [vmem:[#allocation4 + $0x38] sm:$0xff]  }
 0x203   : > { %v2292_v15 = vadd.f32 %v8328_v9, %v2252_v12  ;;  %v7615_v9 = vld [vmem:[#allocation7 + $0x1] ss:$0 sm:$0xff] }
 0x204   : > { %8507 = vmatpush3.bf16.msra.mxu1 %v8841_v3  ;;  %v3134_v3 = vld [vmem:[%s9522_s3 + $0x580] sm:$0xff] }
 0x205   : > { %8508 = vmatprep.subr.bf16.mxu1 %v9250_v62 }
 0x208   : > { %8509 = vmatpush3.bf16.msra.mxu1 %v8842_v4  ;;  %v7810_v4 = vcombine.high %v3118_v2, %v3134_v3 }
 0x209   : > { %8510 = vmatprep.subr.bf16.mxu1 %v9250_v62 }
 0x20c   : > { %8511 = vmatpush3.bf16.msra.mxu1 %v8843_v5  ;;  %v7809_v5 = vcombine.low %v3118_v2, %v3134_v3  ;;  %v3246_v2 = vld [vmem:[%s9522_s3 + $0x900] sm:$0xff] }
 0x20d   : > { %8512 = vmatprep.subr.bf16.mxu1 %v9250_v62  ;;  %v3262_v3 = vld [vmem:[%s9522_s3 + $0x980] sm:$0xff] }
 0x210   : > { %8513 = vmatpush3.bf16.msra.mxu1 %v8844_v6  ;;  %v7624_v6 = vld [vmem:[#allocation7 + $0x2] ss:$0 sm:$0xff] }
 0x211   : > { %8514 = vmatprep.subr.bf16.mxu1 %v9250_v62 }
 0x214   : > { %8515 = vmatpush3.bf16.msra.mxu1 %v8845_v7 }
 0x215   : > { %8516 = vmatprep.subr.bf16.mxu1 %v9250_v62 }
 0x218   : > { %8517 = vmatpush3.bf16.msra.mxu1 %v8846_v8 }
 0x21d   : > { %v8348_v18 = vpop.f32.mrb[12].mxu0 }
 0x21e   : > { %v8370_v19 = vpop.f32.mrb[12].mxu1  ;;  %v8349_v20 = vpop.f32.mrb[13].mxu0 }
 0x21f   : > { %v8350_v21 = vadd.f32 %v8349_v20, %v8348_v18  ;;  %v8371_v22 = vpop.f32.mrb[13].mxu1  ;;  %v8351_v23 = vpop.f32.mrb[14].mxu0 }
 0x220   : > { %v8372_v24 = vadd.f32 %v8371_v22, %v8370_v19  ;;  %v8373_v25 = vpop.f32.mrb[14].mxu1  ;;  %v8352_v26 = vpop.f32.mrb[15].mxu0 }
 0x221   : > { %v2332_v27 = vadd.f32 %v8350_v21, %v2292_v15  ;;  %v8374_v28 = vpop.f32.mrb[15].mxu1  ;;  %v8847_v25 = vld [vmem:[#allocation6] ss:$8 sps:$4 sm:$0xff]   ;;  %v8852_v26 = vld [vmem:[#allocation6 + $0x14] ss:$8 sps:$4 sm:$0xff]  }
 0x222   : > { %v8855_v28 = vld [vmem:[#allocation6 + $0x24] ss:$8 sps:$4 sm:$0xff]  }
 0x223   : > { %v2372_v29 = vadd.f32 %v8372_v24, %v2332_v27  ;;  %v8849_v24 = vld [vmem:[#allocation6 + $0x4] ss:$8 sps:$4 sm:$0xff]   ;;  %v8850_v27 = vld [vmem:[#allocation6 + $0x10] ss:$8 sps:$4 sm:$0xff]  }
 0x224   : > { %2897 = vmatprep.subr.bf16.mxu0 %v8849_v24  ;;  %v3023_v24 = vld [vmem:[%s9522_s3 + $0x208] sm:$0xff] }
 0x23d   : > { %v8392_v30 = vpop.f32.mrb[16].mxu0 }
 0x23e   : > { %v8414_v31 = vpop.f32.mrb[16].mxu1  ;;  %v8393_v32 = vpop.f32.mrb[17].mxu0 }
 0x23f   : > { %v8415_v33 = vpop.f32.mrb[17].mxu1  ;;  %v8394_v34 = vadd.f32 %v8393_v32, %v8392_v30  ;;  %v8395_v36 = vpop.f32.mrb[18].mxu0  ;;  %v8858_v30 = vld [vmem:[#allocation6 + $0x34] ss:$8 sps:$4 sm:$0xff]   ;;  %v8861_v32 = vld [vmem:[#allocation6 + $0x44] ss:$8 sps:$4 sm:$0xff]  }
 0x240   : > { %v8416_v35 = vadd.f32 %v8415_v33, %v8414_v31  ;;  %v8417_v37 = vpop.f32.mrb[18].mxu1  ;;  %v8396_v38 = vpop.f32.mrb[19].mxu0  ;;  %v8856_v31 = vld [vmem:[#allocation6 + $0x30] ss:$8 sps:$4 sm:$0xff]   ;;  %v8859_v33 = vld [vmem:[#allocation6 + $0x40] ss:$8 sps:$4 sm:$0xff]  }
 0x241   : > { %v8418_v39 = vpop.f32.mrb[19].mxu1  ;;  %v2412_v40 = vadd.f32 %v8394_v34, %v2372_v29  ;;  %v8853_v29 = vld [vmem:[#allocation6 + $0x20] ss:$8 sps:$4 sm:$0xff]   ;;  %v8864_v34 = vld [vmem:[#allocation6 + $0x54] ss:$8 sps:$4 sm:$0xff]  }
 0x242   : > { %v8867_v36 = vld [vmem:[#allocation6 + $0x64] ss:$8 sps:$4 sm:$0xff]   ;;  %v8865_v37 = vld [vmem:[#allocation6 + $0x60] ss:$8 sps:$4 sm:$0xff]   ;;  %v8870_v38 = vld [vmem:[#allocation6 + $0x74] ss:$8 sps:$4 sm:$0xff]  }
 0x243   : > { %v2452_v41 = vadd.f32 %v8416_v35, %v2412_v40  ;;  %v8862_v35 = vld [vmem:[#allocation6 + $0x50] ss:$8 sps:$4 sm:$0xff]   ;;  %v9252_v40 = vmov 0  }
 0x244   : > { %v8868_v39 = vld [vmem:[#allocation6 + $0x70] ss:$8 sps:$4 sm:$0xff]  }
 0x25d   : > { %v8436_v42 = vpop.f32.mrb[20].mxu0 }
 0x25e   : > { %v8458_v43 = vpop.f32.mrb[20].mxu1  ;;  %v8437_v44 = vpop.f32.mrb[21].mxu0 }
 0x25f   : > { %v8438_v45 = vadd.f32 %v8437_v44, %v8436_v42  ;;  %v8459_v46 = vpop.f32.mrb[21].mxu1  ;;  %v8439_v47 = vpop.f32.mrb[22].mxu0  ;;  %v2974_v42 = vld [vmem:[%s9522_s3 + $0x80] sm:$0xff] }
 0x260   : > { %v8460_v48 = vadd.f32 %v8459_v46, %v8458_v43  ;;  %v8461_v49 = vpop.f32.mrb[22].mxu1  ;;  %v8440_v50 = vpop.f32.mrb[23].mxu0  ;;  %v10167_v43 = vld [vmem:[%s9522_s3 + $0x8] sm:$0xff]  ;;  %v2990_v47 = vld [vmem:[%s9522_s3 + $0x100] sm:$0xff] }
 0x261   : > { %v2492_v51 = vadd.f32 %v8438_v45, %v2452_v41  ;;  %v8462_v52 = vpop.f32.mrb[23].mxu1  ;;  %v2958_v41 = vld [vmem:[%s9522_s3] sm:$0xff]  ;;  %v2975_v46 = vld [vmem:[%s9522_s3 + $0x88] sm:$0xff] }
 0x262   : > { %v7649_v44 = vcombine.low %v2958_v41, %v2974_v42  ;;  %v7650_v45 = vcombine.high %v2958_v41, %v2974_v42  ;;  %v7651_v49 = vcombine.low %v10167_v43, %v2975_v46  ;;  %v7652_v50 = vcombine.high %v10167_v43, %v2975_v46  ;;  %v3150_v41 = vld [vmem:[%s9522_s3 + $0x600] sm:$0xff]  ;;  %v3151_v43 = vld [vmem:[%s9522_s3 + $0x608] sm:$0xff] }
 0x263   : > { %v2532_v53 = vadd.f32 %v8460_v48, %v2492_v51  ;;  %v3006_v48 = vld [vmem:[%s9522_s3 + $0x180] sm:$0xff] }
 0x264   : > { %v7682_v51 = vcombine.high %v2990_v47, %v3006_v48  ;;  %6198 = vmatprep.subr.bf16.mxu1 %v7650_v45  ;;  %v7681_v52 = vcombine.low %v2990_v47, %v3006_v48  ;;  %v3166_v42 = vld [vmem:[%s9522_s3 + $0x680] sm:$0xff]  ;;  %v3167_v45 = vld [vmem:[%s9522_s3 + $0x688] sm:$0xff] }
 0x265   : > { %v2537_v54 = vmul.f32 1.442695, %v2532_v53  ;;  %v7841_v46 = vcombine.low %v3150_v41, %v3166_v42  ;;  %v7843_v47 = vcombine.low %v3151_v43, %v3167_v45  ;;  %v7844_v48 = vcombine.high %v3151_v43, %v3167_v45  ;;  %v3407_v43 = vld [vmem:[%s9522_s3 + $0xe08] sm:$0xff] }
 0x266   : > { %v3423_v45 = vld [vmem:[%s9522_s3 + $0xe88] sm:$0xff] }
 0x267   : > { %8871 = vpow2.f32 %v2537_v54  ;;  %v3038_v54 = vld [vmem:[%s9522_s3 + $0x280] sm:$0xff] }
 0x271   : > { %v8872_v55 = vpop.eup %8871 }
 0x272   : > { %v2539_v56 = vadd.f32 1.0, %v8872_v55 }
 0x274   : > { %v2540_v57 = vmul.f32 %v2539_v56, %v2539_v56 }
 0x276   : > { %v2541_v58 = vadd.f32 1.0, %v2540_v57  ;;  %v3054_v57 = vld [vmem:[%s9522_s3 + $0x300] sm:$0xff] }
 0x278   : > { %8873 = vrcp.f32 %v2541_v58  ;;  %v3070_v58 = vld [vmem:[%s9522_s3 + $0x380] sm:$0xff] }
 0x282   : > { %v8874_v59 = vpop.eup %8873 }
 0x283   : > { %v2543_v60 = vmul.f32 2.0, %v8874_v59  ;;  %v7746_v59 = vcombine.high %v3054_v57, %v3070_v58 }
 0x285   : > { %v2544_v61 = vsub.f32 1.0, %v2543_v60  ;;  %v7745_v60 = vcombine.low %v3054_v57, %v3070_v58  ;;  %v3214_v57 = vld [vmem:[%s9522_s3 + $0x800] sm:$0xff] }
 0x286   : > { %v3230_v58 = vld [vmem:[%s9522_s3 + $0x880] sm:$0xff] }
 0x287   : > { %v2545_v63 = vmul.f32 %v2544_v61, %v2532_v53  ;;  %v3022_v53 = vld [vmem:[%s9522_s3 + $0x200] sm:$0xff] }
 0x288   : > { %v7714_v55 = vcombine.high %v3022_v53, %v3038_v54  ;;  %v7713_v56 = vcombine.low %v3022_v53, %v3038_v54  ;;  %v3086_v61 = vld [vmem:[%s9522_s3 + $0x400] sm:$0xff]  ;;  %v3199_v53 = vld [vmem:[%s9522_s3 + $0x788] sm:$0xff] }
 0x289   : > { %v2546_v0 = vpack.c.bf16 %v2545_v63, %v2545_v63  ;;  %v3102_v63 = vld [vmem:[%s9522_s3 + $0x480] sm:$0xff] }
 0x28a   : > { %v7777_v1 = vcombine.low %v3086_v61, %v3102_v63 }
 0x28b   : > { %8499 = vmatmul.mubr.bf16.vlgmr.msra.gmra.mrb[24].mxu0 %v2546_v0  ;;  %v7778_v0 = vcombine.high %v3086_v61, %v3102_v63  ;;  %v3231_v61 = vld [vmem:[%s9522_s3 + $0x888] sm:$0xff]  ;;  %v7905_v63 = vcombine.low %v3214_v57, %v3230_v58 }
 0x28c   : > { %2898 = vmatpush1.bf16.msra.mxu0 %v8847_v25  ;;  %2929 = vmatprep.mubr.bf16.mxu0 %v9252_v40  ;;  %v3039_v25 = vld [vmem:[%s9522_s3 + $0x288] sm:$0xff] }
 0x28d   : > { %2899 = vmatprep.subr.bf16.mxu0 %v8852_v26 }
 0x290   : > { %2900 = vmatpush1.bf16.msra.mxu0 %v8850_v27  ;;  %v7716_v27 = vcombine.high %v3023_v24, %v3039_v25 }
 0x291   : > { %2901 = vmatprep.subr.bf16.mxu0 %v8855_v28  ;;  %v3055_v28 = vld [vmem:[%s9522_s3 + $0x308] sm:$0xff] }
 0x294   : > { %2902 = vmatpush1.bf16.msra.mxu0 %v8853_v29  ;;  %v3071_v29 = vld [vmem:[%s9522_s3 + $0x388] sm:$0xff] }
 0x295   : > { %2903 = vmatprep.subr.bf16.mxu0 %v8858_v30  ;;  %v7715_v30 = vcombine.low %v3023_v24, %v3039_v25  ;;  %v3342_v25 = vld [vmem:[%s9522_s3 + $0xc00] sm:$0xff] }
 0x298   : > { %2904 = vmatpush1.bf16.msra.mxu0 %v8856_v31  ;;  %v7748_v31 = vcombine.high %v3055_v28, %v3071_v29 }
 0x299   : > { %2905 = vmatprep.subr.bf16.mxu0 %v8861_v32  ;;  %v3087_v32 = vld [vmem:[%s9522_s3 + $0x408] sm:$0xff] }
 0x29c   : > { %2906 = vmatpush1.bf16.msra.mxu0 %v8859_v33  ;;  %v3103_v33 = vld [vmem:[%s9522_s3 + $0x488] sm:$0xff] }
 0x29d   : > { %2907 = vmatprep.subr.bf16.mxu0 %v8864_v34  ;;  %v7747_v34 = vcombine.low %v3055_v28, %v3071_v29  ;;  %v3359_v29 = vld [vmem:[%s9522_s3 + $0xc88] sm:$0xff] }
 0x2a0   : > { %2908 = vmatpush1.bf16.msra.mxu0 %v8862_v35  ;;  %v7780_v35 = vcombine.high %v3087_v32, %v3103_v33 }
 0x2a1   : > { %2909 = vmatprep.subr.bf16.mxu0 %v8867_v36  ;;  %v3119_v36 = vld [vmem:[%s9522_s3 + $0x508] sm:$0xff] }
 0x2a4   : > { %2910 = vmatpush1.bf16.msra.mxu0 %v8865_v37  ;;  %v3135_v37 = vld [vmem:[%s9522_s3 + $0x588] sm:$0xff] }
 0x2a5   : > { %2911 = vmatprep.subr.bf16.mxu0 %v8870_v38  ;;  %v7779_v38 = vcombine.low %v3087_v32, %v3103_v33  ;;  %v7811_v40 = vcombine.low %v3119_v36, %v3135_v37  ;;  %v3374_v33 = vld [vmem:[%s9522_s3 + $0xd00] sm:$0xff] }
 0x2a8   : > { %2912 = vmatpush1.bf16.msra.mxu0 %v8868_v39  ;;  %v7812_v39 = vcombine.high %v3119_v36, %v3135_v37  ;;  %v3391_v37 = vld [vmem:[%s9522_s3 + $0xd88] sm:$0xff] }
 0x2a9   : > { %6239 = vmatprep.subr.bf16.mxu0 %v7652_v50  ;;  %v3198_v50 = vld [vmem:[%s9522_s3 + $0x780] sm:$0xff] }
 0x35e   : > { %v2652_v10 = vpop.f32.mrb[24].mxu0 }
 0x35f   : > { %v2653_v11 = vadd.f32 %v7615_v9, %v2652_v10  ;;  %v8500_v12 = vpop.f32.mrb[25].mxu0 }
 0x360   : > { %v2655_v13 = vpop.f32.mrb[26].mxu0 }
 0x361   : > { %v2658_v14 = vmul.f32 1.442695, %v2653_v11  ;;  %v8501_v15 = vpop.f32.mrb[27].mxu0 }
 0x363   : > { %8875 = vpow2.f32 %v2658_v14 }
 0x36d   : > { %v8876_v16 = vpop.eup %8875 }
 0x36e   : > { %v2660_v17 = vadd.f32 1.0, %v8876_v16 }
 0x370   : > { %v2661_v18 = vmul.f32 %v2660_v17, %v2660_v17 }
 0x372   : > { %v2662_v19 = vadd.f32 1.0, %v2661_v18 }
 0x374   : > { %8877 = vrcp.f32 %v2662_v19 }
 0x37e   : > { %v8878_v20 = vpop.eup %8877 }
 0x37f   : > { %v2664_v21 = vmul.f32 2.0, %v8878_v20  ;;  %v2991_v20 = vld [vmem:[%s9522_s3 + $0x108] sm:$0xff] }
 0x381   : > { %v2665_v22 = vsub.f32 1.0, %v2664_v21  ;;  %v3007_v21 = vld [vmem:[%s9522_s3 + $0x188] sm:$0xff] }
 0x382   : > { %v7683_v26 = vcombine.low %v2991_v20, %v3007_v21 }
 0x383   : > { %v2666_v23 = vmul.f32 %v2665_v22, %v2653_v11 }
 0x385   : > { %v2667_v62 = vpack.c.bf16 %v2666_v23, %v2666_v23 }
 0x387   : > { %8519 = vmatmul.mubr.bf16.vlgmr.msra.gmra.mrb[24].mxu1 %v2667_v62  ;;  %v7684_v62 = vcombine.high %v2991_v20, %v3007_v21  ;;  %v3311_v20 = vld [vmem:[%s9522_s3 + $0xb08] sm:$0xff] }
 0x388   : > { %6199 = vmatpush1.bf16.msra.mxu1 %v7649_v44  ;;  %v7842_v44 = vcombine.high %v3150_v41, %v3166_v42  ;;  %v3406_v41 = vld [vmem:[%s9522_s3 + $0xe00] sm:$0xff] }
 0x389   : > { %6200 = vmatprep.subr.bf16.mxu1 %v7682_v51  ;;  %v3183_v51 = vld [vmem:[%s9522_s3 + $0x708] sm:$0xff]  ;;  %v3422_v42 = vld [vmem:[%s9522_s3 + $0xe80] sm:$0xff] }
 0x38c   : > { %6201 = vmatpush1.bf16.msra.mxu1 %v7681_v52 }
 0x38d   : > { %6202 = vmatprep.subr.bf16.mxu1 %v7714_v55  ;;  %v7875_v55 = vcombine.low %v3183_v51, %v3199_v53 }
 0x390   : > { %6203 = vmatpush1.bf16.msra.mxu1 %v7713_v56  ;;  %v7876_v56 = vcombine.high %v3183_v51, %v3199_v53  ;;  %v3439_v51 = vld [vmem:[%s9522_s3 + $0xf08] sm:$0xff] }
 0x391   : > { %6204 = vmatprep.subr.bf16.mxu1 %v7746_v59  ;;  %v3215_v59 = vld [vmem:[%s9522_s3 + $0x808] sm:$0xff] }
 0x392   : > { %v3455_v53 = vld [vmem:[%s9522_s3 + $0xf88] sm:$0xff] }
 0x394   : > { %6205 = vmatpush1.bf16.msra.mxu1 %v7745_v60  ;;  %v7906_v60 = vcombine.high %v3214_v57, %v3230_v58  ;;  %v2960_v57 = vld [vmem:[%s9522_s3 + $0x10] sm:$0xff] }
 0x395   : > { %6206 = vmatprep.subr.bf16.mxu1 %v7778_v0  ;;  %v7907_v0 = vcombine.low %v3215_v59, %v3231_v61  ;;  %v2976_v58 = vld [vmem:[%s9522_s3 + $0x90] sm:$0xff] }
 0x398   : > { %6207 = vmatpush1.bf16.msra.mxu1 %v7777_v1  ;;  %v7908_v1 = vcombine.high %v3215_v59, %v3231_v61  ;;  %v2961_v59 = vld [vmem:[%s9522_s3 + $0x18] sm:$0xff] }
 0x399   : > { %6208 = vmatprep.subr.bf16.mxu1 %v7810_v4  ;;  %v3247_v4 = vld [vmem:[%s9522_s3 + $0x908] sm:$0xff]  ;;  %v2977_v61 = vld [vmem:[%s9522_s3 + $0x98] sm:$0xff] }
 0x39c   : > { %6209 = vmatpush1.bf16.msra.mxu1 %v7809_v5  ;;  %v7938_v5 = vcombine.high %v3246_v2, %v3262_v3 }
 0x39d   : > { %6210 = vmatprep.subr.bf16.mxu1 %v7842_v44  ;;  %v8098_v44 = vcombine.high %v3406_v41, %v3422_v42 }
 0x3a0   : > { %6211 = vmatpush1.bf16.msra.mxu1 %v7841_v46  ;;  %v8097_v46 = vcombine.low %v3406_v41, %v3422_v42  ;;  %v3040_v41 = vld [vmem:[%s9522_s3 + $0x290] sm:$0xff]  ;;  %v3025_v42 = vld [vmem:[%s9522_s3 + $0x218] sm:$0xff] }
 0x45a   : > { %v2773_v7 = vpop.f32.mrb[24].mxu1 }
 0x45b   : > { %v2774_v8 = vadd.f32 %v7624_v6, %v2773_v7  ;;  %v8520_v9 = vpop.f32.mrb[25].mxu1  ;;  %v3263_v6 = vld [vmem:[%s9522_s3 + $0x988] sm:$0xff]  ;;  %v7937_v7 = vcombine.low %v3246_v2, %v3262_v3  ;;  %v2807_v2 = vlaneseq }
 0x45c   : > { %v2776_v10 = vpop.f32.mrb[26].mxu1  ;;  %v7940_v9 = vcombine.high %v3247_v4, %v3263_v6 }
 0x45d   : > { %v2779_v11 = vmul.f32 1.442695, %v2774_v8  ;;  %v8521_v12 = vpop.f32.mrb[27].mxu1  ;;  %v3278_v10 = vld [vmem:[%s9522_s3 + $0xa00] sm:$0xff]  ;;  %v10237_v3 = vshrl.u32 %v2807_v2, 7 }
 0x45e   : > { %v3279_v12 = vld [vmem:[%s9522_s3 + $0xa08] sm:$0xff] }
 0x45f   : > { %8879 = vpow2.f32 %v2779_v11  ;;  %v3294_v11 = vld [vmem:[%s9522_s3 + $0xa80] sm:$0xff] }
 0x469   : > { %v8880_v13 = vpop.eup %8879 }
 0x46a   : > { %v2781_v14 = vadd.f32 1.0, %v8880_v13  ;;  %v7970_v13 = vcombine.high %v3278_v10, %v3294_v11 }
 0x46c   : > { %v2782_v15 = vmul.f32 %v2781_v14, %v2781_v14  ;;  %v3295_v14 = vld [vmem:[%s9522_s3 + $0xa88] sm:$0xff] }
 0x46e   : > { %v2783_v16 = vadd.f32 1.0, %v2782_v15  ;;  %v7969_v15 = vcombine.low %v3278_v10, %v3294_v11 }
 0x470   : > { %8881 = vrcp.f32 %v2783_v16  ;;  %v7971_v16 = vcombine.low %v3279_v12, %v3295_v14 }
 0x47a   : > { %v8882_v17 = vpop.eup %8881 }
 0x47b   : > { %v2785_v18 = vmul.f32 2.0, %v8882_v17  ;;  %v7972_v17 = vcombine.high %v3279_v12, %v3295_v14 }
 0x47d   : > { %v2786_v19 = vsub.f32 1.0, %v2785_v18  ;;  %v3310_v18 = vld [vmem:[%s9522_s3 + $0xb00] sm:$0xff] }
 0x47f   : > { %v2787_v22 = vmul.f32 %v2786_v19, %v2774_v8  ;;  %v7939_v8 = vcombine.low %v3247_v4, %v3263_v6  ;;  %v3326_v19 = vld [vmem:[%s9522_s3 + $0xb80] sm:$0xff]  ;;  %v10240_v4 = vsub.s32 0, %v10237_v3  ;;  %v10243_v6 = vsub.s32 1, %v10237_v3 }
 0x480   : > { %v8002_v21 = vcombine.high %v3310_v18, %v3326_v19 }
 0x481   : > { %v2788_v23 = vpack.c.bf16 %v2787_v22, %v2787_v22  ;;  %v3327_v22 = vld [vmem:[%s9522_s3 + $0xb88] sm:$0xff] }
 0x482   : > { %v8004_v24 = vcombine.high %v3311_v20, %v3327_v22 }
 0x483   : > { %2930 = vmatmul.mubr.bf16.vlgmr.msra.gmra.mrb[28].mxu0 %v2788_v23  ;;  %v8001_v23 = vcombine.low %v3310_v18, %v3326_v19 }
 0x484   : > { %6240 = vmatpush1.bf16.msra.mxu0 %v7651_v49  ;;  %v3182_v49 = vld [vmem:[%s9522_s3 + $0x700] sm:$0xff] }
 0x485   : > { %6241 = vmatprep.subr.bf16.mxu0 %v7684_v62  ;;  %v7874_v52 = vcombine.high %v3182_v49, %v3198_v50  ;;  %v7873_v54 = vcombine.low %v3182_v49, %v3198_v50  ;;  %v8003_v62 = vcombine.low %v3311_v20, %v3327_v22  ;;  %v3438_v49 = vld [vmem:[%s9522_s3 + $0xf00] sm:$0xff] }
 0x486   : > { %v3454_v50 = vld [vmem:[%s9522_s3 + $0xf80] sm:$0xff] }
 0x487   : > { %6212 = vmatprep.subr.bf16.mxu1 %v7874_v52  ;;  %v8130_v52 = vcombine.high %v3438_v49, %v3454_v50 }
 0x488   : > { %6242 = vmatpush1.bf16.msra.mxu0 %v7683_v26  ;;  %6213 = vmatpush1.bf16.msra.mxu1 %v7873_v54  ;;  %v3358_v26 = vld [vmem:[%s9522_s3 + $0xc80] sm:$0xff]  ;;  %v8129_v54 = vcombine.low %v3438_v49, %v3454_v50  ;;  %v3072_v49 = vld [vmem:[%s9522_s3 + $0x390] sm:$0xff]  ;;  %v3057_v50 = vld [vmem:[%s9522_s3 + $0x318] sm:$0xff] }
 0x489   : > { %6243 = vmatprep.subr.bf16.mxu0 %v7716_v27  ;;  %6214 = vmatprep.subr.bf16.mxu1 %v7906_v60  ;;  %v3343_v27 = vld [vmem:[%s9522_s3 + $0xc08] sm:$0xff]  ;;  %v8034_v28 = vcombine.high %v3342_v25, %v3358_v26  ;;  %v7654_v60 = vcombine.high %v2960_v57, %v2976_v58 }
 0x48a   : > { %v8036_v32 = vcombine.high %v3343_v27, %v3359_v29 }
 0x48c   : > { %6244 = vmatpush1.bf16.msra.mxu0 %v7715_v30  ;;  %6215 = vmatpush1.bf16.msra.mxu1 %v7905_v63  ;;  %v8033_v30 = vcombine.low %v3342_v25, %v3358_v26  ;;  %v7653_v63 = vcombine.low %v2960_v57, %v2976_v58  ;;  %v3104_v57 = vld [vmem:[%s9522_s3 + $0x490] sm:$0xff]  ;;  %v3089_v58 = vld [vmem:[%s9522_s3 + $0x418] sm:$0xff] }
 0x48d   : > { %6245 = vmatprep.subr.bf16.mxu0 %v7748_v31  ;;  %6216 = vmatprep.subr.bf16.mxu1 %v7938_v5  ;;  %v8035_v31 = vcombine.low %v3343_v27, %v3359_v29  ;;  %v2805_v5 = vld [vmem:[#allocation7 + $0x3] sm:$0x3] }
 0x490   : > { %6246 = vmatpush1.bf16.msra.mxu0 %v7747_v34  ;;  %6217 = vmatpush1.bf16.msra.mxu1 %v7937_v7  ;;  %v3390_v34 = vld [vmem:[%s9522_s3 + $0xd80] sm:$0xff]  ;;  %v2810_v7 = vrot.slane %v2805_v5, %v10240_v4 }
 0x491   : > { %6247 = vmatprep.subr.bf16.mxu0 %v7780_v35  ;;  %6218 = vmatprep.subr.bf16.mxu1 %v7970_v13  ;;  %v3375_v35 = vld [vmem:[%s9522_s3 + $0xd08] sm:$0xff]  ;;  %v8066_v36 = vcombine.high %v3374_v33, %v3390_v34 }
 0x494   : > { %6248 = vmatpush1.bf16.msra.mxu0 %v7779_v38  ;;  %6219 = vmatpush1.bf16.msra.mxu1 %v7969_v15  ;;  %v8065_v38 = vcombine.low %v3374_v33, %v3390_v34  ;;  %v3008_v33 = vld [vmem:[%s9522_s3 + $0x190] sm:$0xff]  ;;  %v2993_v34 = vld [vmem:[%s9522_s3 + $0x118] sm:$0xff] }
 0x495   : > { %6249 = vmatprep.subr.bf16.mxu0 %v7812_v39  ;;  %6220 = vmatprep.subr.bf16.mxu1 %v8002_v21  ;;  %v8067_v39 = vcombine.low %v3375_v35, %v3391_v37 }
 0x498   : > { %6250 = vmatpush1.bf16.msra.mxu0 %v7811_v40  ;;  %6221 = vmatpush1.bf16.msra.mxu1 %v8001_v23  ;;  %v8068_v40 = vcombine.high %v3375_v35, %v3391_v37  ;;  %v3009_v35 = vld [vmem:[%s9522_s3 + $0x198] sm:$0xff] }
 0x499   : > { %6251 = vmatprep.subr.bf16.mxu0 %v7844_v48  ;;  %6222 = vmatprep.subr.bf16.mxu1 %v8034_v28  ;;  %v8100_v48 = vcombine.high %v3407_v43, %v3423_v45 }
 0x49c   : > { %6252 = vmatpush1.bf16.msra.mxu0 %v7843_v47  ;;  %6223 = vmatpush1.bf16.msra.mxu1 %v8033_v30  ;;  %v8099_v47 = vcombine.low %v3407_v43, %v3423_v45  ;;  %v3041_v43 = vld [vmem:[%s9522_s3 + $0x298] sm:$0xff]  ;;  %v7687_v45 = vcombine.low %v2993_v34, %v3009_v35 }
 0x49d   : > { %6253 = vmatprep.subr.bf16.mxu0 %v7876_v56  ;;  %6224 = vmatprep.subr.bf16.mxu1 %v8066_v36  ;;  %v8132_v56 = vcombine.high %v3439_v51, %v3455_v53 }
 0x4a0   : > { %6254 = vmatpush1.bf16.msra.mxu0 %v7875_v55  ;;  %6225 = vmatpush1.bf16.msra.mxu1 %v8065_v38  ;;  %v8131_v55 = vcombine.low %v3439_v51, %v3455_v53  ;;  %v3024_v38 = vld [vmem:[%s9522_s3 + $0x210] sm:$0xff]  ;;  %v3073_v51 = vld [vmem:[%s9522_s3 + $0x398] sm:$0xff]  ;;  %v7719_v53 = vcombine.low %v3025_v42, %v3041_v43 }
 0x4a1   : > { %6255 = vmatprep.subr.bf16.mxu0 %v7908_v1  ;;  %6226 = vmatprep.subr.bf16.mxu1 %v8098_v44  ;;  %v7656_v1 = vcombine.high %v2961_v59, %v2977_v61 }
 0x4a4   : > { %6256 = vmatpush1.bf16.msra.mxu0 %v7907_v0  ;;  %6227 = vmatpush1.bf16.msra.mxu1 %v8097_v46  ;;  %v7655_v0 = vcombine.low %v2961_v59, %v2977_v61  ;;  %v7718_v46 = vcombine.high %v3024_v38, %v3040_v41  ;;  %v3105_v59 = vld [vmem:[%s9522_s3 + $0x498] sm:$0xff]  ;;  %v7751_v61 = vcombine.low %v3057_v50, %v3073_v51 }
 0x4a5   : > { %6257 = vmatprep.subr.bf16.mxu0 %v7940_v9  ;;  %6228 = vmatprep.subr.bf16.mxu1 %v8130_v52  ;;  %v7717_v52 = vcombine.low %v3024_v38, %v3040_v41  ;;  %v3248_v38 = vld [vmem:[%s9522_s3 + $0x910] sm:$0xff]  ;;  %v3265_v41 = vld [vmem:[%s9522_s3 + $0x998] sm:$0xff] }
 0x4a8   : > { %6258 = vmatpush1.bf16.msra.mxu0 %v7939_v8  ;;  %6229 = vmatpush1.bf16.msra.mxu1 %v8129_v54  ;;  %v2814_v8 = vrot.slane %v2805_v5, %v10243_v6  ;;  %v3136_v5 = vld [vmem:[%s9522_s3 + $0x590] sm:$0xff] }
 0x4a9   : > { %6259 = vmatprep.subr.bf16.mxu0 %v7972_v17  ;;  %6280 = vmatprep.subr.bf16.mxu1 %v7654_v60 }
 0x4ac   : > { %6260 = vmatpush1.bf16.msra.mxu0 %v7971_v16 }
 0x4ad   : > { %6261 = vmatprep.subr.bf16.mxu0 %v8004_v24 }
 0x4b0   : > { %6262 = vmatpush1.bf16.msra.mxu0 %v8003_v62 }
 0x4b1   : > { %6263 = vmatprep.subr.bf16.mxu0 %v8036_v32  ;;  %v2992_v32 = vld [vmem:[%s9522_s3 + $0x110] sm:$0xff] }
 0x4b2   : > { %v7685_v44 = vcombine.low %v2992_v32, %v3008_v33 }
 0x4b4   : > { %6264 = vmatpush1.bf16.msra.mxu0 %v8035_v31 }
 0x4b5   : > { %6265 = vmatprep.subr.bf16.mxu0 %v8068_v40  ;;  %v7688_v40 = vcombine.high %v2993_v34, %v3009_v35 }
 0x4b8   : > { %6266 = vmatpush1.bf16.msra.mxu0 %v8067_v39  ;;  %v7686_v39 = vcombine.high %v2992_v32, %v3008_v33 }
 0x4b9   : > { %6267 = vmatprep.subr.bf16.mxu0 %v8100_v48  ;;  %v3056_v48 = vld [vmem:[%s9522_s3 + $0x310] sm:$0xff] }
 0x4ba   : > { %v7750_v54 = vcombine.high %v3056_v48, %v3072_v49  ;;  %v7749_v60 = vcombine.low %v3056_v48, %v3072_v49  ;;  %v3281_v48 = vld [vmem:[%s9522_s3 + $0xa18] sm:$0xff] }
 0x4bb   : > { %v3297_v49 = vld [vmem:[%s9522_s3 + $0xa98] sm:$0xff] }
 0x4bc   : > { %6268 = vmatpush1.bf16.msra.mxu0 %v8099_v47  ;;  %v7720_v47 = vcombine.high %v3025_v42, %v3041_v43 }
 0x4bd   : > { %6269 = vmatprep.subr.bf16.mxu0 %v8132_v56  ;;  %v3088_v56 = vld [vmem:[%s9522_s3 + $0x410] sm:$0xff] }
 0x4c0   : > { %6270 = vmatpush1.bf16.msra.mxu0 %v8131_v55  ;;  %v7752_v55 = vcombine.high %v3057_v50, %v3073_v51 }
 0x4c1   : > { %6321 = vmatprep.subr.bf16.mxu0 %v7656_v1  ;;  %v3120_v1 = vld [vmem:[%s9522_s3 + $0x510] sm:$0xff] }
 0x556   : > { %v2931_v9 = vpop.f32.mrb[28].mxu0 }
 0x557   : > { %v2932_v10 = vadd.f32 %v2931_v9, %v2810_v7  ;;  %v2933_v11 = vpop.f32.mrb[29].mxu0  ;;  %v3121_v7 = vld [vmem:[%s9522_s3 + $0x518] sm:$0xff]  ;;  %v7781_v9 = vcombine.low %v3088_v56, %v3104_v57 }
 0x558   : > { %v2934_v12 = vadd.f32 %v2933_v11, %v2814_v8  ;;  %v2935_v13 = vpop.f32.mrb[30].mxu0  ;;  %v3137_v8 = vld [vmem:[%s9522_s3 + $0x598] sm:$0xff]  ;;  %v7814_v11 = vcombine.high %v3120_v1, %v3136_v5 }
 0x559   : > { %v2938_v14 = vmul.f32 1.442695, %v2932_v10  ;;  %v2936_v15 = vpop.f32.mrb[31].mxu0  ;;  %v3152_v13 = vld [vmem:[%s9522_s3 + $0x610] sm:$0xff] }
 0x55a   : > { %v2940_v16 = vmul.f32 1.442695, %v2934_v12  ;;  %v3153_v15 = vld [vmem:[%s9522_s3 + $0x618] sm:$0xff] }
 0x55b   : > { %8883 = vpow2.f32 %v2938_v14  ;;  %v3168_v14 = vld [vmem:[%s9522_s3 + $0x690] sm:$0xff] }
 0x55c   : > { %8885 = vpow2.f32 %v2940_v16  ;;  %v3169_v16 = vld [vmem:[%s9522_s3 + $0x698] sm:$0xff] }
 0x565   : > { %v8884_v17 = vpop.eup %8883 }
 0x566   : > { %v8886_v18 = vpop.eup %8885  ;;  %v2942_v19 = vadd.f32 1.0, %v8884_v17  ;;  %v7813_v17 = vcombine.low %v3120_v1, %v3136_v5  ;;  %v3345_v1 = vld [vmem:[%s9522_s3 + $0xc18] sm:$0xff] }
 0x567   : > { %v2943_v20 = vadd.f32 1.0, %v8886_v18  ;;  %v7815_v18 = vcombine.low %v3121_v7, %v3137_v8  ;;  %v3361_v5 = vld [vmem:[%s9522_s3 + $0xc98] sm:$0xff] }
 0x568   : > { %v2944_v21 = vmul.f32 %v2942_v19, %v2942_v19  ;;  %v7846_v19 = vcombine.high %v3152_v13, %v3168_v14 }
 0x569   : > { %v2945_v22 = vmul.f32 %v2943_v20, %v2943_v20  ;;  %v7848_v20 = vcombine.high %v3153_v15, %v3169_v16 }
 0x56a   : > { %v2946_v23 = vadd.f32 1.0, %v2944_v21  ;;  %v3184_v21 = vld [vmem:[%s9522_s3 + $0x710] sm:$0xff] }
 0x56b   : > { %v2947_v62 = vadd.f32 1.0, %v2945_v22  ;;  %v3200_v22 = vld [vmem:[%s9522_s3 + $0x790] sm:$0xff] }
 0x56c   : > { %8887 = vrcp.f32 %v2946_v23  ;;  %v3185_v23 = vld [vmem:[%s9522_s3 + $0x718] sm:$0xff]  ;;  %v7877_v32 = vcombine.low %v3184_v21, %v3200_v22 }
 0x56d   : > { %8889 = vrcp.f32 %v2947_v62  ;;  %v3201_v62 = vld [vmem:[%s9522_s3 + $0x798] sm:$0xff] }
 0x56e   : > { %v7879_v33 = vcombine.low %v3185_v23, %v3201_v62 }
 0x576   : > { %v8888_v24 = vpop.eup %8887 }
 0x577   : > { %v8890_v25 = vpop.eup %8889  ;;  %v2950_v26 = vmul.f32 2.0, %v8888_v24  ;;  %v7845_v24 = vcombine.low %v3152_v13, %v3168_v14  ;;  %v3377_v13 = vld [vmem:[%s9522_s3 + $0xd18] sm:$0xff] }
 0x578   : > { %v2951_v27 = vmul.f32 2.0, %v8890_v25  ;;  %v7847_v25 = vcombine.low %v3153_v15, %v3169_v16  ;;  %v3393_v14 = vld [vmem:[%s9522_s3 + $0xd98] sm:$0xff]  ;;  %v8039_v16 = vcombine.low %v3345_v1, %v3361_v5 }
 0x579   : > { %v2952_v28 = vsub.f32 1.0, %v2950_v26  ;;  %v7878_v26 = vcombine.high %v3184_v21, %v3200_v22  ;;  %v3409_v21 = vld [vmem:[%s9522_s3 + $0xe18] sm:$0xff] }
 0x57a   : > { %v2953_v29 = vsub.f32 1.0, %v2951_v27  ;;  %v7880_v27 = vcombine.high %v3185_v23, %v3201_v62  ;;  %v3425_v22 = vld [vmem:[%s9522_s3 + $0xe98] sm:$0xff]  ;;  %v8071_v62 = vcombine.low %v3377_v13, %v3393_v14 }
 0x57b   : > { %v2954_v30 = vmul.f32 %v2952_v28, %v2932_v10  ;;  %v7783_v10 = vcombine.low %v3089_v58, %v3105_v59  ;;  %v3216_v28 = vld [vmem:[%s9522_s3 + $0x810] sm:$0xff] }
 0x57c   : > { %v2955_v31 = vmul.f32 %v2953_v29, %v2934_v12  ;;  %v7816_v12 = vcombine.high %v3121_v7, %v3137_v8  ;;  %v3232_v29 = vld [vmem:[%s9522_s3 + $0x890] sm:$0xff] }
 0x57d   : > { %v10253_v37 = vpack.c.bf16 %v2954_v30, %v2954_v30  ;;  %v3217_v30 = vld [vmem:[%s9522_s3 + $0x818] sm:$0xff]  ;;  %v7910_v34 = vcombine.high %v3216_v28, %v3232_v29  ;;  %v7909_v42 = vcombine.low %v3216_v28, %v3232_v29 }
 0x57e   : > { %v10251_v36 = vpack.c.bf16 %v2955_v31, %v2955_v31  ;;  %v3233_v31 = vld [vmem:[%s9522_s3 + $0x898] sm:$0xff] }
 0x57f   : > { %v7912_v35 = vcombine.high %v3217_v30, %v3233_v31  ;;  %v7911_v43 = vcombine.low %v3217_v30, %v3233_v31  ;;  %v3441_v28 = vld [vmem:[%s9522_s3 + $0xf18] sm:$0xff]  ;;  %v8103_v31 = vcombine.low %v3409_v21, %v3425_v22 }
 0x580   : > { %6230 = vmatprep.mubr.bf16.mxu1 %v10251_v36  ;;  %6271 = vmatprep.mubr.bf16.mxu0 %v10251_v36  ;;  %v3457_v29 = vld [vmem:[%s9522_s3 + $0xf98] sm:$0xff] }
 0x581   : > { %6231 = vmatmul.mubr.bf16.vlgmr.msra.gmra.mrb[28].mxu1 %v10253_v37  ;;  %6272 = vmatmul.mubr.bf16.vlgmr.msra.gmra.mrb[32].mxu0 %v10253_v37 }
 0x582   : > { %6281 = vmatpush1.bf16.msra.mxu1 %v7653_v63  ;;  %6322 = vmatpush1.bf16.msra.mxu0 %v7655_v0  ;;  %v7782_v63 = vcombine.high %v3088_v56, %v3104_v57  ;;  %v7784_v0 = vcombine.high %v3089_v58, %v3105_v59  ;;  %v3313_v56 = vld [vmem:[%s9522_s3 + $0xb18] sm:$0xff]  ;;  %v7975_v59 = vcombine.low %v3281_v48, %v3297_v49 }
 0x583   : > { %6312 = vmatprep.mubr.bf16.mxu1 %v10251_v36  ;;  %6353 = vmatprep.mubr.bf16.mxu0 %v10251_v36  ;;  %v3329_v57 = vld [vmem:[%s9522_s3 + $0xb98] sm:$0xff] }
 0x584   : > { %6282 = vmatprep.subr.bf16.mxu1 %v7686_v39  ;;  %6323 = vmatprep.subr.bf16.mxu0 %v7688_v40  ;;  %v3264_v39 = vld [vmem:[%s9522_s3 + $0x990] sm:$0xff]  ;;  %v3249_v40 = vld [vmem:[%s9522_s3 + $0x918] sm:$0xff]  ;;  %v8007_v8 = vcombine.low %v3313_v56, %v3329_v57 }
 0x585   : > { %v7941_v50 = vcombine.low %v3248_v38, %v3264_v39  ;;  %v7943_v51 = vcombine.low %v3249_v40, %v3265_v41 }
 0x586   : > { %6283 = vmatpush1.bf16.msra.mxu1 %v7685_v44  ;;  %6324 = vmatpush1.bf16.msra.mxu0 %v7687_v45  ;;  %v7942_v44 = vcombine.high %v3248_v38, %v3264_v39  ;;  %v7944_v45 = vcombine.high %v3249_v40, %v3265_v41  ;;  %v2963_v38 = vld [vmem:[%s9522_s3 + $0x28] sm:$0xff]  ;;  %v8135_v41 = vcombine.low %v3441_v28, %v3457_v29 }
 0x587   : > { %6284 = vmatprep.subr.bf16.mxu1 %v7718_v46  ;;  %6325 = vmatprep.subr.bf16.mxu0 %v7720_v47  ;;  %v3280_v46 = vld [vmem:[%s9522_s3 + $0xa10] sm:$0xff]  ;;  %v2979_v39 = vld [vmem:[%s9522_s3 + $0xa8] sm:$0xff] }
 0x588   : > { %v3296_v47 = vld [vmem:[%s9522_s3 + $0xa90] sm:$0xff] }
 0x589   : > { %v7973_v58 = vcombine.low %v3280_v46, %v3296_v47 }
 0x58a   : > { %6285 = vmatpush1.bf16.msra.mxu1 %v7717_v52  ;;  %6326 = vmatpush1.bf16.msra.mxu0 %v7719_v53  ;;  %v7974_v52 = vcombine.high %v3280_v46, %v3296_v47  ;;  %v7976_v53 = vcombine.high %v3281_v48, %v3297_v49  ;;  %v2995_v46 = vld [vmem:[%s9522_s3 + $0x128] sm:$0xff]  ;;  %v7659_v49 = vcombine.low %v2963_v38, %v2979_v39 }
 0x58b   : > { %6286 = vmatprep.subr.bf16.mxu1 %v7750_v54  ;;  %6327 = vmatprep.subr.bf16.mxu0 %v7752_v55  ;;  %v3312_v54 = vld [vmem:[%s9522_s3 + $0xb10] sm:$0xff]  ;;  %v3011_v47 = vld [vmem:[%s9522_s3 + $0x1a8] sm:$0xff] }
 0x58c   : > { %v3328_v55 = vld [vmem:[%s9522_s3 + $0xb90] sm:$0xff] }
 0x58d   : > { %v8005_v7 = vcombine.low %v3312_v54, %v3328_v55 }
 0x58e   : > { %6287 = vmatpush1.bf16.msra.mxu1 %v7749_v60  ;;  %6328 = vmatpush1.bf16.msra.mxu0 %v7751_v61  ;;  %v8006_v60 = vcombine.high %v3312_v54, %v3328_v55  ;;  %v8008_v61 = vcombine.high %v3313_v56, %v3329_v57  ;;  %v3027_v54 = vld [vmem:[%s9522_s3 + $0x228] sm:$0xff]  ;;  %v7691_v57 = vcombine.low %v2995_v46, %v3011_v47 }
 0x58f   : > { %6288 = vmatprep.subr.bf16.mxu1 %v7782_v63  ;;  %6329 = vmatprep.subr.bf16.mxu0 %v7784_v0  ;;  %v3344_v63 = vld [vmem:[%s9522_s3 + $0xc10] sm:$0xff]  ;;  %v3043_v55 = vld [vmem:[%s9522_s3 + $0x2a8] sm:$0xff] }
 0x590   : > { %v3360_v0 = vld [vmem:[%s9522_s3 + $0xc90] sm:$0xff] }
 0x591   : > { %v8037_v15 = vcombine.low %v3344_v63, %v3360_v0 }
 0x592   : > { %6289 = vmatpush1.bf16.msra.mxu1 %v7781_v9  ;;  %6330 = vmatpush1.bf16.msra.mxu0 %v7783_v10  ;;  %v8038_v9 = vcombine.high %v3344_v63, %v3360_v0  ;;  %v8040_v10 = vcombine.high %v3345_v1, %v3361_v5  ;;  %v3059_v63 = vld [vmem:[%s9522_s3 + $0x328] sm:$0xff]  ;;  %v7723_v5 = vcombine.low %v3027_v54, %v3043_v55 }
 0x593   : > { %6290 = vmatprep.subr.bf16.mxu1 %v7814_v11  ;;  %6331 = vmatprep.subr.bf16.mxu0 %v7816_v12  ;;  %v3376_v11 = vld [vmem:[%s9522_s3 + $0xd10] sm:$0xff]  ;;  %v3075_v0 = vld [vmem:[%s9522_s3 + $0x3a8] sm:$0xff] }
 0x594   : > { %v3392_v12 = vld [vmem:[%s9522_s3 + $0xd90] sm:$0xff] }
 0x595   : > { %v8069_v23 = vcombine.low %v3376_v11, %v3392_v12 }
 0x596   : > { %6291 = vmatpush1.bf16.msra.mxu1 %v7813_v17  ;;  %6332 = vmatpush1.bf16.msra.mxu0 %v7815_v18  ;;  %v8070_v17 = vcombine.high %v3376_v11, %v3392_v12  ;;  %v8072_v18 = vcombine.high %v3377_v13, %v3393_v14  ;;  %v3091_v11 = vld [vmem:[%s9522_s3 + $0x428] sm:$0xff]  ;;  %v7755_v14 = vcombine.low %v3059_v63, %v3075_v0 }
 0x597   : > { %6292 = vmatprep.subr.bf16.mxu1 %v7846_v19  ;;  %6333 = vmatprep.subr.bf16.mxu0 %v7848_v20  ;;  %v3408_v19 = vld [vmem:[%s9522_s3 + $0xe10] sm:$0xff]  ;;  %v3107_v12 = vld [vmem:[%s9522_s3 + $0x4a8] sm:$0xff] }
 0x598   : > { %v3424_v20 = vld [vmem:[%s9522_s3 + $0xe90] sm:$0xff] }
 0x599   : > { %v8101_v30 = vcombine.low %v3408_v19, %v3424_v20 }
 0x59a   : > { %6293 = vmatpush1.bf16.msra.mxu1 %v7845_v24  ;;  %6334 = vmatpush1.bf16.msra.mxu0 %v7847_v25  ;;  %v8102_v24 = vcombine.high %v3408_v19, %v3424_v20  ;;  %v8104_v25 = vcombine.high %v3409_v21, %v3425_v22  ;;  %v3123_v19 = vld [vmem:[%s9522_s3 + $0x528] sm:$0xff]  ;;  %v7787_v22 = vcombine.low %v3091_v11, %v3107_v12 }
 0x59b   : > { %6294 = vmatprep.subr.bf16.mxu1 %v7878_v26  ;;  %6335 = vmatprep.subr.bf16.mxu0 %v7880_v27  ;;  %v3440_v26 = vld [vmem:[%s9522_s3 + $0xf10] sm:$0xff]  ;;  %v3139_v20 = vld [vmem:[%s9522_s3 + $0x5a8] sm:$0xff] }
 0x59c   : > { %v3456_v27 = vld [vmem:[%s9522_s3 + $0xf90] sm:$0xff] }
 0x59d   : > { %v8133_v40 = vcombine.low %v3440_v26, %v3456_v27 }
 0x59e   : > { %6295 = vmatpush1.bf16.msra.mxu1 %v7877_v32  ;;  %6336 = vmatpush1.bf16.msra.mxu0 %v7879_v33  ;;  %v8134_v32 = vcombine.high %v3440_v26, %v3456_v27  ;;  %v8136_v33 = vcombine.high %v3441_v28, %v3457_v29  ;;  %v3155_v26 = vld [vmem:[%s9522_s3 + $0x628] sm:$0xff]  ;;  %v7819_v29 = vcombine.low %v3123_v19, %v3139_v20 }
 0x59f   : > { %6296 = vmatprep.subr.bf16.mxu1 %v7910_v34  ;;  %6337 = vmatprep.subr.bf16.mxu0 %v7912_v35  ;;  %v2962_v34 = vld [vmem:[%s9522_s3 + $0x20] sm:$0xff]  ;;  %v3171_v27 = vld [vmem:[%s9522_s3 + $0x6a8] sm:$0xff] }
 0x5a0   : > { %v2978_v35 = vld [vmem:[%s9522_s3 + $0xa0] sm:$0xff] }
 0x5a1   : > { %v7657_v48 = vcombine.low %v2962_v34, %v2978_v35 }
 0x5a2   : > { %6297 = vmatpush1.bf16.msra.mxu1 %v7909_v42  ;;  %6338 = vmatpush1.bf16.msra.mxu0 %v7911_v43  ;;  %v7658_v42 = vcombine.high %v2962_v34, %v2978_v35  ;;  %v7660_v43 = vcombine.high %v2963_v38, %v2979_v39  ;;  %v3187_v34 = vld [vmem:[%s9522_s3 + $0x728] sm:$0xff]  ;;  %v7851_v39 = vcombine.low %v3155_v26, %v3171_v27 }
 0x5a3   : > { %6298 = vmatprep.subr.bf16.mxu1 %v7942_v44  ;;  %6339 = vmatprep.subr.bf16.mxu0 %v7944_v45  ;;  %v2994_v44 = vld [vmem:[%s9522_s3 + $0x120] sm:$0xff]  ;;  %v3203_v35 = vld [vmem:[%s9522_s3 + $0x7a8] sm:$0xff] }
 0x5a4   : > { %v3010_v45 = vld [vmem:[%s9522_s3 + $0x1a0] sm:$0xff] }
 0x5a5   : > { %v7689_v56 = vcombine.low %v2994_v44, %v3010_v45 }
 0x5a6   : > { %6299 = vmatpush1.bf16.msra.mxu1 %v7941_v50  ;;  %6340 = vmatpush1.bf16.msra.mxu0 %v7943_v51  ;;  %v7690_v50 = vcombine.high %v2994_v44, %v3010_v45  ;;  %v7692_v51 = vcombine.high %v2995_v46, %v3011_v47  ;;  %v3219_v44 = vld [vmem:[%s9522_s3 + $0x828] sm:$0xff]  ;;  %v7883_v47 = vcombine.low %v3187_v34, %v3203_v35 }
 0x5a7   : > { %6300 = vmatprep.subr.bf16.mxu1 %v7974_v52  ;;  %6341 = vmatprep.subr.bf16.mxu0 %v7976_v53  ;;  %v3026_v52 = vld [vmem:[%s9522_s3 + $0x220] sm:$0xff]  ;;  %v3235_v45 = vld [vmem:[%s9522_s3 + $0x8a8] sm:$0xff] }
 0x5a8   : > { %v3042_v53 = vld [vmem:[%s9522_s3 + $0x2a0] sm:$0xff] }
 0x5a9   : > { %v7721_v1 = vcombine.low %v3026_v52, %v3042_v53 }
 0x5aa   : > { %6301 = vmatpush1.bf16.msra.mxu1 %v7973_v58  ;;  %6342 = vmatpush1.bf16.msra.mxu0 %v7975_v59  ;;  %v7722_v58 = vcombine.high %v3026_v52, %v3042_v53  ;;  %v7724_v59 = vcombine.high %v3027_v54, %v3043_v55  ;;  %v3251_v52 = vld [vmem:[%s9522_s3 + $0x928] sm:$0xff]  ;;  %v7915_v55 = vcombine.low %v3219_v44, %v3235_v45 }
 0x5ab   : > { %6302 = vmatprep.subr.bf16.mxu1 %v8006_v60  ;;  %6343 = vmatprep.subr.bf16.mxu0 %v8008_v61  ;;  %v3058_v60 = vld [vmem:[%s9522_s3 + $0x320] sm:$0xff]  ;;  %v3267_v53 = vld [vmem:[%s9522_s3 + $0x9a8] sm:$0xff] }
 0x5ac   : > { %v3074_v61 = vld [vmem:[%s9522_s3 + $0x3a0] sm:$0xff] }
 0x5ad   : > { %v7753_v13 = vcombine.low %v3058_v60, %v3074_v61 }
 0x5ae   : > { %6303 = vmatpush1.bf16.msra.mxu1 %v8005_v7  ;;  %6344 = vmatpush1.bf16.msra.mxu0 %v8007_v8  ;;  %v7754_v7 = vcombine.high %v3058_v60, %v3074_v61  ;;  %v7756_v8 = vcombine.high %v3059_v63, %v3075_v0  ;;  %v3283_v60 = vld [vmem:[%s9522_s3 + $0xa28] sm:$0xff]  ;;  %v7947_v0 = vcombine.low %v3251_v52, %v3267_v53 }
 0x5af   : > { %6304 = vmatprep.subr.bf16.mxu1 %v8038_v9  ;;  %6345 = vmatprep.subr.bf16.mxu0 %v8040_v10  ;;  %v3090_v9 = vld [vmem:[%s9522_s3 + $0x420] sm:$0xff]  ;;  %v3299_v61 = vld [vmem:[%s9522_s3 + $0xaa8] sm:$0xff] }
 0x5b0   : > { %v3106_v10 = vld [vmem:[%s9522_s3 + $0x4a0] sm:$0xff] }
 0x5b1   : > { %v7785_v21 = vcombine.low %v3090_v9, %v3106_v10 }
 0x5b2   : > { %6305 = vmatpush1.bf16.msra.mxu1 %v8037_v15  ;;  %6346 = vmatpush1.bf16.msra.mxu0 %v8039_v16  ;;  %v7786_v15 = vcombine.high %v3090_v9, %v3106_v10  ;;  %v7788_v16 = vcombine.high %v3091_v11, %v3107_v12  ;;  %v3315_v9 = vld [vmem:[%s9522_s3 + $0xb28] sm:$0xff]  ;;  %v7979_v12 = vcombine.low %v3283_v60, %v3299_v61 }
 0x5b3   : > { %6306 = vmatprep.subr.bf16.mxu1 %v8070_v17  ;;  %6347 = vmatprep.subr.bf16.mxu0 %v8072_v18  ;;  %v3122_v17 = vld [vmem:[%s9522_s3 + $0x520] sm:$0xff]  ;;  %v3331_v10 = vld [vmem:[%s9522_s3 + $0xba8] sm:$0xff] }
 0x5b4   : > { %v3138_v18 = vld [vmem:[%s9522_s3 + $0x5a0] sm:$0xff] }
 0x5b5   : > { %v7817_v28 = vcombine.low %v3122_v17, %v3138_v18 }
 0x5b6   : > { %6307 = vmatpush1.bf16.msra.mxu1 %v8069_v23  ;;  %6348 = vmatpush1.bf16.msra.mxu0 %v8071_v62  ;;  %v7818_v23 = vcombine.high %v3122_v17, %v3138_v18  ;;  %v7820_v62 = vcombine.high %v3123_v19, %v3139_v20  ;;  %v3347_v17 = vld [vmem:[%s9522_s3 + $0xc28] sm:$0xff]  ;;  %v8011_v20 = vcombine.low %v3315_v9, %v3331_v10 }
 0x5b7   : > { %6308 = vmatprep.subr.bf16.mxu1 %v8102_v24  ;;  %6349 = vmatprep.subr.bf16.mxu0 %v8104_v25  ;;  %v3154_v24 = vld [vmem:[%s9522_s3 + $0x620] sm:$0xff]  ;;  %v3363_v18 = vld [vmem:[%s9522_s3 + $0xca8] sm:$0xff] }
 0x5b8   : > { %v3170_v25 = vld [vmem:[%s9522_s3 + $0x6a0] sm:$0xff] }
 0x5b9   : > { %v7849_v38 = vcombine.low %v3154_v24, %v3170_v25 }
 0x5ba   : > { %6309 = vmatpush1.bf16.msra.mxu1 %v8101_v30  ;;  %6350 = vmatpush1.bf16.msra.mxu0 %v8103_v31  ;;  %v7850_v30 = vcombine.high %v3154_v24, %v3170_v25  ;;  %v7852_v31 = vcombine.high %v3155_v26, %v3171_v27  ;;  %v3379_v24 = vld [vmem:[%s9522_s3 + $0xd28] sm:$0xff]  ;;  %v8043_v27 = vcombine.low %v3347_v17, %v3363_v18 }
 0x5bb   : > { %6310 = vmatprep.subr.bf16.mxu1 %v8134_v32  ;;  %6351 = vmatprep.subr.bf16.mxu0 %v8136_v33  ;;  %v3186_v32 = vld [vmem:[%s9522_s3 + $0x720] sm:$0xff]  ;;  %v3395_v25 = vld [vmem:[%s9522_s3 + $0xda8] sm:$0xff] }
 0x5bc   : > { %v3202_v33 = vld [vmem:[%s9522_s3 + $0x7a0] sm:$0xff] }
 0x5bd   : > { %v7881_v46 = vcombine.low %v3186_v32, %v3202_v33 }
 0x5be   : > { %6311 = vmatpush1.bf16.msra.mxu1 %v8133_v40  ;;  %6352 = vmatpush1.bf16.msra.mxu0 %v8135_v41  ;;  %v7882_v40 = vcombine.high %v3186_v32, %v3202_v33  ;;  %v7884_v41 = vcombine.high %v3187_v34, %v3203_v35  ;;  %v3411_v32 = vld [vmem:[%s9522_s3 + $0xe28] sm:$0xff]  ;;  %v8075_v35 = vcombine.low %v3379_v24, %v3395_v25 }
 0x5bf   : > { %6362 = vmatprep.subr.bf16.mxu1 %v7658_v42  ;;  %6403 = vmatprep.subr.bf16.mxu0 %v7660_v43  ;;  %v3218_v42 = vld [vmem:[%s9522_s3 + $0x820] sm:$0xff]  ;;  %v3427_v33 = vld [vmem:[%s9522_s3 + $0xea8] sm:$0xff] }
 0x5c0   : > { %v3234_v43 = vld [vmem:[%s9522_s3 + $0x8a0] sm:$0xff] }
 0x5c1   : > { %6313 = vmatmul.mubr.bf16.vlgmr.msra.gmra.mrb[32].mxu1 %v10253_v37  ;;  %6354 = vmatmul.mubr.bf16.vlgmr.msra.gmra.mrb[36].mxu0 %v10253_v37  ;;  %v7913_v54 = vcombine.low %v3218_v42, %v3234_v43 }
 0x5c2   : > { %6363 = vmatpush1.bf16.msra.mxu1 %v7657_v48  ;;  %6394 = vmatprep.mubr.bf16.mxu1 %v10251_v36  ;;  %v7914_v48 = vcombine.high %v3218_v42, %v3234_v43  ;;  %v3443_v42 = vld [vmem:[%s9522_s3 + $0xf28] sm:$0xff] }
 0x5c3   : > { %6404 = vmatpush1.bf16.msra.mxu0 %v7659_v49  ;;  %6435 = vmatprep.mubr.bf16.mxu0 %v10251_v36  ;;  %v7916_v49 = vcombine.high %v3219_v44, %v3235_v45  ;;  %v3459_v43 = vld [vmem:[%s9522_s3 + $0xfa8] sm:$0xff]  ;;  %v8107_v45 = vcombine.low %v3411_v32, %v3427_v33 }
 0x5c4   : > { %6364 = vmatprep.subr.bf16.mxu1 %v7690_v50  ;;  %6405 = vmatprep.subr.bf16.mxu0 %v7692_v51  ;;  %v3250_v50 = vld [vmem:[%s9522_s3 + $0x920] sm:$0xff] }
 0x5c5   : > { %v3266_v51 = vld [vmem:[%s9522_s3 + $0x9a0] sm:$0xff] }
 0x5c6   : > { %6365 = vmatpush1.bf16.msra.mxu1 %v7689_v56  ;;  %v7946_v56 = vcombine.high %v3250_v50, %v3266_v51  ;;  %v7945_v63 = vcombine.low %v3250_v50, %v3266_v51  ;;  %v2965_v50 = vld [vmem:[%s9522_s3 + $0x38] sm:$0xff] }
 0x5c7   : > { %6406 = vmatpush1.bf16.msra.mxu0 %v7691_v57  ;;  %6366 = vmatprep.subr.bf16.mxu1 %v7722_v58  ;;  %v7948_v57 = vcombine.high %v3251_v52, %v3267_v53  ;;  %v3282_v58 = vld [vmem:[%s9522_s3 + $0xa20] sm:$0xff]  ;;  %v2981_v51 = vld [vmem:[%s9522_s3 + $0xb8] sm:$0xff]  ;;  %v8139_v53 = vcombine.low %v3443_v42, %v3459_v43 }
 0x5c8   : > { %6407 = vmatprep.subr.bf16.mxu0 %v7724_v59  ;;  %v3298_v59 = vld [vmem:[%s9522_s3 + $0xaa0] sm:$0xff] }
 0x5c9   : > { %v7977_v11 = vcombine.low %v3282_v58, %v3298_v59 }
 0x5ca   : > { %6367 = vmatpush1.bf16.msra.mxu1 %v7721_v1  ;;  %v7978_v1 = vcombine.high %v3282_v58, %v3298_v59  ;;  %v2997_v59 = vld [vmem:[%s9522_s3 + $0x138] sm:$0xff] }
 0x5cb   : > { %6408 = vmatpush1.bf16.msra.mxu0 %v7723_v5  ;;  %6368 = vmatprep.subr.bf16.mxu1 %v7754_v7  ;;  %v7980_v5 = vcombine.high %v3283_v60, %v3299_v61  ;;  %v3314_v7 = vld [vmem:[%s9522_s3 + $0xb20] sm:$0xff]  ;;  %v3013_v60 = vld [vmem:[%s9522_s3 + $0x1b8] sm:$0xff]  ;;  %v7663_v61 = vcombine.low %v2965_v50, %v2981_v51 }
 0x5cc   : > { %6409 = vmatprep.subr.bf16.mxu0 %v7756_v8  ;;  %v3330_v8 = vld [vmem:[%s9522_s3 + $0xba0] sm:$0xff] }
 0x5cd   : > { %v8009_v19 = vcombine.low %v3314_v7, %v3330_v8 }
 0x5ce   : > { %6369 = vmatpush1.bf16.msra.mxu1 %v7753_v13  ;;  %v8010_v13 = vcombine.high %v3314_v7, %v3330_v8  ;;  %v3029_v7 = vld [vmem:[%s9522_s3 + $0x238] sm:$0xff] }
 0x5cf   : > { %6410 = vmatpush1.bf16.msra.mxu0 %v7755_v14  ;;  %6370 = vmatprep.subr.bf16.mxu1 %v7786_v15  ;;  %v8012_v14 = vcombine.high %v3315_v9, %v3331_v10  ;;  %v3346_v15 = vld [vmem:[%s9522_s3 + $0xc20] sm:$0xff]  ;;  %v3045_v8 = vld [vmem:[%s9522_s3 + $0x2b8] sm:$0xff]  ;;  %v7695_v10 = vcombine.low %v2997_v59, %v3013_v60 }
 0x5d0   : > { %6411 = vmatprep.subr.bf16.mxu0 %v7788_v16  ;;  %v3362_v16 = vld [vmem:[%s9522_s3 + $0xca0] sm:$0xff] }
 0x5d1   : > { %v8041_v26 = vcombine.low %v3346_v15, %v3362_v16 }
 0x5d2   : > { %6371 = vmatpush1.bf16.msra.mxu1 %v7785_v21  ;;  %v8042_v21 = vcombine.high %v3346_v15, %v3362_v16  ;;  %v3061_v15 = vld [vmem:[%s9522_s3 + $0x338] sm:$0xff] }
 0x5d3   : > { %6412 = vmatpush1.bf16.msra.mxu0 %v7787_v22  ;;  %6372 = vmatprep.subr.bf16.mxu1 %v7818_v23  ;;  %v8044_v22 = vcombine.high %v3347_v17, %v3363_v18  ;;  %v3378_v23 = vld [vmem:[%s9522_s3 + $0xd20] sm:$0xff]  ;;  %v3077_v16 = vld [vmem:[%s9522_s3 + $0x3b8] sm:$0xff]  ;;  %v7727_v18 = vcombine.low %v3029_v7, %v3045_v8 }
 0x5d4   : > { %6413 = vmatprep.subr.bf16.mxu0 %v7820_v62  ;;  %v3394_v62 = vld [vmem:[%s9522_s3 + $0xda0] sm:$0xff] }
 0x5d5   : > { %v8073_v34 = vcombine.low %v3378_v23, %v3394_v62 }
 0x5d6   : > { %6373 = vmatpush1.bf16.msra.mxu1 %v7817_v28  ;;  %v8074_v28 = vcombine.high %v3378_v23, %v3394_v62  ;;  %v3093_v23 = vld [vmem:[%s9522_s3 + $0x438] sm:$0xff] }
 0x5d7   : > { %6414 = vmatpush1.bf16.msra.mxu0 %v7819_v29  ;;  %6374 = vmatprep.subr.bf16.mxu1 %v7850_v30  ;;  %v8076_v29 = vcombine.high %v3379_v24, %v3395_v25  ;;  %v3410_v30 = vld [vmem:[%s9522_s3 + $0xe20] sm:$0xff]  ;;  %v3109_v62 = vld [vmem:[%s9522_s3 + $0x4b8] sm:$0xff]  ;;  %v7759_v25 = vcombine.low %v3061_v15, %v3077_v16 }
 0x5d8   : > { %6415 = vmatprep.subr.bf16.mxu0 %v7852_v31  ;;  %v3426_v31 = vld [vmem:[%s9522_s3 + $0xea0] sm:$0xff] }
 0x5d9   : > { %v8105_v44 = vcombine.low %v3410_v30, %v3426_v31 }
 0x5da   : > { %6375 = vmatpush1.bf16.msra.mxu1 %v7849_v38  ;;  %v8106_v38 = vcombine.high %v3410_v30, %v3426_v31  ;;  %v3125_v30 = vld [vmem:[%s9522_s3 + $0x538] sm:$0xff] }
 0x5db   : > { %6416 = vmatpush1.bf16.msra.mxu0 %v7851_v39  ;;  %6376 = vmatprep.subr.bf16.mxu1 %v7882_v40  ;;  %v8108_v39 = vcombine.high %v3411_v32, %v3427_v33  ;;  %v3442_v40 = vld [vmem:[%s9522_s3 + $0xf20] sm:$0xff]  ;;  %v3141_v31 = vld [vmem:[%s9522_s3 + $0x5b8] sm:$0xff]  ;;  %v7791_v33 = vcombine.low %v3093_v23, %v3109_v62 }
 0x5dc   : > { %6417 = vmatprep.subr.bf16.mxu0 %v7884_v41  ;;  %v3458_v41 = vld [vmem:[%s9522_s3 + $0xfa0] sm:$0xff] }
 0x5dd   : > { %v8137_v52 = vcombine.low %v3442_v40, %v3458_v41 }
 0x5de   : > { %6377 = vmatpush1.bf16.msra.mxu1 %v7881_v46  ;;  %v8138_v46 = vcombine.high %v3442_v40, %v3458_v41  ;;  %v3157_v40 = vld [vmem:[%s9522_s3 + $0x638] sm:$0xff] }
 0x5df   : > { %6418 = vmatpush1.bf16.msra.mxu0 %v7883_v47  ;;  %6378 = vmatprep.subr.bf16.mxu1 %v7914_v48  ;;  %v8140_v47 = vcombine.high %v3443_v42, %v3459_v43  ;;  %v2964_v48 = vld [vmem:[%s9522_s3 + $0x30] sm:$0xff]  ;;  %v3173_v41 = vld [vmem:[%s9522_s3 + $0x6b8] sm:$0xff]  ;;  %v7823_v43 = vcombine.low %v3125_v30, %v3141_v31 }
 0x5e0   : > { %6419 = vmatprep.subr.bf16.mxu0 %v7916_v49  ;;  %v2980_v49 = vld [vmem:[%s9522_s3 + $0xb0] sm:$0xff] }
 0x5e1   : > { %v7661_v58 = vcombine.low %v2964_v48, %v2980_v49 }
 0x5e2   : > { %6379 = vmatpush1.bf16.msra.mxu1 %v7913_v54  ;;  %v7662_v54 = vcombine.high %v2964_v48, %v2980_v49  ;;  %v3189_v48 = vld [vmem:[%s9522_s3 + $0x738] sm:$0xff] }
 0x5e3   : > { %6420 = vmatpush1.bf16.msra.mxu0 %v7915_v55  ;;  %6380 = vmatprep.subr.bf16.mxu1 %v7946_v56  ;;  %v7664_v55 = vcombine.high %v2965_v50, %v2981_v51  ;;  %v2996_v56 = vld [vmem:[%s9522_s3 + $0x130] sm:$0xff]  ;;  %v3205_v49 = vld [vmem:[%s9522_s3 + $0x7b8] sm:$0xff]  ;;  %v7855_v51 = vcombine.low %v3157_v40, %v3173_v41 }
 0x5e4   : > { %6421 = vmatprep.subr.bf16.mxu0 %v7948_v57  ;;  %v3012_v57 = vld [vmem:[%s9522_s3 + $0x1b0] sm:$0xff] }
 0x5e5   : > { %v7693_v9 = vcombine.low %v2996_v56, %v3012_v57 }
 0x5e6   : > { %6381 = vmatpush1.bf16.msra.mxu1 %v7945_v63  ;;  %v7694_v63 = vcombine.high %v2996_v56, %v3012_v57  ;;  %v3221_v56 = vld [vmem:[%s9522_s3 + $0x838] sm:$0xff] }
 0x5e7   : > { %6422 = vmatpush1.bf16.msra.mxu0 %v7947_v0  ;;  %6382 = vmatprep.subr.bf16.mxu1 %v7978_v1  ;;  %v3028_v0 = vld [vmem:[%s9522_s3 + $0x230] sm:$0xff]  ;;  %v3237_v57 = vld [vmem:[%s9522_s3 + $0x8b8] sm:$0xff] }
 0x5e8   : > { %6423 = vmatprep.subr.bf16.mxu0 %v7980_v5  ;;  %v3044_v1 = vld [vmem:[%s9522_s3 + $0x2b0] sm:$0xff]  ;;  %v7696_v5 = vcombine.high %v2997_v59, %v3013_v60  ;;  %v7887_v59 = vcombine.low %v3189_v48, %v3205_v49 }
 0x5e9   : > { %v7725_v17 = vcombine.low %v3028_v0, %v3044_v1 }
 0x5ea   : > { %6383 = vmatpush1.bf16.msra.mxu1 %v7977_v11  ;;  %v7726_v11 = vcombine.high %v3028_v0, %v3044_v1  ;;  %v3268_v0 = vld [vmem:[%s9522_s3 + $0x9b0] sm:$0xff]  ;;  %v3253_v1 = vld [vmem:[%s9522_s3 + $0x938] sm:$0xff] }
 0x5eb   : > { %6424 = vmatpush1.bf16.msra.mxu0 %v7979_v12  ;;  %6384 = vmatprep.subr.bf16.mxu1 %v8010_v13  ;;  %v7728_v12 = vcombine.high %v3029_v7, %v3045_v8  ;;  %v3060_v13 = vld [vmem:[%s9522_s3 + $0x330] sm:$0xff]  ;;  %v7919_v8 = vcombine.low %v3221_v56, %v3237_v57 }
 0x5ec   : > { %6425 = vmatprep.subr.bf16.mxu0 %v8012_v14  ;;  %v3076_v14 = vld [vmem:[%s9522_s3 + $0x3b0] sm:$0xff] }
 0x5ed   : > { %v7757_v24 = vcombine.low %v3060_v13, %v3076_v14 }
 0x5ee   : > { %6385 = vmatpush1.bf16.msra.mxu1 %v8009_v19  ;;  %v7758_v19 = vcombine.high %v3060_v13, %v3076_v14  ;;  %v3285_v13 = vld [vmem:[%s9522_s3 + $0xa38] sm:$0xff] }
 0x5ef   : > { %6426 = vmatpush1.bf16.msra.mxu0 %v8011_v20  ;;  %6386 = vmatprep.subr.bf16.mxu1 %v8042_v21  ;;  %v7760_v20 = vcombine.high %v3061_v15, %v3077_v16  ;;  %v3092_v21 = vld [vmem:[%s9522_s3 + $0x430] sm:$0xff]  ;;  %v3301_v14 = vld [vmem:[%s9522_s3 + $0xab8] sm:$0xff] }
 0x5f0   : > { %6427 = vmatprep.subr.bf16.mxu0 %v8044_v22  ;;  %v3108_v22 = vld [vmem:[%s9522_s3 + $0x4b0] sm:$0xff] }
 0x5f1   : > { %v7789_v32 = vcombine.low %v3092_v21, %v3108_v22 }
 0x5f2   : > { %6387 = vmatpush1.bf16.msra.mxu1 %v8041_v26  ;;  %v7790_v26 = vcombine.high %v3092_v21, %v3108_v22  ;;  %v3317_v21 = vld [vmem:[%s9522_s3 + $0xb38] sm:$0xff] }
 0x5f3   : > { %6428 = vmatpush1.bf16.msra.mxu0 %v8043_v27  ;;  %6388 = vmatprep.subr.bf16.mxu1 %v8074_v28  ;;  %v7792_v27 = vcombine.high %v3093_v23, %v3109_v62  ;;  %v3124_v28 = vld [vmem:[%s9522_s3 + $0x530] sm:$0xff]  ;;  %v3333_v22 = vld [vmem:[%s9522_s3 + $0xbb8] sm:$0xff]  ;;  %v7983_v62 = vcombine.low %v3285_v13, %v3301_v14 }
 0x5f4   : > { %6429 = vmatprep.subr.bf16.mxu0 %v8076_v29  ;;  %v3140_v29 = vld [vmem:[%s9522_s3 + $0x5b0] sm:$0xff] }
 0x5f5   : > { %v7821_v42 = vcombine.low %v3124_v28, %v3140_v29 }
 0x5f6   : > { %6389 = vmatpush1.bf16.msra.mxu1 %v8073_v34  ;;  %v7822_v34 = vcombine.high %v3124_v28, %v3140_v29  ;;  %v3349_v28 = vld [vmem:[%s9522_s3 + $0xc38] sm:$0xff] }
 0x5f7   : > { %6430 = vmatpush1.bf16.msra.mxu0 %v8075_v35  ;;  %6390 = vmatprep.subr.bf16.mxu1 %v8106_v38  ;;  %v7824_v35 = vcombine.high %v3125_v30, %v3141_v31  ;;  %v3156_v38 = vld [vmem:[%s9522_s3 + $0x630] sm:$0xff]  ;;  %v3365_v29 = vld [vmem:[%s9522_s3 + $0xcb8] sm:$0xff]  ;;  %v8015_v31 = vcombine.low %v3317_v21, %v3333_v22 }
 0x5f8   : > { %6431 = vmatprep.subr.bf16.mxu0 %v8108_v39  ;;  %v3172_v39 = vld [vmem:[%s9522_s3 + $0x6b0] sm:$0xff] }
 0x5f9   : > { %v7853_v50 = vcombine.low %v3156_v38, %v3172_v39 }
 0x5fa   : > { %6391 = vmatpush1.bf16.msra.mxu1 %v8105_v44  ;;  %v7854_v44 = vcombine.high %v3156_v38, %v3172_v39  ;;  %v3381_v38 = vld [vmem:[%s9522_s3 + $0xd38] sm:$0xff] }
 0x5fb   : > { %6432 = vmatpush1.bf16.msra.mxu0 %v8107_v45  ;;  %6392 = vmatprep.subr.bf16.mxu1 %v8138_v46  ;;  %v7856_v45 = vcombine.high %v3157_v40, %v3173_v41  ;;  %v3188_v46 = vld [vmem:[%s9522_s3 + $0x730] sm:$0xff]  ;;  %v3397_v39 = vld [vmem:[%s9522_s3 + $0xdb8] sm:$0xff]  ;;  %v8047_v41 = vcombine.low %v3349_v28, %v3365_v29 }
 0x5fc   : > { %6433 = vmatprep.subr.bf16.mxu0 %v8140_v47  ;;  %v3204_v47 = vld [vmem:[%s9522_s3 + $0x7b0] sm:$0xff] }
 0x5fe   : > { %6393 = vmatpush1.bf16.msra.mxu1 %v8137_v52  ;;  %v7886_v52 = vcombine.high %v3188_v46, %v3204_v47 }
 0x5ff   : > { %6434 = vmatpush1.bf16.msra.mxu0 %v8139_v53  ;;  %6444 = vmatprep.subr.bf16.mxu1 %v7662_v54  ;;  %v7888_v53 = vcombine.high %v3189_v48, %v3205_v49  ;;  %v3220_v54 = vld [vmem:[%s9522_s3 + $0x830] sm:$0xff]  ;;  %v8079_v49 = vcombine.low %v3381_v38, %v3397_v39 }
 0x600   : > { %6485 = vmatprep.subr.bf16.mxu0 %v7664_v55  ;;  %v3236_v55 = vld [vmem:[%s9522_s3 + $0x8b0] sm:$0xff] }
 0x601   : > { %6395 = vmatmul.mubr.bf16.vlgmr.msra.gmra.mrb[36].mxu1 %v10253_v37  ;;  %v7918_v60 = vcombine.high %v3220_v54, %v3236_v55  ;;  %v7917_v7 = vcombine.low %v3220_v54, %v3236_v55  ;;  %v3445_v54 = vld [vmem:[%s9522_s3 + $0xf38] sm:$0xff] }
 0x602   : > { %6436 = vmatmul.mubr.bf16.vlgmr.msra.gmra.mrb[40].mxu0 %v10253_v37  ;;  %6445 = vmatpush1.bf16.msra.mxu1 %v7661_v58  ;;  %v7885_v58 = vcombine.low %v3188_v46, %v3204_v47  ;;  %v3413_v46 = vld [vmem:[%s9522_s3 + $0xe38] sm:$0xff] }
 0x603   : > { %6476 = vmatprep.mubr.bf16.mxu1 %v10251_v36  ;;  %6486 = vmatpush1.bf16.msra.mxu0 %v7663_v61  ;;  %v7920_v61 = vcombine.high %v3221_v56, %v3237_v57  ;;  %v3429_v47 = vld [vmem:[%s9522_s3 + $0xeb8] sm:$0xff] }
 0x604   : > { %6517 = vmatprep.mubr.bf16.mxu0 %v10251_v36  ;;  %6446 = vmatprep.subr.bf16.mxu1 %v7694_v63  ;;  %v3252_v63 = vld [vmem:[%s9522_s3 + $0x930] sm:$0xff]  ;;  %v3461_v55 = vld [vmem:[%s9522_s3 + $0xfb8] sm:$0xff]  ;;  %v8111_v57 = vcombine.low %v3413_v46, %v3429_v47 }
 0x605   : > { %6487 = vmatprep.subr.bf16.mxu0 %v7696_v5  ;;  %v3269_v5 = vld [vmem:[%s9522_s3 + $0x9b8] sm:$0xff]  ;;  %v7949_v15 = vcombine.low %v3252_v63, %v3268_v0 }
 0x606   : > { %6447 = vmatpush1.bf16.msra.mxu1 %v7693_v9  ;;  %v7950_v9 = vcombine.high %v3252_v63, %v3268_v0  ;;  %v7951_v16 = vcombine.low %v3253_v1, %v3269_v5  ;;  %v2967_v63 = vld [vmem:[%s9522_s3 + $0x48] sm:$0xff] }
 0x607   : > { %6488 = vmatpush1.bf16.msra.mxu0 %v7695_v10  ;;  %6448 = vmatprep.subr.bf16.mxu1 %v7726_v11  ;;  %v7952_v10 = vcombine.high %v3253_v1, %v3269_v5  ;;  %v3284_v11 = vld [vmem:[%s9522_s3 + $0xa30] sm:$0xff]  ;;  %v2983_v0 = vld [vmem:[%s9522_s3 + $0xc8] sm:$0xff]  ;;  %v8143_v5 = vcombine.low %v3445_v54, %v3461_v55 }
 0x608   : > { %6489 = vmatprep.subr.bf16.mxu0 %v7728_v12  ;;  %v3300_v12 = vld [vmem:[%s9522_s3 + $0xab0] sm:$0xff] }
 0x609   : > { %v7981_v23 = vcombine.low %v3284_v11, %v3300_v12 }
 0x60a   : > { %6449 = vmatpush1.bf16.msra.mxu1 %v7725_v17  ;;  %v7982_v17 = vcombine.high %v3284_v11, %v3300_v12  ;;  %v2999_v12 = vld [vmem:[%s9522_s3 + $0x148] sm:$0xff] }
 0x60b   : > { %6490 = vmatpush1.bf16.msra.mxu0 %v7727_v18  ;;  %6450 = vmatprep.subr.bf16.mxu1 %v7758_v19  ;;  %v7984_v18 = vcombine.high %v3285_v13, %v3301_v14  ;;  %v3316_v19 = vld [vmem:[%s9522_s3 + $0xb30] sm:$0xff]  ;;  %v3015_v13 = vld [vmem:[%s9522_s3 + $0x1c8] sm:$0xff]  ;;  %v7667_v14 = vcombine.low %v2967_v63, %v2983_v0 }
 0x60c   : > { %6491 = vmatprep.subr.bf16.mxu0 %v7760_v20  ;;  %v3332_v20 = vld [vmem:[%s9522_s3 + $0xbb0] sm:$0xff] }
 0x60d   : > { %v8013_v30 = vcombine.low %v3316_v19, %v3332_v20 }
 0x60e   : > { %6451 = vmatpush1.bf16.msra.mxu1 %v7757_v24  ;;  %v8014_v24 = vcombine.high %v3316_v19, %v3332_v20  ;;  %v3031_v19 = vld [vmem:[%s9522_s3 + $0x248] sm:$0xff] }
 0x60f   : > { %6492 = vmatpush1.bf16.msra.mxu0 %v7759_v25  ;;  %6452 = vmatprep.subr.bf16.mxu1 %v7790_v26  ;;  %v8016_v25 = vcombine.high %v3317_v21, %v3333_v22  ;;  %v3348_v26 = vld [vmem:[%s9522_s3 + $0xc30] sm:$0xff]  ;;  %v3047_v20 = vld [vmem:[%s9522_s3 + $0x2c8] sm:$0xff]  ;;  %v7699_v22 = vcombine.low %v2999_v12, %v3015_v13 }
 0x610   : > { %6493 = vmatprep.subr.bf16.mxu0 %v7792_v27  ;;  %v3364_v27 = vld [vmem:[%s9522_s3 + $0xcb0] sm:$0xff] }
 0x611   : > { %v8045_v40 = vcombine.low %v3348_v26, %v3364_v27 }
 0x612   : > { %6453 = vmatpush1.bf16.msra.mxu1 %v7789_v32  ;;  %v8046_v32 = vcombine.high %v3348_v26, %v3364_v27  ;;  %v3063_v26 = vld [vmem:[%s9522_s3 + $0x348] sm:$0xff] }
 0x613   : > { %6494 = vmatpush1.bf16.msra.mxu0 %v7791_v33  ;;  %6454 = vmatprep.subr.bf16.mxu1 %v7822_v34  ;;  %v8048_v33 = vcombine.high %v3349_v28, %v3365_v29  ;;  %v3380_v34 = vld [vmem:[%s9522_s3 + $0xd30] sm:$0xff]  ;;  %v3079_v27 = vld [vmem:[%s9522_s3 + $0x3c8] sm:$0xff]  ;;  %v7731_v29 = vcombine.low %v3031_v19, %v3047_v20 }
 0x614   : > { %6495 = vmatprep.subr.bf16.mxu0 %v7824_v35  ;;  %v3396_v35 = vld [vmem:[%s9522_s3 + $0xdb0] sm:$0xff] }
 0x615   : > { %v8077_v48 = vcombine.low %v3380_v34, %v3396_v35 }
 0x616   : > { %6455 = vmatpush1.bf16.msra.mxu1 %v7821_v42  ;;  %v8078_v42 = vcombine.high %v3380_v34, %v3396_v35  ;;  %v3095_v34 = vld [vmem:[%s9522_s3 + $0x448] sm:$0xff] }
 0x617   : > { %6496 = vmatpush1.bf16.msra.mxu0 %v7823_v43  ;;  %6456 = vmatprep.subr.bf16.mxu1 %v7854_v44  ;;  %v8080_v43 = vcombine.high %v3381_v38, %v3397_v39  ;;  %v3412_v44 = vld [vmem:[%s9522_s3 + $0xe30] sm:$0xff]  ;;  %v3111_v35 = vld [vmem:[%s9522_s3 + $0x4c8] sm:$0xff]  ;;  %v7763_v39 = vcombine.low %v3063_v26, %v3079_v27 }
 0x618   : > { %6497 = vmatprep.subr.bf16.mxu0 %v7856_v45  ;;  %v3428_v45 = vld [vmem:[%s9522_s3 + $0xeb0] sm:$0xff] }
 0x619   : > { %v8109_v56 = vcombine.low %v3412_v44, %v3428_v45 }
 0x61a   : > { %6457 = vmatpush1.bf16.msra.mxu1 %v7853_v50  ;;  %v8110_v50 = vcombine.high %v3412_v44, %v3428_v45  ;;  %v10482_v44 = vsub.s32 2, %v10237_v3  ;;  %v3127_v45 = vld [vmem:[%s9522_s3 + $0x548] sm:$0xff] }
 0x61b   : > { %6498 = vmatpush1.bf16.msra.mxu0 %v7855_v51  ;;  %6458 = vmatprep.subr.bf16.mxu1 %v7886_v52  ;;  %v8112_v51 = vcombine.high %v3413_v46, %v3429_v47  ;;  %v3444_v52 = vld [vmem:[%s9522_s3 + $0xf30] sm:$0xff]  ;;  %v3143_v46 = vld [vmem:[%s9522_s3 + $0x5c8] sm:$0xff] }
 0x61c   : > { %6499 = vmatprep.subr.bf16.mxu0 %v7888_v53  ;;  %v3460_v53 = vld [vmem:[%s9522_s3 + $0xfb0] sm:$0xff] }
 0x61d   : > { %v8141_v1 = vcombine.low %v3444_v52, %v3460_v53 }
 0x61e   : > { %6459 = vmatpush1.bf16.msra.mxu1 %v7885_v58  ;;  %v8142_v58 = vcombine.high %v3444_v52, %v3460_v53  ;;  %v7828_v52 = vcombine.high %v3127_v45, %v3143_v46  ;;  %v3158_v53 = vld [vmem:[%s9522_s3 + $0x640] sm:$0xff] }
 0x61f   : > { %6500 = vmatpush1.bf16.msra.mxu0 %v7887_v59  ;;  %6460 = vmatprep.subr.bf16.mxu1 %v7918_v60  ;;  %v8144_v59 = vcombine.high %v3445_v54, %v3461_v55  ;;  %v2966_v60 = vld [vmem:[%s9522_s3 + $0x40] sm:$0xff] }
 0x620   : > { %6501 = vmatprep.subr.bf16.mxu0 %v7920_v61  ;;  %v2982_v61 = vld [vmem:[%s9522_s3 + $0xc0] sm:$0xff] }
 0x621   : > { %v7665_v11 = vcombine.low %v2966_v60, %v2982_v61  ;;  %v3174_v54 = vld [vmem:[%s9522_s3 + $0x6c0] sm:$0xff] }
 0x622   : > { %6461 = vmatpush1.bf16.msra.mxu1 %v7917_v7  ;;  %v7666_v7 = vcombine.high %v2966_v60, %v2982_v61 }
 0x623   : > { %6502 = vmatpush1.bf16.msra.mxu0 %v7919_v8  ;;  %6462 = vmatprep.subr.bf16.mxu1 %v7950_v9  ;;  %v7668_v8 = vcombine.high %v2967_v63, %v2983_v0  ;;  %v2998_v9 = vld [vmem:[%s9522_s3 + $0x140] sm:$0xff]  ;;  %v7827_v63 = vcombine.low %v3127_v45, %v3143_v46  ;;  %v7858_v0 = vcombine.high %v3158_v53, %v3174_v54  ;;  %v3287_v46 = vld [vmem:[%s9522_s3 + $0xa48] sm:$0xff] }
 0x624   : > { %6503 = vmatprep.subr.bf16.mxu0 %v7952_v10  ;;  %v3014_v10 = vld [vmem:[%s9522_s3 + $0x1c0] sm:$0xff] }
 0x625   : > { %v7697_v21 = vcombine.low %v2998_v9, %v3014_v10  ;;  %v3302_v45 = vld [vmem:[%s9522_s3 + $0xac0] sm:$0xff] }
 0x626   : > { %6463 = vmatpush1.bf16.msra.mxu1 %v7949_v15  ;;  %v7698_v15 = vcombine.high %v2998_v9, %v3014_v10  ;;  %v3206_v9 = vld [vmem:[%s9522_s3 + $0x7c0] sm:$0xff] }
 0x627   : > { %6504 = vmatpush1.bf16.msra.mxu0 %v7951_v16  ;;  %6464 = vmatprep.subr.bf16.mxu1 %v7982_v17  ;;  %v3030_v16 = vld [vmem:[%s9522_s3 + $0x240] sm:$0xff] }
 0x628   : > { %6505 = vmatprep.subr.bf16.mxu0 %v7984_v18  ;;  %v3046_v17 = vld [vmem:[%s9522_s3 + $0x2c0] sm:$0xff]  ;;  %v7700_v18 = vcombine.high %v2999_v12, %v3015_v13 }
 0x629   : > { %v7729_v28 = vcombine.low %v3030_v16, %v3046_v17 }
 0x62a   : > { %6465 = vmatpush1.bf16.msra.mxu1 %v7981_v23  ;;  %v7730_v23 = vcombine.high %v3030_v16, %v3046_v17 }
 0x62b   : > { %6506 = vmatpush1.bf16.msra.mxu0 %v7983_v62  ;;  %6466 = vmatprep.subr.bf16.mxu1 %v8014_v24  ;;  %v7732_v62 = vcombine.high %v3031_v19, %v3047_v20  ;;  %v3062_v24 = vld [vmem:[%s9522_s3 + $0x340] sm:$0xff]  ;;  %v7857_v20 = vcombine.low %v3158_v53, %v3174_v54 }
 0x62c   : > { %6507 = vmatprep.subr.bf16.mxu0 %v8016_v25  ;;  %v3078_v25 = vld [vmem:[%s9522_s3 + $0x3c0] sm:$0xff] }
 0x62d   : > { %v7761_v38 = vcombine.low %v3062_v24, %v3078_v25  ;;  %v3318_v54 = vld [vmem:[%s9522_s3 + $0xb40] sm:$0xff] }
 0x62e   : > { %6467 = vmatpush1.bf16.msra.mxu1 %v8013_v30  ;;  %v7762_v30 = vcombine.high %v3062_v24, %v3078_v25  ;;  %v3222_v25 = vld [vmem:[%s9522_s3 + $0x840] sm:$0xff] }
 0x62f   : > { %6508 = vmatpush1.bf16.msra.mxu0 %v8015_v31  ;;  %6468 = vmatprep.subr.bf16.mxu1 %v8046_v32  ;;  %v7764_v31 = vcombine.high %v3063_v26, %v3079_v27  ;;  %v3094_v32 = vld [vmem:[%s9522_s3 + $0x440] sm:$0xff]  ;;  %v3223_v27 = vld [vmem:[%s9522_s3 + $0x848] sm:$0xff] }
 0x630   : > { %6509 = vmatprep.subr.bf16.mxu0 %v8048_v33  ;;  %v3110_v33 = vld [vmem:[%s9522_s3 + $0x4c0] sm:$0xff] }
 0x631   : > { %v7793_v47 = vcombine.low %v3094_v32, %v3110_v33  ;;  %v3238_v26 = vld [vmem:[%s9522_s3 + $0x8c0] sm:$0xff] }
 0x632   : > { %6469 = vmatpush1.bf16.msra.mxu1 %v8045_v40  ;;  %v7794_v40 = vcombine.high %v3094_v32, %v3110_v33  ;;  %v3254_v33 = vld [vmem:[%s9522_s3 + $0x940] sm:$0xff] }
 0x633   : > { %6510 = vmatpush1.bf16.msra.mxu0 %v8047_v41  ;;  %6470 = vmatprep.subr.bf16.mxu1 %v8078_v42  ;;  %v7796_v41 = vcombine.high %v3095_v34, %v3111_v35  ;;  %v3126_v42 = vld [vmem:[%s9522_s3 + $0x540] sm:$0xff] }
 0x634   : > { %6511 = vmatprep.subr.bf16.mxu0 %v8080_v43  ;;  %v3142_v43 = vld [vmem:[%s9522_s3 + $0x5c0] sm:$0xff] }
 0x636   : > { %6471 = vmatpush1.bf16.msra.mxu1 %v8077_v48  ;;  %v10489_v48 = vld [vmem:[%s10486_s12] sm:$0xff] }
 0x637   : > { %6512 = vmatpush1.bf16.msra.mxu0 %v8079_v49  ;;  %6472 = vmatprep.subr.bf16.mxu1 %v8110_v50  ;;  %v10492_v49 = vsub.s32 3, %v10237_v3  ;;  %v7795_v50 = vcombine.low %v3095_v34, %v3111_v35  ;;  %v3481_v55 = vrot.slane %v10489_v48, %v10240_v4  ;;  %v3485_v60 = vrot.slane %v10489_v48, %v10243_v6  ;;  %v3270_v34 = vld [vmem:[%s9522_s3 + $0x9c0] sm:$0xff]  ;;  %v3255_v35 = vld [vmem:[%s9522_s3 + $0x948] sm:$0xff] }
 0x638   : > { %6513 = vmatprep.subr.bf16.mxu0 %v8112_v51  ;;  %v7826_v51 = vcombine.high %v3126_v42, %v3142_v43 }
 0x639   : > { %v3493_v61 = vrot.slane %v10489_v48, %v10492_v49 }
 0x63a   : > { %6473 = vmatpush1.bf16.msra.mxu1 %v8109_v56  ;;  %v3489_v56 = vrot.slane %v10489_v48, %v10482_v44 }
 0x63b   : > { %6514 = vmatpush1.bf16.msra.mxu0 %v8111_v57  ;;  %6474 = vmatprep.subr.bf16.mxu1 %v8142_v58  ;;  %v3159_v57 = vld [vmem:[%s9522_s3 + $0x648] sm:$0xff] }
 0x63c   : > { %6515 = vmatprep.subr.bf16.mxu0 %v8144_v59  ;;  %v3175_v58 = vld [vmem:[%s9522_s3 + $0x6c8] sm:$0xff]  ;;  %v7825_v59 = vcombine.low %v3126_v42, %v3142_v43  ;;  %v3286_v43 = vld [vmem:[%s9522_s3 + $0xa40] sm:$0xff] }
 0x63e   : > { %6475 = vmatpush1.bf16.msra.mxu1 %v8141_v1 }
 0x63f   : > { %6516 = vmatpush1.bf16.msra.mxu0 %v8143_v5  ;;  %6526 = vmatprep.subr.bf16.mxu1 %v7666_v7  ;;  %v7860_v7 = vcombine.high %v3159_v57, %v3175_v58 }
 0x640   : > { %6567 = vmatprep.subr.bf16.mxu0 %v7668_v8  ;;  %v3190_v8 = vld [vmem:[%s9522_s3 + $0x740] sm:$0xff] }
 0x641   : > { %6477 = vmatmul.mubr.bf16.vlgmr.msra.gmra.mrb[40].mxu1 %v10253_v37 }
 0x642   : > { %6518 = vmatmul.mubr.bf16.vlgmr.msra.gmra.mrb[44].mxu0 %v10253_v37  ;;  %6527 = vmatpush1.bf16.msra.mxu1 %v7665_v11 }
 0x643   : > { %6558 = vmatprep.mubr.bf16.mxu1 %v10251_v36  ;;  %6568 = vmatpush1.bf16.msra.mxu0 %v7667_v14  ;;  %v3191_v14 = vld [vmem:[%s9522_s3 + $0x748] sm:$0xff] }
 0x644   : > { %6599 = vmatprep.mubr.bf16.mxu0 %v10251_v36  ;;  %6528 = vmatprep.subr.bf16.mxu1 %v7698_v15  ;;  %v3207_v15 = vld [vmem:[%s9522_s3 + $0x7c8] sm:$0xff] }
 0x645   : > { %6569 = vmatprep.subr.bf16.mxu0 %v7700_v18  ;;  %v7892_v24 = vcombine.high %v3191_v14, %v3207_v15 }
 0x646   : > { %6529 = vmatpush1.bf16.msra.mxu1 %v7697_v21 }
 0x647   : > { %6570 = vmatpush1.bf16.msra.mxu0 %v7699_v22  ;;  %6530 = vmatprep.subr.bf16.mxu1 %v7730_v23  ;;  %v7859_v23 = vcombine.low %v3159_v57, %v3175_v58  ;;  %v3335_v57 = vld [vmem:[%s9522_s3 + $0xbc8] sm:$0xff]  ;;  %v7985_v58 = vcombine.low %v3286_v43, %v3302_v45 }
 0x648   : > { %6571 = vmatprep.subr.bf16.mxu0 %v7732_v62  ;;  %v7890_v62 = vcombine.high %v3190_v8, %v3206_v9 }
 0x64a   : > { %6531 = vmatpush1.bf16.msra.mxu1 %v7729_v28  ;;  %v3239_v28 = vld [vmem:[%s9522_s3 + $0x8c8] sm:$0xff] }
 0x64b   : > { %6572 = vmatpush1.bf16.msra.mxu0 %v7731_v29  ;;  %6532 = vmatprep.subr.bf16.mxu1 %v7762_v30  ;;  %v7889_v29 = vcombine.low %v3190_v8, %v3206_v9  ;;  %v7891_v30 = vcombine.low %v3191_v14, %v3207_v15  ;;  %v7924_v32 = vcombine.high %v3223_v27, %v3239_v28  ;;  %v3398_v14 = vld [vmem:[%s9522_s3 + $0xdc0] sm:$0xff]  ;;  %v3383_v15 = vld [vmem:[%s9522_s3 + $0xd48] sm:$0xff] }
 0x64c   : > { %6573 = vmatprep.subr.bf16.mxu0 %v7764_v31  ;;  %v7922_v31 = vcombine.high %v3222_v25, %v3238_v26 }
 0x64e   : > { %6533 = vmatpush1.bf16.msra.mxu1 %v7761_v38  ;;  %v3271_v38 = vld [vmem:[%s9522_s3 + $0x9c8] sm:$0xff] }
 0x64f   : > { %6574 = vmatpush1.bf16.msra.mxu0 %v7763_v39  ;;  %6534 = vmatprep.subr.bf16.mxu1 %v7794_v40  ;;  %v7921_v39 = vcombine.low %v3222_v25, %v3238_v26  ;;  %v7923_v40 = vcombine.low %v3223_v27, %v3239_v28  ;;  %v7956_v42 = vcombine.high %v3255_v35, %v3271_v38  ;;  %v3431_v25 = vld [vmem:[%s9522_s3 + $0xec8] sm:$0xff] }
 0x650   : > { %6575 = vmatprep.subr.bf16.mxu0 %v7796_v41  ;;  %v7954_v41 = vcombine.high %v3254_v33, %v3270_v34 }
 0x652   : > { %6535 = vmatpush1.bf16.msra.mxu1 %v7793_v47  ;;  %v3303_v47 = vld [vmem:[%s9522_s3 + $0xac8] sm:$0xff] }
 0x653   : > { %6576 = vmatpush1.bf16.msra.mxu0 %v7795_v50  ;;  %6536 = vmatprep.subr.bf16.mxu1 %v7826_v51  ;;  %v7953_v50 = vcombine.low %v3254_v33, %v3270_v34  ;;  %v7955_v51 = vcombine.low %v3255_v35, %v3271_v38  ;;  %v7988_v53 = vcombine.high %v3287_v46, %v3303_v47  ;;  %v3463_v33 = vld [vmem:[%s9522_s3 + $0xfc8] sm:$0xff] }
 0x654   : > { %v6232_v1 = vpop.f32.mrb[28].mxu1  ;;  %v6273_v5 = vpop.f32.mrb[32].mxu0  ;;  %6577 = vmatprep.subr.bf16.mxu0 %v7828_v52  ;;  %v7986_v52 = vcombine.high %v3286_v43, %v3302_v45  ;;  %v2985_v43 = vld [vmem:[%s9522_s3 + $0xd8] sm:$0xff] }
 0x655   : > { %v10508_v10 = vadd.f32 %v6232_v1, %v3481_v55  ;;  %v10510_v11 = vadd.f32 %v6273_v5, %v3489_v56  ;;  %v6234_v12 = vpop.f32.mrb[29].mxu1  ;;  %v6275_v13 = vpop.f32.mrb[33].mxu0  ;;  %v3334_v55 = vld [vmem:[%s9522_s3 + $0xbc0] sm:$0xff]  ;;  %v3319_v56 = vld [vmem:[%s9522_s3 + $0xb48] sm:$0xff] }
 0x656   : > { %v10514_v16 = vadd.f32 %v6234_v12, %v3485_v60  ;;  %v10516_v17 = vadd.f32 %v6275_v13, %v3493_v61  ;;  %6537 = vmatpush1.bf16.msra.mxu1 %v7825_v59  ;;  %v6236_v18 = vpop.f32.mrb[30].mxu1  ;;  %v6277_v19 = vpop.f32.mrb[34].mxu0  ;;  %v7987_v59 = vcombine.low %v3287_v46, %v3303_v47  ;;  %v8018_v60 = vcombine.high %v3318_v54, %v3334_v55  ;;  %v3351_v1 = vld [vmem:[%s9522_s3 + $0xc48] sm:$0xff]  ;;  %v3382_v13 = vld [vmem:[%s9522_s3 + $0xd40] sm:$0xff] }
 0x657   : > { %6578 = vmatpush1.bf16.msra.mxu0 %v7827_v63  ;;  %v6237_v21 = vpop.f32.mrb[31].mxu1  ;;  %v6278_v22 = vpop.f32.mrb[35].mxu0  ;;  %6538 = vmatprep.subr.bf16.mxu1 %v7858_v0  ;;  %v8020_v61 = vcombine.high %v3319_v56, %v3335_v57  ;;  %v3350_v63 = vld [vmem:[%s9522_s3 + $0xc40] sm:$0xff]  ;;  %v3367_v5 = vld [vmem:[%s9522_s3 + $0xcc8] sm:$0xff]  ;;  %v8019_v8 = vcombine.low %v3319_v56, %v3335_v57  ;;  %v8081_v26 = vcombine.low %v3382_v13, %v3398_v14 }
 0x658   : > { %6579 = vmatprep.subr.bf16.mxu0 %v7860_v7  ;;  %v3366_v0 = vld [vmem:[%s9522_s3 + $0xcc0] sm:$0xff]  ;;  %v8017_v7 = vcombine.low %v3318_v54, %v3334_v55  ;;  %v8052_v12 = vcombine.high %v3351_v1, %v3367_v5  ;;  %v3399_v18 = vld [vmem:[%s9522_s3 + $0xdc8] sm:$0xff]  ;;  %v8082_v21 = vcombine.high %v3382_v13, %v3398_v14  ;;  %v3001_v54 = vld [vmem:[%s9522_s3 + $0x158] sm:$0xff] }
 0x659   : > { %v8050_v9 = vcombine.high %v3350_v63, %v3366_v0  ;;  %v8049_v19 = vcombine.low %v3350_v63, %v3366_v0  ;;  %v8084_v22 = vcombine.high %v3383_v15, %v3399_v18  ;;  %v8083_v27 = vcombine.low %v3383_v15, %v3399_v18  ;;  %v3017_v55 = vld [vmem:[%s9522_s3 + $0x1d8] sm:$0xff] }
 0x65a   : > { %6539 = vmatpush1.bf16.msra.mxu1 %v7857_v20  ;;  %v8051_v20 = vcombine.low %v3351_v1, %v3367_v5  ;;  %v3049_v63 = vld [vmem:[%s9522_s3 + $0x2d8] sm:$0xff]  ;;  %v7703_v1 = vcombine.low %v3001_v54, %v3017_v55 }
 0x65b   : > { %6580 = vmatpush1.bf16.msra.mxu0 %v7859_v23  ;;  %6540 = vmatprep.subr.bf16.mxu1 %v7890_v62  ;;  %v3414_v23 = vld [vmem:[%s9522_s3 + $0xe40] sm:$0xff]  ;;  %v3081_v13 = vld [vmem:[%s9522_s3 + $0x3d8] sm:$0xff] }
 0x65c   : > { %6581 = vmatprep.subr.bf16.mxu0 %v7892_v24  ;;  %v3430_v62 = vld [vmem:[%s9522_s3 + $0xec0] sm:$0xff]  ;;  %v3415_v24 = vld [vmem:[%s9522_s3 + $0xe48] sm:$0xff] }
 0x65d   : > { %v8114_v28 = vcombine.high %v3414_v23, %v3430_v62  ;;  %v8113_v34 = vcombine.low %v3414_v23, %v3430_v62  ;;  %v8115_v35 = vcombine.low %v3415_v24, %v3431_v25  ;;  %v3113_v23 = vld [vmem:[%s9522_s3 + $0x4d8] sm:$0xff] }
 0x65e   : > { %6541 = vmatpush1.bf16.msra.mxu1 %v7889_v29  ;;  %v8116_v29 = vcombine.high %v3415_v24, %v3431_v25 }
 0x65f   : > { %6582 = vmatpush1.bf16.msra.mxu0 %v7891_v30  ;;  %6542 = vmatprep.subr.bf16.mxu1 %v7922_v31  ;;  %v3446_v30 = vld [vmem:[%s9522_s3 + $0xf40] sm:$0xff] }
 0x660   : > { %6583 = vmatprep.subr.bf16.mxu0 %v7924_v32  ;;  %v3462_v31 = vld [vmem:[%s9522_s3 + $0xfc0] sm:$0xff]  ;;  %v3447_v32 = vld [vmem:[%s9522_s3 + $0xf48] sm:$0xff] }
 0x661   : > { %v8146_v38 = vcombine.high %v3446_v30, %v3462_v31  ;;  %v8145_v45 = vcombine.low %v3446_v30, %v3462_v31  ;;  %v8147_v46 = vcombine.low %v3447_v32, %v3463_v33  ;;  %v10580_v30 = vsub.s32 6, %v10237_v3  ;;  %v3129_v31 = vld [vmem:[%s9522_s3 + $0x558] sm:$0xff] }
 0x662   : > { %6543 = vmatpush1.bf16.msra.mxu1 %v7921_v39  ;;  %v8148_v39 = vcombine.high %v3447_v32, %v3463_v33  ;;  %v3145_v32 = vld [vmem:[%s9522_s3 + $0x5d8] sm:$0xff] }
 0x663   : > { %6584 = vmatpush1.bf16.msra.mxu0 %v7923_v40  ;;  %6544 = vmatprep.subr.bf16.mxu1 %v7954_v41  ;;  %v2968_v40 = vld [vmem:[%s9522_s3 + $0x50] sm:$0xff] }
 0x664   : > { %6585 = vmatprep.subr.bf16.mxu0 %v7956_v42  ;;  %v2984_v41 = vld [vmem:[%s9522_s3 + $0xd0] sm:$0xff]  ;;  %v2969_v42 = vld [vmem:[%s9522_s3 + $0x58] sm:$0xff] }
 0x665   : > { %v7670_v47 = vcombine.high %v2968_v40, %v2984_v41  ;;  %v7671_v56 = vcombine.low %v2969_v42, %v2985_v43 }
 0x666   : > { %6545 = vmatpush1.bf16.msra.mxu1 %v7953_v50  ;;  %v7672_v50 = vcombine.high %v2969_v42, %v2985_v43  ;;  %v3176_v42 = vld [vmem:[%s9522_s3 + $0x6d0] sm:$0xff] }
 0x667   : > { %6586 = vmatpush1.bf16.msra.mxu0 %v7955_v51  ;;  %6546 = vmatprep.subr.bf16.mxu1 %v7986_v52  ;;  %v3000_v51 = vld [vmem:[%s9522_s3 + $0x150] sm:$0xff] }
 0x668   : > { %6587 = vmatprep.subr.bf16.mxu0 %v7988_v53  ;;  %v3016_v52 = vld [vmem:[%s9522_s3 + $0x1d0] sm:$0xff]  ;;  %v7669_v53 = vcombine.low %v2968_v40, %v2984_v41  ;;  %v7832_v40 = vcombine.high %v3129_v31, %v3145_v32 }
 0x669   : > { %v7702_v57 = vcombine.high %v3000_v51, %v3016_v52  ;;  %v7701_v0 = vcombine.low %v3000_v51, %v3016_v52  ;;  %v3160_v41 = vld [vmem:[%s9522_s3 + $0x650] sm:$0xff]  ;;  %v7831_v52 = vcombine.low %v3129_v31, %v3145_v32  ;;  %v3273_v31 = vld [vmem:[%s9522_s3 + $0x9d8] sm:$0xff] }
 0x66a   : > { %6547 = vmatpush1.bf16.msra.mxu1 %v7985_v58  ;;  %v3032_v58 = vld [vmem:[%s9522_s3 + $0x250] sm:$0xff] }
 0x66b   : > { %6588 = vmatpush1.bf16.msra.mxu0 %v7987_v59  ;;  %6548 = vmatprep.subr.bf16.mxu1 %v8018_v60  ;;  %v3048_v59 = vld [vmem:[%s9522_s3 + $0x2d0] sm:$0xff]  ;;  %v7704_v60 = vcombine.high %v3001_v54, %v3017_v55 }
 0x66c   : > { %6589 = vmatprep.subr.bf16.mxu0 %v8020_v61  ;;  %v3033_v61 = vld [vmem:[%s9522_s3 + $0x258] sm:$0xff]  ;;  %v7734_v5 = vcombine.high %v3032_v58, %v3048_v59  ;;  %v7733_v14 = vcombine.low %v3032_v58, %v3048_v59  ;;  %v3208_v58 = vld [vmem:[%s9522_s3 + $0x7d0] sm:$0xff] }
 0x66d   : > { %v7735_v15 = vcombine.low %v3033_v61, %v3049_v63 }
 0x66e   : > { %6549 = vmatpush1.bf16.msra.mxu1 %v8017_v7  ;;  %v7736_v7 = vcombine.high %v3033_v61, %v3049_v63 }
 0x66f   : > { %6590 = vmatpush1.bf16.msra.mxu0 %v8019_v8  ;;  %6550 = vmatprep.subr.bf16.mxu1 %v8050_v9  ;;  %v3064_v8 = vld [vmem:[%s9522_s3 + $0x350] sm:$0xff] }
 0x670   : > { %6591 = vmatprep.subr.bf16.mxu0 %v8052_v12  ;;  %v3080_v9 = vld [vmem:[%s9522_s3 + $0x3d0] sm:$0xff]  ;;  %v3065_v12 = vld [vmem:[%s9522_s3 + $0x358] sm:$0xff] }
 0x671   : > { %v7766_v18 = vcombine.high %v3064_v8, %v3080_v9  ;;  %v7765_v62 = vcombine.low %v3064_v8, %v3080_v9  ;;  %v7767_v24 = vcombine.low %v3065_v12, %v3081_v13  ;;  %v7861_v9 = vcombine.low %v3160_v41, %v3176_v42 }
 0x672   : > { %6551 = vmatpush1.bf16.msra.mxu1 %v8049_v19  ;;  %v7768_v19 = vcombine.high %v3065_v12, %v3081_v13 }
 0x673   : > { %6592 = vmatpush1.bf16.msra.mxu0 %v8051_v20  ;;  %6552 = vmatprep.subr.bf16.mxu1 %v8082_v21  ;;  %v3096_v20 = vld [vmem:[%s9522_s3 + $0x450] sm:$0xff] }
 0x674   : > { %6593 = vmatprep.subr.bf16.mxu0 %v8084_v22  ;;  %v3112_v21 = vld [vmem:[%s9522_s3 + $0x4d0] sm:$0xff]  ;;  %v3097_v22 = vld [vmem:[%s9522_s3 + $0x458] sm:$0xff] }
 0x675   : > { %v7798_v25 = vcombine.high %v3096_v20, %v3112_v21  ;;  %v7797_v33 = vcombine.low %v3096_v20, %v3112_v21  ;;  %v3240_v20 = vld [vmem:[%s9522_s3 + $0x8d0] sm:$0xff]  ;;  %v3225_v21 = vld [vmem:[%s9522_s3 + $0x858] sm:$0xff] }
 0x676   : > { %6553 = vmatpush1.bf16.msra.mxu1 %v8081_v26  ;;  %v7800_v26 = vcombine.high %v3097_v22, %v3113_v23 }
 0x677   : > { %6594 = vmatpush1.bf16.msra.mxu0 %v8083_v27  ;;  %6554 = vmatprep.subr.bf16.mxu1 %v8114_v28  ;;  %v3128_v27 = vld [vmem:[%s9522_s3 + $0x550] sm:$0xff] }
 0x678   : > { %6595 = vmatprep.subr.bf16.mxu0 %v8116_v29  ;;  %v3144_v28 = vld [vmem:[%s9522_s3 + $0x5d0] sm:$0xff]  ;;  %v10577_v29 = vsub.s32 4, %v10237_v3 }
 0x679   : > { %v7829_v51 = vcombine.low %v3128_v27, %v3144_v28 }
 0x67a   : > { %6555 = vmatpush1.bf16.msra.mxu1 %v8113_v34  ;;  %v10585_v34 = vsub.s32 5, %v10237_v3  ;;  %v3497_v43 = vrot.slane %v10489_v48, %v10577_v29 }
 0x67b   : > { %6596 = vmatpush1.bf16.msra.mxu0 %v8115_v35  ;;  %6556 = vmatprep.subr.bf16.mxu1 %v8146_v38  ;;  %v10588_v35 = vsub.s32 7, %v10237_v3  ;;  %v7799_v38 = vcombine.low %v3097_v22, %v3113_v23  ;;  %v3241_v22 = vld [vmem:[%s9522_s3 + $0x8d8] sm:$0xff] }
 0x67c   : > { %6597 = vmatprep.subr.bf16.mxu0 %v8148_v39  ;;  %v7830_v39 = vcombine.high %v3128_v27, %v3144_v28  ;;  %v3501_v3 = vrot.slane %v10489_v48, %v10585_v34  ;;  %v3272_v27 = vld [vmem:[%s9522_s3 + $0x9d0] sm:$0xff]  ;;  %v3257_v28 = vld [vmem:[%s9522_s3 + $0x958] sm:$0xff] }
 0x67e   : > { %6557 = vmatpush1.bf16.msra.mxu1 %v8145_v45  ;;  %v3505_v45 = vrot.slane %v10489_v48, %v10580_v30 }
 0x67f   : > { %6598 = vmatpush1.bf16.msra.mxu0 %v8147_v46  ;;  %6608 = vmatprep.subr.bf16.mxu1 %v7670_v47  ;;  %v3161_v46 = vld [vmem:[%s9522_s3 + $0x658] sm:$0xff] }
 0x680   : > { %6649 = vmatprep.subr.bf16.mxu0 %v7672_v50  ;;  %v3177_v47 = vld [vmem:[%s9522_s3 + $0x6d8] sm:$0xff]  ;;  %v3509_v50 = vrot.slane %v10489_v48, %v10588_v35 }
 0x681   : > { %6559 = vmatmul.mubr.bf16.vlgmr.msra.gmra.mrb[44].mxu1 %v10253_v37  ;;  %v3193_v48 = vld [vmem:[%s9522_s3 + $0x758] sm:$0xff] }
 0x682   : > { %6600 = vmatmul.mubr.bf16.vlgmr.msra.gmra.mrb[48].mxu0 %v10253_v37  ;;  %6609 = vmatpush1.bf16.msra.mxu1 %v7669_v53  ;;  %v7862_v53 = vcombine.high %v3160_v41, %v3176_v42  ;;  %v3304_v41 = vld [vmem:[%s9522_s3 + $0xad0] sm:$0xff]  ;;  %v3289_v42 = vld [vmem:[%s9522_s3 + $0xa58] sm:$0xff] }
 0x683   : > { %6640 = vmatprep.mubr.bf16.mxu1 %v10251_v36  ;;  %6650 = vmatpush1.bf16.msra.mxu0 %v7671_v56  ;;  %v7864_v56 = vcombine.high %v3161_v46, %v3177_v47 }
 0x684   : > { %6681 = vmatprep.mubr.bf16.mxu0 %v10251_v36  ;;  %6610 = vmatprep.subr.bf16.mxu1 %v7702_v57  ;;  %v3192_v57 = vld [vmem:[%s9522_s3 + $0x750] sm:$0xff] }
 0x685   : > { %6651 = vmatprep.subr.bf16.mxu0 %v7704_v60  ;;  %v7893_v23 = vcombine.low %v3192_v57, %v3208_v58 }
 0x686   : > { %6611 = vmatpush1.bf16.msra.mxu1 %v7701_v0  ;;  %v3209_v0 = vld [vmem:[%s9522_s3 + $0x7d8] sm:$0xff] }
 0x687   : > { %6652 = vmatpush1.bf16.msra.mxu0 %v7703_v1  ;;  %6612 = vmatprep.subr.bf16.mxu1 %v7734_v5 }
 0x688   : > { %6653 = vmatprep.subr.bf16.mxu0 %v7736_v7 }
 0x68a   : > { %6613 = vmatpush1.bf16.msra.mxu1 %v7733_v14  ;;  %v7863_v14 = vcombine.low %v3161_v46, %v3177_v47  ;;  %v7959_v46 = vcombine.low %v3257_v28, %v3273_v31 }
 0x68b   : > { %6654 = vmatpush1.bf16.msra.mxu0 %v7735_v15  ;;  %6614 = vmatprep.subr.bf16.mxu1 %v7766_v18  ;;  %v7894_v15 = vcombine.high %v3192_v57, %v3208_v58  ;;  %v7896_v18 = vcombine.high %v3193_v48, %v3209_v0  ;;  %v3352_v58 = vld [vmem:[%s9522_s3 + $0xc50] sm:$0xff] }
 0x68c   : > { %6655 = vmatprep.subr.bf16.mxu0 %v7768_v19  ;;  %v3224_v19 = vld [vmem:[%s9522_s3 + $0x850] sm:$0xff] }
 0x68d   : > { %v7925_v32 = vcombine.low %v3224_v19, %v3240_v20 }
 0x68e   : > { %6615 = vmatpush1.bf16.msra.mxu1 %v7765_v62  ;;  %v7895_v62 = vcombine.low %v3193_v48, %v3209_v0  ;;  %v3369_v48 = vld [vmem:[%s9522_s3 + $0xcd8] sm:$0xff] }
 0x68f   : > { %6656 = vmatpush1.bf16.msra.mxu0 %v7767_v24  ;;  %6616 = vmatprep.subr.bf16.mxu1 %v7798_v25  ;;  %v7926_v24 = vcombine.high %v3224_v19, %v3240_v20  ;;  %v7928_v25 = vcombine.high %v3225_v21, %v3241_v22 }
 0x690   : > { %6657 = vmatprep.subr.bf16.mxu0 %v7800_v26  ;;  %v3256_v26 = vld [vmem:[%s9522_s3 + $0x950] sm:$0xff] }
 0x692   : > { %6617 = vmatpush1.bf16.msra.mxu1 %v7797_v33  ;;  %v7927_v33 = vcombine.low %v3225_v21, %v3241_v22  ;;  %v3416_v22 = vld [vmem:[%s9522_s3 + $0xe50] sm:$0xff] }
 0x693   : > { %6658 = vmatpush1.bf16.msra.mxu0 %v7799_v38  ;;  %6618 = vmatprep.subr.bf16.mxu1 %v7830_v39  ;;  %v7958_v38 = vcombine.high %v3256_v26, %v3272_v27  ;;  %v7960_v39 = vcombine.high %v3257_v28, %v3273_v31  ;;  %v3448_v31 = vld [vmem:[%s9522_s3 + $0xf50] sm:$0xff] }
 0x694   : > { %v6314_v54 = vpop.f32.mrb[32].mxu1  ;;  %v6355_v55 = vpop.f32.mrb[36].mxu0  ;;  %6659 = vmatprep.subr.bf16.mxu0 %v7832_v40  ;;  %v3288_v40 = vld [vmem:[%s9522_s3 + $0xa50] sm:$0xff] }
 0x695   : > { %v10604_v59 = vadd.f32 %v6314_v54, %v3497_v43  ;;  %v10606_v60 = vadd.f32 %v6355_v55, %v3505_v45  ;;  %v6316_v61 = vpop.f32.mrb[33].mxu1  ;;  %v6357_v63 = vpop.f32.mrb[37].mxu0  ;;  %v3305_v43 = vld [vmem:[%s9522_s3 + $0xad8] sm:$0xff]  ;;  %v7957_v45 = vcombine.low %v3256_v26, %v3272_v27  ;;  %v7990_v47 = vcombine.high %v3288_v40, %v3304_v41 }
 0x696   : > { %v10610_v1 = vadd.f32 %v6316_v61, %v3501_v3  ;;  %v10612_v5 = vadd.f32 %v6357_v63, %v3509_v50  ;;  %v6318_v7 = vpop.f32.mrb[34].mxu1  ;;  %v6359_v8 = vpop.f32.mrb[38].mxu0  ;;  %6619 = vmatpush1.bf16.msra.mxu1 %v7829_v51  ;;  %v7992_v3 = vcombine.high %v3289_v42, %v3305_v43  ;;  %v3320_v50 = vld [vmem:[%s9522_s3 + $0xb50] sm:$0xff]  ;;  %v7989_v54 = vcombine.low %v3288_v40, %v3304_v41  ;;  %v3353_v63 = vld [vmem:[%s9522_s3 + $0xc58] sm:$0xff] }
 0x697   : > { %6660 = vmatpush1.bf16.msra.mxu0 %v7831_v52  ;;  %v6319_v12 = vpop.f32.mrb[35].mxu1  ;;  %v6360_v13 = vpop.f32.mrb[39].mxu0  ;;  %6620 = vmatprep.subr.bf16.mxu1 %v7862_v53  ;;  %v3336_v51 = vld [vmem:[%s9522_s3 + $0xbd0] sm:$0xff]  ;;  %v3321_v52 = vld [vmem:[%s9522_s3 + $0xb58] sm:$0xff]  ;;  %v7991_v55 = vcombine.low %v3289_v42, %v3305_v43  ;;  %v8055_v19 = vcombine.low %v3353_v63, %v3369_v48  ;;  %v2970_v43 = vld [vmem:[%s9522_s3 + $0x60] sm:$0xff] }
 0x698   : > { %6661 = vmatprep.subr.bf16.mxu0 %v7864_v56  ;;  %v3337_v53 = vld [vmem:[%s9522_s3 + $0xbd8] sm:$0xff]  ;;  %v8022_v56 = vcombine.high %v3320_v50, %v3336_v51  ;;  %v3368_v61 = vld [vmem:[%s9522_s3 + $0xcd0] sm:$0xff]  ;;  %v8021_v0 = vcombine.low %v3320_v50, %v3336_v51 }
 0x699   : > { %v8024_v57 = vcombine.high %v3321_v52, %v3337_v53  ;;  %v8023_v7 = vcombine.low %v3321_v52, %v3337_v53  ;;  %v8054_v8 = vcombine.high %v3352_v58, %v3368_v61  ;;  %v3384_v12 = vld [vmem:[%s9522_s3 + $0xd50] sm:$0xff]  ;;  %v3002_v53 = vld [vmem:[%s9522_s3 + $0x160] sm:$0xff] }
 0x69a   : > { %6621 = vmatpush1.bf16.msra.mxu1 %v7861_v9  ;;  %v8056_v9 = vcombine.high %v3353_v63, %v3369_v48  ;;  %v3400_v13 = vld [vmem:[%s9522_s3 + $0xdd0] sm:$0xff]  ;;  %v3034_v63 = vld [vmem:[%s9522_s3 + $0x260] sm:$0xff] }
 0x69b   : > { %6662 = vmatpush1.bf16.msra.mxu0 %v7863_v14  ;;  %6622 = vmatprep.subr.bf16.mxu1 %v7894_v15  ;;  %v3385_v14 = vld [vmem:[%s9522_s3 + $0xd58] sm:$0xff]  ;;  %v8086_v20 = vcombine.high %v3384_v12, %v3400_v13  ;;  %v3050_v48 = vld [vmem:[%s9522_s3 + $0x2e0] sm:$0xff] }
 0x69c   : > { %6663 = vmatprep.subr.bf16.mxu0 %v7896_v18  ;;  %v3401_v15 = vld [vmem:[%s9522_s3 + $0xdd8] sm:$0xff]  ;;  %v8053_v18 = vcombine.low %v3352_v58, %v3368_v61 }
 0x69d   : > { %v8088_v21 = vcombine.high %v3385_v14, %v3401_v15  ;;  %v8087_v26 = vcombine.low %v3385_v14, %v3401_v15  ;;  %v3066_v15 = vld [vmem:[%s9522_s3 + $0x360] sm:$0xff] }
 0x69e   : > { %6623 = vmatpush1.bf16.msra.mxu1 %v7893_v23  ;;  %v3432_v23 = vld [vmem:[%s9522_s3 + $0xed0] sm:$0xff] }
 0x69f   : > { %6664 = vmatpush1.bf16.msra.mxu0 %v7895_v62  ;;  %6624 = vmatprep.subr.bf16.mxu1 %v7926_v24  ;;  %v3417_v62 = vld [vmem:[%s9522_s3 + $0xe58] sm:$0xff]  ;;  %v8118_v27 = vcombine.high %v3416_v22, %v3432_v23 }
 0x6a0   : > { %6665 = vmatprep.subr.bf16.mxu0 %v7928_v25  ;;  %v3433_v24 = vld [vmem:[%s9522_s3 + $0xed8] sm:$0xff]  ;;  %v8085_v25 = vcombine.low %v3384_v12, %v3400_v13  ;;  %v7738_v13 = vcombine.high %v3034_v63, %v3050_v48 }
 0x6a1   : > { %v8120_v28 = vcombine.high %v3417_v62, %v3433_v24  ;;  %v8119_v40 = vcombine.low %v3417_v62, %v3433_v24  ;;  %v3098_v24 = vld [vmem:[%s9522_s3 + $0x460] sm:$0xff] }
 0x6a2   : > { %6625 = vmatpush1.bf16.msra.mxu1 %v7925_v32  ;;  %v3464_v32 = vld [vmem:[%s9522_s3 + $0xfd0] sm:$0xff] }
 0x6a3   : > { %6666 = vmatpush1.bf16.msra.mxu0 %v7927_v33  ;;  %6626 = vmatprep.subr.bf16.mxu1 %v7958_v38  ;;  %v3449_v33 = vld [vmem:[%s9522_s3 + $0xf58] sm:$0xff]  ;;  %v8150_v41 = vcombine.high %v3448_v31, %v3464_v32 }
 0x6a4   : > { %6667 = vmatprep.subr.bf16.mxu0 %v7960_v39  ;;  %v3465_v38 = vld [vmem:[%s9522_s3 + $0xfd8] sm:$0xff]  ;;  %v8117_v39 = vcombine.low %v3416_v22, %v3432_v23 }
 0x6a5   : > { %v8152_v42 = vcombine.high %v3449_v33, %v3465_v38  ;;  %v8151_v50 = vcombine.low %v3449_v33, %v3465_v38  ;;  %v3130_v38 = vld [vmem:[%s9522_s3 + $0x560] sm:$0xff] }
 0x6a6   : > { %6627 = vmatpush1.bf16.msra.mxu1 %v7957_v45  ;;  %v2986_v45 = vld [vmem:[%s9522_s3 + $0xe0] sm:$0xff] }
 0x6a7   : > { %6668 = vmatpush1.bf16.msra.mxu0 %v7959_v46  ;;  %6628 = vmatprep.subr.bf16.mxu1 %v7990_v47  ;;  %v2971_v46 = vld [vmem:[%s9522_s3 + $0x68] sm:$0xff]  ;;  %v7674_v51 = vcombine.high %v2970_v43, %v2986_v45 }
 0x6a8   : > { %6669 = vmatprep.subr.bf16.mxu0 %v7992_v3  ;;  %v2987_v47 = vld [vmem:[%s9522_s3 + $0xe8] sm:$0xff]  ;;  %v8149_v3 = vcombine.low %v3448_v31, %v3464_v32 }
 0x6a9   : > { %v7676_v52 = vcombine.high %v2971_v46, %v2987_v47  ;;  %v7675_v58 = vcombine.low %v2971_v46, %v2987_v47 }
 0x6aa   : > { %6629 = vmatpush1.bf16.msra.mxu1 %v7989_v54  ;;  %v3018_v54 = vld [vmem:[%s9522_s3 + $0x1e0] sm:$0xff] }
 0x6ab   : > { %6670 = vmatpush1.bf16.msra.mxu0 %v7991_v55  ;;  %6630 = vmatprep.subr.bf16.mxu1 %v8022_v56  ;;  %v7673_v55 = vcombine.low %v2970_v43, %v2986_v45  ;;  %v3003_v56 = vld [vmem:[%s9522_s3 + $0x168] sm:$0xff]  ;;  %v7706_v61 = vcombine.high %v3002_v53, %v3018_v54 }
 0x6ac   : > { %6671 = vmatprep.subr.bf16.mxu0 %v8024_v57  ;;  %v3019_v57 = vld [vmem:[%s9522_s3 + $0x1e8] sm:$0xff] }
 0x6ad   : > { %v7707_v12 = vcombine.low %v3003_v56, %v3019_v57  ;;  %v10675_v43 = vld [vmem:[%s10486_s12 + $0x8] sm:$0xff] }
 0x6ae   : > { %6631 = vmatpush1.bf16.msra.mxu1 %v8021_v0  ;;  %v7708_v0 = vcombine.high %v3003_v56, %v3019_v57  ;;  %v3525_v57 = vrot.slane %v10675_v43, %v10492_v49 }
 0x6af   : > { %6672 = vmatpush1.bf16.msra.mxu0 %v8023_v7  ;;  %6632 = vmatprep.subr.bf16.mxu1 %v8054_v8  ;;  %v3035_v7 = vld [vmem:[%s9522_s3 + $0x268] sm:$0xff] }
 0x6b0   : > { %6673 = vmatprep.subr.bf16.mxu0 %v8056_v9  ;;  %v3051_v8 = vld [vmem:[%s9522_s3 + $0x2e8] sm:$0xff]  ;;  %v7705_v9 = vcombine.low %v3002_v53, %v3018_v54  ;;  %v3521_v54 = vrot.slane %v10675_v43, %v10482_v44 }
 0x6b1   : > { %v7740_v14 = vcombine.high %v3035_v7, %v3051_v8  ;;  %v7739_v22 = vcombine.low %v3035_v7, %v3051_v8  ;;  %v3179_v53 = vld [vmem:[%s9522_s3 + $0x6e8] sm:$0xff]  ;;  %v3210_v7 = vld [vmem:[%s9522_s3 + $0x7e0] sm:$0xff] }
 0x6b2   : > { %6633 = vmatpush1.bf16.msra.mxu1 %v8053_v18  ;;  %v3082_v18 = vld [vmem:[%s9522_s3 + $0x3e0] sm:$0xff] }
 0x6b3   : > { %6674 = vmatpush1.bf16.msra.mxu0 %v8055_v19  ;;  %6634 = vmatprep.subr.bf16.mxu1 %v8086_v20  ;;  %v3067_v19 = vld [vmem:[%s9522_s3 + $0x368] sm:$0xff]  ;;  %v7770_v23 = vcombine.high %v3066_v15, %v3082_v18 }
 0x6b4   : > { %6675 = vmatprep.subr.bf16.mxu0 %v8088_v21  ;;  %v3083_v20 = vld [vmem:[%s9522_s3 + $0x3e8] sm:$0xff]  ;;  %v7737_v21 = vcombine.low %v3034_v63, %v3050_v48 }
 0x6b5   : > { %v7772_v62 = vcombine.high %v3067_v19, %v3083_v20  ;;  %v7771_v31 = vcombine.low %v3067_v19, %v3083_v20 }
 0x6b6   : > { %6635 = vmatpush1.bf16.msra.mxu1 %v8085_v25  ;;  %v3114_v25 = vld [vmem:[%s9522_s3 + $0x4e0] sm:$0xff] }
 0x6b7   : > { %6676 = vmatpush1.bf16.msra.mxu0 %v8087_v26  ;;  %6636 = vmatprep.subr.bf16.mxu1 %v8118_v27  ;;  %v3099_v26 = vld [vmem:[%s9522_s3 + $0x468] sm:$0xff]  ;;  %v7802_v32 = vcombine.high %v3098_v24, %v3114_v25 }
 0x6b8   : > { %6677 = vmatprep.subr.bf16.mxu0 %v8120_v28  ;;  %v3115_v27 = vld [vmem:[%s9522_s3 + $0x4e8] sm:$0xff]  ;;  %v7769_v28 = vcombine.low %v3066_v15, %v3082_v18 }
 0x6b9   : > { %v7804_v33 = vcombine.high %v3099_v26, %v3115_v27  ;;  %v7803_v45 = vcombine.low %v3099_v26, %v3115_v27 }
 0x6ba   : > { %6637 = vmatpush1.bf16.msra.mxu1 %v8117_v39  ;;  %v3146_v39 = vld [vmem:[%s9522_s3 + $0x5e0] sm:$0xff] }
 0x6bb   : > { %6678 = vmatpush1.bf16.msra.mxu0 %v8119_v40  ;;  %6638 = vmatprep.subr.bf16.mxu1 %v8150_v41  ;;  %v3131_v40 = vld [vmem:[%s9522_s3 + $0x568] sm:$0xff]  ;;  %v7834_v46 = vcombine.high %v3130_v38, %v3146_v39  ;;  %v7833_v56 = vcombine.low %v3130_v38, %v3146_v39 }
 0x6bc   : > { %6679 = vmatprep.subr.bf16.mxu0 %v8152_v42  ;;  %v3147_v41 = vld [vmem:[%s9522_s3 + $0x5e8] sm:$0xff]  ;;  %v7801_v42 = vcombine.low %v3098_v24, %v3114_v25 }
 0x6bd   : > { %v7836_v47 = vcombine.high %v3131_v40, %v3147_v41 }
 0x6be   : > { %6639 = vmatpush1.bf16.msra.mxu1 %v8149_v3  ;;  %v3162_v3 = vld [vmem:[%s9522_s3 + $0x660] sm:$0xff] }
 0x6bf   : > { %6680 = vmatpush1.bf16.msra.mxu0 %v8151_v50  ;;  %6690 = vmatprep.subr.bf16.mxu1 %v7674_v51  ;;  %v3178_v50 = vld [vmem:[%s9522_s3 + $0x6e0] sm:$0xff]  ;;  %v3513_v51 = vrot.slane %v10675_v43, %v10240_v4 }
 0x6c0   : > { %6731 = vmatprep.subr.bf16.mxu0 %v7676_v52  ;;  %v3163_v52 = vld [vmem:[%s9522_s3 + $0x668] sm:$0xff] }
 0x6c1   : > { %6641 = vmatmul.mubr.bf16.vlgmr.msra.gmra.mrb[48].mxu1 %v10253_v37  ;;  %v7868_v48 = vcombine.high %v3163_v52, %v3179_v53  ;;  %v7867_v24 = vcombine.low %v3163_v52, %v3179_v53  ;;  %v3290_v53 = vld [vmem:[%s9522_s3 + $0xa60] sm:$0xff] }
 0x6c2   : > { %6682 = vmatmul.mubr.bf16.vlgmr.msra.gmra.mrb[52].mxu0 %v10253_v37  ;;  %6691 = vmatpush1.bf16.msra.mxu1 %v7673_v55  ;;  %v3517_v55 = vrot.slane %v10675_v43, %v10243_v6 }
 0x6c3   : > { %6722 = vmatprep.mubr.bf16.mxu1 %v10251_v36  ;;  %6732 = vmatpush1.bf16.msra.mxu0 %v7675_v58  ;;  %v7835_v58 = vcombine.low %v3131_v40, %v3147_v41 }
 0x6c4   : > { %6763 = vmatprep.mubr.bf16.mxu0 %v10251_v36  ;;  %6692 = vmatprep.subr.bf16.mxu1 %v7706_v61  ;;  %v7866_v61 = vcombine.high %v3162_v3, %v3178_v50 }
 0x6c5   : > { %6733 = vmatprep.subr.bf16.mxu0 %v7708_v0  ;;  %v3194_v0 = vld [vmem:[%s9522_s3 + $0x760] sm:$0xff] }
 0x6c6   : > { %6693 = vmatpush1.bf16.msra.mxu1 %v7705_v9  ;;  %v7898_v25 = vcombine.high %v3194_v0, %v3210_v7  ;;  %v7897_v38 = vcombine.low %v3194_v0, %v3210_v7  ;;  %v3338_v0 = vld [vmem:[%s9522_s3 + $0xbe0] sm:$0xff]  ;;  %v3323_v7 = vld [vmem:[%s9522_s3 + $0xb68] sm:$0xff] }
 0x6c7   : > { %6734 = vmatpush1.bf16.msra.mxu0 %v7707_v12  ;;  %6694 = vmatprep.subr.bf16.mxu1 %v7738_v13  ;;  %v3195_v13 = vld [vmem:[%s9522_s3 + $0x768] sm:$0xff] }
 0x6c8   : > { %6735 = vmatprep.subr.bf16.mxu0 %v7740_v14  ;;  %v3211_v14 = vld [vmem:[%s9522_s3 + $0x7e8] sm:$0xff] }
 0x6c9   : > { %v7900_v27 = vcombine.high %v3195_v13, %v3211_v14  ;;  %v7899_v39 = vcombine.low %v3195_v13, %v3211_v14 }
 0x6ca   : > { %6695 = vmatpush1.bf16.msra.mxu1 %v7737_v21  ;;  %v7865_v21 = vcombine.low %v3162_v3, %v3178_v50 }
 0x6cb   : > { %6736 = vmatpush1.bf16.msra.mxu0 %v7739_v22  ;;  %6696 = vmatprep.subr.bf16.mxu1 %v7770_v23 }
 0x6cc   : > { %6737 = vmatprep.subr.bf16.mxu0 %v7772_v62 }
 0x6ce   : > { %6697 = vmatpush1.bf16.msra.mxu1 %v7769_v28  ;;  %v3226_v28 = vld [vmem:[%s9522_s3 + $0x860] sm:$0xff] }
 0x6cf   : > { %6738 = vmatpush1.bf16.msra.mxu0 %v7771_v31  ;;  %6698 = vmatprep.subr.bf16.mxu1 %v7802_v32  ;;  %v3242_v31 = vld [vmem:[%s9522_s3 + $0x8e0] sm:$0xff]  ;;  %v3227_v32 = vld [vmem:[%s9522_s3 + $0x868] sm:$0xff] }
 0x6d0   : > { %6739 = vmatprep.subr.bf16.mxu0 %v7804_v33  ;;  %v3243_v33 = vld [vmem:[%s9522_s3 + $0x8e8] sm:$0xff]  ;;  %v7930_v40 = vcombine.high %v3226_v28, %v3242_v31  ;;  %v7929_v3 = vcombine.low %v3226_v28, %v3242_v31  ;;  %v3386_v28 = vld [vmem:[%s9522_s3 + $0xd60] sm:$0xff] }
 0x6d1   : > { %v7932_v41 = vcombine.high %v3227_v32, %v3243_v33  ;;  %v7931_v50 = vcombine.low %v3227_v32, %v3243_v33  ;;  %v3402_v31 = vld [vmem:[%s9522_s3 + $0xde0] sm:$0xff]  ;;  %v3387_v32 = vld [vmem:[%s9522_s3 + $0xd68] sm:$0xff] }
 0x6d2   : > { %6699 = vmatpush1.bf16.msra.mxu1 %v7801_v42  ;;  %v3258_v42 = vld [vmem:[%s9522_s3 + $0x960] sm:$0xff]  ;;  %v3403_v33 = vld [vmem:[%s9522_s3 + $0xde8] sm:$0xff] }
 0x6d3   : > { %6740 = vmatpush1.bf16.msra.mxu0 %v7803_v45  ;;  %6700 = vmatprep.subr.bf16.mxu1 %v7834_v46  ;;  %v3274_v45 = vld [vmem:[%s9522_s3 + $0x9e0] sm:$0xff]  ;;  %v3259_v46 = vld [vmem:[%s9522_s3 + $0x968] sm:$0xff] }
 0x6d4   : > { %v6396_v63 = vpop.f32.mrb[36].mxu1  ;;  %6741 = vmatprep.subr.bf16.mxu0 %v7836_v47  ;;  %v3275_v47 = vld [vmem:[%s9522_s3 + $0x9e8] sm:$0xff] }
 0x6d5   : > { %v10691_v8 = vadd.f32 %v6396_v63, %v3513_v51  ;;  %v6437_v9 = vpop.f32.mrb[40].mxu0  ;;  %v6398_v12 = vpop.f32.mrb[37].mxu1  ;;  %v7962_v51 = vcombine.high %v3258_v42, %v3274_v45  ;;  %v7964_v52 = vcombine.high %v3259_v46, %v3275_v47 }
 0x6d6   : > { %v10695_v15 = vadd.f32 %v6437_v9, %v3521_v54  ;;  %v10697_v18 = vadd.f32 %v6398_v12, %v3517_v55  ;;  %v6439_v19 = vpop.f32.mrb[41].mxu0  ;;  %v6400_v20 = vpop.f32.mrb[38].mxu1  ;;  %6701 = vmatpush1.bf16.msra.mxu1 %v7833_v56  ;;  %v3306_v54 = vld [vmem:[%s9522_s3 + $0xae0] sm:$0xff]  ;;  %v3291_v55 = vld [vmem:[%s9522_s3 + $0xa68] sm:$0xff] }
 0x6d7   : > { %v10699_v22 = vadd.f32 %v6439_v19, %v3525_v57  ;;  %v6441_v23 = vpop.f32.mrb[42].mxu0  ;;  %6742 = vmatpush1.bf16.msra.mxu0 %v7835_v58  ;;  %v6401_v62 = vpop.f32.mrb[39].mxu1  ;;  %6702 = vmatprep.subr.bf16.mxu1 %v7866_v61  ;;  %v3307_v56 = vld [vmem:[%s9522_s3 + $0xae8] sm:$0xff]  ;;  %v7961_v57 = vcombine.low %v3258_v42, %v3274_v45  ;;  %v7963_v58 = vcombine.low %v3259_v46, %v3275_v47  ;;  %v3354_v20 = vld [vmem:[%s9522_s3 + $0xc60] sm:$0xff] }
 0x6d8   : > { %v6442_v26 = vpop.f32.mrb[43].mxu0  ;;  %6743 = vmatprep.subr.bf16.mxu0 %v7868_v48  ;;  %v7994_v61 = vcombine.high %v3290_v53, %v3306_v54  ;;  %v7996_v63 = vcombine.high %v3291_v55, %v3307_v56  ;;  %v3322_v48 = vld [vmem:[%s9522_s3 + $0xb60] sm:$0xff]  ;;  %v3339_v9 = vld [vmem:[%s9522_s3 + $0xbe8] sm:$0xff]  ;;  %v7993_v12 = vcombine.low %v3290_v53, %v3306_v54  ;;  %v7995_v13 = vcombine.low %v3291_v55, %v3307_v56 }
 0x6d9   : > { %v8026_v14 = vcombine.high %v3322_v48, %v3338_v0  ;;  %v8028_v19 = vcombine.high %v3323_v7, %v3339_v9  ;;  %v3355_v23 = vld [vmem:[%s9522_s3 + $0xc68] sm:$0xff]  ;;  %v3418_v42 = vld [vmem:[%s9522_s3 + $0xe60] sm:$0xff] }
 0x6da   : > { %6703 = vmatpush1.bf16.msra.mxu1 %v7865_v21  ;;  %v3370_v21 = vld [vmem:[%s9522_s3 + $0xce0] sm:$0xff]  ;;  %v3371_v62 = vld [vmem:[%s9522_s3 + $0xce8] sm:$0xff] }
 0x6db   : > { %6744 = vmatpush1.bf16.msra.mxu0 %v7867_v24  ;;  %6704 = vmatprep.subr.bf16.mxu1 %v7898_v25  ;;  %v8025_v24 = vcombine.low %v3322_v48, %v3338_v0  ;;  %v8027_v25 = vcombine.low %v3323_v7, %v3339_v9  ;;  %v8058_v26 = vcombine.high %v3354_v20, %v3370_v21  ;;  %v3434_v45 = vld [vmem:[%s9522_s3 + $0xee0] sm:$0xff]  ;;  %v3419_v46 = vld [vmem:[%s9522_s3 + $0xe68] sm:$0xff]  ;;  %v2972_v48 = vld [vmem:[%s9522_s3 + $0x70] sm:$0xff] }
 0x6dc   : > { %6745 = vmatprep.subr.bf16.mxu0 %v7900_v27  ;;  %v8060_v27 = vcombine.high %v3355_v23, %v3371_v62  ;;  %v3435_v47 = vld [vmem:[%s9522_s3 + $0xee8] sm:$0xff]  ;;  %v3450_v53 = vld [vmem:[%s9522_s3 + $0xf60] sm:$0xff]  ;;  %v2988_v0 = vld [vmem:[%s9522_s3 + $0xf0] sm:$0xff] }
 0x6dd   : > { %v3466_v54 = vld [vmem:[%s9522_s3 + $0xfe0] sm:$0xff]  ;;  %v3451_v55 = vld [vmem:[%s9522_s3 + $0xf68] sm:$0xff]  ;;  %v2973_v7 = vld [vmem:[%s9522_s3 + $0x78] sm:$0xff] }
 0x6de   : > { %6705 = vmatpush1.bf16.msra.mxu1 %v7897_v38  ;;  %v8057_v38 = vcombine.low %v3354_v20, %v3370_v21  ;;  %v3467_v56 = vld [vmem:[%s9522_s3 + $0xfe8] sm:$0xff]  ;;  %v2989_v9 = vld [vmem:[%s9522_s3 + $0xf8] sm:$0xff]  ;;  %v3004_v20 = vld [vmem:[%s9522_s3 + $0x170] sm:$0xff] }
 0x6df   : > { %6746 = vmatpush1.bf16.msra.mxu0 %v7899_v39  ;;  %6706 = vmatprep.subr.bf16.mxu1 %v7930_v40  ;;  %v8059_v39 = vcombine.low %v3355_v23, %v3371_v62  ;;  %v8090_v40 = vcombine.high %v3386_v28, %v3402_v31  ;;  %v3020_v21 = vld [vmem:[%s9522_s3 + $0x1f0] sm:$0xff]  ;;  %v7677_v23 = vcombine.low %v2972_v48, %v2988_v0  ;;  %v3005_v62 = vld [vmem:[%s9522_s3 + $0x178] sm:$0xff] }
 0x6e0   : > { %6747 = vmatprep.subr.bf16.mxu0 %v7932_v41  ;;  %v8092_v41 = vcombine.high %v3387_v32, %v3403_v33 }
 0x6e2   : > { %6707 = vmatpush1.bf16.msra.mxu1 %v7929_v3  ;;  %v8089_v3 = vcombine.low %v3386_v28, %v3402_v31  ;;  %v3052_v28 = vld [vmem:[%s9522_s3 + $0x2f0] sm:$0xff] }
 0x6e3   : > { %6748 = vmatpush1.bf16.msra.mxu0 %v7931_v50  ;;  %6708 = vmatprep.subr.bf16.mxu1 %v7962_v51  ;;  %v8091_v50 = vcombine.low %v3387_v32, %v3403_v33  ;;  %v8122_v51 = vcombine.high %v3418_v42, %v3434_v45  ;;  %v3037_v32 = vld [vmem:[%s9522_s3 + $0x278] sm:$0xff] }
 0x6e4   : > { %6749 = vmatprep.subr.bf16.mxu0 %v7964_v52  ;;  %v8124_v52 = vcombine.high %v3419_v46, %v3435_v47  ;;  %v3053_v33 = vld [vmem:[%s9522_s3 + $0x2f8] sm:$0xff] }
 0x6e6   : > { %6709 = vmatpush1.bf16.msra.mxu1 %v7961_v57  ;;  %v8121_v57 = vcombine.low %v3418_v42, %v3434_v45  ;;  %v3068_v42 = vld [vmem:[%s9522_s3 + $0x370] sm:$0xff] }
 0x6e7   : > { %6750 = vmatpush1.bf16.msra.mxu0 %v7963_v58  ;;  %6710 = vmatprep.subr.bf16.mxu1 %v7994_v61  ;;  %v8123_v58 = vcombine.low %v3419_v46, %v3435_v47  ;;  %v8154_v61 = vcombine.high %v3450_v53, %v3466_v54  ;;  %v3084_v45 = vld [vmem:[%s9522_s3 + $0x3f0] sm:$0xff]  ;;  %v3069_v46 = vld [vmem:[%s9522_s3 + $0x378] sm:$0xff] }
 0x6e8   : > { %6751 = vmatprep.subr.bf16.mxu0 %v7996_v63  ;;  %v8156_v63 = vcombine.high %v3451_v55, %v3467_v56  ;;  %v3085_v47 = vld [vmem:[%s9522_s3 + $0x3f8] sm:$0xff] }
 0x6ea   : > { %6711 = vmatpush1.bf16.msra.mxu1 %v7993_v12  ;;  %v8153_v12 = vcombine.low %v3450_v53, %v3466_v54  ;;  %v3116_v53 = vld [vmem:[%s9522_s3 + $0x4f0] sm:$0xff]  ;;  %v3101_v54 = vld [vmem:[%s9522_s3 + $0x478] sm:$0xff] }
 0x6eb   : > { %6752 = vmatpush1.bf16.msra.mxu0 %v7995_v13  ;;  %6712 = vmatprep.subr.bf16.mxu1 %v8026_v14  ;;  %v8155_v13 = vcombine.low %v3451_v55, %v3467_v56  ;;  %v7678_v14 = vcombine.high %v2972_v48, %v2988_v0  ;;  %v3117_v55 = vld [vmem:[%s9522_s3 + $0x4f8] sm:$0xff]  ;;  %v7773_v56 = vcombine.low %v3068_v42, %v3084_v45  ;;  %v3148_v48 = vld [vmem:[%s9522_s3 + $0x5f0] sm:$0xff] }
 0x6ec   : > { %6753 = vmatprep.subr.bf16.mxu0 %v8028_v19  ;;  %v7680_v19 = vcombine.high %v2973_v7, %v2989_v9  ;;  %v3133_v0 = vld [vmem:[%s9522_s3 + $0x578] sm:$0xff] }
 0x6ee   : > { %6713 = vmatpush1.bf16.msra.mxu1 %v8025_v24  ;;  %v3021_v24 = vld [vmem:[%s9522_s3 + $0x1f8] sm:$0xff] }
 0x6ef   : > { %6754 = vmatpush1.bf16.msra.mxu0 %v8027_v25  ;;  %6714 = vmatprep.subr.bf16.mxu1 %v8058_v26  ;;  %v7679_v25 = vcombine.low %v2973_v7, %v2989_v9  ;;  %v7710_v26 = vcombine.high %v3004_v20, %v3020_v21  ;;  %v7712_v31 = vcombine.high %v3005_v62, %v3021_v24  ;;  %v3149_v7 = vld [vmem:[%s9522_s3 + $0x5f8] sm:$0xff] }
 0x6f0   : > { %6755 = vmatprep.subr.bf16.mxu0 %v8060_v27  ;;  %v3036_v27 = vld [vmem:[%s9522_s3 + $0x270] sm:$0xff] }
 0x6f2   : > { %6715 = vmatpush1.bf16.msra.mxu1 %v8057_v38  ;;  %v7709_v38 = vcombine.low %v3004_v20, %v3020_v21  ;;  %v3180_v20 = vld [vmem:[%s9522_s3 + $0x6f0] sm:$0xff]  ;;  %v3529_v21 = vrot.slane %v10675_v43, %v10577_v29 }
 0x6f3   : > { %6756 = vmatpush1.bf16.msra.mxu0 %v8059_v39  ;;  %6716 = vmatprep.subr.bf16.mxu1 %v8090_v40  ;;  %v7711_v39 = vcombine.low %v3005_v62, %v3021_v24  ;;  %v7742_v40 = vcombine.high %v3036_v27, %v3052_v28  ;;  %v3181_v62 = vld [vmem:[%s9522_s3 + $0x6f8] sm:$0xff]  ;;  %v3537_v24 = vrot.slane %v10675_v43, %v10580_v30 }
 0x6f4   : > { %6757 = vmatprep.subr.bf16.mxu0 %v8092_v41  ;;  %v7744_v41 = vcombine.high %v3037_v32, %v3053_v33 }
 0x6f6   : > { %6717 = vmatpush1.bf16.msra.mxu1 %v8089_v3  ;;  %v7741_v3 = vcombine.low %v3036_v27, %v3052_v28  ;;  %v3541_v27 = vrot.slane %v10675_v43, %v10588_v35  ;;  %v7839_v28 = vcombine.low %v3133_v0, %v3149_v7 }
 0x6f7   : > { %6758 = vmatpush1.bf16.msra.mxu0 %v8091_v50  ;;  %6718 = vmatprep.subr.bf16.mxu1 %v8122_v51  ;;  %v7743_v50 = vcombine.low %v3037_v32, %v3053_v33  ;;  %v7774_v51 = vcombine.high %v3068_v42, %v3084_v45  ;;  %v3197_v45 = vld [vmem:[%s9522_s3 + $0x778] sm:$0xff] }
 0x6f8   : > { %6759 = vmatprep.subr.bf16.mxu0 %v8124_v52  ;;  %v3100_v52 = vld [vmem:[%s9522_s3 + $0x470] sm:$0xff] }
 0x6f9   : > { %v7805_v9 = vcombine.low %v3100_v52, %v3116_v53 }
 0x6fa   : > { %6719 = vmatpush1.bf16.msra.mxu1 %v8121_v57  ;;  %v7775_v57 = vcombine.low %v3069_v46, %v3085_v47 }
 0x6fb   : > { %6760 = vmatpush1.bf16.msra.mxu0 %v8123_v58  ;;  %6720 = vmatprep.subr.bf16.mxu1 %v8154_v61  ;;  %v7806_v58 = vcombine.high %v3100_v52, %v3116_v53  ;;  %v7808_v61 = vcombine.high %v3101_v54, %v3117_v55 }
 0x6fc   : > { %6761 = vmatprep.subr.bf16.mxu0 %v8156_v63  ;;  %v3132_v63 = vld [vmem:[%s9522_s3 + $0x570] sm:$0xff] }
 0x6fe   : > { %6721 = vmatpush1.bf16.msra.mxu1 %v8153_v12  ;;  %v7807_v12 = vcombine.low %v3101_v54, %v3117_v55 }
 0x6ff   : > { %6762 = vmatpush1.bf16.msra.mxu0 %v8155_v13  ;;  %6772 = vmatprep.subr.bf16.mxu1 %v7678_v14  ;;  %v7838_v13 = vcombine.high %v3132_v63, %v3148_v48  ;;  %v7840_v14 = vcombine.high %v3133_v0, %v3149_v7 }
 0x700   : > { %6813 = vmatprep.subr.bf16.mxu0 %v7680_v19  ;;  %v3164_v19 = vld [vmem:[%s9522_s3 + $0x670] sm:$0xff] }
 0x701   : > { %6723 = vmatmul.mubr.bf16.vlgmr.msra.gmra.mrb[52].mxu1 %v10253_v37 }
 0x702   : > { %6764 = vmatmul.mubr.bf16.vlgmr.msra.gmra.mrb[56].mxu0 %v10253_v37  ;;  %6773 = vmatpush1.bf16.msra.mxu1 %v7677_v23  ;;  %v3165_v23 = vld [vmem:[%s9522_s3 + $0x678] sm:$0xff] }
 0x703   : > { %6804 = vmatprep.mubr.bf16.mxu1 %v10251_v36  ;;  %6814 = vmatpush1.bf16.msra.mxu0 %v7679_v25  ;;  %v3533_v25 = vrot.slane %v10675_v43, %v10585_v34  ;;  %v7872_v33 = vcombine.high %v3165_v23, %v3181_v62  ;;  %v7871_v54 = vcombine.low %v3165_v23, %v3181_v62 }
 0x704   : > { %6845 = vmatprep.mubr.bf16.mxu0 %v10251_v36  ;;  %6774 = vmatprep.subr.bf16.mxu1 %v7710_v26  ;;  %v7776_v36 = vcombine.high %v3069_v46, %v3085_v47  ;;  %v7837_v26 = vcombine.low %v3132_v63, %v3148_v48  ;;  %v3213_v46 = vld [vmem:[%s9522_s3 + $0x7f8] sm:$0xff] }
 0x705   : > { %6815 = vmatprep.subr.bf16.mxu0 %v7712_v31  ;;  %v7870_v31 = vcombine.high %v3164_v19, %v3180_v20  ;;  %v3229_v63 = vld [vmem:[%s9522_s3 + $0x878] sm:$0xff]  ;;  %v7903_v7 = vcombine.low %v3197_v45, %v3213_v46 }
 0x706   : > { %6775 = vmatpush1.bf16.msra.mxu1 %v7709_v38  ;;  %v3196_v38 = vld [vmem:[%s9522_s3 + $0x770] sm:$0xff]  ;;  %v3245_v48 = vld [vmem:[%s9522_s3 + $0x8f8] sm:$0xff] }
 0x707   : > { %6816 = vmatpush1.bf16.msra.mxu0 %v7711_v39  ;;  %6776 = vmatprep.subr.bf16.mxu1 %v7742_v40  ;;  %v3212_v39 = vld [vmem:[%s9522_s3 + $0x7f0] sm:$0xff]  ;;  %v7935_v23 = vcombine.low %v3229_v63, %v3245_v48 }
 0x708   : > { %6817 = vmatprep.subr.bf16.mxu0 %v7744_v41  ;;  %v7902_v55 = vcombine.high %v3196_v38, %v3212_v39  ;;  %v7901_v0 = vcombine.low %v3196_v38, %v3212_v39  ;;  %v3324_v39 = vld [vmem:[%s9522_s3 + $0xb70] sm:$0xff] }
 0x70a   : > { %6777 = vmatpush1.bf16.msra.mxu1 %v7741_v3 }
 0x70b   : > { %6818 = vmatpush1.bf16.msra.mxu0 %v7743_v50  ;;  %6778 = vmatprep.subr.bf16.mxu1 %v7774_v51  ;;  %v7869_v51 = vcombine.low %v3164_v19, %v3180_v20  ;;  %v3261_v19 = vld [vmem:[%s9522_s3 + $0x978] sm:$0xff] }
 0x70c   : > { %6819 = vmatprep.subr.bf16.mxu0 %v7776_v36  ;;  %v3277_v20 = vld [vmem:[%s9522_s3 + $0x9f8] sm:$0xff] }
 0x70e   : > { %6779 = vmatpush1.bf16.msra.mxu1 %v7773_v56 }
 0x70f   : > { %6820 = vmatpush1.bf16.msra.mxu0 %v7775_v57  ;;  %6780 = vmatprep.subr.bf16.mxu1 %v7806_v58  ;;  %v7904_v57 = vcombine.high %v3197_v45, %v3213_v46  ;;  %v3228_v58 = vld [vmem:[%s9522_s3 + $0x870] sm:$0xff]  ;;  %v3341_v45 = vld [vmem:[%s9522_s3 + $0xbf8] sm:$0xff] }
 0x710   : > { %6821 = vmatprep.subr.bf16.mxu0 %v7808_v61  ;;  %v3244_v61 = vld [vmem:[%s9522_s3 + $0x8f0] sm:$0xff] }
 0x712   : > { %6781 = vmatpush1.bf16.msra.mxu1 %v7805_v9  ;;  %v7934_v9 = vcombine.high %v3228_v58, %v3244_v61 }
 0x713   : > { %6822 = vmatpush1.bf16.msra.mxu0 %v7807_v12  ;;  %6782 = vmatprep.subr.bf16.mxu1 %v7838_v13  ;;  %v7936_v12 = vcombine.high %v3229_v63, %v3245_v48  ;;  %v3260_v13 = vld [vmem:[%s9522_s3 + $0x970] sm:$0xff] }
 0x714   : > { %v6478_v32 = vpop.f32.mrb[40].mxu1  ;;  %6823 = vmatprep.subr.bf16.mxu0 %v7840_v14  ;;  %v3276_v14 = vld [vmem:[%s9522_s3 + $0x9f0] sm:$0xff] }
 0x715   : > { %v10775_v40 = vadd.f32 %v6478_v32, %v3529_v21  ;;  %v6519_v41 = vpop.f32.mrb[44].mxu0  ;;  %v6480_v42 = vpop.f32.mrb[41].mxu1  ;;  %v7933_v21 = vcombine.low %v3228_v58, %v3244_v61  ;;  %v7966_v62 = vcombine.high %v3260_v13, %v3276_v14  ;;  %v7967_v32 = vcombine.low %v3261_v19, %v3277_v20  ;;  %v3388_v63 = vld [vmem:[%s9522_s3 + $0xd70] sm:$0xff] }
 0x716   : > { %v10779_v47 = vadd.f32 %v6519_v41, %v3537_v24  ;;  %v10781_v3 = vadd.f32 %v6480_v42, %v3533_v25  ;;  %v6521_v43 = vpop.f32.mrb[45].mxu0  ;;  %v6482_v50 = vpop.f32.mrb[42].mxu1  ;;  %6783 = vmatpush1.bf16.msra.mxu1 %v7837_v26  ;;  %v7968_v24 = vcombine.high %v3261_v19, %v3277_v20  ;;  %v3292_v25 = vld [vmem:[%s9522_s3 + $0xa70] sm:$0xff]  ;;  %v3325_v42 = vld [vmem:[%s9522_s3 + $0xb78] sm:$0xff] }
 0x717   : > { %v10783_v36 = vadd.f32 %v6521_v43, %v3541_v27  ;;  %v6523_v52 = vpop.f32.mrb[46].mxu0  ;;  %6824 = vmatpush1.bf16.msra.mxu0 %v7839_v28  ;;  %v6483_v53 = vpop.f32.mrb[43].mxu1  ;;  %6784 = vmatprep.subr.bf16.mxu1 %v7870_v31  ;;  %v3308_v26 = vld [vmem:[%s9522_s3 + $0xaf0] sm:$0xff]  ;;  %v3293_v27 = vld [vmem:[%s9522_s3 + $0xa78] sm:$0xff]  ;;  %v7965_v31 = vcombine.low %v3260_v13, %v3276_v14 }
 0x718   : > { %v6524_v56 = vpop.f32.mrb[47].mxu0  ;;  %6825 = vmatprep.subr.bf16.mxu0 %v7872_v33  ;;  %v3309_v28 = vld [vmem:[%s9522_s3 + $0xaf8] sm:$0xff]  ;;  %v7998_v33 = vcombine.high %v3292_v25, %v3308_v26  ;;  %v3340_v41 = vld [vmem:[%s9522_s3 + $0xbf0] sm:$0xff]  ;;  %v7997_v46 = vcombine.low %v3292_v25, %v3308_v26 }
 0x719   : > { %v8000_v38 = vcombine.high %v3293_v27, %v3309_v28  ;;  %v7999_v43 = vcombine.low %v3293_v27, %v3309_v28  ;;  %v8030_v50 = vcombine.high %v3324_v39, %v3340_v41  ;;  %v3356_v52 = vld [vmem:[%s9522_s3 + $0xc70] sm:$0xff]  ;;  %v8029_v56 = vcombine.low %v3324_v39, %v3340_v41 }
 0x71a   : > { %6785 = vmatpush1.bf16.msra.mxu1 %v7869_v51  ;;  %v8032_v51 = vcombine.high %v3325_v42, %v3341_v45  ;;  %v3372_v53 = vld [vmem:[%s9522_s3 + $0xcf0] sm:$0xff] }
 0x71b   : > { %6826 = vmatpush1.bf16.msra.mxu0 %v7871_v54  ;;  %6786 = vmatprep.subr.bf16.mxu1 %v7902_v55  ;;  %v3357_v54 = vld [vmem:[%s9522_s3 + $0xc78] sm:$0xff]  ;;  %v8062_v58 = vcombine.high %v3356_v52, %v3372_v53  ;;  %v3404_v48 = vld [vmem:[%s9522_s3 + $0xdf0] sm:$0xff] }
 0x71c   : > { %6827 = vmatprep.subr.bf16.mxu0 %v7904_v57  ;;  %v3373_v55 = vld [vmem:[%s9522_s3 + $0xcf8] sm:$0xff]  ;;  %v8031_v57 = vcombine.low %v3325_v42, %v3341_v45  ;;  %v8094_v13 = vcombine.high %v3388_v63, %v3404_v48  ;;  %v3420_v19 = vld [vmem:[%s9522_s3 + $0xe70] sm:$0xff] }
 0x71d   : > { %v8064_v61 = vcombine.high %v3357_v54, %v3373_v55  ;;  %v3436_v20 = vld [vmem:[%s9522_s3 + $0xef0] sm:$0xff] }
 0x71e   : > { %6787 = vmatpush1.bf16.msra.mxu1 %v7901_v0  ;;  %v3389_v0 = vld [vmem:[%s9522_s3 + $0xd78] sm:$0xff]  ;;  %v8126_v25 = vcombine.high %v3420_v19, %v3436_v20  ;;  %v3452_v27 = vld [vmem:[%s9522_s3 + $0xf70] sm:$0xff] }
 0x71f   : > { %6828 = vmatpush1.bf16.msra.mxu0 %v7903_v7  ;;  %6788 = vmatprep.subr.bf16.mxu1 %v7934_v9  ;;  %v3405_v7 = vld [vmem:[%s9522_s3 + $0xdf8] sm:$0xff]  ;;  %v8061_v9 = vcombine.low %v3356_v52, %v3372_v53  ;;  %v3468_v28 = vld [vmem:[%s9522_s3 + $0xff0] sm:$0xff] }
 0x720   : > { %6829 = vmatprep.subr.bf16.mxu0 %v7936_v12  ;;  %v8063_v12 = vcombine.low %v3357_v54, %v3373_v55  ;;  %v8096_v14 = vcombine.high %v3389_v0, %v3405_v7  ;;  %v8158_v39 = vcombine.high %v3452_v27, %v3468_v28  ;;  %v8157_v42 = vcombine.low %v3452_v27, %v3468_v28 }
 0x722   : > { %6789 = vmatpush1.bf16.msra.mxu1 %v7933_v21  ;;  %v3421_v21 = vld [vmem:[%s9522_s3 + $0xe78] sm:$0xff] }
 0x723   : > { %6830 = vmatpush1.bf16.msra.mxu0 %v7935_v23  ;;  %6790 = vmatprep.subr.bf16.mxu1 %v7966_v62  ;;  %v3437_v23 = vld [vmem:[%s9522_s3 + $0xef8] sm:$0xff]  ;;  %v8093_v62 = vcombine.low %v3388_v63, %v3404_v48 }
 0x724   : > { %6831 = vmatprep.subr.bf16.mxu0 %v7968_v24  ;;  %v8095_v24 = vcombine.low %v3389_v0, %v3405_v7  ;;  %v8128_v26 = vcombine.high %v3421_v21, %v3437_v23 }
 0x726   : > { %6791 = vmatpush1.bf16.msra.mxu1 %v7965_v31  ;;  %v3453_v31 = vld [vmem:[%s9522_s3 + $0xf78] sm:$0xff] }
 0x727   : > { %6832 = vmatpush1.bf16.msra.mxu0 %v7967_v32  ;;  %6792 = vmatprep.subr.bf16.mxu1 %v7998_v33  ;;  %v3469_v32 = vld [vmem:[%s9522_s3 + $0xff8] sm:$0xff]  ;;  %v8125_v33 = vcombine.low %v3420_v19, %v3436_v20  ;;  %s8161_s3 = sshll.u32 %s9317_s9, 12 }
 0x728   : > { %6833 = vmatprep.subr.bf16.mxu0 %v8000_v38  ;;  %v8127_v38 = vcombine.low %v3421_v21, %v3437_v23  ;;  %v8160_v41 = vcombine.high %v3453_v31, %v3469_v32  ;;  %v8159_v45 = vcombine.low %v3453_v31, %v3469_v32  ;;  %s10847_s2 = sadd.s32 4096, %s8161_s3 }
 0x729   : > { %p8162_p9 = scmp.gt.s32.totalorder %s10847_s2, 7236 }
 0x72a   : > { %6793 = vmatpush1.bf16.msra.mxu1 %v7997_v46  ;;  %v3472_v46 = vld [vmem:[%s10486_s12 + $0x10] sm:$0xff]  ;;  %6860 = vst [vmem:[%s9532_s25] sm:$0xff] (!%p8162_p9), %v10508_v10  ;;  %6861 = vst [vmem:[%s9532_s25 + $0x8] sm:$0xff] (!%p8162_p9), %v10514_v16 }
 0x72b   : > { %6834 = vmatpush1.bf16.msra.mxu0 %v7999_v43  ;;  %6794 = vmatprep.subr.bf16.mxu1 %v8030_v50  ;;  %v3545_v43 = vrot.slane %v3472_v46, %v10240_v4  ;;  %v3553_v50 = vrot.slane %v3472_v46, %v10482_v44  ;;  %v3557_v52 = vrot.slane %v3472_v46, %v10492_v49 }
 0x72c   : > { %6835 = vmatprep.subr.bf16.mxu0 %v8032_v51  ;;  %v3549_v51 = vrot.slane %v3472_v46, %v10243_v6  ;;  %6862 = vst [vmem:[%s9532_s25 + $0x10] sm:$0xff] (!%p8162_p9), %v10510_v11  ;;  %6863 = vst [vmem:[%s9532_s25 + $0x18] sm:$0xff] (!%p8162_p9), %v10516_v17 }
 0x72d   : > { %6864 = vst [vmem:[%s9532_s25 + $0x20] sm:$0xff] (!%p8162_p9), %v10604_v59  ;;  %6865 = vst [vmem:[%s9532_s25 + $0x28] sm:$0xff] (!%p8162_p9), %v10610_v1 }
 0x72e   : > { %6795 = vmatpush1.bf16.msra.mxu1 %v8029_v56  ;;  %6866 = vst [vmem:[%s9532_s25 + $0x30] sm:$0xff] (!%p8162_p9), %v10606_v60  ;;  %6867 = vst [vmem:[%s9532_s25 + $0x38] sm:$0xff] (!%p8162_p9), %v10612_v5 }
 0x72f   : > { %6836 = vmatpush1.bf16.msra.mxu0 %v8031_v57  ;;  %6796 = vmatprep.subr.bf16.mxu1 %v8062_v58  ;;  %6868 = vst [vmem:[%s9532_s25 + $0x40] sm:$0xff] (!%p8162_p9), %v10691_v8  ;;  %6869 = vst [vmem:[%s9532_s25 + $0x48] sm:$0xff] (!%p8162_p9), %v10697_v18 }
 0x730   : > { %6837 = vmatprep.subr.bf16.mxu0 %v8064_v61  ;;  %6870 = vst [vmem:[%s9532_s25 + $0x50] sm:$0xff] (!%p8162_p9), %v10695_v15  ;;  %6871 = vst [vmem:[%s9532_s25 + $0x58] sm:$0xff] (!%p8162_p9), %v10699_v22 }
 0x731   : > { %6872 = vst [vmem:[%s9532_s25 + $0x60] sm:$0xff] (!%p8162_p9), %v10775_v40  ;;  %6873 = vst [vmem:[%s9532_s25 + $0x68] sm:$0xff] (!%p8162_p9), %v10781_v3 }
 0x732   : > { %6797 = vmatpush1.bf16.msra.mxu1 %v8061_v9  ;;  %v3561_v9 = vrot.slane %v3472_v46, %v10577_v29  ;;  %6874 = vst [vmem:[%s9532_s25 + $0x70] sm:$0xff] (!%p8162_p9), %v10779_v47  ;;  %6875 = vst [vmem:[%s9532_s25 + $0x78] sm:$0xff] (!%p8162_p9), %v10783_v36 }
 0x733   : > { %6838 = vmatpush1.bf16.msra.mxu0 %v8063_v12  ;;  %6798 = vmatprep.subr.bf16.mxu1 %v8094_v13  ;;  %v3569_v12 = vrot.slane %v3472_v46, %v10580_v30  ;;  %v3565_v13 = vrot.slane %v3472_v46, %v10585_v34 }
 0x734   : > { %6839 = vmatprep.subr.bf16.mxu0 %v8096_v14  ;;  %v3573_v14 = vrot.slane %v3472_v46, %v10588_v35 }
 0x736   : > { %6799 = vmatpush1.bf16.msra.mxu1 %v8093_v62 }
 0x737   : > { %6840 = vmatpush1.bf16.msra.mxu0 %v8095_v24  ;;  %6800 = vmatprep.subr.bf16.mxu1 %v8126_v25 }
 0x738   : > { %6841 = vmatprep.subr.bf16.mxu0 %v8128_v26 }
 0x73a   : > { %6801 = vmatpush1.bf16.msra.mxu1 %v8125_v33  ;;  %v3473_v33 = vld [vmem:[%s10486_s12 + $0x18] sm:$0xff] }
 0x73b   : > { %6842 = vmatpush1.bf16.msra.mxu0 %v8127_v38  ;;  %6802 = vmatprep.subr.bf16.mxu1 %v8158_v39  ;;  %v3577_v38 = vrot.slane %v3473_v33, %v10240_v4  ;;  %v3585_v39 = vrot.slane %v3473_v33, %v10482_v44 }
 0x73c   : > { %6843 = vmatprep.subr.bf16.mxu0 %v8160_v41  ;;  %v3581_v41 = vrot.slane %v3473_v33, %v10243_v6  ;;  %v3593_v6 = vrot.slane %v3473_v33, %v10577_v29 }
 0x73e   : > { %6803 = vmatpush1.bf16.msra.mxu1 %v8157_v42  ;;  %v3589_v42 = vrot.slane %v3473_v33, %v10492_v49  ;;  %v3601_v49 = vrot.slane %v3473_v33, %v10580_v30 }
 0x73f   : > { %6844 = vmatpush1.bf16.msra.mxu0 %v8159_v45 }
 0x741   : > { %6805 = vmatmul.mubr.bf16.vlgmr.msra.gmra.mrb[56].mxu1 %v10253_v37 }
 0x742   : > { %6846 = vmatmul.mubr.bf16.vlgmr.msra.gmra.mrb[60].mxu0 %v10253_v37 }
 0x754   : > { %v6560_v53 = vpop.f32.mrb[44].mxu1 }
 0x755   : > { %v10824_v54 = vadd.f32 %v6560_v53, %v3545_v43  ;;  %v6601_v55 = vpop.f32.mrb[48].mxu0  ;;  %v6562_v56 = vpop.f32.mrb[45].mxu1 }
 0x756   : > { %v10826_v57 = vadd.f32 %v6601_v55, %v3553_v50  ;;  %v10828_v58 = vadd.f32 %v6562_v56, %v3549_v51  ;;  %v6603_v61 = vpop.f32.mrb[49].mxu0  ;;  %v6564_v37 = vpop.f32.mrb[46].mxu1 }
 0x757   : > { %v10830_v63 = vadd.f32 %v6603_v61, %v3557_v52  ;;  %v6605_v48 = vpop.f32.mrb[50].mxu0  ;;  %v6565_v0 = vpop.f32.mrb[47].mxu1  ;;  %v3597_v37 = vrot.slane %v3473_v33, %v10585_v34  ;;  %6876 = vst [vmem:[%s9532_s25 + $0x80] sm:$0xff] (!%p8162_p9), %v10824_v54 }
 0x758   : > { %v6606_v7 = vpop.f32.mrb[51].mxu0  ;;  %v3605_v48 = vrot.slane %v3473_v33, %v10588_v35  ;;  %6877 = vst [vmem:[%s9532_s25 + $0x88] sm:$0xff] (!%p8162_p9), %v10828_v58  ;;  %6878 = vst [vmem:[%s9532_s25 + $0x90] sm:$0xff] (!%p8162_p9), %v10826_v57 }
 0x759   : > { %6879 = vst [vmem:[%s9532_s25 + $0x98] sm:$0xff] (!%p8162_p9), %v10830_v63 }
 0x794   : > { %v6642_v19 = vpop.f32.mrb[48].mxu1 }
 0x795   : > { %v10836_v20 = vadd.f32 %v6642_v19, %v3561_v9  ;;  %v6683_v21 = vpop.f32.mrb[52].mxu0  ;;  %v6644_v23 = vpop.f32.mrb[49].mxu1 }
 0x796   : > { %v10838_v62 = vadd.f32 %v6683_v21, %v3569_v12  ;;  %v10840_v24 = vadd.f32 %v6644_v23, %v3565_v13  ;;  %v6685_v25 = vpop.f32.mrb[53].mxu0  ;;  %v6646_v26 = vpop.f32.mrb[50].mxu1 }
 0x797   : > { %v10842_v27 = vadd.f32 %v6685_v25, %v3573_v14  ;;  %v6687_v28 = vpop.f32.mrb[54].mxu0  ;;  %v6647_v31 = vpop.f32.mrb[51].mxu1  ;;  %6880 = vst [vmem:[%s9532_s25 + $0xa0] sm:$0xff] (!%p8162_p9), %v10836_v20 }
 0x798   : > { %v6688_v32 = vpop.f32.mrb[55].mxu0  ;;  %6881 = vst [vmem:[%s9532_s25 + $0xa8] sm:$0xff] (!%p8162_p9), %v10840_v24  ;;  %6882 = vst [vmem:[%s9532_s25 + $0xb0] sm:$0xff] (!%p8162_p9), %v10838_v62 }
 0x799   : > { %6883 = vst [vmem:[%s9532_s25 + $0xb8] sm:$0xff] (!%p8162_p9), %v10842_v27 }
 0x7d4   : > { %v6724_v45 = vpop.f32.mrb[52].mxu1 }
 0x7d5   : > { %v10854_v46 = vadd.f32 %v6724_v45, %v3577_v38  ;;  %v6765_v43 = vpop.f32.mrb[56].mxu0  ;;  %v6726_v50 = vpop.f32.mrb[53].mxu1 }
 0x7d6   : > { %v10856_v51 = vadd.f32 %v6765_v43, %v3585_v39  ;;  %v10858_v52 = vadd.f32 %v6726_v50, %v3581_v41  ;;  %v6767_v53 = vpop.f32.mrb[57].mxu0  ;;  %v6728_v55 = vpop.f32.mrb[54].mxu1 }
 0x7d7   : > { %v10860_v56 = vadd.f32 %v6767_v53, %v3589_v42  ;;  %v6769_v4 = vpop.f32.mrb[58].mxu0  ;;  %v6729_v61 = vpop.f32.mrb[55].mxu1  ;;  %6884 = vst [vmem:[%s9532_s25 + $0xc0] sm:$0xff] (!%p8162_p9), %v10854_v46 }
 0x7d8   : > { %v6770_v44 = vpop.f32.mrb[59].mxu0  ;;  %6885 = vst [vmem:[%s9532_s25 + $0xc8] sm:$0xff] (!%p8162_p9), %v10858_v52  ;;  %6886 = vst [vmem:[%s9532_s25 + $0xd0] sm:$0xff] (!%p8162_p9), %v10856_v51 }
 0x7d9   : > { %6887 = vst [vmem:[%s9532_s25 + $0xd8] sm:$0xff] (!%p8162_p9), %v10860_v56 }
 0x812   : > { %6859 = sbr.rel (%p8162_p9) target bundleno = 2074 (0x81a), region = 80 }
 0x814   : > { %v6806_v0 = vpop.f32.mrb[56].mxu1 }
 0x815   : > { %v10866_v7 = vadd.f32 %v6806_v0, %v3593_v6  ;;  %v6847_v9 = vpop.f32.mrb[60].mxu0  ;;  %v6808_v12 = vpop.f32.mrb[57].mxu1 }
 0x816   : > { %v10868_v13 = vadd.f32 %v6847_v9, %v3601_v49  ;;  %v10870_v14 = vadd.f32 %v6808_v12, %v3597_v37  ;;  %v6849_v19 = vpop.f32.mrb[61].mxu0  ;;  %v6810_v21 = vpop.f32.mrb[58].mxu1 }
 0x817   : > { %v10872_v23 = vadd.f32 %v6849_v19, %v3605_v48  ;;  %v6851_v29 = vpop.f32.mrb[62].mxu0  ;;  %v6811_v25 = vpop.f32.mrb[59].mxu1  ;;  %6888 = vst [vmem:[%s9532_s25 + $0xe0] sm:$0xff] (!%p8162_p9), %v10866_v7 }
 0x818   : > { %v6852_v30 = vpop.f32.mrb[63].mxu0  ;;  %6889 = vst [vmem:[%s9532_s25 + $0xe8] sm:$0xff] (!%p8162_p9), %v10870_v14  ;;  %6890 = vst [vmem:[%s9532_s25 + $0xf0] sm:$0xff] (!%p8162_p9), %v10868_v13 }
 0x819   : > { %6891 = vst [vmem:[%s9532_s25 + $0xf8] sm:$0xff] %v10872_v23 }
 0x81a PF: > { %p8163_p11 = scmp.le.s32.totalorder %s10847_s2, 7236 }
 0x81b   : > { %v8164_v34 = vmul.f32 (!%p8163_p11), -1.442695, %v10508_v10  ;;  %v8165_v35 = vmul.f32 (!%p8163_p11), -1.442695, %v10514_v16  ;;  %v8166_v26 = vmul.f32 (!%p8163_p11), -1.442695, %v10510_v11  ;;  %v10955_v43 = vstv (!%p8163_p11), %s8161_s3 }
 0x81c   : > { %6895 = sbr.rel (%p8163_p11) target bundleno = 2161 (0x871), region = 84  ;;  %v8167_v28 = vmul.f32 (!%p8163_p11), -1.442695, %v10516_v17  ;;  %v8168_v31 = vmul.f32 (!%p8163_p11), -1.442695, %v10604_v59  ;;  %v10947_v33 = vand.u32 (!%p8163_p11), 127, %v2807_v2 }
 0x81d   : > { %8891 = vpow2.f32 (!%p8163_p11), %v8164_v34  ;;  %v8169_v32 = vmul.f32 (!%p8163_p11), -1.442695, %v10610_v1  ;;  %v8170_v38 = vmul.f32 (!%p8163_p11), -1.442695, %v10606_v60  ;;  %v8171_v39 = vmul.f32 (!%p8163_p11), -1.442695, %v10612_v5 }
 0x81e   : > { %8893 = vpow2.f32 (!%p8163_p11), %v8165_v35  ;;  %v8172_v41 = vmul.f32 (!%p8163_p11), -1.442695, %v10691_v8  ;;  %v8173_v42 = vmul.f32 (!%p8163_p11), -1.442695, %v10697_v18  ;;  %v6898_v50 = vadd.s32 (!%p8163_p11), 128, %v10947_v33 }
 0x81f   : > { %8895 = vpow2.f32 (!%p8163_p11), %v8166_v26  ;;  %v8174_v2 = vmul.f32 (!%p8163_p11), -1.442695, %v10695_v15  ;;  %v6899_v4 = vadd.s32 (!%p8163_p11), 256, %v10947_v33  ;;  %v6900_v61 = vadd.s32 (!%p8163_p11), 384, %v10947_v33 }
 0x820   : > { %8897 = vpow2.f32 (!%p8163_p11), %v8167_v28  ;;  %v6901_v49 = vadd.s32 (!%p8163_p11), 512, %v10947_v33  ;;  %v6930_v48 = vadd.s32 (!%p8163_p11), %v10955_v43, %v10947_v33  ;;  %v6902_v9 = vadd.s32 (!%p8163_p11), 640, %v10947_v33 }
 0x821   : > { %8899 = vpow2.f32 (!%p8163_p11), %v8168_v31  ;;  %v6931_v19 = vadd.s32 (!%p8163_p11), %v10955_v43, %v6898_v50  ;;  %v8175_v29 = vmul.f32 (!%p8163_p11), -1.442695, %v10699_v22  ;;  %v6932_v25 = vadd.s32 (!%p8163_p11), %v10955_v43, %v6899_v4 }
 0x822   : > { %8901 = vpow2.f32 (!%p8163_p11), %v8169_v32  ;;  %v6933_v30 = vadd.s32 (!%p8163_p11), %v10955_v43, %v6900_v61  ;;  %v6934_v26 = vadd.s32 (!%p8163_p11), %v10955_v43, %v6901_v49  ;;  %v8176_v28 = vmul.f32 (!%p8163_p11), -1.442695, %v10775_v40 }
 0x823   : > { %8903 = vpow2.f32 %v8170_v38  ;;  %v10972_v31 = vadd.s32 %v10955_v43, %v6902_v9  ;;  %v6903_v38 = vadd.s32 768, %v10947_v33  ;;  %vm6962_vm1 = vcmp.ge.s32.totalorder %v6930_v48, 7236 }
 0x824   : > { %8905 = vpow2.f32 %v8171_v39  ;;  %vm6963_vm2 = vcmp.ge.s32.totalorder %v6931_v19, 7236  ;;  %vm6964_vm3 = vcmp.ge.s32.totalorder %v6932_v25, 7236  ;;  %vm6965_vm4 = vcmp.ge.s32.totalorder %v6933_v30, 7236 }
 0x825   : > { %8907 = vpow2.f32 %v8172_v41  ;;  %vm6966_vm5 = vcmp.ge.s32.totalorder %v6934_v26, 7236  ;;  %v6904_v50 = vadd.s32 896, %v10947_v33  ;;  %vm6967_vm6 = vcmp.ge.s32.totalorder %v10972_v31, 7236 }
 0x826   : > { %8909 = vpow2.f32 %v8173_v42  ;;  %v8177_v49 = vmul.f32 -1.442695, %v10781_v3  ;;  %v8181_v48 = vmul.f32 -1.442695, %v10828_v58  ;;  %v8182_v25 = vmul.f32 -1.442695, %v10826_v57 }
 0x827   : > { %v8892_v45 = vpop.eup %8891  ;;  %8911 = vpow2.f32 %v8174_v2  ;;  %v8183_v26 = vmul.f32 -1.442695, %v10830_v63 }
 0x828   : > { %v8894_v53 = vpop.eup %8893  ;;  %v7090_v55 = vadd.f32 1.0, %v8892_v45 }
 0x829   : > { %v8896_v44 = vpop.eup %8895  ;;  %v7091_v6 = vadd.f32 1.0, %v8894_v53 }
 0x82a   : > { %v8898_v37 = vpop.eup %8897  ;;  %8913 = vrcp.f32 %v7090_v55  ;;  %v7092_v0 = vadd.f32 1.0, %v8896_v44  ;;  %v6936_v55 = vadd.s32 %v10955_v43, %v6903_v38  ;;  %v6905_v44 = vadd.s32 1024, %v10947_v33 }
 0x82b   : > { %v8900_v12 = vpop.eup %8899  ;;  %8915 = vrcp.f32 %v7091_v6  ;;  %v7093_v21 = vadd.f32 1.0, %v8898_v37  ;;  %v6907_v38 = vadd.s32 1280, %v10947_v33 }
 0x82c   : > { %8917 = vrcp.f32 %v7092_v0  ;;  %v7094_v34 = vadd.f32 1.0, %v8900_v12  ;;  %v8902_v35 = vpop.eup %8901  ;;  %v6906_v0 = vadd.s32 1152, %v10947_v33  ;;  %v8178_v12 = vmul.f32 -1.442695, %v10779_v47 }
 0x82d   : > { %8919 = vrcp.f32 %v7093_v21  ;;  %v7095_v32 = vadd.f32 1.0, %v8902_v35  ;;  %v8904_v39 = vpop.eup %8903  ;;  %v8179_v35 = vmul.f32 -1.442695, %v10783_v36  ;;  %vm6968_vm7 = vcmp.ge.s32.totalorder %v6936_v55, 7236 }
 0x82e   : > { %8921 = vrcp.f32 %v7094_v34  ;;  %v8906_v41 = vpop.eup %8905  ;;  %v7096_v42 = vadd.f32 1.0, %v8904_v39  ;;  %v6937_v34 = vadd.s32 %v10955_v43, %v6904_v50  ;;  %v8180_v39 = vmul.f32 -1.442695, %v10824_v54 }
 0x82f   : > { %8923 = vpow2.f32 %v8175_v29  ;;  %v8908_v45 = vpop.eup %8907  ;;  %v7097_v2 = vadd.f32 1.0, %v8906_v41  ;;  %v6938_v19 = vadd.s32 %v10955_v43, %v6905_v44  ;;  %v6940_v30 = vadd.s32 %v10955_v43, %v6907_v38 }
 0x830   : > { %8925 = vrcp.f32 %v7095_v32  ;;  %v8910_v53 = vpop.eup %8909  ;;  %v7098_v4 = vadd.f32 1.0, %v8908_v45  ;;  %v6939_v45 = vadd.s32 %v10955_v43, %v6906_v0  ;;  %vm6969_vm8 = vcmp.ge.s32.totalorder %v6937_v34, 7236 }
 0x831   : > { %8927 = vpow2.f32 %v8176_v28  ;;  %v8912_v61 = vpop.eup %8911  ;;  %v7099_v6 = vadd.f32 1.0, %v8910_v53  ;;  %vm6970_vm9 = vcmp.ge.s32.totalorder %v6938_v19, 7236  ;;  %vm6972_vm11 = vcmp.ge.s32.totalorder %v6940_v30, 7236 }
 0x832   : > { %8929 = vrcp.f32 %v7096_v42  ;;  %v7100_v9 = vadd.f32 1.0, %v8912_v61  ;;  %vm6971_vm10 = vcmp.ge.s32.totalorder %v6939_v45, 7236  ;;  %v6910_v34 = vadd.s32 1664, %v10947_v33 }
 0x833   : > { %8931 = vrcp.f32 %v7097_v2  ;;  %v6911_v38 = vadd.s32 1792, %v10947_v33 }
 0x834   : > { %v8914_v37 = vpop.eup %8913  ;;  %8933 = vrcp.f32 %v7098_v4 }
 0x835   : > { %v8916_v21 = vpop.eup %8915  ;;  %v7186_v29 = vsel %vm6962_vm1, %v8914_v37, %v10508_v10  ;;  %8935 = vrcp.f32 %v7099_v6 }
 0x836   : > { %v8918_v28 = vpop.eup %8917  ;;  %7218 = vst [vmem:[%s9532_s25] sm:$0xff] %v7186_v29  ;;  %v7187_v32 = vsel %vm6963_vm2, %v8916_v21, %v10514_v16  ;;  %8937 = vrcp.f32 %v7100_v9 }
 0x837   : > { %v8920_v41 = vpop.eup %8919  ;;  %7219 = vst [vmem:[%s9532_s25 + $0x8] sm:$0xff] %v7187_v32  ;;  %v7188_v10 = vsel %vm6964_vm3, %v8918_v28, %v10510_v11  ;;  %8939 = vpow2.f32 %v8177_v49  ;;  %v8184_v49 = vmul.f32 -1.442695, %v10836_v20  ;;  %v8187_v28 = vmul.f32 -1.442695, %v10842_v27 }
 0x838   : > { %v8922_v42 = vpop.eup %8921  ;;  %7220 = vst [vmem:[%s9532_s25 + $0x10] sm:$0xff] %v7188_v10  ;;  %v7189_v16 = vsel %vm6965_vm4, %v8920_v41, %v10516_v17  ;;  %8941 = vpow2.f32 %v8178_v12  ;;  %v6908_v17 = vadd.s32 1408, %v10947_v33  ;;  %v8186_v12 = vmul.f32 -1.442695, %v10838_v62 }
 0x839   : > { %v8924_v50 = vpop.eup %8923  ;;  %7221 = vst [vmem:[%s9532_s25 + $0x18] sm:$0xff] %v7189_v16  ;;  %v7190_v11 = vsel %vm6966_vm5, %v8922_v42, %v10604_v59  ;;  %8943 = vpow2.f32 %v8179_v35  ;;  %v6909_v59 = vadd.s32 1536, %v10947_v33  ;;  %v6912_v10 = vadd.s32 1920, %v10947_v33 }
 0x83a   : > { %v8926_v2 = vpop.eup %8925  ;;  %7222 = vst [vmem:[%s9532_s25 + $0x20] sm:$0xff] %v7190_v11  ;;  %v7101_v53 = vadd.f32 1.0, %v8924_v50  ;;  %8945 = vpow2.f32 %v8180_v39  ;;  %v6941_v55 = vadd.s32 %v10955_v43, %v6908_v17  ;;  %v6914_v16 = vadd.s32 2176, %v10947_v33 }
 0x83b   : > { %v8928_v4 = vpop.eup %8927  ;;  %v7191_v61 = vsel %vm6967_vm6, %v8926_v2, %v10610_v1  ;;  %8947 = vpow2.f32 %v8181_v48  ;;  %v8185_v1 = vmul.f32 -1.442695, %v10840_v24  ;;  %v6942_v29 = vadd.s32 %v10955_v43, %v6909_v59 }
 0x83c   : > { %v8930_v44 = vpop.eup %8929  ;;  %7223 = vst [vmem:[%s9532_s25 + $0x28] sm:$0xff] %v7191_v61  ;;  %8949 = vrcp.f32 %v7101_v53  ;;  %v7102_v6 = vadd.f32 1.0, %v8928_v4  ;;  %vm6973_vm12 = vcmp.ge.s32.totalorder %v6941_v55, 7236  ;;  %v6944_v11 = vadd.s32 %v10955_v43, %v6911_v38 }
 0x83d   : > { %v8932_v37 = vpop.eup %8931  ;;  %v7192_v0 = vsel %vm6968_vm7, %v8930_v44, %v10606_v60  ;;  %8951 = vpow2.f32 %v8182_v25  ;;  %vm6974_vm13 = vcmp.ge.s32.totalorder %v6942_v29, 7236  ;;  %v8188_v2 = vmul.f32 -1.442695, %v10854_v46 }
 0x83e   : > { %v8934_v31 = vpop.eup %8933  ;;  %7224 = vst [vmem:[%s9532_s25 + $0x30] sm:$0xff] %v7192_v0  ;;  %v7193_v9 = vsel %vm6969_vm8, %v8932_v37, %v10612_v5  ;;  %8953 = vrcp.f32 %v7102_v6  ;;  %v6945_v17 = vadd.s32 %v10955_v43, %v6912_v10  ;;  %v8189_v44 = vmul.f32 -1.442695, %v10858_v52 }
 0x83f   : > { %v8936_v21 = vpop.eup %8935  ;;  %7225 = vst [vmem:[%s9532_s25 + $0x38] sm:$0xff] %v7193_v9  ;;  %v7194_v60 = vsel %vm6970_vm9, %v8934_v31, %v10691_v8  ;;  %8955 = vpow2.f32 %v8183_v26  ;;  %v11049_v26 = vadd.s32 %v10955_v43, %v6914_v16  ;;  %v6916_v31 = vadd.s32 2432, %v10947_v33 }
 0x840   : > { %v8938_v35 = vpop.eup %8937  ;;  %7226 = vst [vmem:[%s9532_s25 + $0x40] sm:$0xff] %v7194_v60  ;;  %v7195_v5 = vsel %vm6971_vm10, %v8936_v21, %v10697_v18  ;;  %8957 = vpow2.f32 %v8184_v49  ;;  %v6913_v18 = vadd.s32 2048, %v10947_v33  ;;  %v6915_v49 = vadd.s32 2304, %v10947_v33 }
 0x841   : > { %v8940_v32 = vpop.eup %8939  ;;  %7227 = vst [vmem:[%s9532_s25 + $0x48] sm:$0xff] %v7195_v5  ;;  %v7196_v8 = vsel %vm6972_vm11, %v8938_v35, %v10695_v15  ;;  %8959 = vpow2.f32 %v8185_v1  ;;  %v6943_v15 = vadd.s32 %v10955_v43, %v6910_v34  ;;  %vm6976_vm15 = vcmp.ge.s32.totalorder %v6944_v11, 7236 }
 0x842   : > { %v8942_v39 = vpop.eup %8941  ;;  %7228 = vst [vmem:[%s9532_s25 + $0x50] sm:$0xff] %v7196_v8  ;;  %v7103_v41 = vadd.f32 1.0, %v8940_v32  ;;  %8961 = vpow2.f32 %v8186_v12  ;;  %v11044_v53 = vadd.s32 %v10955_v43, %v6913_v18  ;;  %vm6977_vm0 = vcmp.ge.s32.totalorder %v6945_v17, 7236 }
 0x843   : > { %v8944_v48 = vpop.eup %8943  ;;  %v7104_v42 = vadd.f32 1.0, %v8942_v39  ;;  %8963 = vpow2.f32 %v8187_v28  ;;  %vm6975_vm14 = vcmp.ge.s32.totalorder %v6943_v15, 7236  ;;  %vm6979_vm2 = vcmp.ge.s32.totalorder %v11049_v26, 7236 }
 0x844   : > { %v8946_v19 = vpop.eup %8945  ;;  %8965 = vrcp.f32 %v7103_v41  ;;  %v7105_v45 = vadd.f32 1.0, %v8944_v48  ;;  %vm6978_vm1 = vcmp.ge.s32.totalorder %v11044_v53, 7236  ;;  %v6917_v55 = vadd.s32 2560, %v10947_v33 }
 0x845   : > { %v8948_v50 = vpop.eup %8947  ;;  %8967 = vrcp.f32 %v7104_v42  ;;  %v7106_v25 = vadd.f32 1.0, %v8946_v19  ;;  %v6949_v5 = vadd.s32 %v10955_v43, %v6916_v31  ;;  %v8190_v28 = vmul.f32 -1.442695, %v10856_v51 }
 0x846   : > { %v8950_v30 = vpop.eup %8949  ;;  %8969 = vrcp.f32 %v7105_v45  ;;  %v7107_v4 = vadd.f32 1.0, %v8948_v50  ;;  %v6918_v8 = vadd.s32 2688, %v10947_v33  ;;  %v8191_v39 = vmul.f32 -1.442695, %v10860_v56 }
 0x847   : > { %v8952_v61 = vpop.eup %8951  ;;  %v7197_v59 = vsel %vm6973_vm12, %v8950_v30, %v10699_v22  ;;  %8971 = vrcp.f32 %v7106_v25  ;;  %v6919_v18 = vadd.s32 2816, %v10947_v33  ;;  %v8192_v48 = vmul.f32 -1.442695, %v10866_v7 }
 0x848   : > { %v8954_v6 = vpop.eup %8953  ;;  %7229 = vst [vmem:[%s9532_s25 + $0x58] sm:$0xff] %v7197_v59  ;;  %8973 = vrcp.f32 %v7107_v4  ;;  %v7108_v37 = vadd.f32 1.0, %v8952_v61  ;;  %v6920_v19 = vadd.s32 2944, %v10947_v33  ;;  %v8193_v45 = vmul.f32 -1.442695, %v10870_v14 }
 0x849   : > { %v8956_v0 = vpop.eup %8955  ;;  %v7198_v1 = vsel %vm6974_vm13, %v8954_v6, %v10775_v40  ;;  %8975 = vpow2.f32 %v8188_v2  ;;  %v6948_v40 = vadd.s32 %v10955_v43, %v6915_v49  ;;  %v6950_v15 = vadd.s32 %v10955_v43, %v6917_v55 }
 0x84a   : > { %v8958_v22 = vpop.eup %8957  ;;  %7230 = vst [vmem:[%s9532_s25 + $0x60] sm:$0xff] %v7198_v1  ;;  %8977 = vrcp.f32 %v7108_v37  ;;  %v7109_v9 = vadd.f32 1.0, %v8956_v0  ;;  %v8194_v25 = vmul.f32 -1.442695, %v10868_v13  ;;  %v6951_v11 = vadd.s32 %v10955_v43, %v6918_v8 }
 0x84b   : > { %v8960_v12 = vpop.eup %8959  ;;  %v7110_v21 = vadd.f32 1.0, %v8958_v22  ;;  %8979 = vpow2.f32 %v8189_v44  ;;  %vm6980_vm3 = vcmp.ge.s32.totalorder %v6948_v40, 7236  ;;  %v6952_v17 = vadd.s32 %v10955_v43, %v6919_v18 }
 0x84c   : > { %v8962_v60 = vpop.eup %8961  ;;  %8981 = vrcp.f32 %v7109_v9  ;;  %v7111_v29 = vadd.f32 1.0, %v8960_v12  ;;  %v8195_v4 = vmul.f32 -1.442695, %v10872_v23  ;;  %vm6981_vm4 = vcmp.ge.s32.totalorder %v6949_v5, 7236 }
 0x84d   : > { %v8964_v35 = vpop.eup %8963  ;;  %8983 = vrcp.f32 %v7110_v21  ;;  %v7112_v34 = vadd.f32 1.0, %v8962_v60  ;;  %vm6982_vm5 = vcmp.ge.s32.totalorder %v6950_v15, 7236  ;;  %vm6983_vm6 = vcmp.ge.s32.totalorder %v6951_v11, 7236 }
 0x84e   : > { %v8966_v32 = vpop.eup %8965  ;;  %8985 = vrcp.f32 %v7111_v29  ;;  %v7113_v38 = vadd.f32 1.0, %v8964_v35  ;;  %v6921_v26 = vadd.s32 3072, %v10947_v33  ;;  %vm6984_vm7 = vcmp.ge.s32.totalorder %v6952_v17, 7236 }
 0x84f   : > { %v8968_v41 = vpop.eup %8967  ;;  %v7199_v10 = vsel %vm6975_vm14, %v8966_v32, %v10781_v3  ;;  %8987 = vrcp.f32 %v7112_v34  ;;  %v6922_v1 = vadd.s32 3200, %v10947_v33  ;;  %v6925_v8 = vadd.s32 3584, %v10947_v33 }
 0x850   : > { %v8970_v42 = vpop.eup %8969  ;;  %7231 = vst [vmem:[%s9532_s25 + $0x68] sm:$0xff] %v7199_v10  ;;  %v7200_v16 = vsel %vm6976_vm15, %v8968_v41, %v10779_v47  ;;  %8989 = vrcp.f32 %v7113_v38  ;;  %v6954_v12 = vadd.s32 %v10955_v43, %v6921_v26  ;;  %v6926_v10 = vadd.s32 3712, %v10947_v33 }
 0x851   : > { %v8972_v50 = vpop.eup %8971  ;;  %7232 = vst [vmem:[%s9532_s25 + $0x70] sm:$0xff] %v7200_v16  ;;  %v7201_v3 = vsel %vm6977_vm0, %v8970_v42, %v10783_v36  ;;  %8991 = vpow2.f32 %v8190_v28  ;;  %v6955_v40 = vadd.s32 %v10955_v43, %v6922_v1  ;;  %v6924_v28 = vadd.s32 3456, %v10947_v33 }
 0x852   : > { %v8974_v2 = vpop.eup %8973  ;;  %7233 = vst [vmem:[%s9532_s25 + $0x78] sm:$0xff] %v7201_v3  ;;  %v7202_v47 = vsel %vm6978_vm1, %v8972_v50, %v10824_v54  ;;  %8993 = vpow2.f32 %v8191_v39  ;;  %v6953_v54 = vadd.s32 %v10955_v43, %v6920_v19  ;;  %vm6986_vm9 = vcmp.ge.s32.totalorder %v6954_v12, 7236 }
 0x853   : > { %v8976_v30 = vpop.eup %8975  ;;  %7234 = vst [vmem:[%s9532_s25 + $0x80] sm:$0xff] %v7202_v47  ;;  %v7203_v36 = vsel %vm6979_vm2, %v8974_v2, %v10828_v58  ;;  %8995 = vpow2.f32 %v8192_v48  ;;  %vm6987_vm10 = vcmp.ge.s32.totalorder %v6955_v40, 7236  ;;  %v6927_v42 = vadd.s32 3840, %v10947_v33 }
 0x854   : > { %v8978_v61 = vpop.eup %8977  ;;  %7235 = vst [vmem:[%s9532_s25 + $0x88] sm:$0xff] %v7203_v36  ;;  %v7114_v53 = vadd.f32 1.0, %v8976_v30  ;;  %8997 = vpow2.f32 %v8193_v45  ;;  %vm6985_vm8 = vcmp.ge.s32.totalorder %v6953_v54, 7236  ;;  %v6957_v45 = vadd.s32 %v10955_v43, %v6924_v28 }
 0x855   : > { %v8980_v59 = vpop.eup %8979  ;;  %v7204_v44 = vsel %vm6980_vm3, %v8978_v61, %v10826_v57  ;;  %8999 = vpow2.f32 %v8194_v25  ;;  %v6958_v50 = vadd.s32 %v10955_v43, %v6925_v8  ;;  %v6959_v3 = vadd.s32 %v10955_v43, %v6926_v10 }
 0x856   : > { %v8982_v58 = vpop.eup %8981  ;;  %7236 = vst [vmem:[%s9532_s25 + $0x90] sm:$0xff] %v7204_v44  ;;  %9001 = vrcp.f32 %v7114_v53  ;;  %v7115_v6 = vadd.f32 1.0, %v8980_v59  ;;  %v6960_v15 = vadd.s32 %v10955_v43, %v6927_v42  ;;  %vm6989_vm12 = vcmp.ge.s32.totalorder %v6957_v45, 7236 }
 0x857   : > { %v8984_v49 = vpop.eup %8983  ;;  %v7205_v37 = vsel %vm6981_vm4, %v8982_v58, %v10830_v63  ;;  %9003 = vpow2.f32 %v8195_v4  ;;  %vm6990_vm13 = vcmp.ge.s32.totalorder %v6958_v50, 7236  ;;  %vm6991_vm14 = vcmp.ge.s32.totalorder %v6959_v3, 7236 }
 0x858   : > { %v8986_v0 = vpop.eup %8985  ;;  %7237 = vst [vmem:[%s9532_s25 + $0x98] sm:$0xff] %v7205_v37  ;;  %v7206_v57 = vsel %vm6982_vm5, %v8984_v49, %v10836_v20  ;;  %9005 = vrcp.f32 %v7115_v6  ;;  %vm6992_vm15 = vcmp.ge.s32.totalorder %v6960_v15, 7236 }
 0x859   : > { %v8988_v31 = vpop.eup %8987  ;;  %7238 = vst [vmem:[%s9532_s25 + $0xa0] sm:$0xff] %v7206_v57  ;;  %v7207_v22 = vsel %vm6983_vm6, %v8986_v0, %v10840_v24  ;;  %v6923_v24 = vadd.s32 3328, %v10947_v33 }
 0x85a   : > { %v8990_v9 = vpop.eup %8989  ;;  %7239 = vst [vmem:[%s9532_s25 + $0xa8] sm:$0xff] %v7207_v22  ;;  %v7208_v63 = vsel %vm6984_vm7, %v8988_v31, %v10838_v62 }
 0x85b   : > { %v8992_v21 = vpop.eup %8991  ;;  %7240 = vst [vmem:[%s9532_s25 + $0xb0] sm:$0xff] %v7208_v63  ;;  %v7209_v60 = vsel %vm6985_vm8, %v8990_v9, %v10842_v27  ;;  %v6956_v48 = vadd.s32 %v10955_v43, %v6923_v24 }
 0x85c   : > { %v8994_v20 = vpop.eup %8993  ;;  %7241 = vst [vmem:[%s9532_s25 + $0xb8] sm:$0xff] %v7209_v60  ;;  %v7116_v55 = vadd.f32 1.0, %v8992_v21 }
 0x85d   : > { %v8996_v29 = vpop.eup %8995  ;;  %v7117_v35 = vadd.f32 1.0, %v8994_v20  ;;  %vm6988_vm11 = vcmp.ge.s32.totalorder %v6956_v48, 7236 }
 0x85e   : > { %v8998_v5 = vpop.eup %8997  ;;  %9007 = vrcp.f32 %v7116_v55  ;;  %v7118_v62 = vadd.f32 1.0, %v8996_v29 }
 0x85f   : > { %v9000_v34 = vpop.eup %8999  ;;  %9009 = vrcp.f32 %v7117_v35  ;;  %v7119_v32 = vadd.f32 1.0, %v8998_v5 }
 0x860   : > { %v9002_v27 = vpop.eup %9001  ;;  %9011 = vrcp.f32 %v7118_v62  ;;  %v7120_v38 = vadd.f32 1.0, %v9000_v34 }
 0x861   : > { %v9004_v39 = vpop.eup %9003  ;;  %v7210_v41 = vsel %vm6986_vm9, %v9002_v27, %v10854_v46  ;;  %9013 = vrcp.f32 %v7119_v32  ;;  %v6928_v46 = vadd.s32 3968, %v10947_v33 }
 0x862   : > { %v9006_v18 = vpop.eup %9005  ;;  %7242 = vst [vmem:[%s9532_s25 + $0xc0] sm:$0xff] %v7210_v41  ;;  %9015 = vrcp.f32 %v7120_v38  ;;  %v7121_v16 = vadd.f32 1.0, %v9004_v39 }
 0x863   : > { %v7211_v19 = vsel %vm6987_vm10, %v9006_v18, %v10858_v52  ;;  %v6961_v52 = vadd.s32 %v10955_v43, %v6928_v46 }
 0x864   : > { %7243 = vst [vmem:[%s9532_s25 + $0xc8] sm:$0xff] %v7211_v19  ;;  %9017 = vrcp.f32 %v7121_v16 }
 0x865   : > { %vm6993_vm0 = vcmp.ge.s32.totalorder %v6961_v52, 7236 }
 0x868   : > { %v9008_v25 = vpop.eup %9007 }
 0x869   : > { %v9010_v2 = vpop.eup %9009  ;;  %v7212_v47 = vsel %vm6988_vm11, %v9008_v25, %v10856_v51 }
 0x86a   : > { %v9012_v33 = vpop.eup %9011  ;;  %7244 = vst [vmem:[%s9532_s25 + $0xd0] sm:$0xff] %v7212_v47  ;;  %v7213_v11 = vsel %vm6989_vm12, %v9010_v2, %v10860_v56 }
 0x86b   : > { %v9014_v30 = vpop.eup %9013  ;;  %7245 = vst [vmem:[%s9532_s25 + $0xd8] sm:$0xff] %v7213_v11  ;;  %v7214_v36 = vsel %vm6990_vm13, %v9012_v33, %v10866_v7 }
 0x86c   : > { %v9016_v17 = vpop.eup %9015  ;;  %7246 = vst [vmem:[%s9532_s25 + $0xe0] sm:$0xff] %v7214_v36  ;;  %v7215_v4 = vsel %vm6991_vm14, %v9014_v30, %v10870_v14 }
 0x86d   : > { %7247 = vst [vmem:[%s9532_s25 + $0xe8] sm:$0xff] %v7215_v4  ;;  %v7216_v51 = vsel %vm6992_vm15, %v9016_v17, %v10868_v13 }
 0x86e   : > { %v9018_v43 = vpop.eup %9017  ;;  %7248 = vst [vmem:[%s9532_s25 + $0xf0] sm:$0xff] %v7216_v51 }
 0x86f   : > { %v7217_v61 = vsel %vm6993_vm0, %v9018_v43, %v10872_v23 }
 0x870   : > { %7249 = vst [vmem:[%s9532_s25 + $0xf8] sm:$0xff] %v7217_v61 }
 0x871 PF: > { %s11195_s9 = sld [smem:[#allocation15_spill]]  ;;  %p18_p2 = scmp.ge.s32.totalorder %s9391_s15, 4  }
 0x872   : > { %s11196_s27 = smov %s9229_s28  ;;  %s11197_s28 = smov %s9233_s29 }
 0x873   : > { %s11199_s30 = smov %s9391_s15  ;;  %20 = sbr.rel (!%p18_p2) target bundleno = 8 (0x8), region = 126 }
 0x877   : > { %s11198_s29 = smov %s11195_s9 }
 0x87a   :  { %7272 = vsyncpa [#allocation3], 1 }
 0x87b   :  { %7274 = vsyncpa [#allocation3 + $0x1], 1 }
 0x87c   :  { %7275 = vsyncpa [#allocation5], 1 }
 0x87d   :  { %7276 = vsyncpa [#allocation8], 1 }

</bundles_post_ra>
